<compile_context>
chip_gen: v7x
topology: tpu7x:2x2x1
jax: 0.10.0
libtpu: 0.0.40
codegen_flags: <defaults>
</compile_context>

<pallas_src>
import functools

import jax
import jax.numpy as jnp
import numpy as np
from jax import lax
from jax.experimental import pallas as pl
from jax.experimental.pallas import tpu as pltpu


# ----------------------------------------------------------------------------
# Fused RRDB kernel (one batch element per grid step)
# ----------------------------------------------------------------------------
def _rrdb_kernel(x_ref, wg_ref, bg_ref, wn_ref, bn_ref, mask_ref, o_ref,
                 big_ref, stage_ref, *, H, W, nf, gc):
    # x_ref    : (1, nf, H*W)            input image, channels x spatial(lane)
    # wg_ref   : (3, 4, gc, 9*Ctot)      packed conv1..conv4 weights per RDB
    # bg_ref   : (3, 4, gc, 1)           their biases
    # wn_ref   : (3, nf, 9*Ctot)         packed conv5 weights per RDB
    # bn_ref   : (3, nf, 1)              their biases
    # mask_ref : (2, H*W) f32            row-boundary masks for dx = -1 / +1
    # o_ref    : (1, nf, H*W)
    # big_ref  : (9*Ctot, H*W) f32       persistent shifted-tap matrix
    # stage_ref: (max(nf,gc), H*W + 2*(W+1)) f32  zero-margined staging slab
    HW = H * W
    ctot = nf + 4 * gc
    margin = W + 1

    # Zero scratch once per grid step: tap rows that only ever multiply
    # zero-padded weight rows must not hold NaN/Inf garbage, and the staging
    # slab's left/right margins provide the conv's zero "same" padding.
    big_ref[...] = jnp.zeros_like(big_ref)
    stage_ref[...] = jnp.zeros_like(stage_ref)

    def write_group(vals, ch_off):
        """Scatter the 9 spatially shifted copies of `vals` ((C, HW) f32) into
        big_ref rows [tap*ctot + ch_off : + C] (tap-major, channel-minor)."""
        C = vals.shape[0]
        stage_ref[0:C, margin:margin + HW] = vals
        for ky in range(3):
            for kx in range(3):
                dy, dx = ky - 1, kx - 1
                s = dy * W + dx
                # shifted[p] = vals[p + s] with zeros outside the image
                sh = stage_ref[0:C, margin + s:margin + s + HW]
                if dx == -1:
                    sh = jnp.where(mask_ref[0:1, :] > 0.5, sh, 0.0)
                elif dx == 1:
                    sh = jnp.where(mask_ref[1:2, :] > 0.5, sh, 0.0)
                row = (ky * 3 + kx) * ctot + ch_off
                big_ref[row:row + C, :] = sh

    def conv(wp, b, apply_lrelu):
        """wp: (Cout, 9*ctot), b: (Cout, 1)  ->  (Cout, HW) f32."""
        y = jnp.dot(wp, big_ref[...], preferred_element_type=jnp.float32)
        y = y + b
        if apply_lrelu:
            y = jnp.where(y >= 0.0, y, 0.2 * y)
        return y

    x0 = x_ref[0].astype(jnp.float32)        # (nf, HW)
    out = x0
    for r in range(3):                       # three dense blocks
        x_cur = out
        write_group(x_cur, 0)                # (re)write base channels
        for l in range(4):                   # conv1..conv4 (+ LeakyReLU)
            y = conv(wg_ref[r, l].astype(jnp.float32),
                     bg_ref[r, l].astype(jnp.float32), True)
            write_group(y, nf + l * gc)
        y5 = conv(wn_ref[r].astype(jnp.float32),
                  bn_ref[r].astype(jnp.float32), False)
        out = y5 * 0.2 + x_cur               # dense-block residual
    out = out * 0.2 + x0                     # RRDB residual
    o_ref[0] = out.astype(o_ref.dtype)


# ----------------------------------------------------------------------------
# Wrapper: NCHW in / NCHW out, weight packing done once in plain JAX
# ----------------------------------------------------------------------------
def _pack_weight(w_hwio, ctot):
    """(3,3,cin,cout) HWIO  ->  (cout, 9*ctot); column = (ky*3+kx)*ctot + c,
    with channel rows c >= cin zero-padded."""
    kh, kw, cin, cout = w_hwio.shape
    w = jnp.transpose(w_hwio, (3, 0, 1, 2))                  # (cout, 3, 3, cin)
    w = jnp.pad(w, ((0, 0), (0, 0), (0, 0), (0, ctot - cin)))
    return w.reshape(cout, kh * kw * ctot)


def rrdb_forward_nchw(x_nchw, params):
    N, nf, H, W = x_nchw.shape
    gc = params[0][0][0].shape[-1]
    ctot = nf + 4 * gc
    HW = H * W
    K = 9 * ctot

    # Pack / stack all 15 conv weights + biases.
    Wg = jnp.stack([jnp.stack([_pack_weight(params[r][l][0], ctot)
                               for l in range(4)]) for r in range(3)])
    Bg = jnp.stack([jnp.stack([params[r][l][1] for l in range(4)])
                    for r in range(3)])[..., None]
    Wn = jnp.stack([_pack_weight(params[r][4][0], ctot) for r in range(3)])
    Bn = jnp.stack([params[r][4][1] for r in range(3)])[..., None]

    # Row-boundary masks for horizontal taps (dx = -1 / +1).
    xcol = jnp.arange(HW, dtype=jnp.int32) % W
    masks = jnp.stack([(xcol >= 1), (xcol <= W - 2)]).astype(jnp.float32)

    x2 = x_nchw.reshape(N, nf, HW)           # free reshape, stays NCHW order

    kernel = functools.partial(_rrdb_kernel, H=H, W=W, nf=nf, gc=gc)
    out = pl.pallas_call(
        kernel,
        out_shape=jax.ShapeDtypeStruct((N, nf, HW), x_nchw.dtype),
        grid_spec=pltpu.PrefetchScalarGridSpec(
            num_scalar_prefetch=0,
            grid=(N,),
            in_specs=[
                pl.BlockSpec((1, nf, HW), lambda n: (n, 0, 0)),
                pl.BlockSpec((3, 4, gc, K), lambda n: (0, 0, 0, 0)),
                pl.BlockSpec((3, 4, gc, 1), lambda n: (0, 0, 0, 0)),
                pl.BlockSpec((3, nf, K), lambda n: (0, 0, 0)),
                pl.BlockSpec((3, nf, 1), lambda n: (0, 0, 0)),
                pl.BlockSpec((2, HW), lambda n: (0, 0)),
            ],
            out_specs=pl.BlockSpec((1, nf, HW), lambda n: (n, 0, 0)),
            scratch_shapes=[
                pltpu.VMEM((K, HW), jnp.float32),
                pltpu.VMEM((max(nf, gc), HW + 2 * (W + 1)), jnp.float32),
            ],
        ),
        compiler_params=pltpu.CompilerParams(
            dimension_semantics=("parallel",)),
    )(x2, Wg, Bg, Wn, Bn, masks)
    return out.reshape(N, nf, H, W)


# ----------------------------------------------------------------------------
# Parameter construction (deterministic, synthetic)
# ----------------------------------------------------------------------------
def _init_conv(key, cin, cout):
    kw, kb = jax.random.split(key)
    w = jax.random.normal(kw, (3, 3, cin, cout), jnp.float32) * 0.05
    b = jax.random.normal(kb, (cout,), jnp.float32) * 0.05
    return w, b


def init_rdb_params(key, nf, gc):
    keys = jax.random.split(key, 5)
    cins = [nf, nf + gc, nf + 2 * gc, nf + 3 * gc, nf + 4 * gc]
    couts = [gc, gc, gc, gc, nf]
    return [_init_conv(k, ci, co) for k, ci, co in zip(keys, cins, couts)]


def init_rrdb_params(key, nf, gc):
    k1, k2, k3 = jax.random.split(key, 3)
    return [init_rdb_params(k1, nf, gc),
            init_rdb_params(k2, nf, gc),
            init_rdb_params(k3, nf, gc)]


# ----------------------------------------------------------------------------
# Pure-JAX reference (for numerical verification of the fused kernel)
# ----------------------------------------------------------------------------
def _conv3x3_ref(x, w, b, apply_lrelu):
    y = lax.conv_general_dilated(
        x, w, window_strides=(1, 1), padding="SAME",
        dimension_numbers=("NCHW", "HWIO", "NCHW"))
    y = y + b[None, :, None, None]
    if apply_lrelu:
        y = jnp.where(y >= 0.0, y, 0.2 * y)
    return y


def _rdb_ref(x, params):
    (w1, b1), (w2, b2), (w3, b3), (w4, b4), (w5, b5) = params
    x1 = _conv3x3_ref(x, w1, b1, True)
    x2 = _conv3x3_ref(jnp.concatenate([x, x1], 1), w2, b2, True)
    x3 = _conv3x3_ref(jnp.concatenate([x, x1, x2], 1), w3, b3, True)
    x4 = _conv3x3_ref(jnp.concatenate([x, x1, x2, x3], 1), w4, b4, True)
    x5 = _conv3x3_ref(jnp.concatenate([x, x1, x2, x3, x4], 1), w5, b5, False)
    return x5 * 0.2 + x


def rrdb_ref_nchw(x, params):
    out = _rdb_ref(x, params[0])
    out = _rdb_ref(out, params[1])
    out = _rdb_ref(out, params[2])
    return out * 0.2 + x


# ----------------------------------------------------------------------------
if __name__ == "__main__":
    nf, gc = 8, 4
    N, H, W = 2, 16, 16

    key = jax.random.PRNGKey(0)
    kx, kp = jax.random.split(key)
    x = jax.random.normal(kx, (N, nf, H, W), jnp.float32)   # NCHW like PyTorch
    params = init_rrdb_params(kp, nf, gc)

    out = jax.jit(rrdb_forward_nchw)(x, params)
    out = jax.block_until_ready(out)

    ref = jax.block_until_ready(rrdb_ref_nchw(x, params))
    assert out.shape == (N, nf, H, W)
    np.testing.assert_allclose(np.asarray(out), np.asarray(ref),
                               rtol=1e-4, atol=1e-4)

    print("KERNEL_OK")
</pallas_src>

<mosaic_0001>
module attributes {stable_mosaic.version = 11 : i64} {
  func.func @_rrdb_kernel(%arg0: i32, %arg1: memref<1x8x256xf32, #tpu.memory_space<vmem>>, %arg2: memref<3x4x4x216xf32, #tpu.memory_space<vmem>>, %arg3: memref<3x4x4x1xf32, #tpu.memory_space<vmem>>, %arg4: memref<3x8x216xf32, #tpu.memory_space<vmem>>, %arg5: memref<3x8x1xf32, #tpu.memory_space<vmem>>, %arg6: memref<2x256xf32, #tpu.memory_space<vmem>>, %arg7: memref<1x8x256xf32, #tpu.memory_space<vmem>>, %arg8: memref<216x256xf32, #tpu.memory_space<vmem>>, %arg9: memref<8x290xf32, #tpu.memory_space<vmem>>) attributes {dimension_semantics = [#tpu.dimension_semantics<parallel>], iteration_bounds = array<i64: 2>, scalar_prefetch = 0 : i64, scratch_operands = 2 : i64, tpu.core_type = #tpu.core_type<tc>, window_params = [{transform_indices = @transform_0, window_bounds = array<i64: 1, 8, 256>}, {pipeline_mode = #tpu.pipeline_mode<synchronous>, transform_indices = @transform_1, window_bounds = array<i64: 3, 4, 4, 216>}, {pipeline_mode = #tpu.pipeline_mode<synchronous>, transform_indices = @transform_2, window_bounds = array<i64: 3, 4, 4, 1>}, {pipeline_mode = #tpu.pipeline_mode<synchronous>, transform_indices = @transform_3, window_bounds = array<i64: 3, 8, 216>}, {pipeline_mode = #tpu.pipeline_mode<synchronous>, transform_indices = @transform_4, window_bounds = array<i64: 3, 8, 1>}, {pipeline_mode = #tpu.pipeline_mode<synchronous>, transform_indices = @transform_5, window_bounds = array<i64: 2, 256>}, {transform_indices = @transform_6, window_bounds = array<i64: 1, 8, 256>}]} {
    %cst = arith.constant 0.000000e+00 : f32
    %0 = vector.broadcast %cst : f32 to vector<216x256xf32>
    %c0 = arith.constant 0 : index
    %c0_0 = arith.constant 0 : index
    %1 = vector.load %arg8[%c0, %c0_0] : memref<216x256xf32, #tpu.memory_space<vmem>>, vector<216x256xf32>
    tpu.vector_store %arg8[%c0, %c0_0], %0 {strides = array<i32>} : memref<216x256xf32, #tpu.memory_space<vmem>>, vector<216x256xf32>,
    %cst_1 = arith.constant 0.000000e+00 : f32
    %2 = vector.broadcast %cst_1 : f32 to vector<8x290xf32>
    %c0_2 = arith.constant 0 : index
    %c0_3 = arith.constant 0 : index
    %3 = vector.load %arg9[%c0_2, %c0_3] : memref<8x290xf32, #tpu.memory_space<vmem>>, vector<8x290xf32>
    tpu.vector_store %arg9[%c0_2, %c0_3], %2 {strides = array<i32>} : memref<8x290xf32, #tpu.memory_space<vmem>>, vector<8x290xf32>,
    %c0_4 = arith.constant 0 : index
    %c0_5 = arith.constant 0 : index
    %c0_6 = arith.constant 0 : index
    %4 = vector.load %arg1[%c0_4, %c0_5, %c0_6] : memref<1x8x256xf32, #tpu.memory_space<vmem>>, vector<1x8x256xf32>
    %5 = vector.shape_cast %4 : vector<1x8x256xf32> to vector<8x256xf32>
    %c0_7 = arith.constant 0 : index
    %c17 = arith.constant 17 : index
    %6 = vector.load %arg9[%c0_7, %c17] : memref<8x290xf32, #tpu.memory_space<vmem>>, vector<8x256xf32>
    tpu.vector_store %arg9[%c0_7, %c17], %5 {strides = array<i32>} : memref<8x290xf32, #tpu.memory_space<vmem>>, vector<8x256xf32>,
    %c0_8 = arith.constant 0 : index
    %c0_9 = arith.constant 0 : index
    %7 = vector.load %arg9[%c0_8, %c0_9] : memref<8x290xf32, #tpu.memory_space<vmem>>, vector<8x256xf32>
    %c0_10 = arith.constant 0 : index
    %c0_11 = arith.constant 0 : index
    %8 = vector.load %arg6[%c0_10, %c0_11] : memref<2x256xf32, #tpu.memory_space<vmem>>, vector<1x256xf32>
    %cst_12 = arith.constant 5.000000e-01 : f32
    %9 = vector.broadcast %cst_12 : f32 to vector<1x256xf32>
    %10 = arith.cmpf ogt, %8, %9 : vector<1x256xf32>
    %cst_13 = arith.constant 0.000000e+00 : f32
    %11 = vector.shape_cast %10 : vector<1x256xi1> to vector<1x256xi1>
    %12 = vector.broadcast %11 : vector<1x256xi1> to vector<8x256xi1>
    %13 = vector.broadcast %cst_13 : f32 to vector<8x256xf32>
    %14 = arith.select %12, %7, %13 : vector<8x256xi1>, vector<8x256xf32>
    %c0_14 = arith.constant 0 : index
    %c0_15 = arith.constant 0 : index
    %15 = vector.load %arg8[%c0_14, %c0_15] : memref<216x256xf32, #tpu.memory_space<vmem>>, vector<8x256xf32>
    tpu.vector_store %arg8[%c0_14, %c0_15], %14 {strides = array<i32>} : memref<216x256xf32, #tpu.memory_space<vmem>>, vector<8x256xf32>,
    %c0_16 = arith.constant 0 : index
    %c1 = arith.constant 1 : index
    %16 = vector.load %arg9[%c0_16, %c1] : memref<8x290xf32, #tpu.memory_space<vmem>>, vector<8x256xf32>
    %c24 = arith.constant 24 : index
    %c0_17 = arith.constant 0 : index
    %17 = vector.load %arg8[%c24, %c0_17] : memref<216x256xf32, #tpu.memory_space<vmem>>, vector<8x256xf32>
    tpu.vector_store %arg8[%c24, %c0_17], %16 {strides = array<i32>} : memref<216x256xf32, #tpu.memory_space<vmem>>, vector<8x256xf32>,
    %c0_18 = arith.constant 0 : index
    %c2 = arith.constant 2 : index
    %18 = vector.load %arg9[%c0_18, %c2] : memref<8x290xf32, #tpu.memory_space<vmem>>, vector<8x256xf32>
    %c1_19 = arith.constant 1 : index
    %c0_20 = arith.constant 0 : index
    %19 = vector.load %arg6[%c1_19, %c0_20] : memref<2x256xf32, #tpu.memory_space<vmem>>, vector<1x256xf32>
    %cst_21 = arith.constant 5.000000e-01 : f32
    %20 = vector.broadcast %cst_21 : f32 to vector<1x256xf32>
    %21 = arith.cmpf ogt, %19, %20 : vector<1x256xf32>
    %cst_22 = arith.constant 0.000000e+00 : f32
    %22 = vector.shape_cast %21 : vector<1x256xi1> to vector<1x256xi1>
    %23 = vector.broadcast %22 : vector<1x256xi1> to vector<8x256xi1>
    %24 = vector.broadcast %cst_22 : f32 to vector<8x256xf32>
    %25 = arith.select %23, %18, %24 : vector<8x256xi1>, vector<8x256xf32>
    %c48 = arith.constant 48 : index
    %c0_23 = arith.constant 0 : index
    %26 = vector.load %arg8[%c48, %c0_23] : memref<216x256xf32, #tpu.memory_space<vmem>>, vector<8x256xf32>
    tpu.vector_store %arg8[%c48, %c0_23], %25 {strides = array<i32>} : memref<216x256xf32, #tpu.memory_space<vmem>>, vector<8x256xf32>,
    %c0_24 = arith.constant 0 : index
    %c16 = arith.constant 16 : index
    %27 = vector.load %arg9[%c0_24, %c16] : memref<8x290xf32, #tpu.memory_space<vmem>>, vector<8x256xf32>
    %c0_25 = arith.constant 0 : index
    %c0_26 = arith.constant 0 : index
    %28 = vector.load %arg6[%c0_25, %c0_26] : memref<2x256xf32, #tpu.memory_space<vmem>>, vector<1x256xf32>
    %cst_27 = arith.constant 5.000000e-01 : f32
    %29 = vector.broadcast %cst_27 : f32 to vector<1x256xf32>
    %30 = arith.cmpf ogt, %28, %29 : vector<1x256xf32>
    %cst_28 = arith.constant 0.000000e+00 : f32
    %31 = vector.shape_cast %30 : vector<1x256xi1> to vector<1x256xi1>
    %32 = vector.broadcast %31 : vector<1x256xi1> to vector<8x256xi1>
    %33 = vector.broadcast %cst_28 : f32 to vector<8x256xf32>
    %34 = arith.select %32, %27, %33 : vector<8x256xi1>, vector<8x256xf32>
    %c72 = arith.constant 72 : index
    %c0_29 = arith.constant 0 : index
    %35 = vector.load %arg8[%c72, %c0_29] : memref<216x256xf32, #tpu.memory_space<vmem>>, vector<8x256xf32>
    tpu.vector_store %arg8[%c72, %c0_29], %34 {strides = array<i32>} : memref<216x256xf32, #tpu.memory_space<vmem>>, vector<8x256xf32>,
    %c0_30 = arith.constant 0 : index
    %c17_31 = arith.constant 17 : index
    %36 = vector.load %arg9[%c0_30, %c17_31] : memref<8x290xf32, #tpu.memory_space<vmem>>, vector<8x256xf32>
    %c96 = arith.constant 96 : index
    %c0_32 = arith.constant 0 : index
    %37 = vector.load %arg8[%c96, %c0_32] : memref<216x256xf32, #tpu.memory_space<vmem>>, vector<8x256xf32>
    tpu.vector_store %arg8[%c96, %c0_32], %36 {strides = array<i32>} : memref<216x256xf32, #tpu.memory_space<vmem>>, vector<8x256xf32>,
    %c0_33 = arith.constant 0 : index
    %c18 = arith.constant 18 : index
    %38 = vector.load %arg9[%c0_33, %c18] : memref<8x290xf32, #tpu.memory_space<vmem>>, vector<8x256xf32>
    %c1_34 = arith.constant 1 : index
    %c0_35 = arith.constant 0 : index
    %39 = vector.load %arg6[%c1_34, %c0_35] : memref<2x256xf32, #tpu.memory_space<vmem>>, vector<1x256xf32>
    %cst_36 = arith.constant 5.000000e-01 : f32
    %40 = vector.broadcast %cst_36 : f32 to vector<1x256xf32>
    %41 = arith.cmpf ogt, %39, %40 : vector<1x256xf32>
    %cst_37 = arith.constant 0.000000e+00 : f32
    %42 = vector.shape_cast %41 : vector<1x256xi1> to vector<1x256xi1>
    %43 = vector.broadcast %42 : vector<1x256xi1> to vector<8x256xi1>
    %44 = vector.broadcast %cst_37 : f32 to vector<8x256xf32>
    %45 = arith.select %43, %38, %44 : vector<8x256xi1>, vector<8x256xf32>
    %c120 = arith.constant 120 : index
    %c0_38 = arith.constant 0 : index
    %46 = vector.load %arg8[%c120, %c0_38] : memref<216x256xf32, #tpu.memory_space<vmem>>, vector<8x256xf32>
    tpu.vector_store %arg8[%c120, %c0_38], %45 {strides = array<i32>} : memref<216x256xf32, #tpu.memory_space<vmem>>, vector<8x256xf32>,
    %c0_39 = arith.constant 0 : index
    %c32 = arith.constant 32 : index
    %47 = vector.load %arg9[%c0_39, %c32] : memref<8x290xf32, #tpu.memory_space<vmem>>, vector<8x256xf32>
    %c0_40 = arith.constant 0 : index
    %c0_41 = arith.constant 0 : index
    %48 = vector.load %arg6[%c0_40, %c0_41] : memref<2x256xf32, #tpu.memory_space<vmem>>, vector<1x256xf32>
    %cst_42 = arith.constant 5.000000e-01 : f32
    %49 = vector.broadcast %cst_42 : f32 to vector<1x256xf32>
    %50 = arith.cmpf ogt, %48, %49 : vector<1x256xf32>
    %cst_43 = arith.constant 0.000000e+00 : f32
    %51 = vector.shape_cast %50 : vector<1x256xi1> to vector<1x256xi1>
    %52 = vector.broadcast %51 : vector<1x256xi1> to vector<8x256xi1>
    %53 = vector.broadcast %cst_43 : f32 to vector<8x256xf32>
    %54 = arith.select %52, %47, %53 : vector<8x256xi1>, vector<8x256xf32>
    %c144 = arith.constant 144 : index
    %c0_44 = arith.constant 0 : index
    %55 = vector.load %arg8[%c144, %c0_44] : memref<216x256xf32, #tpu.memory_space<vmem>>, vector<8x256xf32>
    tpu.vector_store %arg8[%c144, %c0_44], %54 {strides = array<i32>} : memref<216x256xf32, #tpu.memory_space<vmem>>, vector<8x256xf32>,
    %c0_45 = arith.constant 0 : index
    %c33 = arith.constant 33 : index
    %56 = vector.load %arg9[%c0_45, %c33] : memref<8x290xf32, #tpu.memory_space<vmem>>, vector<8x256xf32>
    %c168 = arith.constant 168 : index
    %c0_46 = arith.constant 0 : index
    %57 = vector.load %arg8[%c168, %c0_46] : memref<216x256xf32, #tpu.memory_space<vmem>>, vector<8x256xf32>
    tpu.vector_store %arg8[%c168, %c0_46], %56 {strides = array<i32>} : memref<216x256xf32, #tpu.memory_space<vmem>>, vector<8x256xf32>,
    %c0_47 = arith.constant 0 : index
    %c34 = arith.constant 34 : index
    %58 = vector.load %arg9[%c0_47, %c34] : memref<8x290xf32, #tpu.memory_space<vmem>>, vector<8x256xf32>
    %c1_48 = arith.constant 1 : index
    %c0_49 = arith.constant 0 : index
    %59 = vector.load %arg6[%c1_48, %c0_49] : memref<2x256xf32, #tpu.memory_space<vmem>>, vector<1x256xf32>
    %cst_50 = arith.constant 5.000000e-01 : f32
    %60 = vector.broadcast %cst_50 : f32 to vector<1x256xf32>
    %61 = arith.cmpf ogt, %59, %60 : vector<1x256xf32>
    %cst_51 = arith.constant 0.000000e+00 : f32
    %62 = vector.shape_cast %61 : vector<1x256xi1> to vector<1x256xi1>
    %63 = vector.broadcast %62 : vector<1x256xi1> to vector<8x256xi1>
    %64 = vector.broadcast %cst_51 : f32 to vector<8x256xf32>
    %65 = arith.select %63, %58, %64 : vector<8x256xi1>, vector<8x256xf32>
    %c192 = arith.constant 192 : index
    %c0_52 = arith.constant 0 : index
    %66 = vector.load %arg8[%c192, %c0_52] : memref<216x256xf32, #tpu.memory_space<vmem>>, vector<8x256xf32>
    tpu.vector_store %arg8[%c192, %c0_52], %65 {strides = array<i32>} : memref<216x256xf32, #tpu.memory_space<vmem>>, vector<8x256xf32>,
    %c0_53 = arith.constant 0 : index
    %c0_54 = arith.constant 0 : index
    %c0_55 = arith.constant 0 : index
    %c0_56 = arith.constant 0 : index
    %67 = vector.load %arg2[%c0_53, %c0_54, %c0_55, %c0_56] : memref<3x4x4x216xf32, #tpu.memory_space<vmem>>, vector<1x1x4x216xf32>
    %68 = vector.shape_cast %67 : vector<1x1x4x216xf32> to vector<4x216xf32>
    %c0_57 = arith.constant 0 : index
    %c0_58 = arith.constant 0 : index
    %c0_59 = arith.constant 0 : index
    %c0_60 = arith.constant 0 : index
    %69 = vector.load %arg3[%c0_57, %c0_58, %c0_59, %c0_60] : memref<3x4x4x1xf32, #tpu.memory_space<vmem>>, vector<1x1x4x1xf32>
    %70 = vector.shape_cast %69 : vector<1x1x4x1xf32> to vector<4x1xf32>
    %c0_61 = arith.constant 0 : index
    %c0_62 = arith.constant 0 : index
    %71 = vector.load %arg8[%c0_61, %c0_62] : memref<216x256xf32, #tpu.memory_space<vmem>>, vector<216x256xf32>
    %cst_63 = arith.constant dense<0.000000e+00> : vector<4x256xf32>
    %72 = tpu.matmul %68, %71, %cst_63 {dimension_numbers = #tpu.dot_dimension_numbers<[1], [0], [0], [1], [0, 0, 1, 1], [], []>} : vector<4x216xf32>, vector<216x256xf32>, vector<4x256xf32> -> vector<4x256xf32>
    %73 = vector.broadcast %70 : vector<4x1xf32> to vector<4x256xf32>
    %74 = arith.addf %72, %73 : vector<4x256xf32>
    %cst_64 = arith.constant 0.000000e+00 : f32
    %75 = vector.broadcast %cst_64 : f32 to vector<4x256xf32>
    %76 = arith.cmpf oge, %74, %75 : vector<4x256xf32>
    %cst_65 = arith.constant 2.000000e-01 : f32
    %77 = vector.broadcast %cst_65 : f32 to vector<4x256xf32>
    %78 = arith.mulf %77, %74 : vector<4x256xf32>
    %79 = arith.select %76, %74, %78 : vector<4x256xi1>, vector<4x256xf32>
    %c0_66 = arith.constant 0 : index
    %c17_67 = arith.constant 17 : index
    %80 = vector.load %arg9[%c0_66, %c17_67] : memref<8x290xf32, #tpu.memory_space<vmem>>, vector<4x256xf32>
    tpu.vector_store %arg9[%c0_66, %c17_67], %79 {strides = array<i32>} : memref<8x290xf32, #tpu.memory_space<vmem>>, vector<4x256xf32>,
    %c0_68 = arith.constant 0 : index
    %c0_69 = arith.constant 0 : index
    %81 = vector.load %arg9[%c0_68, %c0_69] : memref<8x290xf32, #tpu.memory_space<vmem>>, vector<4x256xf32>
    %c0_70 = arith.constant 0 : index
    %c0_71 = arith.constant 0 : index
    %82 = vector.load %arg6[%c0_70, %c0_71] : memref<2x256xf32, #tpu.memory_space<vmem>>, vector<1x256xf32>
    %cst_72 = arith.constant 5.000000e-01 : f32
    %83 = vector.broadcast %cst_72 : f32 to vector<1x256xf32>
    %84 = arith.cmpf ogt, %82, %83 : vector<1x256xf32>
    %cst_73 = arith.constant 0.000000e+00 : f32
    %85 = vector.shape_cast %84 : vector<1x256xi1> to vector<1x256xi1>
    %86 = vector.broadcast %85 : vector<1x256xi1> to vector<4x256xi1>
    %87 = vector.broadcast %cst_73 : f32 to vector<4x256xf32>
    %88 = arith.select %86, %81, %87 : vector<4x256xi1>, vector<4x256xf32>
    %c8 = arith.constant 8 : index
    %c0_74 = arith.constant 0 : index
    %89 = vector.load %arg8[%c8, %c0_74] : memref<216x256xf32, #tpu.memory_space<vmem>>, vector<4x256xf32>
    tpu.vector_store %arg8[%c8, %c0_74], %88 {strides = array<i32>} : memref<216x256xf32, #tpu.memory_space<vmem>>, vector<4x256xf32>,
    %c0_75 = arith.constant 0 : index
    %c1_76 = arith.constant 1 : index
    %90 = vector.load %arg9[%c0_75, %c1_76] : memref<8x290xf32, #tpu.memory_space<vmem>>, vector<4x256xf32>
    %c32_77 = arith.constant 32 : index
    %c0_78 = arith.constant 0 : index
    %91 = vector.load %arg8[%c32_77, %c0_78] : memref<216x256xf32, #tpu.memory_space<vmem>>, vector<4x256xf32>
    tpu.vector_store %arg8[%c32_77, %c0_78], %90 {strides = array<i32>} : memref<216x256xf32, #tpu.memory_space<vmem>>, vector<4x256xf32>,
    %c0_79 = arith.constant 0 : index
    %c2_80 = arith.constant 2 : index
    %92 = vector.load %arg9[%c0_79, %c2_80] : memref<8x290xf32, #tpu.memory_space<vmem>>, vector<4x256xf32>
    %c1_81 = arith.constant 1 : index
    %c0_82 = arith.constant 0 : index
    %93 = vector.load %arg6[%c1_81, %c0_82] : memref<2x256xf32, #tpu.memory_space<vmem>>, vector<1x256xf32>
    %cst_83 = arith.constant 5.000000e-01 : f32
    %94 = vector.broadcast %cst_83 : f32 to vector<1x256xf32>
    %95 = arith.cmpf ogt, %93, %94 : vector<1x256xf32>
    %cst_84 = arith.constant 0.000000e+00 : f32
    %96 = vector.shape_cast %95 : vector<1x256xi1> to vector<1x256xi1>
    %97 = vector.broadcast %96 : vector<1x256xi1> to vector<4x256xi1>
    %98 = vector.broadcast %cst_84 : f32 to vector<4x256xf32>
    %99 = arith.select %97, %92, %98 : vector<4x256xi1>, vector<4x256xf32>
    %c56 = arith.constant 56 : index
    %c0_85 = arith.constant 0 : index
    %100 = vector.load %arg8[%c56, %c0_85] : memref<216x256xf32, #tpu.memory_space<vmem>>, vector<4x256xf32>
    tpu.vector_store %arg8[%c56, %c0_85], %99 {strides = array<i32>} : memref<216x256xf32, #tpu.memory_space<vmem>>, vector<4x256xf32>,
    %c0_86 = arith.constant 0 : index
    %c16_87 = arith.constant 16 : index
    %101 = vector.load %arg9[%c0_86, %c16_87] : memref<8x290xf32, #tpu.memory_space<vmem>>, vector<4x256xf32>
    %c0_88 = arith.constant 0 : index
    %c0_89 = arith.constant 0 : index
    %102 = vector.load %arg6[%c0_88, %c0_89] : memref<2x256xf32, #tpu.memory_space<vmem>>, vector<1x256xf32>
    %cst_90 = arith.constant 5.000000e-01 : f32
    %103 = vector.broadcast %cst_90 : f32 to vector<1x256xf32>
    %104 = arith.cmpf ogt, %102, %103 : vector<1x256xf32>
    %cst_91 = arith.constant 0.000000e+00 : f32
    %105 = vector.shape_cast %104 : vector<1x256xi1> to vector<1x256xi1>
    %106 = vector.broadcast %105 : vector<1x256xi1> to vector<4x256xi1>
    %107 = vector.broadcast %cst_91 : f32 to vector<4x256xf32>
    %108 = arith.select %106, %101, %107 : vector<4x256xi1>, vector<4x256xf32>
    %c80 = arith.constant 80 : index
    %c0_92 = arith.constant 0 : index
    %109 = vector.load %arg8[%c80, %c0_92] : memref<216x256xf32, #tpu.memory_space<vmem>>, vector<4x256xf32>
    tpu.vector_store %arg8[%c80, %c0_92], %108 {strides = array<i32>} : memref<216x256xf32, #tpu.memory_space<vmem>>, vector<4x256xf32>,
    %c0_93 = arith.constant 0 : index
    %c17_94 = arith.constant 17 : index
    %110 = vector.load %arg9[%c0_93, %c17_94] : memref<8x290xf32, #tpu.memory_space<vmem>>, vector<4x256xf32>
    %c104 = arith.constant 104 : index
    %c0_95 = arith.constant 0 : index
    %111 = vector.load %arg8[%c104, %c0_95] : memref<216x256xf32, #tpu.memory_space<vmem>>, vector<4x256xf32>
    tpu.vector_store %arg8[%c104, %c0_95], %110 {strides = array<i32>} : memref<216x256xf32, #tpu.memory_space<vmem>>, vector<4x256xf32>,
    %c0_96 = arith.constant 0 : index
    %c18_97 = arith.constant 18 : index
    %112 = vector.load %arg9[%c0_96, %c18_97] : memref<8x290xf32, #tpu.memory_space<vmem>>, vector<4x256xf32>
    %c1_98 = arith.constant 1 : index
    %c0_99 = arith.constant 0 : index
    %113 = vector.load %arg6[%c1_98, %c0_99] : memref<2x256xf32, #tpu.memory_space<vmem>>, vector<1x256xf32>
    %cst_100 = arith.constant 5.000000e-01 : f32
    %114 = vector.broadcast %cst_100 : f32 to vector<1x256xf32>
    %115 = arith.cmpf ogt, %113, %114 : vector<1x256xf32>
    %cst_101 = arith.constant 0.000000e+00 : f32
    %116 = vector.shape_cast %115 : vector<1x256xi1> to vector<1x256xi1>
    %117 = vector.broadcast %116 : vector<1x256xi1> to vector<4x256xi1>
    %118 = vector.broadcast %cst_101 : f32 to vector<4x256xf32>
    %119 = arith.select %117, %112, %118 : vector<4x256xi1>, vector<4x256xf32>
    %c128 = arith.constant 128 : index
    %c0_102 = arith.constant 0 : index
    %120 = vector.load %arg8[%c128, %c0_102] : memref<216x256xf32, #tpu.memory_space<vmem>>, vector<4x256xf32>
    tpu.vector_store %arg8[%c128, %c0_102], %119 {strides = array<i32>} : memref<216x256xf32, #tpu.memory_space<vmem>>, vector<4x256xf32>,
    %c0_103 = arith.constant 0 : index
    %c32_104 = arith.constant 32 : index
    %121 = vector.load %arg9[%c0_103, %c32_104] : memref<8x290xf32, #tpu.memory_space<vmem>>, vector<4x256xf32>
    %c0_105 = arith.constant 0 : index
    %c0_106 = arith.constant 0 : index
    %122 = vector.load %arg6[%c0_105, %c0_106] : memref<2x256xf32, #tpu.memory_space<vmem>>, vector<1x256xf32>
    %cst_107 = arith.constant 5.000000e-01 : f32
    %123 = vector.broadcast %cst_107 : f32 to vector<1x256xf32>
    %124 = arith.cmpf ogt, %122, %123 : vector<1x256xf32>
    %cst_108 = arith.constant 0.000000e+00 : f32
    %125 = vector.shape_cast %124 : vector<1x256xi1> to vector<1x256xi1>
    %126 = vector.broadcast %125 : vector<1x256xi1> to vector<4x256xi1>
    %127 = vector.broadcast %cst_108 : f32 to vector<4x256xf32>
    %128 = arith.select %126, %121, %127 : vector<4x256xi1>, vector<4x256xf32>
    %c152 = arith.constant 152 : index
    %c0_109 = arith.constant 0 : index
    %129 = vector.load %arg8[%c152, %c0_109] : memref<216x256xf32, #tpu.memory_space<vmem>>, vector<4x256xf32>
    tpu.vector_store %arg8[%c152, %c0_109], %128 {strides = array<i32>} : memref<216x256xf32, #tpu.memory_space<vmem>>, vector<4x256xf32>,
    %c0_110 = arith.constant 0 : index
    %c33_111 = arith.constant 33 : index
    %130 = vector.load %arg9[%c0_110, %c33_111] : memref<8x290xf32, #tpu.memory_space<vmem>>, vector<4x256xf32>
    %c176 = arith.constant 176 : index
    %c0_112 = arith.constant 0 : index
    %131 = vector.load %arg8[%c176, %c0_112] : memref<216x256xf32, #tpu.memory_space<vmem>>, vector<4x256xf32>
    tpu.vector_store %arg8[%c176, %c0_112], %130 {strides = array<i32>} : memref<216x256xf32, #tpu.memory_space<vmem>>, vector<4x256xf32>,
    %c0_113 = arith.constant 0 : index
    %c34_114 = arith.constant 34 : index
    %132 = vector.load %arg9[%c0_113, %c34_114] : memref<8x290xf32, #tpu.memory_space<vmem>>, vector<4x256xf32>
    %c1_115 = arith.constant 1 : index
    %c0_116 = arith.constant 0 : index
    %133 = vector.load %arg6[%c1_115, %c0_116] : memref<2x256xf32, #tpu.memory_space<vmem>>, vector<1x256xf32>
    %cst_117 = arith.constant 5.000000e-01 : f32
    %134 = vector.broadcast %cst_117 : f32 to vector<1x256xf32>
    %135 = arith.cmpf ogt, %133, %134 : vector<1x256xf32>
    %cst_118 = arith.constant 0.000000e+00 : f32
    %136 = vector.shape_cast %135 : vector<1x256xi1> to vector<1x256xi1>
    %137 = vector.broadcast %136 : vector<1x256xi1> to vector<4x256xi1>
    %138 = vector.broadcast %cst_118 : f32 to vector<4x256xf32>
    %139 = arith.select %137, %132, %138 : vector<4x256xi1>, vector<4x256xf32>
    %c200 = arith.constant 200 : index
    %c0_119 = arith.constant 0 : index
    %140 = vector.load %arg8[%c200, %c0_119] : memref<216x256xf32, #tpu.memory_space<vmem>>, vector<4x256xf32>
    tpu.vector_store %arg8[%c200, %c0_119], %139 {strides = array<i32>} : memref<216x256xf32, #tpu.memory_space<vmem>>, vector<4x256xf32>,
    %c0_120 = arith.constant 0 : index
    %c1_121 = arith.constant 1 : index
    %c0_122 = arith.constant 0 : index
    %c0_123 = arith.constant 0 : index
    %141 = vector.load %arg2[%c0_120, %c1_121, %c0_122, %c0_123] : memref<3x4x4x216xf32, #tpu.memory_space<vmem>>, vector<1x1x4x216xf32>
    %142 = vector.shape_cast %141 : vector<1x1x4x216xf32> to vector<4x216xf32>
    %c0_124 = arith.constant 0 : index
    %c1_125 = arith.constant 1 : index
    %c0_126 = arith.constant 0 : index
    %c0_127 = arith.constant 0 : index
    %143 = vector.load %arg3[%c0_124, %c1_125, %c0_126, %c0_127] : memref<3x4x4x1xf32, #tpu.memory_space<vmem>>, vector<1x1x4x1xf32>
    %144 = vector.shape_cast %143 : vector<1x1x4x1xf32> to vector<4x1xf32>
    %c0_128 = arith.constant 0 : index
    %c0_129 = arith.constant 0 : index
    %145 = vector.load %arg8[%c0_128, %c0_129] : memref<216x256xf32, #tpu.memory_space<vmem>>, vector<216x256xf32>
    %cst_130 = arith.constant dense<0.000000e+00> : vector<4x256xf32>
    %146 = tpu.matmul %142, %145, %cst_130 {dimension_numbers = #tpu.dot_dimension_numbers<[1], [0], [0], [1], [0, 0, 1, 1], [], []>} : vector<4x216xf32>, vector<216x256xf32>, vector<4x256xf32> -> vector<4x256xf32>
    %147 = vector.broadcast %144 : vector<4x1xf32> to vector<4x256xf32>
    %148 = arith.addf %146, %147 : vector<4x256xf32>
    %cst_131 = arith.constant 0.000000e+00 : f32
    %149 = vector.broadcast %cst_131 : f32 to vector<4x256xf32>
    %150 = arith.cmpf oge, %148, %149 : vector<4x256xf32>
    %cst_132 = arith.constant 2.000000e-01 : f32
    %151 = vector.broadcast %cst_132 : f32 to vector<4x256xf32>
    %152 = arith.mulf %151, %148 : vector<4x256xf32>
    %153 = arith.select %150, %148, %152 : vector<4x256xi1>, vector<4x256xf32>
    %c0_133 = arith.constant 0 : index
    %c17_134 = arith.constant 17 : index
    %154 = vector.load %arg9[%c0_133, %c17_134] : memref<8x290xf32, #tpu.memory_space<vmem>>, vector<4x256xf32>
    tpu.vector_store %arg9[%c0_133, %c17_134], %153 {strides = array<i32>} : memref<8x290xf32, #tpu.memory_space<vmem>>, vector<4x256xf32>,
    %c0_135 = arith.constant 0 : index
    %c0_136 = arith.constant 0 : index
    %155 = vector.load %arg9[%c0_135, %c0_136] : memref<8x290xf32, #tpu.memory_space<vmem>>, vector<4x256xf32>
    %c0_137 = arith.constant 0 : index
    %c0_138 = arith.constant 0 : index
    %156 = vector.load %arg6[%c0_137, %c0_138] : memref<2x256xf32, #tpu.memory_space<vmem>>, vector<1x256xf32>
    %cst_139 = arith.constant 5.000000e-01 : f32
    %157 = vector.broadcast %cst_139 : f32 to vector<1x256xf32>
    %158 = arith.cmpf ogt, %156, %157 : vector<1x256xf32>
    %cst_140 = arith.constant 0.000000e+00 : f32
    %159 = vector.shape_cast %158 : vector<1x256xi1> to vector<1x256xi1>
    %160 = vector.broadcast %159 : vector<1x256xi1> to vector<4x256xi1>
    %161 = vector.broadcast %cst_140 : f32 to vector<4x256xf32>
    %162 = arith.select %160, %155, %161 : vector<4x256xi1>, vector<4x256xf32>
    %c12 = arith.constant 12 : index
    %c0_141 = arith.constant 0 : index
    %163 = vector.load %arg8[%c12, %c0_141] : memref<216x256xf32, #tpu.memory_space<vmem>>, vector<4x256xf32>
    tpu.vector_store %arg8[%c12, %c0_141], %162 {strides = array<i32>} : memref<216x256xf32, #tpu.memory_space<vmem>>, vector<4x256xf32>,
    %c0_142 = arith.constant 0 : index
    %c1_143 = arith.constant 1 : index
    %164 = vector.load %arg9[%c0_142, %c1_143] : memref<8x290xf32, #tpu.memory_space<vmem>>, vector<4x256xf32>
    %c36 = arith.constant 36 : index
    %c0_144 = arith.constant 0 : index
    %165 = vector.load %arg8[%c36, %c0_144] : memref<216x256xf32, #tpu.memory_space<vmem>>, vector<4x256xf32>
    tpu.vector_store %arg8[%c36, %c0_144], %164 {strides = array<i32>} : memref<216x256xf32, #tpu.memory_space<vmem>>, vector<4x256xf32>,
    %c0_145 = arith.constant 0 : index
    %c2_146 = arith.constant 2 : index
    %166 = vector.load %arg9[%c0_145, %c2_146] : memref<8x290xf32, #tpu.memory_space<vmem>>, vector<4x256xf32>
    %c1_147 = arith.constant 1 : index
    %c0_148 = arith.constant 0 : index
    %167 = vector.load %arg6[%c1_147, %c0_148] : memref<2x256xf32, #tpu.memory_space<vmem>>, vector<1x256xf32>
    %cst_149 = arith.constant 5.000000e-01 : f32
    %168 = vector.broadcast %cst_149 : f32 to vector<1x256xf32>
    %169 = arith.cmpf ogt, %167, %168 : vector<1x256xf32>
    %cst_150 = arith.constant 0.000000e+00 : f32
    %170 = vector.shape_cast %169 : vector<1x256xi1> to vector<1x256xi1>
    %171 = vector.broadcast %170 : vector<1x256xi1> to vector<4x256xi1>
    %172 = vector.broadcast %cst_150 : f32 to vector<4x256xf32>
    %173 = arith.select %171, %166, %172 : vector<4x256xi1>, vector<4x256xf32>
    %c60 = arith.constant 60 : index
    %c0_151 = arith.constant 0 : index
    %174 = vector.load %arg8[%c60, %c0_151] : memref<216x256xf32, #tpu.memory_space<vmem>>, vector<4x256xf32>
    tpu.vector_store %arg8[%c60, %c0_151], %173 {strides = array<i32>} : memref<216x256xf32, #tpu.memory_space<vmem>>, vector<4x256xf32>,
    %c0_152 = arith.constant 0 : index
    %c16_153 = arith.constant 16 : index
    %175 = vector.load %arg9[%c0_152, %c16_153] : memref<8x290xf32, #tpu.memory_space<vmem>>, vector<4x256xf32>
    %c0_154 = arith.constant 0 : index
    %c0_155 = arith.constant 0 : index
    %176 = vector.load %arg6[%c0_154, %c0_155] : memref<2x256xf32, #tpu.memory_space<vmem>>, vector<1x256xf32>
    %cst_156 = arith.constant 5.000000e-01 : f32
    %177 = vector.broadcast %cst_156 : f32 to vector<1x256xf32>
    %178 = arith.cmpf ogt, %176, %177 : vector<1x256xf32>
    %cst_157 = arith.constant 0.000000e+00 : f32
    %179 = vector.shape_cast %178 : vector<1x256xi1> to vector<1x256xi1>
    %180 = vector.broadcast %179 : vector<1x256xi1> to vector<4x256xi1>
    %181 = vector.broadcast %cst_157 : f32 to vector<4x256xf32>
    %182 = arith.select %180, %175, %181 : vector<4x256xi1>, vector<4x256xf32>
    %c84 = arith.constant 84 : index
    %c0_158 = arith.constant 0 : index
    %183 = vector.load %arg8[%c84, %c0_158] : memref<216x256xf32, #tpu.memory_space<vmem>>, vector<4x256xf32>
    tpu.vector_store %arg8[%c84, %c0_158], %182 {strides = array<i32>} : memref<216x256xf32, #tpu.memory_space<vmem>>, vector<4x256xf32>,
    %c0_159 = arith.constant 0 : index
    %c17_160 = arith.constant 17 : index
    %184 = vector.load %arg9[%c0_159, %c17_160] : memref<8x290xf32, #tpu.memory_space<vmem>>, vector<4x256xf32>
    %c108 = arith.constant 108 : index
    %c0_161 = arith.constant 0 : index
    %185 = vector.load %arg8[%c108, %c0_161] : memref<216x256xf32, #tpu.memory_space<vmem>>, vector<4x256xf32>
    tpu.vector_store %arg8[%c108, %c0_161], %184 {strides = array<i32>} : memref<216x256xf32, #tpu.memory_space<vmem>>, vector<4x256xf32>,
    %c0_162 = arith.constant 0 : index
    %c18_163 = arith.constant 18 : index
    %186 = vector.load %arg9[%c0_162, %c18_163] : memref<8x290xf32, #tpu.memory_space<vmem>>, vector<4x256xf32>
    %c1_164 = arith.constant 1 : index
    %c0_165 = arith.constant 0 : index
    %187 = vector.load %arg6[%c1_164, %c0_165] : memref<2x256xf32, #tpu.memory_space<vmem>>, vector<1x256xf32>
    %cst_166 = arith.constant 5.000000e-01 : f32
    %188 = vector.broadcast %cst_166 : f32 to vector<1x256xf32>
    %189 = arith.cmpf ogt, %187, %188 : vector<1x256xf32>
    %cst_167 = arith.constant 0.000000e+00 : f32
    %190 = vector.shape_cast %189 : vector<1x256xi1> to vector<1x256xi1>
    %191 = vector.broadcast %190 : vector<1x256xi1> to vector<4x256xi1>
    %192 = vector.broadcast %cst_167 : f32 to vector<4x256xf32>
    %193 = arith.select %191, %186, %192 : vector<4x256xi1>, vector<4x256xf32>
    %c132 = arith.constant 132 : index
    %c0_168 = arith.constant 0 : index
    %194 = vector.load %arg8[%c132, %c0_168] : memref<216x256xf32, #tpu.memory_space<vmem>>, vector<4x256xf32>
    tpu.vector_store %arg8[%c132, %c0_168], %193 {strides = array<i32>} : memref<216x256xf32, #tpu.memory_space<vmem>>, vector<4x256xf32>,
    %c0_169 = arith.constant 0 : index
    %c32_170 = arith.constant 32 : index
    %195 = vector.load %arg9[%c0_169, %c32_170] : memref<8x290xf32, #tpu.memory_space<vmem>>, vector<4x256xf32>
    %c0_171 = arith.constant 0 : index
    %c0_172 = arith.constant 0 : index
    %196 = vector.load %arg6[%c0_171, %c0_172] : memref<2x256xf32, #tpu.memory_space<vmem>>, vector<1x256xf32>
    %cst_173 = arith.constant 5.000000e-01 : f32
    %197 = vector.broadcast %cst_173 : f32 to vector<1x256xf32>
    %198 = arith.cmpf ogt, %196, %197 : vector<1x256xf32>
    %cst_174 = arith.constant 0.000000e+00 : f32
    %199 = vector.shape_cast %198 : vector<1x256xi1> to vector<1x256xi1>
    %200 = vector.broadcast %199 : vector<1x256xi1> to vector<4x256xi1>
    %201 = vector.broadcast %cst_174 : f32 to vector<4x256xf32>
    %202 = arith.select %200, %195, %201 : vector<4x256xi1>, vector<4x256xf32>
    %c156 = arith.constant 156 : index
    %c0_175 = arith.constant 0 : index
    %203 = vector.load %arg8[%c156, %c0_175] : memref<216x256xf32, #tpu.memory_space<vmem>>, vector<4x256xf32>
    tpu.vector_store %arg8[%c156, %c0_175], %202 {strides = array<i32>} : memref<216x256xf32, #tpu.memory_space<vmem>>, vector<4x256xf32>,
    %c0_176 = arith.constant 0 : index
    %c33_177 = arith.constant 33 : index
    %204 = vector.load %arg9[%c0_176, %c33_177] : memref<8x290xf32, #tpu.memory_space<vmem>>, vector<4x256xf32>
    %c180 = arith.constant 180 : index
    %c0_178 = arith.constant 0 : index
    %205 = vector.load %arg8[%c180, %c0_178] : memref<216x256xf32, #tpu.memory_space<vmem>>, vector<4x256xf32>
    tpu.vector_store %arg8[%c180, %c0_178], %204 {strides = array<i32>} : memref<216x256xf32, #tpu.memory_space<vmem>>, vector<4x256xf32>,
    %c0_179 = arith.constant 0 : index
    %c34_180 = arith.constant 34 : index
    %206 = vector.load %arg9[%c0_179, %c34_180] : memref<8x290xf32, #tpu.memory_space<vmem>>, vector<4x256xf32>
    %c1_181 = arith.constant 1 : index
    %c0_182 = arith.constant 0 : index
    %207 = vector.load %arg6[%c1_181, %c0_182] : memref<2x256xf32, #tpu.memory_space<vmem>>, vector<1x256xf32>
    %cst_183 = arith.constant 5.000000e-01 : f32
    %208 = vector.broadcast %cst_183 : f32 to vector<1x256xf32>
    %209 = arith.cmpf ogt, %207, %208 : vector<1x256xf32>
    %cst_184 = arith.constant 0.000000e+00 : f32
    %210 = vector.shape_cast %209 : vector<1x256xi1> to vector<1x256xi1>
    %211 = vector.broadcast %210 : vector<1x256xi1> to vector<4x256xi1>
    %212 = vector.broadcast %cst_184 : f32 to vector<4x256xf32>
    %213 = arith.select %211, %206, %212 : vector<4x256xi1>, vector<4x256xf32>
    %c204 = arith.constant 204 : index
    %c0_185 = arith.constant 0 : index
    %214 = vector.load %arg8[%c204, %c0_185] : memref<216x256xf32, #tpu.memory_space<vmem>>, vector<4x256xf32>
    tpu.vector_store %arg8[%c204, %c0_185], %213 {strides = array<i32>} : memref<216x256xf32, #tpu.memory_space<vmem>>, vector<4x256xf32>,
    %c0_186 = arith.constant 0 : index
    %c2_187 = arith.constant 2 : index
    %c0_188 = arith.constant 0 : index
    %c0_189 = arith.constant 0 : index
    %215 = vector.load %arg2[%c0_186, %c2_187, %c0_188, %c0_189] : memref<3x4x4x216xf32, #tpu.memory_space<vmem>>, vector<1x1x4x216xf32>
    %216 = vector.shape_cast %215 : vector<1x1x4x216xf32> to vector<4x216xf32>
    %c0_190 = arith.constant 0 : index
    %c2_191 = arith.constant 2 : index
    %c0_192 = arith.constant 0 : index
    %c0_193 = arith.constant 0 : index
    %217 = vector.load %arg3[%c0_190, %c2_191, %c0_192, %c0_193] : memref<3x4x4x1xf32, #tpu.memory_space<vmem>>, vector<1x1x4x1xf32>
    %218 = vector.shape_cast %217 : vector<1x1x4x1xf32> to vector<4x1xf32>
    %c0_194 = arith.constant 0 : index
    %c0_195 = arith.constant 0 : index
    %219 = vector.load %arg8[%c0_194, %c0_195] : memref<216x256xf32, #tpu.memory_space<vmem>>, vector<216x256xf32>
    %cst_196 = arith.constant dense<0.000000e+00> : vector<4x256xf32>
    %220 = tpu.matmul %216, %219, %cst_196 {dimension_numbers = #tpu.dot_dimension_numbers<[1], [0], [0], [1], [0, 0, 1, 1], [], []>} : vector<4x216xf32>, vector<216x256xf32>, vector<4x256xf32> -> vector<4x256xf32>
    %221 = vector.broadcast %218 : vector<4x1xf32> to vector<4x256xf32>
    %222 = arith.addf %220, %221 : vector<4x256xf32>
    %cst_197 = arith.constant 0.000000e+00 : f32
    %223 = vector.broadcast %cst_197 : f32 to vector<4x256xf32>
    %224 = arith.cmpf oge, %222, %223 : vector<4x256xf32>
    %cst_198 = arith.constant 2.000000e-01 : f32
    %225 = vector.broadcast %cst_198 : f32 to vector<4x256xf32>
    %226 = arith.mulf %225, %222 : vector<4x256xf32>
    %227 = arith.select %224, %222, %226 : vector<4x256xi1>, vector<4x256xf32>
    %c0_199 = arith.constant 0 : index
    %c17_200 = arith.constant 17 : index
    %228 = vector.load %arg9[%c0_199, %c17_200] : memref<8x290xf32, #tpu.memory_space<vmem>>, vector<4x256xf32>
    tpu.vector_store %arg9[%c0_199, %c17_200], %227 {strides = array<i32>} : memref<8x290xf32, #tpu.memory_space<vmem>>, vector<4x256xf32>,
    %c0_201 = arith.constant 0 : index
    %c0_202 = arith.constant 0 : index
    %229 = vector.load %arg9[%c0_201, %c0_202] : memref<8x290xf32, #tpu.memory_space<vmem>>, vector<4x256xf32>
    %c0_203 = arith.constant 0 : index
    %c0_204 = arith.constant 0 : index
    %230 = vector.load %arg6[%c0_203, %c0_204] : memref<2x256xf32, #tpu.memory_space<vmem>>, vector<1x256xf32>
    %cst_205 = arith.constant 5.000000e-01 : f32
    %231 = vector.broadcast %cst_205 : f32 to vector<1x256xf32>
    %232 = arith.cmpf ogt, %230, %231 : vector<1x256xf32>
    %cst_206 = arith.constant 0.000000e+00 : f32
    %233 = vector.shape_cast %232 : vector<1x256xi1> to vector<1x256xi1>
    %234 = vector.broadcast %233 : vector<1x256xi1> to vector<4x256xi1>
    %235 = vector.broadcast %cst_206 : f32 to vector<4x256xf32>
    %236 = arith.select %234, %229, %235 : vector<4x256xi1>, vector<4x256xf32>
    %c16_207 = arith.constant 16 : index
    %c0_208 = arith.constant 0 : index
    %237 = vector.load %arg8[%c16_207, %c0_208] : memref<216x256xf32, #tpu.memory_space<vmem>>, vector<4x256xf32>
    tpu.vector_store %arg8[%c16_207, %c0_208], %236 {strides = array<i32>} : memref<216x256xf32, #tpu.memory_space<vmem>>, vector<4x256xf32>,
    %c0_209 = arith.constant 0 : index
    %c1_210 = arith.constant 1 : index
    %238 = vector.load %arg9[%c0_209, %c1_210] : memref<8x290xf32, #tpu.memory_space<vmem>>, vector<4x256xf32>
    %c40 = arith.constant 40 : index
    %c0_211 = arith.constant 0 : index
    %239 = vector.load %arg8[%c40, %c0_211] : memref<216x256xf32, #tpu.memory_space<vmem>>, vector<4x256xf32>
    tpu.vector_store %arg8[%c40, %c0_211], %238 {strides = array<i32>} : memref<216x256xf32, #tpu.memory_space<vmem>>, vector<4x256xf32>,
    %c0_212 = arith.constant 0 : index
    %c2_213 = arith.constant 2 : index
    %240 = vector.load %arg9[%c0_212, %c2_213] : memref<8x290xf32, #tpu.memory_space<vmem>>, vector<4x256xf32>
    %c1_214 = arith.constant 1 : index
    %c0_215 = arith.constant 0 : index
    %241 = vector.load %arg6[%c1_214, %c0_215] : memref<2x256xf32, #tpu.memory_space<vmem>>, vector<1x256xf32>
    %cst_216 = arith.constant 5.000000e-01 : f32
    %242 = vector.broadcast %cst_216 : f32 to vector<1x256xf32>
    %243 = arith.cmpf ogt, %241, %242 : vector<1x256xf32>
    %cst_217 = arith.constant 0.000000e+00 : f32
    %244 = vector.shape_cast %243 : vector<1x256xi1> to vector<1x256xi1>
    %245 = vector.broadcast %244 : vector<1x256xi1> to vector<4x256xi1>
    %246 = vector.broadcast %cst_217 : f32 to vector<4x256xf32>
    %247 = arith.select %245, %240, %246 : vector<4x256xi1>, vector<4x256xf32>
    %c64 = arith.constant 64 : index
    %c0_218 = arith.constant 0 : index
    %248 = vector.load %arg8[%c64, %c0_218] : memref<216x256xf32, #tpu.memory_space<vmem>>, vector<4x256xf32>
    tpu.vector_store %arg8[%c64, %c0_218], %247 {strides = array<i32>} : memref<216x256xf32, #tpu.memory_space<vmem>>, vector<4x256xf32>,
    %c0_219 = arith.constant 0 : index
    %c16_220 = arith.constant 16 : index
    %249 = vector.load %arg9[%c0_219, %c16_220] : memref<8x290xf32, #tpu.memory_space<vmem>>, vector<4x256xf32>
    %c0_221 = arith.constant 0 : index
    %c0_222 = arith.constant 0 : index
    %250 = vector.load %arg6[%c0_221, %c0_222] : memref<2x256xf32, #tpu.memory_space<vmem>>, vector<1x256xf32>
    %cst_223 = arith.constant 5.000000e-01 : f32
    %251 = vector.broadcast %cst_223 : f32 to vector<1x256xf32>
    %252 = arith.cmpf ogt, %250, %251 : vector<1x256xf32>
    %cst_224 = arith.constant 0.000000e+00 : f32
    %253 = vector.shape_cast %252 : vector<1x256xi1> to vector<1x256xi1>
    %254 = vector.broadcast %253 : vector<1x256xi1> to vector<4x256xi1>
    %255 = vector.broadcast %cst_224 : f32 to vector<4x256xf32>
    %256 = arith.select %254, %249, %255 : vector<4x256xi1>, vector<4x256xf32>
    %c88 = arith.constant 88 : index
    %c0_225 = arith.constant 0 : index
    %257 = vector.load %arg8[%c88, %c0_225] : memref<216x256xf32, #tpu.memory_space<vmem>>, vector<4x256xf32>
    tpu.vector_store %arg8[%c88, %c0_225], %256 {strides = array<i32>} : memref<216x256xf32, #tpu.memory_space<vmem>>, vector<4x256xf32>,
    %c0_226 = arith.constant 0 : index
    %c17_227 = arith.constant 17 : index
    %258 = vector.load %arg9[%c0_226, %c17_227] : memref<8x290xf32, #tpu.memory_space<vmem>>, vector<4x256xf32>
    %c112 = arith.constant 112 : index
    %c0_228 = arith.constant 0 : index
    %259 = vector.load %arg8[%c112, %c0_228] : memref<216x256xf32, #tpu.memory_space<vmem>>, vector<4x256xf32>
    tpu.vector_store %arg8[%c112, %c0_228], %258 {strides = array<i32>} : memref<216x256xf32, #tpu.memory_space<vmem>>, vector<4x256xf32>,
    %c0_229 = arith.constant 0 : index
    %c18_230 = arith.constant 18 : index
    %260 = vector.load %arg9[%c0_229, %c18_230] : memref<8x290xf32, #tpu.memory_space<vmem>>, vector<4x256xf32>
    %c1_231 = arith.constant 1 : index
    %c0_232 = arith.constant 0 : index
    %261 = vector.load %arg6[%c1_231, %c0_232] : memref<2x256xf32, #tpu.memory_space<vmem>>, vector<1x256xf32>
    %cst_233 = arith.constant 5.000000e-01 : f32
    %262 = vector.broadcast %cst_233 : f32 to vector<1x256xf32>
    %263 = arith.cmpf ogt, %261, %262 : vector<1x256xf32>
    %cst_234 = arith.constant 0.000000e+00 : f32
    %264 = vector.shape_cast %263 : vector<1x256xi1> to vector<1x256xi1>
    %265 = vector.broadcast %264 : vector<1x256xi1> to vector<4x256xi1>
    %266 = vector.broadcast %cst_234 : f32 to vector<4x256xf32>
    %267 = arith.select %265, %260, %266 : vector<4x256xi1>, vector<4x256xf32>
    %c136 = arith.constant 136 : index
    %c0_235 = arith.constant 0 : index
    %268 = vector.load %arg8[%c136, %c0_235] : memref<216x256xf32, #tpu.memory_space<vmem>>, vector<4x256xf32>
    tpu.vector_store %arg8[%c136, %c0_235], %267 {strides = array<i32>} : memref<216x256xf32, #tpu.memory_space<vmem>>, vector<4x256xf32>,
    %c0_236 = arith.constant 0 : index
    %c32_237 = arith.constant 32 : index
    %269 = vector.load %arg9[%c0_236, %c32_237] : memref<8x290xf32, #tpu.memory_space<vmem>>, vector<4x256xf32>
    %c0_238 = arith.constant 0 : index
    %c0_239 = arith.constant 0 : index
    %270 = vector.load %arg6[%c0_238, %c0_239] : memref<2x256xf32, #tpu.memory_space<vmem>>, vector<1x256xf32>
    %cst_240 = arith.constant 5.000000e-01 : f32
    %271 = vector.broadcast %cst_240 : f32 to vector<1x256xf32>
    %272 = arith.cmpf ogt, %270, %271 : vector<1x256xf32>
    %cst_241 = arith.constant 0.000000e+00 : f32
    %273 = vector.shape_cast %272 : vector<1x256xi1> to vector<1x256xi1>
    %274 = vector.broadcast %273 : vector<1x256xi1> to vector<4x256xi1>
    %275 = vector.broadcast %cst_241 : f32 to vector<4x256xf32>
    %276 = arith.select %274, %269, %275 : vector<4x256xi1>, vector<4x256xf32>
    %c160 = arith.constant 160 : index
    %c0_242 = arith.constant 0 : index
    %277 = vector.load %arg8[%c160, %c0_242] : memref<216x256xf32, #tpu.memory_space<vmem>>, vector<4x256xf32>
    tpu.vector_store %arg8[%c160, %c0_242], %276 {strides = array<i32>} : memref<216x256xf32, #tpu.memory_space<vmem>>, vector<4x256xf32>,
    %c0_243 = arith.constant 0 : index
    %c33_244 = arith.constant 33 : index
    %278 = vector.load %arg9[%c0_243, %c33_244] : memref<8x290xf32, #tpu.memory_space<vmem>>, vector<4x256xf32>
    %c184 = arith.constant 184 : index
    %c0_245 = arith.constant 0 : index
    %279 = vector.load %arg8[%c184, %c0_245] : memref<216x256xf32, #tpu.memory_space<vmem>>, vector<4x256xf32>
    tpu.vector_store %arg8[%c184, %c0_245], %278 {strides = array<i32>} : memref<216x256xf32, #tpu.memory_space<vmem>>, vector<4x256xf32>,
    %c0_246 = arith.constant 0 : index
    %c34_247 = arith.constant 34 : index
    %280 = vector.load %arg9[%c0_246, %c34_247] : memref<8x290xf32, #tpu.memory_space<vmem>>, vector<4x256xf32>
    %c1_248 = arith.constant 1 : index
    %c0_249 = arith.constant 0 : index
    %281 = vector.load %arg6[%c1_248, %c0_249] : memref<2x256xf32, #tpu.memory_space<vmem>>, vector<1x256xf32>
    %cst_250 = arith.constant 5.000000e-01 : f32
    %282 = vector.broadcast %cst_250 : f32 to vector<1x256xf32>
    %283 = arith.cmpf ogt, %281, %282 : vector<1x256xf32>
    %cst_251 = arith.constant 0.000000e+00 : f32
    %284 = vector.shape_cast %283 : vector<1x256xi1> to vector<1x256xi1>
    %285 = vector.broadcast %284 : vector<1x256xi1> to vector<4x256xi1>
    %286 = vector.broadcast %cst_251 : f32 to vector<4x256xf32>
    %287 = arith.select %285, %280, %286 : vector<4x256xi1>, vector<4x256xf32>
    %c208 = arith.constant 208 : index
    %c0_252 = arith.constant 0 : index
    %288 = vector.load %arg8[%c208, %c0_252] : memref<216x256xf32, #tpu.memory_space<vmem>>, vector<4x256xf32>
    tpu.vector_store %arg8[%c208, %c0_252], %287 {strides = array<i32>} : memref<216x256xf32, #tpu.memory_space<vmem>>, vector<4x256xf32>,
    %c0_253 = arith.constant 0 : index
    %c3 = arith.constant 3 : index
    %c0_254 = arith.constant 0 : index
    %c0_255 = arith.constant 0 : index
    %289 = vector.load %arg2[%c0_253, %c3, %c0_254, %c0_255] : memref<3x4x4x216xf32, #tpu.memory_space<vmem>>, vector<1x1x4x216xf32>
    %290 = vector.shape_cast %289 : vector<1x1x4x216xf32> to vector<4x216xf32>
    %c0_256 = arith.constant 0 : index
    %c3_257 = arith.constant 3 : index
    %c0_258 = arith.constant 0 : index
    %c0_259 = arith.constant 0 : index
    %291 = vector.load %arg3[%c0_256, %c3_257, %c0_258, %c0_259] : memref<3x4x4x1xf32, #tpu.memory_space<vmem>>, vector<1x1x4x1xf32>
    %292 = vector.shape_cast %291 : vector<1x1x4x1xf32> to vector<4x1xf32>
    %c0_260 = arith.constant 0 : index
    %c0_261 = arith.constant 0 : index
    %293 = vector.load %arg8[%c0_260, %c0_261] : memref<216x256xf32, #tpu.memory_space<vmem>>, vector<216x256xf32>
    %cst_262 = arith.constant dense<0.000000e+00> : vector<4x256xf32>
    %294 = tpu.matmul %290, %293, %cst_262 {dimension_numbers = #tpu.dot_dimension_numbers<[1], [0], [0], [1], [0, 0, 1, 1], [], []>} : vector<4x216xf32>, vector<216x256xf32>, vector<4x256xf32> -> vector<4x256xf32>
    %295 = vector.broadcast %292 : vector<4x1xf32> to vector<4x256xf32>
    %296 = arith.addf %294, %295 : vector<4x256xf32>
    %cst_263 = arith.constant 0.000000e+00 : f32
    %297 = vector.broadcast %cst_263 : f32 to vector<4x256xf32>
    %298 = arith.cmpf oge, %296, %297 : vector<4x256xf32>
    %cst_264 = arith.constant 2.000000e-01 : f32
    %299 = vector.broadcast %cst_264 : f32 to vector<4x256xf32>
    %300 = arith.mulf %299, %296 : vector<4x256xf32>
    %301 = arith.select %298, %296, %300 : vector<4x256xi1>, vector<4x256xf32>
    %c0_265 = arith.constant 0 : index
    %c17_266 = arith.constant 17 : index
    %302 = vector.load %arg9[%c0_265, %c17_266] : memref<8x290xf32, #tpu.memory_space<vmem>>, vector<4x256xf32>
    tpu.vector_store %arg9[%c0_265, %c17_266], %301 {strides = array<i32>} : memref<8x290xf32, #tpu.memory_space<vmem>>, vector<4x256xf32>,
    %c0_267 = arith.constant 0 : index
    %c0_268 = arith.constant 0 : index
    %303 = vector.load %arg9[%c0_267, %c0_268] : memref<8x290xf32, #tpu.memory_space<vmem>>, vector<4x256xf32>
    %c0_269 = arith.constant 0 : index
    %c0_270 = arith.constant 0 : index
    %304 = vector.load %arg6[%c0_269, %c0_270] : memref<2x256xf32, #tpu.memory_space<vmem>>, vector<1x256xf32>
    %cst_271 = arith.constant 5.000000e-01 : f32
    %305 = vector.broadcast %cst_271 : f32 to vector<1x256xf32>
    %306 = arith.cmpf ogt, %304, %305 : vector<1x256xf32>
    %cst_272 = arith.constant 0.000000e+00 : f32
    %307 = vector.shape_cast %306 : vector<1x256xi1> to vector<1x256xi1>
    %308 = vector.broadcast %307 : vector<1x256xi1> to vector<4x256xi1>
    %309 = vector.broadcast %cst_272 : f32 to vector<4x256xf32>
    %310 = arith.select %308, %303, %309 : vector<4x256xi1>, vector<4x256xf32>
    %c20 = arith.constant 20 : index
    %c0_273 = arith.constant 0 : index
    %311 = vector.load %arg8[%c20, %c0_273] : memref<216x256xf32, #tpu.memory_space<vmem>>, vector<4x256xf32>
    tpu.vector_store %arg8[%c20, %c0_273], %310 {strides = array<i32>} : memref<216x256xf32, #tpu.memory_space<vmem>>, vector<4x256xf32>,
    %c0_274 = arith.constant 0 : index
    %c1_275 = arith.constant 1 : index
    %312 = vector.load %arg9[%c0_274, %c1_275] : memref<8x290xf32, #tpu.memory_space<vmem>>, vector<4x256xf32>
    %c44 = arith.constant 44 : index
    %c0_276 = arith.constant 0 : index
    %313 = vector.load %arg8[%c44, %c0_276] : memref<216x256xf32, #tpu.memory_space<vmem>>, vector<4x256xf32>
    tpu.vector_store %arg8[%c44, %c0_276], %312 {strides = array<i32>} : memref<216x256xf32, #tpu.memory_space<vmem>>, vector<4x256xf32>,
    %c0_277 = arith.constant 0 : index
    %c2_278 = arith.constant 2 : index
    %314 = vector.load %arg9[%c0_277, %c2_278] : memref<8x290xf32, #tpu.memory_space<vmem>>, vector<4x256xf32>
    %c1_279 = arith.constant 1 : index
    %c0_280 = arith.constant 0 : index
    %315 = vector.load %arg6[%c1_279, %c0_280] : memref<2x256xf32, #tpu.memory_space<vmem>>, vector<1x256xf32>
    %cst_281 = arith.constant 5.000000e-01 : f32
    %316 = vector.broadcast %cst_281 : f32 to vector<1x256xf32>
    %317 = arith.cmpf ogt, %315, %316 : vector<1x256xf32>
    %cst_282 = arith.constant 0.000000e+00 : f32
    %318 = vector.shape_cast %317 : vector<1x256xi1> to vector<1x256xi1>
    %319 = vector.broadcast %318 : vector<1x256xi1> to vector<4x256xi1>
    %320 = vector.broadcast %cst_282 : f32 to vector<4x256xf32>
    %321 = arith.select %319, %314, %320 : vector<4x256xi1>, vector<4x256xf32>
    %c68 = arith.constant 68 : index
    %c0_283 = arith.constant 0 : index
    %322 = vector.load %arg8[%c68, %c0_283] : memref<216x256xf32, #tpu.memory_space<vmem>>, vector<4x256xf32>
    tpu.vector_store %arg8[%c68, %c0_283], %321 {strides = array<i32>} : memref<216x256xf32, #tpu.memory_space<vmem>>, vector<4x256xf32>,
    %c0_284 = arith.constant 0 : index
    %c16_285 = arith.constant 16 : index
    %323 = vector.load %arg9[%c0_284, %c16_285] : memref<8x290xf32, #tpu.memory_space<vmem>>, vector<4x256xf32>
    %c0_286 = arith.constant 0 : index
    %c0_287 = arith.constant 0 : index
    %324 = vector.load %arg6[%c0_286, %c0_287] : memref<2x256xf32, #tpu.memory_space<vmem>>, vector<1x256xf32>
    %cst_288 = arith.constant 5.000000e-01 : f32
    %325 = vector.broadcast %cst_288 : f32 to vector<1x256xf32>
    %326 = arith.cmpf ogt, %324, %325 : vector<1x256xf32>
    %cst_289 = arith.constant 0.000000e+00 : f32
    %327 = vector.shape_cast %326 : vector<1x256xi1> to vector<1x256xi1>
    %328 = vector.broadcast %327 : vector<1x256xi1> to vector<4x256xi1>
    %329 = vector.broadcast %cst_289 : f32 to vector<4x256xf32>
    %330 = arith.select %328, %323, %329 : vector<4x256xi1>, vector<4x256xf32>
    %c92 = arith.constant 92 : index
    %c0_290 = arith.constant 0 : index
    %331 = vector.load %arg8[%c92, %c0_290] : memref<216x256xf32, #tpu.memory_space<vmem>>, vector<4x256xf32>
    tpu.vector_store %arg8[%c92, %c0_290], %330 {strides = array<i32>} : memref<216x256xf32, #tpu.memory_space<vmem>>, vector<4x256xf32>,
    %c0_291 = arith.constant 0 : index
    %c17_292 = arith.constant 17 : index
    %332 = vector.load %arg9[%c0_291, %c17_292] : memref<8x290xf32, #tpu.memory_space<vmem>>, vector<4x256xf32>
    %c116 = arith.constant 116 : index
    %c0_293 = arith.constant 0 : index
    %333 = vector.load %arg8[%c116, %c0_293] : memref<216x256xf32, #tpu.memory_space<vmem>>, vector<4x256xf32>
    tpu.vector_store %arg8[%c116, %c0_293], %332 {strides = array<i32>} : memref<216x256xf32, #tpu.memory_space<vmem>>, vector<4x256xf32>,
    %c0_294 = arith.constant 0 : index
    %c18_295 = arith.constant 18 : index
    %334 = vector.load %arg9[%c0_294, %c18_295] : memref<8x290xf32, #tpu.memory_space<vmem>>, vector<4x256xf32>
    %c1_296 = arith.constant 1 : index
    %c0_297 = arith.constant 0 : index
    %335 = vector.load %arg6[%c1_296, %c0_297] : memref<2x256xf32, #tpu.memory_space<vmem>>, vector<1x256xf32>
    %cst_298 = arith.constant 5.000000e-01 : f32
    %336 = vector.broadcast %cst_298 : f32 to vector<1x256xf32>
    %337 = arith.cmpf ogt, %335, %336 : vector<1x256xf32>
    %cst_299 = arith.constant 0.000000e+00 : f32
    %338 = vector.shape_cast %337 : vector<1x256xi1> to vector<1x256xi1>
    %339 = vector.broadcast %338 : vector<1x256xi1> to vector<4x256xi1>
    %340 = vector.broadcast %cst_299 : f32 to vector<4x256xf32>
    %341 = arith.select %339, %334, %340 : vector<4x256xi1>, vector<4x256xf32>
    %c140 = arith.constant 140 : index
    %c0_300 = arith.constant 0 : index
    %342 = vector.load %arg8[%c140, %c0_300] : memref<216x256xf32, #tpu.memory_space<vmem>>, vector<4x256xf32>
    tpu.vector_store %arg8[%c140, %c0_300], %341 {strides = array<i32>} : memref<216x256xf32, #tpu.memory_space<vmem>>, vector<4x256xf32>,
    %c0_301 = arith.constant 0 : index
    %c32_302 = arith.constant 32 : index
    %343 = vector.load %arg9[%c0_301, %c32_302] : memref<8x290xf32, #tpu.memory_space<vmem>>, vector<4x256xf32>
    %c0_303 = arith.constant 0 : index
    %c0_304 = arith.constant 0 : index
    %344 = vector.load %arg6[%c0_303, %c0_304] : memref<2x256xf32, #tpu.memory_space<vmem>>, vector<1x256xf32>
    %cst_305 = arith.constant 5.000000e-01 : f32
    %345 = vector.broadcast %cst_305 : f32 to vector<1x256xf32>
    %346 = arith.cmpf ogt, %344, %345 : vector<1x256xf32>
    %cst_306 = arith.constant 0.000000e+00 : f32
    %347 = vector.shape_cast %346 : vector<1x256xi1> to vector<1x256xi1>
    %348 = vector.broadcast %347 : vector<1x256xi1> to vector<4x256xi1>
    %349 = vector.broadcast %cst_306 : f32 to vector<4x256xf32>
    %350 = arith.select %348, %343, %349 : vector<4x256xi1>, vector<4x256xf32>
    %c164 = arith.constant 164 : index
    %c0_307 = arith.constant 0 : index
    %351 = vector.load %arg8[%c164, %c0_307] : memref<216x256xf32, #tpu.memory_space<vmem>>, vector<4x256xf32>
    tpu.vector_store %arg8[%c164, %c0_307], %350 {strides = array<i32>} : memref<216x256xf32, #tpu.memory_space<vmem>>, vector<4x256xf32>,
    %c0_308 = arith.constant 0 : index
    %c33_309 = arith.constant 33 : index
    %352 = vector.load %arg9[%c0_308, %c33_309] : memref<8x290xf32, #tpu.memory_space<vmem>>, vector<4x256xf32>
    %c188 = arith.constant 188 : index
    %c0_310 = arith.constant 0 : index
    %353 = vector.load %arg8[%c188, %c0_310] : memref<216x256xf32, #tpu.memory_space<vmem>>, vector<4x256xf32>
    tpu.vector_store %arg8[%c188, %c0_310], %352 {strides = array<i32>} : memref<216x256xf32, #tpu.memory_space<vmem>>, vector<4x256xf32>,
    %c0_311 = arith.constant 0 : index
    %c34_312 = arith.constant 34 : index
    %354 = vector.load %arg9[%c0_311, %c34_312] : memref<8x290xf32, #tpu.memory_space<vmem>>, vector<4x256xf32>
    %c1_313 = arith.constant 1 : index
    %c0_314 = arith.constant 0 : index
    %355 = vector.load %arg6[%c1_313, %c0_314] : memref<2x256xf32, #tpu.memory_space<vmem>>, vector<1x256xf32>
    %cst_315 = arith.constant 5.000000e-01 : f32
    %356 = vector.broadcast %cst_315 : f32 to vector<1x256xf32>
    %357 = arith.cmpf ogt, %355, %356 : vector<1x256xf32>
    %cst_316 = arith.constant 0.000000e+00 : f32
    %358 = vector.shape_cast %357 : vector<1x256xi1> to vector<1x256xi1>
    %359 = vector.broadcast %358 : vector<1x256xi1> to vector<4x256xi1>
    %360 = vector.broadcast %cst_316 : f32 to vector<4x256xf32>
    %361 = arith.select %359, %354, %360 : vector<4x256xi1>, vector<4x256xf32>
    %c212 = arith.constant 212 : index
    %c0_317 = arith.constant 0 : index
    %362 = vector.load %arg8[%c212, %c0_317] : memref<216x256xf32, #tpu.memory_space<vmem>>, vector<4x256xf32>
    tpu.vector_store %arg8[%c212, %c0_317], %361 {strides = array<i32>} : memref<216x256xf32, #tpu.memory_space<vmem>>, vector<4x256xf32>,
    %c0_318 = arith.constant 0 : index
    %c0_319 = arith.constant 0 : index
    %c0_320 = arith.constant 0 : index
    %363 = vector.load %arg4[%c0_318, %c0_319, %c0_320] : memref<3x8x216xf32, #tpu.memory_space<vmem>>, vector<1x8x216xf32>
    %364 = vector.shape_cast %363 : vector<1x8x216xf32> to vector<8x216xf32>
    %c0_321 = arith.constant 0 : index
    %c0_322 = arith.constant 0 : index
    %c0_323 = arith.constant 0 : index
    %365 = vector.load %arg5[%c0_321, %c0_322, %c0_323] : memref<3x8x1xf32, #tpu.memory_space<vmem>>, vector<1x8x1xf32>
    %366 = vector.shape_cast %365 : vector<1x8x1xf32> to vector<8x1xf32>
    %c0_324 = arith.constant 0 : index
    %c0_325 = arith.constant 0 : index
    %367 = vector.load %arg8[%c0_324, %c0_325] : memref<216x256xf32, #tpu.memory_space<vmem>>, vector<216x256xf32>
    %cst_326 = arith.constant dense<0.000000e+00> : vector<8x256xf32>
    %368 = tpu.matmul %364, %367, %cst_326 {dimension_numbers = #tpu.dot_dimension_numbers<[1], [0], [0], [1], [0, 0, 1, 1], [], []>} : vector<8x216xf32>, vector<216x256xf32>, vector<8x256xf32> -> vector<8x256xf32>
    %369 = vector.broadcast %366 : vector<8x1xf32> to vector<8x256xf32>
    %370 = arith.addf %368, %369 : vector<8x256xf32>
    %cst_327 = arith.constant 2.000000e-01 : f32
    %371 = vector.broadcast %cst_327 : f32 to vector<8x256xf32>
    %372 = arith.mulf %370, %371 : vector<8x256xf32>
    %373 = arith.addf %372, %5 : vector<8x256xf32>
    %c0_328 = arith.constant 0 : index
    %c17_329 = arith.constant 17 : index
    %374 = vector.load %arg9[%c0_328, %c17_329] : memref<8x290xf32, #tpu.memory_space<vmem>>, vector<8x256xf32>
    tpu.vector_store %arg9[%c0_328, %c17_329], %373 {strides = array<i32>} : memref<8x290xf32, #tpu.memory_space<vmem>>, vector<8x256xf32>,
    %c0_330 = arith.constant 0 : index
    %c0_331 = arith.constant 0 : index
    %375 = vector.load %arg9[%c0_330, %c0_331] : memref<8x290xf32, #tpu.memory_space<vmem>>, vector<8x256xf32>
    %c0_332 = arith.constant 0 : index
    %c0_333 = arith.constant 0 : index
    %376 = vector.load %arg6[%c0_332, %c0_333] : memref<2x256xf32, #tpu.memory_space<vmem>>, vector<1x256xf32>
    %cst_334 = arith.constant 5.000000e-01 : f32
    %377 = vector.broadcast %cst_334 : f32 to vector<1x256xf32>
    %378 = arith.cmpf ogt, %376, %377 : vector<1x256xf32>
    %cst_335 = arith.constant 0.000000e+00 : f32
    %379 = vector.shape_cast %378 : vector<1x256xi1> to vector<1x256xi1>
    %380 = vector.broadcast %379 : vector<1x256xi1> to vector<8x256xi1>
    %381 = vector.broadcast %cst_335 : f32 to vector<8x256xf32>
    %382 = arith.select %380, %375, %381 : vector<8x256xi1>, vector<8x256xf32>
    %c0_336 = arith.constant 0 : index
    %c0_337 = arith.constant 0 : index
    %383 = vector.load %arg8[%c0_336, %c0_337] : memref<216x256xf32, #tpu.memory_space<vmem>>, vector<8x256xf32>
    tpu.vector_store %arg8[%c0_336, %c0_337], %382 {strides = array<i32>} : memref<216x256xf32, #tpu.memory_space<vmem>>, vector<8x256xf32>,
    %c0_338 = arith.constant 0 : index
    %c1_339 = arith.constant 1 : index
    %384 = vector.load %arg9[%c0_338, %c1_339] : memref<8x290xf32, #tpu.memory_space<vmem>>, vector<8x256xf32>
    %c24_340 = arith.constant 24 : index
    %c0_341 = arith.constant 0 : index
    %385 = vector.load %arg8[%c24_340, %c0_341] : memref<216x256xf32, #tpu.memory_space<vmem>>, vector<8x256xf32>
    tpu.vector_store %arg8[%c24_340, %c0_341], %384 {strides = array<i32>} : memref<216x256xf32, #tpu.memory_space<vmem>>, vector<8x256xf32>,
    %c0_342 = arith.constant 0 : index
    %c2_343 = arith.constant 2 : index
    %386 = vector.load %arg9[%c0_342, %c2_343] : memref<8x290xf32, #tpu.memory_space<vmem>>, vector<8x256xf32>
    %c1_344 = arith.constant 1 : index
    %c0_345 = arith.constant 0 : index
    %387 = vector.load %arg6[%c1_344, %c0_345] : memref<2x256xf32, #tpu.memory_space<vmem>>, vector<1x256xf32>
    %cst_346 = arith.constant 5.000000e-01 : f32
    %388 = vector.broadcast %cst_346 : f32 to vector<1x256xf32>
    %389 = arith.cmpf ogt, %387, %388 : vector<1x256xf32>
    %cst_347 = arith.constant 0.000000e+00 : f32
    %390 = vector.shape_cast %389 : vector<1x256xi1> to vector<1x256xi1>
    %391 = vector.broadcast %390 : vector<1x256xi1> to vector<8x256xi1>
    %392 = vector.broadcast %cst_347 : f32 to vector<8x256xf32>
    %393 = arith.select %391, %386, %392 : vector<8x256xi1>, vector<8x256xf32>
    %c48_348 = arith.constant 48 : index
    %c0_349 = arith.constant 0 : index
    %394 = vector.load %arg8[%c48_348, %c0_349] : memref<216x256xf32, #tpu.memory_space<vmem>>, vector<8x256xf32>
    tpu.vector_store %arg8[%c48_348, %c0_349], %393 {strides = array<i32>} : memref<216x256xf32, #tpu.memory_space<vmem>>, vector<8x256xf32>,
    %c0_350 = arith.constant 0 : index
    %c16_351 = arith.constant 16 : index
    %395 = vector.load %arg9[%c0_350, %c16_351] : memref<8x290xf32, #tpu.memory_space<vmem>>, vector<8x256xf32>
    %c0_352 = arith.constant 0 : index
    %c0_353 = arith.constant 0 : index
    %396 = vector.load %arg6[%c0_352, %c0_353] : memref<2x256xf32, #tpu.memory_space<vmem>>, vector<1x256xf32>
    %cst_354 = arith.constant 5.000000e-01 : f32
    %397 = vector.broadcast %cst_354 : f32 to vector<1x256xf32>
    %398 = arith.cmpf ogt, %396, %397 : vector<1x256xf32>
    %cst_355 = arith.constant 0.000000e+00 : f32
    %399 = vector.shape_cast %398 : vector<1x256xi1> to vector<1x256xi1>
    %400 = vector.broadcast %399 : vector<1x256xi1> to vector<8x256xi1>
    %401 = vector.broadcast %cst_355 : f32 to vector<8x256xf32>
    %402 = arith.select %400, %395, %401 : vector<8x256xi1>, vector<8x256xf32>
    %c72_356 = arith.constant 72 : index
    %c0_357 = arith.constant 0 : index
    %403 = vector.load %arg8[%c72_356, %c0_357] : memref<216x256xf32, #tpu.memory_space<vmem>>, vector<8x256xf32>
    tpu.vector_store %arg8[%c72_356, %c0_357], %402 {strides = array<i32>} : memref<216x256xf32, #tpu.memory_space<vmem>>, vector<8x256xf32>,
    %c0_358 = arith.constant 0 : index
    %c17_359 = arith.constant 17 : index
    %404 = vector.load %arg9[%c0_358, %c17_359] : memref<8x290xf32, #tpu.memory_space<vmem>>, vector<8x256xf32>
    %c96_360 = arith.constant 96 : index
    %c0_361 = arith.constant 0 : index
    %405 = vector.load %arg8[%c96_360, %c0_361] : memref<216x256xf32, #tpu.memory_space<vmem>>, vector<8x256xf32>
    tpu.vector_store %arg8[%c96_360, %c0_361], %404 {strides = array<i32>} : memref<216x256xf32, #tpu.memory_space<vmem>>, vector<8x256xf32>,
    %c0_362 = arith.constant 0 : index
    %c18_363 = arith.constant 18 : index
    %406 = vector.load %arg9[%c0_362, %c18_363] : memref<8x290xf32, #tpu.memory_space<vmem>>, vector<8x256xf32>
    %c1_364 = arith.constant 1 : index
    %c0_365 = arith.constant 0 : index
    %407 = vector.load %arg6[%c1_364, %c0_365] : memref<2x256xf32, #tpu.memory_space<vmem>>, vector<1x256xf32>
    %cst_366 = arith.constant 5.000000e-01 : f32
    %408 = vector.broadcast %cst_366 : f32 to vector<1x256xf32>
    %409 = arith.cmpf ogt, %407, %408 : vector<1x256xf32>
    %cst_367 = arith.constant 0.000000e+00 : f32
    %410 = vector.shape_cast %409 : vector<1x256xi1> to vector<1x256xi1>
    %411 = vector.broadcast %410 : vector<1x256xi1> to vector<8x256xi1>
    %412 = vector.broadcast %cst_367 : f32 to vector<8x256xf32>
    %413 = arith.select %411, %406, %412 : vector<8x256xi1>, vector<8x256xf32>
    %c120_368 = arith.constant 120 : index
    %c0_369 = arith.constant 0 : index
    %414 = vector.load %arg8[%c120_368, %c0_369] : memref<216x256xf32, #tpu.memory_space<vmem>>, vector<8x256xf32>
    tpu.vector_store %arg8[%c120_368, %c0_369], %413 {strides = array<i32>} : memref<216x256xf32, #tpu.memory_space<vmem>>, vector<8x256xf32>,
    %c0_370 = arith.constant 0 : index
    %c32_371 = arith.constant 32 : index
    %415 = vector.load %arg9[%c0_370, %c32_371] : memref<8x290xf32, #tpu.memory_space<vmem>>, vector<8x256xf32>
    %c0_372 = arith.constant 0 : index
    %c0_373 = arith.constant 0 : index
    %416 = vector.load %arg6[%c0_372, %c0_373] : memref<2x256xf32, #tpu.memory_space<vmem>>, vector<1x256xf32>
    %cst_374 = arith.constant 5.000000e-01 : f32
    %417 = vector.broadcast %cst_374 : f32 to vector<1x256xf32>
    %418 = arith.cmpf ogt, %416, %417 : vector<1x256xf32>
    %cst_375 = arith.constant 0.000000e+00 : f32
    %419 = vector.shape_cast %418 : vector<1x256xi1> to vector<1x256xi1>
    %420 = vector.broadcast %419 : vector<1x256xi1> to vector<8x256xi1>
    %421 = vector.broadcast %cst_375 : f32 to vector<8x256xf32>
    %422 = arith.select %420, %415, %421 : vector<8x256xi1>, vector<8x256xf32>
    %c144_376 = arith.constant 144 : index
    %c0_377 = arith.constant 0 : index
    %423 = vector.load %arg8[%c144_376, %c0_377] : memref<216x256xf32, #tpu.memory_space<vmem>>, vector<8x256xf32>
    tpu.vector_store %arg8[%c144_376, %c0_377], %422 {strides = array<i32>} : memref<216x256xf32, #tpu.memory_space<vmem>>, vector<8x256xf32>,
    %c0_378 = arith.constant 0 : index
    %c33_379 = arith.constant 33 : index
    %424 = vector.load %arg9[%c0_378, %c33_379] : memref<8x290xf32, #tpu.memory_space<vmem>>, vector<8x256xf32>
    %c168_380 = arith.constant 168 : index
    %c0_381 = arith.constant 0 : index
    %425 = vector.load %arg8[%c168_380, %c0_381] : memref<216x256xf32, #tpu.memory_space<vmem>>, vector<8x256xf32>
    tpu.vector_store %arg8[%c168_380, %c0_381], %424 {strides = array<i32>} : memref<216x256xf32, #tpu.memory_space<vmem>>, vector<8x256xf32>,
    %c0_382 = arith.constant 0 : index
    %c34_383 = arith.constant 34 : index
    %426 = vector.load %arg9[%c0_382, %c34_383] : memref<8x290xf32, #tpu.memory_space<vmem>>, vector<8x256xf32>
    %c1_384 = arith.constant 1 : index
    %c0_385 = arith.constant 0 : index
    %427 = vector.load %arg6[%c1_384, %c0_385] : memref<2x256xf32, #tpu.memory_space<vmem>>, vector<1x256xf32>
    %cst_386 = arith.constant 5.000000e-01 : f32
    %428 = vector.broadcast %cst_386 : f32 to vector<1x256xf32>
    %429 = arith.cmpf ogt, %427, %428 : vector<1x256xf32>
    %cst_387 = arith.constant 0.000000e+00 : f32
    %430 = vector.shape_cast %429 : vector<1x256xi1> to vector<1x256xi1>
    %431 = vector.broadcast %430 : vector<1x256xi1> to vector<8x256xi1>
    %432 = vector.broadcast %cst_387 : f32 to vector<8x256xf32>
    %433 = arith.select %431, %426, %432 : vector<8x256xi1>, vector<8x256xf32>
    %c192_388 = arith.constant 192 : index
    %c0_389 = arith.constant 0 : index
    %434 = vector.load %arg8[%c192_388, %c0_389] : memref<216x256xf32, #tpu.memory_space<vmem>>, vector<8x256xf32>
    tpu.vector_store %arg8[%c192_388, %c0_389], %433 {strides = array<i32>} : memref<216x256xf32, #tpu.memory_space<vmem>>, vector<8x256xf32>,
    %c1_390 = arith.constant 1 : index
    %c0_391 = arith.constant 0 : index
    %c0_392 = arith.constant 0 : index
    %c0_393 = arith.constant 0 : index
    %435 = vector.load %arg2[%c1_390, %c0_391, %c0_392, %c0_393] : memref<3x4x4x216xf32, #tpu.memory_space<vmem>>, vector<1x1x4x216xf32>
    %436 = vector.shape_cast %435 : vector<1x1x4x216xf32> to vector<4x216xf32>
    %c1_394 = arith.constant 1 : index
    %c0_395 = arith.constant 0 : index
    %c0_396 = arith.constant 0 : index
    %c0_397 = arith.constant 0 : index
    %437 = vector.load %arg3[%c1_394, %c0_395, %c0_396, %c0_397] : memref<3x4x4x1xf32, #tpu.memory_space<vmem>>, vector<1x1x4x1xf32>
    %438 = vector.shape_cast %437 : vector<1x1x4x1xf32> to vector<4x1xf32>
    %c0_398 = arith.constant 0 : index
    %c0_399 = arith.constant 0 : index
    %439 = vector.load %arg8[%c0_398, %c0_399] : memref<216x256xf32, #tpu.memory_space<vmem>>, vector<216x256xf32>
    %cst_400 = arith.constant dense<0.000000e+00> : vector<4x256xf32>
    %440 = tpu.matmul %436, %439, %cst_400 {dimension_numbers = #tpu.dot_dimension_numbers<[1], [0], [0], [1], [0, 0, 1, 1], [], []>} : vector<4x216xf32>, vector<216x256xf32>, vector<4x256xf32> -> vector<4x256xf32>
    %441 = vector.broadcast %438 : vector<4x1xf32> to vector<4x256xf32>
    %442 = arith.addf %440, %441 : vector<4x256xf32>
    %cst_401 = arith.constant 0.000000e+00 : f32
    %443 = vector.broadcast %cst_401 : f32 to vector<4x256xf32>
    %444 = arith.cmpf oge, %442, %443 : vector<4x256xf32>
    %cst_402 = arith.constant 2.000000e-01 : f32
    %445 = vector.broadcast %cst_402 : f32 to vector<4x256xf32>
    %446 = arith.mulf %445, %442 : vector<4x256xf32>
    %447 = arith.select %444, %442, %446 : vector<4x256xi1>, vector<4x256xf32>
    %c0_403 = arith.constant 0 : index
    %c17_404 = arith.constant 17 : index
    %448 = vector.load %arg9[%c0_403, %c17_404] : memref<8x290xf32, #tpu.memory_space<vmem>>, vector<4x256xf32>
    tpu.vector_store %arg9[%c0_403, %c17_404], %447 {strides = array<i32>} : memref<8x290xf32, #tpu.memory_space<vmem>>, vector<4x256xf32>,
    %c0_405 = arith.constant 0 : index
    %c0_406 = arith.constant 0 : index
    %449 = vector.load %arg9[%c0_405, %c0_406] : memref<8x290xf32, #tpu.memory_space<vmem>>, vector<4x256xf32>
    %c0_407 = arith.constant 0 : index
    %c0_408 = arith.constant 0 : index
    %450 = vector.load %arg6[%c0_407, %c0_408] : memref<2x256xf32, #tpu.memory_space<vmem>>, vector<1x256xf32>
    %cst_409 = arith.constant 5.000000e-01 : f32
    %451 = vector.broadcast %cst_409 : f32 to vector<1x256xf32>
    %452 = arith.cmpf ogt, %450, %451 : vector<1x256xf32>
    %cst_410 = arith.constant 0.000000e+00 : f32
    %453 = vector.shape_cast %452 : vector<1x256xi1> to vector<1x256xi1>
    %454 = vector.broadcast %453 : vector<1x256xi1> to vector<4x256xi1>
    %455 = vector.broadcast %cst_410 : f32 to vector<4x256xf32>
    %456 = arith.select %454, %449, %455 : vector<4x256xi1>, vector<4x256xf32>
    %c8_411 = arith.constant 8 : index
    %c0_412 = arith.constant 0 : index
    %457 = vector.load %arg8[%c8_411, %c0_412] : memref<216x256xf32, #tpu.memory_space<vmem>>, vector<4x256xf32>
    tpu.vector_store %arg8[%c8_411, %c0_412], %456 {strides = array<i32>} : memref<216x256xf32, #tpu.memory_space<vmem>>, vector<4x256xf32>,
    %c0_413 = arith.constant 0 : index
    %c1_414 = arith.constant 1 : index
    %458 = vector.load %arg9[%c0_413, %c1_414] : memref<8x290xf32, #tpu.memory_space<vmem>>, vector<4x256xf32>
    %c32_415 = arith.constant 32 : index
    %c0_416 = arith.constant 0 : index
    %459 = vector.load %arg8[%c32_415, %c0_416] : memref<216x256xf32, #tpu.memory_space<vmem>>, vector<4x256xf32>
    tpu.vector_store %arg8[%c32_415, %c0_416], %458 {strides = array<i32>} : memref<216x256xf32, #tpu.memory_space<vmem>>, vector<4x256xf32>,
    %c0_417 = arith.constant 0 : index
    %c2_418 = arith.constant 2 : index
    %460 = vector.load %arg9[%c0_417, %c2_418] : memref<8x290xf32, #tpu.memory_space<vmem>>, vector<4x256xf32>
    %c1_419 = arith.constant 1 : index
    %c0_420 = arith.constant 0 : index
    %461 = vector.load %arg6[%c1_419, %c0_420] : memref<2x256xf32, #tpu.memory_space<vmem>>, vector<1x256xf32>
    %cst_421 = arith.constant 5.000000e-01 : f32
    %462 = vector.broadcast %cst_421 : f32 to vector<1x256xf32>
    %463 = arith.cmpf ogt, %461, %462 : vector<1x256xf32>
    %cst_422 = arith.constant 0.000000e+00 : f32
    %464 = vector.shape_cast %463 : vector<1x256xi1> to vector<1x256xi1>
    %465 = vector.broadcast %464 : vector<1x256xi1> to vector<4x256xi1>
    %466 = vector.broadcast %cst_422 : f32 to vector<4x256xf32>
    %467 = arith.select %465, %460, %466 : vector<4x256xi1>, vector<4x256xf32>
    %c56_423 = arith.constant 56 : index
    %c0_424 = arith.constant 0 : index
    %468 = vector.load %arg8[%c56_423, %c0_424] : memref<216x256xf32, #tpu.memory_space<vmem>>, vector<4x256xf32>
    tpu.vector_store %arg8[%c56_423, %c0_424], %467 {strides = array<i32>} : memref<216x256xf32, #tpu.memory_space<vmem>>, vector<4x256xf32>,
    %c0_425 = arith.constant 0 : index
    %c16_426 = arith.constant 16 : index
    %469 = vector.load %arg9[%c0_425, %c16_426] : memref<8x290xf32, #tpu.memory_space<vmem>>, vector<4x256xf32>
    %c0_427 = arith.constant 0 : index
    %c0_428 = arith.constant 0 : index
    %470 = vector.load %arg6[%c0_427, %c0_428] : memref<2x256xf32, #tpu.memory_space<vmem>>, vector<1x256xf32>
    %cst_429 = arith.constant 5.000000e-01 : f32
    %471 = vector.broadcast %cst_429 : f32 to vector<1x256xf32>
    %472 = arith.cmpf ogt, %470, %471 : vector<1x256xf32>
    %cst_430 = arith.constant 0.000000e+00 : f32
    %473 = vector.shape_cast %472 : vector<1x256xi1> to vector<1x256xi1>
    %474 = vector.broadcast %473 : vector<1x256xi1> to vector<4x256xi1>
    %475 = vector.broadcast %cst_430 : f32 to vector<4x256xf32>
    %476 = arith.select %474, %469, %475 : vector<4x256xi1>, vector<4x256xf32>
    %c80_431 = arith.constant 80 : index
    %c0_432 = arith.constant 0 : index
    %477 = vector.load %arg8[%c80_431, %c0_432] : memref<216x256xf32, #tpu.memory_space<vmem>>, vector<4x256xf32>
    tpu.vector_store %arg8[%c80_431, %c0_432], %476 {strides = array<i32>} : memref<216x256xf32, #tpu.memory_space<vmem>>, vector<4x256xf32>,
    %c0_433 = arith.constant 0 : index
    %c17_434 = arith.constant 17 : index
    %478 = vector.load %arg9[%c0_433, %c17_434] : memref<8x290xf32, #tpu.memory_space<vmem>>, vector<4x256xf32>
    %c104_435 = arith.constant 104 : index
    %c0_436 = arith.constant 0 : index
    %479 = vector.load %arg8[%c104_435, %c0_436] : memref<216x256xf32, #tpu.memory_space<vmem>>, vector<4x256xf32>
    tpu.vector_store %arg8[%c104_435, %c0_436], %478 {strides = array<i32>} : memref<216x256xf32, #tpu.memory_space<vmem>>, vector<4x256xf32>,
    %c0_437 = arith.constant 0 : index
    %c18_438 = arith.constant 18 : index
    %480 = vector.load %arg9[%c0_437, %c18_438] : memref<8x290xf32, #tpu.memory_space<vmem>>, vector<4x256xf32>
    %c1_439 = arith.constant 1 : index
    %c0_440 = arith.constant 0 : index
    %481 = vector.load %arg6[%c1_439, %c0_440] : memref<2x256xf32, #tpu.memory_space<vmem>>, vector<1x256xf32>
    %cst_441 = arith.constant 5.000000e-01 : f32
    %482 = vector.broadcast %cst_441 : f32 to vector<1x256xf32>
    %483 = arith.cmpf ogt, %481, %482 : vector<1x256xf32>
    %cst_442 = arith.constant 0.000000e+00 : f32
    %484 = vector.shape_cast %483 : vector<1x256xi1> to vector<1x256xi1>
    %485 = vector.broadcast %484 : vector<1x256xi1> to vector<4x256xi1>
    %486 = vector.broadcast %cst_442 : f32 to vector<4x256xf32>
    %487 = arith.select %485, %480, %486 : vector<4x256xi1>, vector<4x256xf32>
    %c128_443 = arith.constant 128 : index
    %c0_444 = arith.constant 0 : index
    %488 = vector.load %arg8[%c128_443, %c0_444] : memref<216x256xf32, #tpu.memory_space<vmem>>, vector<4x256xf32>
    tpu.vector_store %arg8[%c128_443, %c0_444], %487 {strides = array<i32>} : memref<216x256xf32, #tpu.memory_space<vmem>>, vector<4x256xf32>,
    %c0_445 = arith.constant 0 : index
    %c32_446 = arith.constant 32 : index
    %489 = vector.load %arg9[%c0_445, %c32_446] : memref<8x290xf32, #tpu.memory_space<vmem>>, vector<4x256xf32>
    %c0_447 = arith.constant 0 : index
    %c0_448 = arith.constant 0 : index
    %490 = vector.load %arg6[%c0_447, %c0_448] : memref<2x256xf32, #tpu.memory_space<vmem>>, vector<1x256xf32>
    %cst_449 = arith.constant 5.000000e-01 : f32
    %491 = vector.broadcast %cst_449 : f32 to vector<1x256xf32>
    %492 = arith.cmpf ogt, %490, %491 : vector<1x256xf32>
    %cst_450 = arith.constant 0.000000e+00 : f32
    %493 = vector.shape_cast %492 : vector<1x256xi1> to vector<1x256xi1>
    %494 = vector.broadcast %493 : vector<1x256xi1> to vector<4x256xi1>
    %495 = vector.broadcast %cst_450 : f32 to vector<4x256xf32>
    %496 = arith.select %494, %489, %495 : vector<4x256xi1>, vector<4x256xf32>
    %c152_451 = arith.constant 152 : index
    %c0_452 = arith.constant 0 : index
    %497 = vector.load %arg8[%c152_451, %c0_452] : memref<216x256xf32, #tpu.memory_space<vmem>>, vector<4x256xf32>
    tpu.vector_store %arg8[%c152_451, %c0_452], %496 {strides = array<i32>} : memref<216x256xf32, #tpu.memory_space<vmem>>, vector<4x256xf32>,
    %c0_453 = arith.constant 0 : index
    %c33_454 = arith.constant 33 : index
    %498 = vector.load %arg9[%c0_453, %c33_454] : memref<8x290xf32, #tpu.memory_space<vmem>>, vector<4x256xf32>
    %c176_455 = arith.constant 176 : index
    %c0_456 = arith.constant 0 : index
    %499 = vector.load %arg8[%c176_455, %c0_456] : memref<216x256xf32, #tpu.memory_space<vmem>>, vector<4x256xf32>
    tpu.vector_store %arg8[%c176_455, %c0_456], %498 {strides = array<i32>} : memref<216x256xf32, #tpu.memory_space<vmem>>, vector<4x256xf32>,
    %c0_457 = arith.constant 0 : index
    %c34_458 = arith.constant 34 : index
    %500 = vector.load %arg9[%c0_457, %c34_458] : memref<8x290xf32, #tpu.memory_space<vmem>>, vector<4x256xf32>
    %c1_459 = arith.constant 1 : index
    %c0_460 = arith.constant 0 : index
    %501 = vector.load %arg6[%c1_459, %c0_460] : memref<2x256xf32, #tpu.memory_space<vmem>>, vector<1x256xf32>
    %cst_461 = arith.constant 5.000000e-01 : f32
    %502 = vector.broadcast %cst_461 : f32 to vector<1x256xf32>
    %503 = arith.cmpf ogt, %501, %502 : vector<1x256xf32>
    %cst_462 = arith.constant 0.000000e+00 : f32
    %504 = vector.shape_cast %503 : vector<1x256xi1> to vector<1x256xi1>
    %505 = vector.broadcast %504 : vector<1x256xi1> to vector<4x256xi1>
    %506 = vector.broadcast %cst_462 : f32 to vector<4x256xf32>
    %507 = arith.select %505, %500, %506 : vector<4x256xi1>, vector<4x256xf32>
    %c200_463 = arith.constant 200 : index
    %c0_464 = arith.constant 0 : index
    %508 = vector.load %arg8[%c200_463, %c0_464] : memref<216x256xf32, #tpu.memory_space<vmem>>, vector<4x256xf32>
    tpu.vector_store %arg8[%c200_463, %c0_464], %507 {strides = array<i32>} : memref<216x256xf32, #tpu.memory_space<vmem>>, vector<4x256xf32>,
    %c1_465 = arith.constant 1 : index
    %c1_466 = arith.constant 1 : index
    %c0_467 = arith.constant 0 : index
    %c0_468 = arith.constant 0 : index
    %509 = vector.load %arg2[%c1_465, %c1_466, %c0_467, %c0_468] : memref<3x4x4x216xf32, #tpu.memory_space<vmem>>, vector<1x1x4x216xf32>
    %510 = vector.shape_cast %509 : vector<1x1x4x216xf32> to vector<4x216xf32>
    %c1_469 = arith.constant 1 : index
    %c1_470 = arith.constant 1 : index
    %c0_471 = arith.constant 0 : index
    %c0_472 = arith.constant 0 : index
    %511 = vector.load %arg3[%c1_469, %c1_470, %c0_471, %c0_472] : memref<3x4x4x1xf32, #tpu.memory_space<vmem>>, vector<1x1x4x1xf32>
    %512 = vector.shape_cast %511 : vector<1x1x4x1xf32> to vector<4x1xf32>
    %c0_473 = arith.constant 0 : index
    %c0_474 = arith.constant 0 : index
    %513 = vector.load %arg8[%c0_473, %c0_474] : memref<216x256xf32, #tpu.memory_space<vmem>>, vector<216x256xf32>
    %cst_475 = arith.constant dense<0.000000e+00> : vector<4x256xf32>
    %514 = tpu.matmul %510, %513, %cst_475 {dimension_numbers = #tpu.dot_dimension_numbers<[1], [0], [0], [1], [0, 0, 1, 1], [], []>} : vector<4x216xf32>, vector<216x256xf32>, vector<4x256xf32> -> vector<4x256xf32>
    %515 = vector.broadcast %512 : vector<4x1xf32> to vector<4x256xf32>
    %516 = arith.addf %514, %515 : vector<4x256xf32>
    %cst_476 = arith.constant 0.000000e+00 : f32
    %517 = vector.broadcast %cst_476 : f32 to vector<4x256xf32>
    %518 = arith.cmpf oge, %516, %517 : vector<4x256xf32>
    %cst_477 = arith.constant 2.000000e-01 : f32
    %519 = vector.broadcast %cst_477 : f32 to vector<4x256xf32>
    %520 = arith.mulf %519, %516 : vector<4x256xf32>
    %521 = arith.select %518, %516, %520 : vector<4x256xi1>, vector<4x256xf32>
    %c0_478 = arith.constant 0 : index
    %c17_479 = arith.constant 17 : index
    %522 = vector.load %arg9[%c0_478, %c17_479] : memref<8x290xf32, #tpu.memory_space<vmem>>, vector<4x256xf32>
    tpu.vector_store %arg9[%c0_478, %c17_479], %521 {strides = array<i32>} : memref<8x290xf32, #tpu.memory_space<vmem>>, vector<4x256xf32>,
    %c0_480 = arith.constant 0 : index
    %c0_481 = arith.constant 0 : index
    %523 = vector.load %arg9[%c0_480, %c0_481] : memref<8x290xf32, #tpu.memory_space<vmem>>, vector<4x256xf32>
    %c0_482 = arith.constant 0 : index
    %c0_483 = arith.constant 0 : index
    %524 = vector.load %arg6[%c0_482, %c0_483] : memref<2x256xf32, #tpu.memory_space<vmem>>, vector<1x256xf32>
    %cst_484 = arith.constant 5.000000e-01 : f32
    %525 = vector.broadcast %cst_484 : f32 to vector<1x256xf32>
    %526 = arith.cmpf ogt, %524, %525 : vector<1x256xf32>
    %cst_485 = arith.constant 0.000000e+00 : f32
    %527 = vector.shape_cast %526 : vector<1x256xi1> to vector<1x256xi1>
    %528 = vector.broadcast %527 : vector<1x256xi1> to vector<4x256xi1>
    %529 = vector.broadcast %cst_485 : f32 to vector<4x256xf32>
    %530 = arith.select %528, %523, %529 : vector<4x256xi1>, vector<4x256xf32>
    %c12_486 = arith.constant 12 : index
    %c0_487 = arith.constant 0 : index
    %531 = vector.load %arg8[%c12_486, %c0_487] : memref<216x256xf32, #tpu.memory_space<vmem>>, vector<4x256xf32>
    tpu.vector_store %arg8[%c12_486, %c0_487], %530 {strides = array<i32>} : memref<216x256xf32, #tpu.memory_space<vmem>>, vector<4x256xf32>,
    %c0_488 = arith.constant 0 : index
    %c1_489 = arith.constant 1 : index
    %532 = vector.load %arg9[%c0_488, %c1_489] : memref<8x290xf32, #tpu.memory_space<vmem>>, vector<4x256xf32>
    %c36_490 = arith.constant 36 : index
    %c0_491 = arith.constant 0 : index
    %533 = vector.load %arg8[%c36_490, %c0_491] : memref<216x256xf32, #tpu.memory_space<vmem>>, vector<4x256xf32>
    tpu.vector_store %arg8[%c36_490, %c0_491], %532 {strides = array<i32>} : memref<216x256xf32, #tpu.memory_space<vmem>>, vector<4x256xf32>,
    %c0_492 = arith.constant 0 : index
    %c2_493 = arith.constant 2 : index
    %534 = vector.load %arg9[%c0_492, %c2_493] : memref<8x290xf32, #tpu.memory_space<vmem>>, vector<4x256xf32>
    %c1_494 = arith.constant 1 : index
    %c0_495 = arith.constant 0 : index
    %535 = vector.load %arg6[%c1_494, %c0_495] : memref<2x256xf32, #tpu.memory_space<vmem>>, vector<1x256xf32>
    %cst_496 = arith.constant 5.000000e-01 : f32
    %536 = vector.broadcast %cst_496 : f32 to vector<1x256xf32>
    %537 = arith.cmpf ogt, %535, %536 : vector<1x256xf32>
    %cst_497 = arith.constant 0.000000e+00 : f32
    %538 = vector.shape_cast %537 : vector<1x256xi1> to vector<1x256xi1>
    %539 = vector.broadcast %538 : vector<1x256xi1> to vector<4x256xi1>
    %540 = vector.broadcast %cst_497 : f32 to vector<4x256xf32>
    %541 = arith.select %539, %534, %540 : vector<4x256xi1>, vector<4x256xf32>
    %c60_498 = arith.constant 60 : index
    %c0_499 = arith.constant 0 : index
    %542 = vector.load %arg8[%c60_498, %c0_499] : memref<216x256xf32, #tpu.memory_space<vmem>>, vector<4x256xf32>
    tpu.vector_store %arg8[%c60_498, %c0_499], %541 {strides = array<i32>} : memref<216x256xf32, #tpu.memory_space<vmem>>, vector<4x256xf32>,
    %c0_500 = arith.constant 0 : index
    %c16_501 = arith.constant 16 : index
    %543 = vector.load %arg9[%c0_500, %c16_501] : memref<8x290xf32, #tpu.memory_space<vmem>>, vector<4x256xf32>
    %c0_502 = arith.constant 0 : index
    %c0_503 = arith.constant 0 : index
    %544 = vector.load %arg6[%c0_502, %c0_503] : memref<2x256xf32, #tpu.memory_space<vmem>>, vector<1x256xf32>
    %cst_504 = arith.constant 5.000000e-01 : f32
    %545 = vector.broadcast %cst_504 : f32 to vector<1x256xf32>
    %546 = arith.cmpf ogt, %544, %545 : vector<1x256xf32>
    %cst_505 = arith.constant 0.000000e+00 : f32
    %547 = vector.shape_cast %546 : vector<1x256xi1> to vector<1x256xi1>
    %548 = vector.broadcast %547 : vector<1x256xi1> to vector<4x256xi1>
    %549 = vector.broadcast %cst_505 : f32 to vector<4x256xf32>
    %550 = arith.select %548, %543, %549 : vector<4x256xi1>, vector<4x256xf32>
    %c84_506 = arith.constant 84 : index
    %c0_507 = arith.constant 0 : index
    %551 = vector.load %arg8[%c84_506, %c0_507] : memref<216x256xf32, #tpu.memory_space<vmem>>, vector<4x256xf32>
    tpu.vector_store %arg8[%c84_506, %c0_507], %550 {strides = array<i32>} : memref<216x256xf32, #tpu.memory_space<vmem>>, vector<4x256xf32>,
    %c0_508 = arith.constant 0 : index
    %c17_509 = arith.constant 17 : index
    %552 = vector.load %arg9[%c0_508, %c17_509] : memref<8x290xf32, #tpu.memory_space<vmem>>, vector<4x256xf32>
    %c108_510 = arith.constant 108 : index
    %c0_511 = arith.constant 0 : index
    %553 = vector.load %arg8[%c108_510, %c0_511] : memref<216x256xf32, #tpu.memory_space<vmem>>, vector<4x256xf32>
    tpu.vector_store %arg8[%c108_510, %c0_511], %552 {strides = array<i32>} : memref<216x256xf32, #tpu.memory_space<vmem>>, vector<4x256xf32>,
    %c0_512 = arith.constant 0 : index
    %c18_513 = arith.constant 18 : index
    %554 = vector.load %arg9[%c0_512, %c18_513] : memref<8x290xf32, #tpu.memory_space<vmem>>, vector<4x256xf32>
    %c1_514 = arith.constant 1 : index
    %c0_515 = arith.constant 0 : index
    %555 = vector.load %arg6[%c1_514, %c0_515] : memref<2x256xf32, #tpu.memory_space<vmem>>, vector<1x256xf32>
    %cst_516 = arith.constant 5.000000e-01 : f32
    %556 = vector.broadcast %cst_516 : f32 to vector<1x256xf32>
    %557 = arith.cmpf ogt, %555, %556 : vector<1x256xf32>
    %cst_517 = arith.constant 0.000000e+00 : f32
    %558 = vector.shape_cast %557 : vector<1x256xi1> to vector<1x256xi1>
    %559 = vector.broadcast %558 : vector<1x256xi1> to vector<4x256xi1>
    %560 = vector.broadcast %cst_517 : f32 to vector<4x256xf32>
    %561 = arith.select %559, %554, %560 : vector<4x256xi1>, vector<4x256xf32>
    %c132_518 = arith.constant 132 : index
    %c0_519 = arith.constant 0 : index
    %562 = vector.load %arg8[%c132_518, %c0_519] : memref<216x256xf32, #tpu.memory_space<vmem>>, vector<4x256xf32>
    tpu.vector_store %arg8[%c132_518, %c0_519], %561 {strides = array<i32>} : memref<216x256xf32, #tpu.memory_space<vmem>>, vector<4x256xf32>,
    %c0_520 = arith.constant 0 : index
    %c32_521 = arith.constant 32 : index
    %563 = vector.load %arg9[%c0_520, %c32_521] : memref<8x290xf32, #tpu.memory_space<vmem>>, vector<4x256xf32>
    %c0_522 = arith.constant 0 : index
    %c0_523 = arith.constant 0 : index
    %564 = vector.load %arg6[%c0_522, %c0_523] : memref<2x256xf32, #tpu.memory_space<vmem>>, vector<1x256xf32>
    %cst_524 = arith.constant 5.000000e-01 : f32
    %565 = vector.broadcast %cst_524 : f32 to vector<1x256xf32>
    %566 = arith.cmpf ogt, %564, %565 : vector<1x256xf32>
    %cst_525 = arith.constant 0.000000e+00 : f32
    %567 = vector.shape_cast %566 : vector<1x256xi1> to vector<1x256xi1>
    %568 = vector.broadcast %567 : vector<1x256xi1> to vector<4x256xi1>
    %569 = vector.broadcast %cst_525 : f32 to vector<4x256xf32>
    %570 = arith.select %568, %563, %569 : vector<4x256xi1>, vector<4x256xf32>
    %c156_526 = arith.constant 156 : index
    %c0_527 = arith.constant 0 : index
    %571 = vector.load %arg8[%c156_526, %c0_527] : memref<216x256xf32, #tpu.memory_space<vmem>>, vector<4x256xf32>
    tpu.vector_store %arg8[%c156_526, %c0_527], %570 {strides = array<i32>} : memref<216x256xf32, #tpu.memory_space<vmem>>, vector<4x256xf32>,
    %c0_528 = arith.constant 0 : index
    %c33_529 = arith.constant 33 : index
    %572 = vector.load %arg9[%c0_528, %c33_529] : memref<8x290xf32, #tpu.memory_space<vmem>>, vector<4x256xf32>
    %c180_530 = arith.constant 180 : index
    %c0_531 = arith.constant 0 : index
    %573 = vector.load %arg8[%c180_530, %c0_531] : memref<216x256xf32, #tpu.memory_space<vmem>>, vector<4x256xf32>
    tpu.vector_store %arg8[%c180_530, %c0_531], %572 {strides = array<i32>} : memref<216x256xf32, #tpu.memory_space<vmem>>, vector<4x256xf32>,
    %c0_532 = arith.constant 0 : index
    %c34_533 = arith.constant 34 : index
    %574 = vector.load %arg9[%c0_532, %c34_533] : memref<8x290xf32, #tpu.memory_space<vmem>>, vector<4x256xf32>
    %c1_534 = arith.constant 1 : index
    %c0_535 = arith.constant 0 : index
    %575 = vector.load %arg6[%c1_534, %c0_535] : memref<2x256xf32, #tpu.memory_space<vmem>>, vector<1x256xf32>
    %cst_536 = arith.constant 5.000000e-01 : f32
    %576 = vector.broadcast %cst_536 : f32 to vector<1x256xf32>
    %577 = arith.cmpf ogt, %575, %576 : vector<1x256xf32>
    %cst_537 = arith.constant 0.000000e+00 : f32
    %578 = vector.shape_cast %577 : vector<1x256xi1> to vector<1x256xi1>
    %579 = vector.broadcast %578 : vector<1x256xi1> to vector<4x256xi1>
    %580 = vector.broadcast %cst_537 : f32 to vector<4x256xf32>
    %581 = arith.select %579, %574, %580 : vector<4x256xi1>, vector<4x256xf32>
    %c204_538 = arith.constant 204 : index
    %c0_539 = arith.constant 0 : index
    %582 = vector.load %arg8[%c204_538, %c0_539] : memref<216x256xf32, #tpu.memory_space<vmem>>, vector<4x256xf32>
    tpu.vector_store %arg8[%c204_538, %c0_539], %581 {strides = array<i32>} : memref<216x256xf32, #tpu.memory_space<vmem>>, vector<4x256xf32>,
    %c1_540 = arith.constant 1 : index
    %c2_541 = arith.constant 2 : index
    %c0_542 = arith.constant 0 : index
    %c0_543 = arith.constant 0 : index
    %583 = vector.load %arg2[%c1_540, %c2_541, %c0_542, %c0_543] : memref<3x4x4x216xf32, #tpu.memory_space<vmem>>, vector<1x1x4x216xf32>
    %584 = vector.shape_cast %583 : vector<1x1x4x216xf32> to vector<4x216xf32>
    %c1_544 = arith.constant 1 : index
    %c2_545 = arith.constant 2 : index
    %c0_546 = arith.constant 0 : index
    %c0_547 = arith.constant 0 : index
    %585 = vector.load %arg3[%c1_544, %c2_545, %c0_546, %c0_547] : memref<3x4x4x1xf32, #tpu.memory_space<vmem>>, vector<1x1x4x1xf32>
    %586 = vector.shape_cast %585 : vector<1x1x4x1xf32> to vector<4x1xf32>
    %c0_548 = arith.constant 0 : index
    %c0_549 = arith.constant 0 : index
    %587 = vector.load %arg8[%c0_548, %c0_549] : memref<216x256xf32, #tpu.memory_space<vmem>>, vector<216x256xf32>
    %cst_550 = arith.constant dense<0.000000e+00> : vector<4x256xf32>
    %588 = tpu.matmul %584, %587, %cst_550 {dimension_numbers = #tpu.dot_dimension_numbers<[1], [0], [0], [1], [0, 0, 1, 1], [], []>} : vector<4x216xf32>, vector<216x256xf32>, vector<4x256xf32> -> vector<4x256xf32>
    %589 = vector.broadcast %586 : vector<4x1xf32> to vector<4x256xf32>
    %590 = arith.addf %588, %589 : vector<4x256xf32>
    %cst_551 = arith.constant 0.000000e+00 : f32
    %591 = vector.broadcast %cst_551 : f32 to vector<4x256xf32>
    %592 = arith.cmpf oge, %590, %591 : vector<4x256xf32>
    %cst_552 = arith.constant 2.000000e-01 : f32
    %593 = vector.broadcast %cst_552 : f32 to vector<4x256xf32>
    %594 = arith.mulf %593, %590 : vector<4x256xf32>
    %595 = arith.select %592, %590, %594 : vector<4x256xi1>, vector<4x256xf32>
    %c0_553 = arith.constant 0 : index
    %c17_554 = arith.constant 17 : index
    %596 = vector.load %arg9[%c0_553, %c17_554] : memref<8x290xf32, #tpu.memory_space<vmem>>, vector<4x256xf32>
    tpu.vector_store %arg9[%c0_553, %c17_554], %595 {strides = array<i32>} : memref<8x290xf32, #tpu.memory_space<vmem>>, vector<4x256xf32>,
    %c0_555 = arith.constant 0 : index
    %c0_556 = arith.constant 0 : index
    %597 = vector.load %arg9[%c0_555, %c0_556] : memref<8x290xf32, #tpu.memory_space<vmem>>, vector<4x256xf32>
    %c0_557 = arith.constant 0 : index
    %c0_558 = arith.constant 0 : index
    %598 = vector.load %arg6[%c0_557, %c0_558] : memref<2x256xf32, #tpu.memory_space<vmem>>, vector<1x256xf32>
    %cst_559 = arith.constant 5.000000e-01 : f32
    %599 = vector.broadcast %cst_559 : f32 to vector<1x256xf32>
    %600 = arith.cmpf ogt, %598, %599 : vector<1x256xf32>
    %cst_560 = arith.constant 0.000000e+00 : f32
    %601 = vector.shape_cast %600 : vector<1x256xi1> to vector<1x256xi1>
    %602 = vector.broadcast %601 : vector<1x256xi1> to vector<4x256xi1>
    %603 = vector.broadcast %cst_560 : f32 to vector<4x256xf32>
    %604 = arith.select %602, %597, %603 : vector<4x256xi1>, vector<4x256xf32>
    %c16_561 = arith.constant 16 : index
    %c0_562 = arith.constant 0 : index
    %605 = vector.load %arg8[%c16_561, %c0_562] : memref<216x256xf32, #tpu.memory_space<vmem>>, vector<4x256xf32>
    tpu.vector_store %arg8[%c16_561, %c0_562], %604 {strides = array<i32>} : memref<216x256xf32, #tpu.memory_space<vmem>>, vector<4x256xf32>,
    %c0_563 = arith.constant 0 : index
    %c1_564 = arith.constant 1 : index
    %606 = vector.load %arg9[%c0_563, %c1_564] : memref<8x290xf32, #tpu.memory_space<vmem>>, vector<4x256xf32>
    %c40_565 = arith.constant 40 : index
    %c0_566 = arith.constant 0 : index
    %607 = vector.load %arg8[%c40_565, %c0_566] : memref<216x256xf32, #tpu.memory_space<vmem>>, vector<4x256xf32>
    tpu.vector_store %arg8[%c40_565, %c0_566], %606 {strides = array<i32>} : memref<216x256xf32, #tpu.memory_space<vmem>>, vector<4x256xf32>,
    %c0_567 = arith.constant 0 : index
    %c2_568 = arith.constant 2 : index
    %608 = vector.load %arg9[%c0_567, %c2_568] : memref<8x290xf32, #tpu.memory_space<vmem>>, vector<4x256xf32>
    %c1_569 = arith.constant 1 : index
    %c0_570 = arith.constant 0 : index
    %609 = vector.load %arg6[%c1_569, %c0_570] : memref<2x256xf32, #tpu.memory_space<vmem>>, vector<1x256xf32>
    %cst_571 = arith.constant 5.000000e-01 : f32
    %610 = vector.broadcast %cst_571 : f32 to vector<1x256xf32>
    %611 = arith.cmpf ogt, %609, %610 : vector<1x256xf32>
    %cst_572 = arith.constant 0.000000e+00 : f32
    %612 = vector.shape_cast %611 : vector<1x256xi1> to vector<1x256xi1>
    %613 = vector.broadcast %612 : vector<1x256xi1> to vector<4x256xi1>
    %614 = vector.broadcast %cst_572 : f32 to vector<4x256xf32>
    %615 = arith.select %613, %608, %614 : vector<4x256xi1>, vector<4x256xf32>
    %c64_573 = arith.constant 64 : index
    %c0_574 = arith.constant 0 : index
    %616 = vector.load %arg8[%c64_573, %c0_574] : memref<216x256xf32, #tpu.memory_space<vmem>>, vector<4x256xf32>
    tpu.vector_store %arg8[%c64_573, %c0_574], %615 {strides = array<i32>} : memref<216x256xf32, #tpu.memory_space<vmem>>, vector<4x256xf32>,
    %c0_575 = arith.constant 0 : index
    %c16_576 = arith.constant 16 : index
    %617 = vector.load %arg9[%c0_575, %c16_576] : memref<8x290xf32, #tpu.memory_space<vmem>>, vector<4x256xf32>
    %c0_577 = arith.constant 0 : index
    %c0_578 = arith.constant 0 : index
    %618 = vector.load %arg6[%c0_577, %c0_578] : memref<2x256xf32, #tpu.memory_space<vmem>>, vector<1x256xf32>
    %cst_579 = arith.constant 5.000000e-01 : f32
    %619 = vector.broadcast %cst_579 : f32 to vector<1x256xf32>
    %620 = arith.cmpf ogt, %618, %619 : vector<1x256xf32>
    %cst_580 = arith.constant 0.000000e+00 : f32
    %621 = vector.shape_cast %620 : vector<1x256xi1> to vector<1x256xi1>
    %622 = vector.broadcast %621 : vector<1x256xi1> to vector<4x256xi1>
    %623 = vector.broadcast %cst_580 : f32 to vector<4x256xf32>
    %624 = arith.select %622, %617, %623 : vector<4x256xi1>, vector<4x256xf32>
    %c88_581 = arith.constant 88 : index
    %c0_582 = arith.constant 0 : index
    %625 = vector.load %arg8[%c88_581, %c0_582] : memref<216x256xf32, #tpu.memory_space<vmem>>, vector<4x256xf32>
    tpu.vector_store %arg8[%c88_581, %c0_582], %624 {strides = array<i32>} : memref<216x256xf32, #tpu.memory_space<vmem>>, vector<4x256xf32>,
    %c0_583 = arith.constant 0 : index
    %c17_584 = arith.constant 17 : index
    %626 = vector.load %arg9[%c0_583, %c17_584] : memref<8x290xf32, #tpu.memory_space<vmem>>, vector<4x256xf32>
    %c112_585 = arith.constant 112 : index
    %c0_586 = arith.constant 0 : index
    %627 = vector.load %arg8[%c112_585, %c0_586] : memref<216x256xf32, #tpu.memory_space<vmem>>, vector<4x256xf32>
    tpu.vector_store %arg8[%c112_585, %c0_586], %626 {strides = array<i32>} : memref<216x256xf32, #tpu.memory_space<vmem>>, vector<4x256xf32>,
    %c0_587 = arith.constant 0 : index
    %c18_588 = arith.constant 18 : index
    %628 = vector.load %arg9[%c0_587, %c18_588] : memref<8x290xf32, #tpu.memory_space<vmem>>, vector<4x256xf32>
    %c1_589 = arith.constant 1 : index
    %c0_590 = arith.constant 0 : index
    %629 = vector.load %arg6[%c1_589, %c0_590] : memref<2x256xf32, #tpu.memory_space<vmem>>, vector<1x256xf32>
    %cst_591 = arith.constant 5.000000e-01 : f32
    %630 = vector.broadcast %cst_591 : f32 to vector<1x256xf32>
    %631 = arith.cmpf ogt, %629, %630 : vector<1x256xf32>
    %cst_592 = arith.constant 0.000000e+00 : f32
    %632 = vector.shape_cast %631 : vector<1x256xi1> to vector<1x256xi1>
    %633 = vector.broadcast %632 : vector<1x256xi1> to vector<4x256xi1>
    %634 = vector.broadcast %cst_592 : f32 to vector<4x256xf32>
    %635 = arith.select %633, %628, %634 : vector<4x256xi1>, vector<4x256xf32>
    %c136_593 = arith.constant 136 : index
    %c0_594 = arith.constant 0 : index
    %636 = vector.load %arg8[%c136_593, %c0_594] : memref<216x256xf32, #tpu.memory_space<vmem>>, vector<4x256xf32>
    tpu.vector_store %arg8[%c136_593, %c0_594], %635 {strides = array<i32>} : memref<216x256xf32, #tpu.memory_space<vmem>>, vector<4x256xf32>,
    %c0_595 = arith.constant 0 : index
    %c32_596 = arith.constant 32 : index
    %637 = vector.load %arg9[%c0_595, %c32_596] : memref<8x290xf32, #tpu.memory_space<vmem>>, vector<4x256xf32>
    %c0_597 = arith.constant 0 : index
    %c0_598 = arith.constant 0 : index
    %638 = vector.load %arg6[%c0_597, %c0_598] : memref<2x256xf32, #tpu.memory_space<vmem>>, vector<1x256xf32>
    %cst_599 = arith.constant 5.000000e-01 : f32
    %639 = vector.broadcast %cst_599 : f32 to vector<1x256xf32>
    %640 = arith.cmpf ogt, %638, %639 : vector<1x256xf32>
    %cst_600 = arith.constant 0.000000e+00 : f32
    %641 = vector.shape_cast %640 : vector<1x256xi1> to vector<1x256xi1>
    %642 = vector.broadcast %641 : vector<1x256xi1> to vector<4x256xi1>
    %643 = vector.broadcast %cst_600 : f32 to vector<4x256xf32>
    %644 = arith.select %642, %637, %643 : vector<4x256xi1>, vector<4x256xf32>
    %c160_601 = arith.constant 160 : index
    %c0_602 = arith.constant 0 : index
    %645 = vector.load %arg8[%c160_601, %c0_602] : memref<216x256xf32, #tpu.memory_space<vmem>>, vector<4x256xf32>
    tpu.vector_store %arg8[%c160_601, %c0_602], %644 {strides = array<i32>} : memref<216x256xf32, #tpu.memory_space<vmem>>, vector<4x256xf32>,
    %c0_603 = arith.constant 0 : index
    %c33_604 = arith.constant 33 : index
    %646 = vector.load %arg9[%c0_603, %c33_604] : memref<8x290xf32, #tpu.memory_space<vmem>>, vector<4x256xf32>
    %c184_605 = arith.constant 184 : index
    %c0_606 = arith.constant 0 : index
    %647 = vector.load %arg8[%c184_605, %c0_606] : memref<216x256xf32, #tpu.memory_space<vmem>>, vector<4x256xf32>
    tpu.vector_store %arg8[%c184_605, %c0_606], %646 {strides = array<i32>} : memref<216x256xf32, #tpu.memory_space<vmem>>, vector<4x256xf32>,
    %c0_607 = arith.constant 0 : index
    %c34_608 = arith.constant 34 : index
    %648 = vector.load %arg9[%c0_607, %c34_608] : memref<8x290xf32, #tpu.memory_space<vmem>>, vector<4x256xf32>
    %c1_609 = arith.constant 1 : index
    %c0_610 = arith.constant 0 : index
    %649 = vector.load %arg6[%c1_609, %c0_610] : memref<2x256xf32, #tpu.memory_space<vmem>>, vector<1x256xf32>
    %cst_611 = arith.constant 5.000000e-01 : f32
    %650 = vector.broadcast %cst_611 : f32 to vector<1x256xf32>
    %651 = arith.cmpf ogt, %649, %650 : vector<1x256xf32>
    %cst_612 = arith.constant 0.000000e+00 : f32
    %652 = vector.shape_cast %651 : vector<1x256xi1> to vector<1x256xi1>
    %653 = vector.broadcast %652 : vector<1x256xi1> to vector<4x256xi1>
    %654 = vector.broadcast %cst_612 : f32 to vector<4x256xf32>
    %655 = arith.select %653, %648, %654 : vector<4x256xi1>, vector<4x256xf32>
    %c208_613 = arith.constant 208 : index
    %c0_614 = arith.constant 0 : index
    %656 = vector.load %arg8[%c208_613, %c0_614] : memref<216x256xf32, #tpu.memory_space<vmem>>, vector<4x256xf32>
    tpu.vector_store %arg8[%c208_613, %c0_614], %655 {strides = array<i32>} : memref<216x256xf32, #tpu.memory_space<vmem>>, vector<4x256xf32>,
    %c1_615 = arith.constant 1 : index
    %c3_616 = arith.constant 3 : index
    %c0_617 = arith.constant 0 : index
    %c0_618 = arith.constant 0 : index
    %657 = vector.load %arg2[%c1_615, %c3_616, %c0_617, %c0_618] : memref<3x4x4x216xf32, #tpu.memory_space<vmem>>, vector<1x1x4x216xf32>
    %658 = vector.shape_cast %657 : vector<1x1x4x216xf32> to vector<4x216xf32>
    %c1_619 = arith.constant 1 : index
    %c3_620 = arith.constant 3 : index
    %c0_621 = arith.constant 0 : index
    %c0_622 = arith.constant 0 : index
    %659 = vector.load %arg3[%c1_619, %c3_620, %c0_621, %c0_622] : memref<3x4x4x1xf32, #tpu.memory_space<vmem>>, vector<1x1x4x1xf32>
    %660 = vector.shape_cast %659 : vector<1x1x4x1xf32> to vector<4x1xf32>
    %c0_623 = arith.constant 0 : index
    %c0_624 = arith.constant 0 : index
    %661 = vector.load %arg8[%c0_623, %c0_624] : memref<216x256xf32, #tpu.memory_space<vmem>>, vector<216x256xf32>
    %cst_625 = arith.constant dense<0.000000e+00> : vector<4x256xf32>
    %662 = tpu.matmul %658, %661, %cst_625 {dimension_numbers = #tpu.dot_dimension_numbers<[1], [0], [0], [1], [0, 0, 1, 1], [], []>} : vector<4x216xf32>, vector<216x256xf32>, vector<4x256xf32> -> vector<4x256xf32>
    %663 = vector.broadcast %660 : vector<4x1xf32> to vector<4x256xf32>
    %664 = arith.addf %662, %663 : vector<4x256xf32>
    %cst_626 = arith.constant 0.000000e+00 : f32
    %665 = vector.broadcast %cst_626 : f32 to vector<4x256xf32>
    %666 = arith.cmpf oge, %664, %665 : vector<4x256xf32>
    %cst_627 = arith.constant 2.000000e-01 : f32
    %667 = vector.broadcast %cst_627 : f32 to vector<4x256xf32>
    %668 = arith.mulf %667, %664 : vector<4x256xf32>
    %669 = arith.select %666, %664, %668 : vector<4x256xi1>, vector<4x256xf32>
    %c0_628 = arith.constant 0 : index
    %c17_629 = arith.constant 17 : index
    %670 = vector.load %arg9[%c0_628, %c17_629] : memref<8x290xf32, #tpu.memory_space<vmem>>, vector<4x256xf32>
    tpu.vector_store %arg9[%c0_628, %c17_629], %669 {strides = array<i32>} : memref<8x290xf32, #tpu.memory_space<vmem>>, vector<4x256xf32>,
    %c0_630 = arith.constant 0 : index
    %c0_631 = arith.constant 0 : index
    %671 = vector.load %arg9[%c0_630, %c0_631] : memref<8x290xf32, #tpu.memory_space<vmem>>, vector<4x256xf32>
    %c0_632 = arith.constant 0 : index
    %c0_633 = arith.constant 0 : index
    %672 = vector.load %arg6[%c0_632, %c0_633] : memref<2x256xf32, #tpu.memory_space<vmem>>, vector<1x256xf32>
    %cst_634 = arith.constant 5.000000e-01 : f32
    %673 = vector.broadcast %cst_634 : f32 to vector<1x256xf32>
    %674 = arith.cmpf ogt, %672, %673 : vector<1x256xf32>
    %cst_635 = arith.constant 0.000000e+00 : f32
    %675 = vector.shape_cast %674 : vector<1x256xi1> to vector<1x256xi1>
    %676 = vector.broadcast %675 : vector<1x256xi1> to vector<4x256xi1>
    %677 = vector.broadcast %cst_635 : f32 to vector<4x256xf32>
    %678 = arith.select %676, %671, %677 : vector<4x256xi1>, vector<4x256xf32>
    %c20_636 = arith.constant 20 : index
    %c0_637 = arith.constant 0 : index
    %679 = vector.load %arg8[%c20_636, %c0_637] : memref<216x256xf32, #tpu.memory_space<vmem>>, vector<4x256xf32>
    tpu.vector_store %arg8[%c20_636, %c0_637], %678 {strides = array<i32>} : memref<216x256xf32, #tpu.memory_space<vmem>>, vector<4x256xf32>,
    %c0_638 = arith.constant 0 : index
    %c1_639 = arith.constant 1 : index
    %680 = vector.load %arg9[%c0_638, %c1_639] : memref<8x290xf32, #tpu.memory_space<vmem>>, vector<4x256xf32>
    %c44_640 = arith.constant 44 : index
    %c0_641 = arith.constant 0 : index
    %681 = vector.load %arg8[%c44_640, %c0_641] : memref<216x256xf32, #tpu.memory_space<vmem>>, vector<4x256xf32>
    tpu.vector_store %arg8[%c44_640, %c0_641], %680 {strides = array<i32>} : memref<216x256xf32, #tpu.memory_space<vmem>>, vector<4x256xf32>,
    %c0_642 = arith.constant 0 : index
    %c2_643 = arith.constant 2 : index
    %682 = vector.load %arg9[%c0_642, %c2_643] : memref<8x290xf32, #tpu.memory_space<vmem>>, vector<4x256xf32>
    %c1_644 = arith.constant 1 : index
    %c0_645 = arith.constant 0 : index
    %683 = vector.load %arg6[%c1_644, %c0_645] : memref<2x256xf32, #tpu.memory_space<vmem>>, vector<1x256xf32>
    %cst_646 = arith.constant 5.000000e-01 : f32
    %684 = vector.broadcast %cst_646 : f32 to vector<1x256xf32>
    %685 = arith.cmpf ogt, %683, %684 : vector<1x256xf32>
    %cst_647 = arith.constant 0.000000e+00 : f32
    %686 = vector.shape_cast %685 : vector<1x256xi1> to vector<1x256xi1>
    %687 = vector.broadcast %686 : vector<1x256xi1> to vector<4x256xi1>
    %688 = vector.broadcast %cst_647 : f32 to vector<4x256xf32>
    %689 = arith.select %687, %682, %688 : vector<4x256xi1>, vector<4x256xf32>
    %c68_648 = arith.constant 68 : index
    %c0_649 = arith.constant 0 : index
    %690 = vector.load %arg8[%c68_648, %c0_649] : memref<216x256xf32, #tpu.memory_space<vmem>>, vector<4x256xf32>
    tpu.vector_store %arg8[%c68_648, %c0_649], %689 {strides = array<i32>} : memref<216x256xf32, #tpu.memory_space<vmem>>, vector<4x256xf32>,
    %c0_650 = arith.constant 0 : index
    %c16_651 = arith.constant 16 : index
    %691 = vector.load %arg9[%c0_650, %c16_651] : memref<8x290xf32, #tpu.memory_space<vmem>>, vector<4x256xf32>
    %c0_652 = arith.constant 0 : index
    %c0_653 = arith.constant 0 : index
    %692 = vector.load %arg6[%c0_652, %c0_653] : memref<2x256xf32, #tpu.memory_space<vmem>>, vector<1x256xf32>
    %cst_654 = arith.constant 5.000000e-01 : f32
    %693 = vector.broadcast %cst_654 : f32 to vector<1x256xf32>
    %694 = arith.cmpf ogt, %692, %693 : vector<1x256xf32>
    %cst_655 = arith.constant 0.000000e+00 : f32
    %695 = vector.shape_cast %694 : vector<1x256xi1> to vector<1x256xi1>
    %696 = vector.broadcast %695 : vector<1x256xi1> to vector<4x256xi1>
    %697 = vector.broadcast %cst_655 : f32 to vector<4x256xf32>
    %698 = arith.select %696, %691, %697 : vector<4x256xi1>, vector<4x256xf32>
    %c92_656 = arith.constant 92 : index
    %c0_657 = arith.constant 0 : index
    %699 = vector.load %arg8[%c92_656, %c0_657] : memref<216x256xf32, #tpu.memory_space<vmem>>, vector<4x256xf32>
    tpu.vector_store %arg8[%c92_656, %c0_657], %698 {strides = array<i32>} : memref<216x256xf32, #tpu.memory_space<vmem>>, vector<4x256xf32>,
    %c0_658 = arith.constant 0 : index
    %c17_659 = arith.constant 17 : index
    %700 = vector.load %arg9[%c0_658, %c17_659] : memref<8x290xf32, #tpu.memory_space<vmem>>, vector<4x256xf32>
    %c116_660 = arith.constant 116 : index
    %c0_661 = arith.constant 0 : index
    %701 = vector.load %arg8[%c116_660, %c0_661] : memref<216x256xf32, #tpu.memory_space<vmem>>, vector<4x256xf32>
    tpu.vector_store %arg8[%c116_660, %c0_661], %700 {strides = array<i32>} : memref<216x256xf32, #tpu.memory_space<vmem>>, vector<4x256xf32>,
    %c0_662 = arith.constant 0 : index
    %c18_663 = arith.constant 18 : index
    %702 = vector.load %arg9[%c0_662, %c18_663] : memref<8x290xf32, #tpu.memory_space<vmem>>, vector<4x256xf32>
    %c1_664 = arith.constant 1 : index
    %c0_665 = arith.constant 0 : index
    %703 = vector.load %arg6[%c1_664, %c0_665] : memref<2x256xf32, #tpu.memory_space<vmem>>, vector<1x256xf32>
    %cst_666 = arith.constant 5.000000e-01 : f32
    %704 = vector.broadcast %cst_666 : f32 to vector<1x256xf32>
    %705 = arith.cmpf ogt, %703, %704 : vector<1x256xf32>
    %cst_667 = arith.constant 0.000000e+00 : f32
    %706 = vector.shape_cast %705 : vector<1x256xi1> to vector<1x256xi1>
    %707 = vector.broadcast %706 : vector<1x256xi1> to vector<4x256xi1>
    %708 = vector.broadcast %cst_667 : f32 to vector<4x256xf32>
    %709 = arith.select %707, %702, %708 : vector<4x256xi1>, vector<4x256xf32>
    %c140_668 = arith.constant 140 : index
    %c0_669 = arith.constant 0 : index
    %710 = vector.load %arg8[%c140_668, %c0_669] : memref<216x256xf32, #tpu.memory_space<vmem>>, vector<4x256xf32>
    tpu.vector_store %arg8[%c140_668, %c0_669], %709 {strides = array<i32>} : memref<216x256xf32, #tpu.memory_space<vmem>>, vector<4x256xf32>,
    %c0_670 = arith.constant 0 : index
    %c32_671 = arith.constant 32 : index
    %711 = vector.load %arg9[%c0_670, %c32_671] : memref<8x290xf32, #tpu.memory_space<vmem>>, vector<4x256xf32>
    %c0_672 = arith.constant 0 : index
    %c0_673 = arith.constant 0 : index
    %712 = vector.load %arg6[%c0_672, %c0_673] : memref<2x256xf32, #tpu.memory_space<vmem>>, vector<1x256xf32>
    %cst_674 = arith.constant 5.000000e-01 : f32
    %713 = vector.broadcast %cst_674 : f32 to vector<1x256xf32>
    %714 = arith.cmpf ogt, %712, %713 : vector<1x256xf32>
    %cst_675 = arith.constant 0.000000e+00 : f32
    %715 = vector.shape_cast %714 : vector<1x256xi1> to vector<1x256xi1>
    %716 = vector.broadcast %715 : vector<1x256xi1> to vector<4x256xi1>
    %717 = vector.broadcast %cst_675 : f32 to vector<4x256xf32>
    %718 = arith.select %716, %711, %717 : vector<4x256xi1>, vector<4x256xf32>
    %c164_676 = arith.constant 164 : index
    %c0_677 = arith.constant 0 : index
    %719 = vector.load %arg8[%c164_676, %c0_677] : memref<216x256xf32, #tpu.memory_space<vmem>>, vector<4x256xf32>
    tpu.vector_store %arg8[%c164_676, %c0_677], %718 {strides = array<i32>} : memref<216x256xf32, #tpu.memory_space<vmem>>, vector<4x256xf32>,
    %c0_678 = arith.constant 0 : index
    %c33_679 = arith.constant 33 : index
    %720 = vector.load %arg9[%c0_678, %c33_679] : memref<8x290xf32, #tpu.memory_space<vmem>>, vector<4x256xf32>
    %c188_680 = arith.constant 188 : index
    %c0_681 = arith.constant 0 : index
    %721 = vector.load %arg8[%c188_680, %c0_681] : memref<216x256xf32, #tpu.memory_space<vmem>>, vector<4x256xf32>
    tpu.vector_store %arg8[%c188_680, %c0_681], %720 {strides = array<i32>} : memref<216x256xf32, #tpu.memory_space<vmem>>, vector<4x256xf32>,
    %c0_682 = arith.constant 0 : index
    %c34_683 = arith.constant 34 : index
    %722 = vector.load %arg9[%c0_682, %c34_683] : memref<8x290xf32, #tpu.memory_space<vmem>>, vector<4x256xf32>
    %c1_684 = arith.constant 1 : index
    %c0_685 = arith.constant 0 : index
    %723 = vector.load %arg6[%c1_684, %c0_685] : memref<2x256xf32, #tpu.memory_space<vmem>>, vector<1x256xf32>
    %cst_686 = arith.constant 5.000000e-01 : f32
    %724 = vector.broadcast %cst_686 : f32 to vector<1x256xf32>
    %725 = arith.cmpf ogt, %723, %724 : vector<1x256xf32>
    %cst_687 = arith.constant 0.000000e+00 : f32
    %726 = vector.shape_cast %725 : vector<1x256xi1> to vector<1x256xi1>
    %727 = vector.broadcast %726 : vector<1x256xi1> to vector<4x256xi1>
    %728 = vector.broadcast %cst_687 : f32 to vector<4x256xf32>
    %729 = arith.select %727, %722, %728 : vector<4x256xi1>, vector<4x256xf32>
    %c212_688 = arith.constant 212 : index
    %c0_689 = arith.constant 0 : index
    %730 = vector.load %arg8[%c212_688, %c0_689] : memref<216x256xf32, #tpu.memory_space<vmem>>, vector<4x256xf32>
    tpu.vector_store %arg8[%c212_688, %c0_689], %729 {strides = array<i32>} : memref<216x256xf32, #tpu.memory_space<vmem>>, vector<4x256xf32>,
    %c1_690 = arith.constant 1 : index
    %c0_691 = arith.constant 0 : index
    %c0_692 = arith.constant 0 : index
    %731 = vector.load %arg4[%c1_690, %c0_691, %c0_692] : memref<3x8x216xf32, #tpu.memory_space<vmem>>, vector<1x8x216xf32>
    %732 = vector.shape_cast %731 : vector<1x8x216xf32> to vector<8x216xf32>
    %c1_693 = arith.constant 1 : index
    %c0_694 = arith.constant 0 : index
    %c0_695 = arith.constant 0 : index
    %733 = vector.load %arg5[%c1_693, %c0_694, %c0_695] : memref<3x8x1xf32, #tpu.memory_space<vmem>>, vector<1x8x1xf32>
    %734 = vector.shape_cast %733 : vector<1x8x1xf32> to vector<8x1xf32>
    %c0_696 = arith.constant 0 : index
    %c0_697 = arith.constant 0 : index
    %735 = vector.load %arg8[%c0_696, %c0_697] : memref<216x256xf32, #tpu.memory_space<vmem>>, vector<216x256xf32>
    %cst_698 = arith.constant dense<0.000000e+00> : vector<8x256xf32>
    %736 = tpu.matmul %732, %735, %cst_698 {dimension_numbers = #tpu.dot_dimension_numbers<[1], [0], [0], [1], [0, 0, 1, 1], [], []>} : vector<8x216xf32>, vector<216x256xf32>, vector<8x256xf32> -> vector<8x256xf32>
    %737 = vector.broadcast %734 : vector<8x1xf32> to vector<8x256xf32>
    %738 = arith.addf %736, %737 : vector<8x256xf32>
    %cst_699 = arith.constant 2.000000e-01 : f32
    %739 = vector.broadcast %cst_699 : f32 to vector<8x256xf32>
    %740 = arith.mulf %738, %739 : vector<8x256xf32>
    %741 = arith.addf %740, %373 : vector<8x256xf32>
    %c0_700 = arith.constant 0 : index
    %c17_701 = arith.constant 17 : index
    %742 = vector.load %arg9[%c0_700, %c17_701] : memref<8x290xf32, #tpu.memory_space<vmem>>, vector<8x256xf32>
    tpu.vector_store %arg9[%c0_700, %c17_701], %741 {strides = array<i32>} : memref<8x290xf32, #tpu.memory_space<vmem>>, vector<8x256xf32>,
    %c0_702 = arith.constant 0 : index
    %c0_703 = arith.constant 0 : index
    %743 = vector.load %arg9[%c0_702, %c0_703] : memref<8x290xf32, #tpu.memory_space<vmem>>, vector<8x256xf32>
    %c0_704 = arith.constant 0 : index
    %c0_705 = arith.constant 0 : index
    %744 = vector.load %arg6[%c0_704, %c0_705] : memref<2x256xf32, #tpu.memory_space<vmem>>, vector<1x256xf32>
    %cst_706 = arith.constant 5.000000e-01 : f32
    %745 = vector.broadcast %cst_706 : f32 to vector<1x256xf32>
    %746 = arith.cmpf ogt, %744, %745 : vector<1x256xf32>
    %cst_707 = arith.constant 0.000000e+00 : f32
    %747 = vector.shape_cast %746 : vector<1x256xi1> to vector<1x256xi1>
    %748 = vector.broadcast %747 : vector<1x256xi1> to vector<8x256xi1>
    %749 = vector.broadcast %cst_707 : f32 to vector<8x256xf32>
    %750 = arith.select %748, %743, %749 : vector<8x256xi1>, vector<8x256xf32>
    %c0_708 = arith.constant 0 : index
    %c0_709 = arith.constant 0 : index
    %751 = vector.load %arg8[%c0_708, %c0_709] : memref<216x256xf32, #tpu.memory_space<vmem>>, vector<8x256xf32>
    tpu.vector_store %arg8[%c0_708, %c0_709], %750 {strides = array<i32>} : memref<216x256xf32, #tpu.memory_space<vmem>>, vector<8x256xf32>,
    %c0_710 = arith.constant 0 : index
    %c1_711 = arith.constant 1 : index
    %752 = vector.load %arg9[%c0_710, %c1_711] : memref<8x290xf32, #tpu.memory_space<vmem>>, vector<8x256xf32>
    %c24_712 = arith.constant 24 : index
    %c0_713 = arith.constant 0 : index
    %753 = vector.load %arg8[%c24_712, %c0_713] : memref<216x256xf32, #tpu.memory_space<vmem>>, vector<8x256xf32>
    tpu.vector_store %arg8[%c24_712, %c0_713], %752 {strides = array<i32>} : memref<216x256xf32, #tpu.memory_space<vmem>>, vector<8x256xf32>,
    %c0_714 = arith.constant 0 : index
    %c2_715 = arith.constant 2 : index
    %754 = vector.load %arg9[%c0_714, %c2_715] : memref<8x290xf32, #tpu.memory_space<vmem>>, vector<8x256xf32>
    %c1_716 = arith.constant 1 : index
    %c0_717 = arith.constant 0 : index
    %755 = vector.load %arg6[%c1_716, %c0_717] : memref<2x256xf32, #tpu.memory_space<vmem>>, vector<1x256xf32>
    %cst_718 = arith.constant 5.000000e-01 : f32
    %756 = vector.broadcast %cst_718 : f32 to vector<1x256xf32>
    %757 = arith.cmpf ogt, %755, %756 : vector<1x256xf32>
    %cst_719 = arith.constant 0.000000e+00 : f32
    %758 = vector.shape_cast %757 : vector<1x256xi1> to vector<1x256xi1>
    %759 = vector.broadcast %758 : vector<1x256xi1> to vector<8x256xi1>
    %760 = vector.broadcast %cst_719 : f32 to vector<8x256xf32>
    %761 = arith.select %759, %754, %760 : vector<8x256xi1>, vector<8x256xf32>
    %c48_720 = arith.constant 48 : index
    %c0_721 = arith.constant 0 : index
    %762 = vector.load %arg8[%c48_720, %c0_721] : memref<216x256xf32, #tpu.memory_space<vmem>>, vector<8x256xf32>
    tpu.vector_store %arg8[%c48_720, %c0_721], %761 {strides = array<i32>} : memref<216x256xf32, #tpu.memory_space<vmem>>, vector<8x256xf32>,
    %c0_722 = arith.constant 0 : index
    %c16_723 = arith.constant 16 : index
    %763 = vector.load %arg9[%c0_722, %c16_723] : memref<8x290xf32, #tpu.memory_space<vmem>>, vector<8x256xf32>
    %c0_724 = arith.constant 0 : index
    %c0_725 = arith.constant 0 : index
    %764 = vector.load %arg6[%c0_724, %c0_725] : memref<2x256xf32, #tpu.memory_space<vmem>>, vector<1x256xf32>
    %cst_726 = arith.constant 5.000000e-01 : f32
    %765 = vector.broadcast %cst_726 : f32 to vector<1x256xf32>
    %766 = arith.cmpf ogt, %764, %765 : vector<1x256xf32>
    %cst_727 = arith.constant 0.000000e+00 : f32
    %767 = vector.shape_cast %766 : vector<1x256xi1> to vector<1x256xi1>
    %768 = vector.broadcast %767 : vector<1x256xi1> to vector<8x256xi1>
    %769 = vector.broadcast %cst_727 : f32 to vector<8x256xf32>
    %770 = arith.select %768, %763, %769 : vector<8x256xi1>, vector<8x256xf32>
    %c72_728 = arith.constant 72 : index
    %c0_729 = arith.constant 0 : index
    %771 = vector.load %arg8[%c72_728, %c0_729] : memref<216x256xf32, #tpu.memory_space<vmem>>, vector<8x256xf32>
    tpu.vector_store %arg8[%c72_728, %c0_729], %770 {strides = array<i32>} : memref<216x256xf32, #tpu.memory_space<vmem>>, vector<8x256xf32>,
    %c0_730 = arith.constant 0 : index
    %c17_731 = arith.constant 17 : index
    %772 = vector.load %arg9[%c0_730, %c17_731] : memref<8x290xf32, #tpu.memory_space<vmem>>, vector<8x256xf32>
    %c96_732 = arith.constant 96 : index
    %c0_733 = arith.constant 0 : index
    %773 = vector.load %arg8[%c96_732, %c0_733] : memref<216x256xf32, #tpu.memory_space<vmem>>, vector<8x256xf32>
    tpu.vector_store %arg8[%c96_732, %c0_733], %772 {strides = array<i32>} : memref<216x256xf32, #tpu.memory_space<vmem>>, vector<8x256xf32>,
    %c0_734 = arith.constant 0 : index
    %c18_735 = arith.constant 18 : index
    %774 = vector.load %arg9[%c0_734, %c18_735] : memref<8x290xf32, #tpu.memory_space<vmem>>, vector<8x256xf32>
    %c1_736 = arith.constant 1 : index
    %c0_737 = arith.constant 0 : index
    %775 = vector.load %arg6[%c1_736, %c0_737] : memref<2x256xf32, #tpu.memory_space<vmem>>, vector<1x256xf32>
    %cst_738 = arith.constant 5.000000e-01 : f32
    %776 = vector.broadcast %cst_738 : f32 to vector<1x256xf32>
    %777 = arith.cmpf ogt, %775, %776 : vector<1x256xf32>
    %cst_739 = arith.constant 0.000000e+00 : f32
    %778 = vector.shape_cast %777 : vector<1x256xi1> to vector<1x256xi1>
    %779 = vector.broadcast %778 : vector<1x256xi1> to vector<8x256xi1>
    %780 = vector.broadcast %cst_739 : f32 to vector<8x256xf32>
    %781 = arith.select %779, %774, %780 : vector<8x256xi1>, vector<8x256xf32>
    %c120_740 = arith.constant 120 : index
    %c0_741 = arith.constant 0 : index
    %782 = vector.load %arg8[%c120_740, %c0_741] : memref<216x256xf32, #tpu.memory_space<vmem>>, vector<8x256xf32>
    tpu.vector_store %arg8[%c120_740, %c0_741], %781 {strides = array<i32>} : memref<216x256xf32, #tpu.memory_space<vmem>>, vector<8x256xf32>,
    %c0_742 = arith.constant 0 : index
    %c32_743 = arith.constant 32 : index
    %783 = vector.load %arg9[%c0_742, %c32_743] : memref<8x290xf32, #tpu.memory_space<vmem>>, vector<8x256xf32>
    %c0_744 = arith.constant 0 : index
    %c0_745 = arith.constant 0 : index
    %784 = vector.load %arg6[%c0_744, %c0_745] : memref<2x256xf32, #tpu.memory_space<vmem>>, vector<1x256xf32>
    %cst_746 = arith.constant 5.000000e-01 : f32
    %785 = vector.broadcast %cst_746 : f32 to vector<1x256xf32>
    %786 = arith.cmpf ogt, %784, %785 : vector<1x256xf32>
    %cst_747 = arith.constant 0.000000e+00 : f32
    %787 = vector.shape_cast %786 : vector<1x256xi1> to vector<1x256xi1>
    %788 = vector.broadcast %787 : vector<1x256xi1> to vector<8x256xi1>
    %789 = vector.broadcast %cst_747 : f32 to vector<8x256xf32>
    %790 = arith.select %788, %783, %789 : vector<8x256xi1>, vector<8x256xf32>
    %c144_748 = arith.constant 144 : index
    %c0_749 = arith.constant 0 : index
    %791 = vector.load %arg8[%c144_748, %c0_749] : memref<216x256xf32, #tpu.memory_space<vmem>>, vector<8x256xf32>
    tpu.vector_store %arg8[%c144_748, %c0_749], %790 {strides = array<i32>} : memref<216x256xf32, #tpu.memory_space<vmem>>, vector<8x256xf32>,
    %c0_750 = arith.constant 0 : index
    %c33_751 = arith.constant 33 : index
    %792 = vector.load %arg9[%c0_750, %c33_751] : memref<8x290xf32, #tpu.memory_space<vmem>>, vector<8x256xf32>
    %c168_752 = arith.constant 168 : index
    %c0_753 = arith.constant 0 : index
    %793 = vector.load %arg8[%c168_752, %c0_753] : memref<216x256xf32, #tpu.memory_space<vmem>>, vector<8x256xf32>
    tpu.vector_store %arg8[%c168_752, %c0_753], %792 {strides = array<i32>} : memref<216x256xf32, #tpu.memory_space<vmem>>, vector<8x256xf32>,
    %c0_754 = arith.constant 0 : index
    %c34_755 = arith.constant 34 : index
    %794 = vector.load %arg9[%c0_754, %c34_755] : memref<8x290xf32, #tpu.memory_space<vmem>>, vector<8x256xf32>
    %c1_756 = arith.constant 1 : index
    %c0_757 = arith.constant 0 : index
    %795 = vector.load %arg6[%c1_756, %c0_757] : memref<2x256xf32, #tpu.memory_space<vmem>>, vector<1x256xf32>
    %cst_758 = arith.constant 5.000000e-01 : f32
    %796 = vector.broadcast %cst_758 : f32 to vector<1x256xf32>
    %797 = arith.cmpf ogt, %795, %796 : vector<1x256xf32>
    %cst_759 = arith.constant 0.000000e+00 : f32
    %798 = vector.shape_cast %797 : vector<1x256xi1> to vector<1x256xi1>
    %799 = vector.broadcast %798 : vector<1x256xi1> to vector<8x256xi1>
    %800 = vector.broadcast %cst_759 : f32 to vector<8x256xf32>
    %801 = arith.select %799, %794, %800 : vector<8x256xi1>, vector<8x256xf32>
    %c192_760 = arith.constant 192 : index
    %c0_761 = arith.constant 0 : index
    %802 = vector.load %arg8[%c192_760, %c0_761] : memref<216x256xf32, #tpu.memory_space<vmem>>, vector<8x256xf32>
    tpu.vector_store %arg8[%c192_760, %c0_761], %801 {strides = array<i32>} : memref<216x256xf32, #tpu.memory_space<vmem>>, vector<8x256xf32>,
    %c2_762 = arith.constant 2 : index
    %c0_763 = arith.constant 0 : index
    %c0_764 = arith.constant 0 : index
    %c0_765 = arith.constant 0 : index
    %803 = vector.load %arg2[%c2_762, %c0_763, %c0_764, %c0_765] : memref<3x4x4x216xf32, #tpu.memory_space<vmem>>, vector<1x1x4x216xf32>
    %804 = vector.shape_cast %803 : vector<1x1x4x216xf32> to vector<4x216xf32>
    %c2_766 = arith.constant 2 : index
    %c0_767 = arith.constant 0 : index
    %c0_768 = arith.constant 0 : index
    %c0_769 = arith.constant 0 : index
    %805 = vector.load %arg3[%c2_766, %c0_767, %c0_768, %c0_769] : memref<3x4x4x1xf32, #tpu.memory_space<vmem>>, vector<1x1x4x1xf32>
    %806 = vector.shape_cast %805 : vector<1x1x4x1xf32> to vector<4x1xf32>
    %c0_770 = arith.constant 0 : index
    %c0_771 = arith.constant 0 : index
    %807 = vector.load %arg8[%c0_770, %c0_771] : memref<216x256xf32, #tpu.memory_space<vmem>>, vector<216x256xf32>
    %cst_772 = arith.constant dense<0.000000e+00> : vector<4x256xf32>
    %808 = tpu.matmul %804, %807, %cst_772 {dimension_numbers = #tpu.dot_dimension_numbers<[1], [0], [0], [1], [0, 0, 1, 1], [], []>} : vector<4x216xf32>, vector<216x256xf32>, vector<4x256xf32> -> vector<4x256xf32>
    %809 = vector.broadcast %806 : vector<4x1xf32> to vector<4x256xf32>
    %810 = arith.addf %808, %809 : vector<4x256xf32>
    %cst_773 = arith.constant 0.000000e+00 : f32
    %811 = vector.broadcast %cst_773 : f32 to vector<4x256xf32>
    %812 = arith.cmpf oge, %810, %811 : vector<4x256xf32>
    %cst_774 = arith.constant 2.000000e-01 : f32
    %813 = vector.broadcast %cst_774 : f32 to vector<4x256xf32>
    %814 = arith.mulf %813, %810 : vector<4x256xf32>
    %815 = arith.select %812, %810, %814 : vector<4x256xi1>, vector<4x256xf32>
    %c0_775 = arith.constant 0 : index
    %c17_776 = arith.constant 17 : index
    %816 = vector.load %arg9[%c0_775, %c17_776] : memref<8x290xf32, #tpu.memory_space<vmem>>, vector<4x256xf32>
    tpu.vector_store %arg9[%c0_775, %c17_776], %815 {strides = array<i32>} : memref<8x290xf32, #tpu.memory_space<vmem>>, vector<4x256xf32>,
    %c0_777 = arith.constant 0 : index
    %c0_778 = arith.constant 0 : index
    %817 = vector.load %arg9[%c0_777, %c0_778] : memref<8x290xf32, #tpu.memory_space<vmem>>, vector<4x256xf32>
    %c0_779 = arith.constant 0 : index
    %c0_780 = arith.constant 0 : index
    %818 = vector.load %arg6[%c0_779, %c0_780] : memref<2x256xf32, #tpu.memory_space<vmem>>, vector<1x256xf32>
    %cst_781 = arith.constant 5.000000e-01 : f32
    %819 = vector.broadcast %cst_781 : f32 to vector<1x256xf32>
    %820 = arith.cmpf ogt, %818, %819 : vector<1x256xf32>
    %cst_782 = arith.constant 0.000000e+00 : f32
    %821 = vector.shape_cast %820 : vector<1x256xi1> to vector<1x256xi1>
    %822 = vector.broadcast %821 : vector<1x256xi1> to vector<4x256xi1>
    %823 = vector.broadcast %cst_782 : f32 to vector<4x256xf32>
    %824 = arith.select %822, %817, %823 : vector<4x256xi1>, vector<4x256xf32>
    %c8_783 = arith.constant 8 : index
    %c0_784 = arith.constant 0 : index
    %825 = vector.load %arg8[%c8_783, %c0_784] : memref<216x256xf32, #tpu.memory_space<vmem>>, vector<4x256xf32>
    tpu.vector_store %arg8[%c8_783, %c0_784], %824 {strides = array<i32>} : memref<216x256xf32, #tpu.memory_space<vmem>>, vector<4x256xf32>,
    %c0_785 = arith.constant 0 : index
    %c1_786 = arith.constant 1 : index
    %826 = vector.load %arg9[%c0_785, %c1_786] : memref<8x290xf32, #tpu.memory_space<vmem>>, vector<4x256xf32>
    %c32_787 = arith.constant 32 : index
    %c0_788 = arith.constant 0 : index
    %827 = vector.load %arg8[%c32_787, %c0_788] : memref<216x256xf32, #tpu.memory_space<vmem>>, vector<4x256xf32>
    tpu.vector_store %arg8[%c32_787, %c0_788], %826 {strides = array<i32>} : memref<216x256xf32, #tpu.memory_space<vmem>>, vector<4x256xf32>,
    %c0_789 = arith.constant 0 : index
    %c2_790 = arith.constant 2 : index
    %828 = vector.load %arg9[%c0_789, %c2_790] : memref<8x290xf32, #tpu.memory_space<vmem>>, vector<4x256xf32>
    %c1_791 = arith.constant 1 : index
    %c0_792 = arith.constant 0 : index
    %829 = vector.load %arg6[%c1_791, %c0_792] : memref<2x256xf32, #tpu.memory_space<vmem>>, vector<1x256xf32>
    %cst_793 = arith.constant 5.000000e-01 : f32
    %830 = vector.broadcast %cst_793 : f32 to vector<1x256xf32>
    %831 = arith.cmpf ogt, %829, %830 : vector<1x256xf32>
    %cst_794 = arith.constant 0.000000e+00 : f32
    %832 = vector.shape_cast %831 : vector<1x256xi1> to vector<1x256xi1>
    %833 = vector.broadcast %832 : vector<1x256xi1> to vector<4x256xi1>
    %834 = vector.broadcast %cst_794 : f32 to vector<4x256xf32>
    %835 = arith.select %833, %828, %834 : vector<4x256xi1>, vector<4x256xf32>
    %c56_795 = arith.constant 56 : index
    %c0_796 = arith.constant 0 : index
    %836 = vector.load %arg8[%c56_795, %c0_796] : memref<216x256xf32, #tpu.memory_space<vmem>>, vector<4x256xf32>
    tpu.vector_store %arg8[%c56_795, %c0_796], %835 {strides = array<i32>} : memref<216x256xf32, #tpu.memory_space<vmem>>, vector<4x256xf32>,
    %c0_797 = arith.constant 0 : index
    %c16_798 = arith.constant 16 : index
    %837 = vector.load %arg9[%c0_797, %c16_798] : memref<8x290xf32, #tpu.memory_space<vmem>>, vector<4x256xf32>
    %c0_799 = arith.constant 0 : index
    %c0_800 = arith.constant 0 : index
    %838 = vector.load %arg6[%c0_799, %c0_800] : memref<2x256xf32, #tpu.memory_space<vmem>>, vector<1x256xf32>
    %cst_801 = arith.constant 5.000000e-01 : f32
    %839 = vector.broadcast %cst_801 : f32 to vector<1x256xf32>
    %840 = arith.cmpf ogt, %838, %839 : vector<1x256xf32>
    %cst_802 = arith.constant 0.000000e+00 : f32
    %841 = vector.shape_cast %840 : vector<1x256xi1> to vector<1x256xi1>
    %842 = vector.broadcast %841 : vector<1x256xi1> to vector<4x256xi1>
    %843 = vector.broadcast %cst_802 : f32 to vector<4x256xf32>
    %844 = arith.select %842, %837, %843 : vector<4x256xi1>, vector<4x256xf32>
    %c80_803 = arith.constant 80 : index
    %c0_804 = arith.constant 0 : index
    %845 = vector.load %arg8[%c80_803, %c0_804] : memref<216x256xf32, #tpu.memory_space<vmem>>, vector<4x256xf32>
    tpu.vector_store %arg8[%c80_803, %c0_804], %844 {strides = array<i32>} : memref<216x256xf32, #tpu.memory_space<vmem>>, vector<4x256xf32>,
    %c0_805 = arith.constant 0 : index
    %c17_806 = arith.constant 17 : index
    %846 = vector.load %arg9[%c0_805, %c17_806] : memref<8x290xf32, #tpu.memory_space<vmem>>, vector<4x256xf32>
    %c104_807 = arith.constant 104 : index
    %c0_808 = arith.constant 0 : index
    %847 = vector.load %arg8[%c104_807, %c0_808] : memref<216x256xf32, #tpu.memory_space<vmem>>, vector<4x256xf32>
    tpu.vector_store %arg8[%c104_807, %c0_808], %846 {strides = array<i32>} : memref<216x256xf32, #tpu.memory_space<vmem>>, vector<4x256xf32>,
    %c0_809 = arith.constant 0 : index
    %c18_810 = arith.constant 18 : index
    %848 = vector.load %arg9[%c0_809, %c18_810] : memref<8x290xf32, #tpu.memory_space<vmem>>, vector<4x256xf32>
    %c1_811 = arith.constant 1 : index
    %c0_812 = arith.constant 0 : index
    %849 = vector.load %arg6[%c1_811, %c0_812] : memref<2x256xf32, #tpu.memory_space<vmem>>, vector<1x256xf32>
    %cst_813 = arith.constant 5.000000e-01 : f32
    %850 = vector.broadcast %cst_813 : f32 to vector<1x256xf32>
    %851 = arith.cmpf ogt, %849, %850 : vector<1x256xf32>
    %cst_814 = arith.constant 0.000000e+00 : f32
    %852 = vector.shape_cast %851 : vector<1x256xi1> to vector<1x256xi1>
    %853 = vector.broadcast %852 : vector<1x256xi1> to vector<4x256xi1>
    %854 = vector.broadcast %cst_814 : f32 to vector<4x256xf32>
    %855 = arith.select %853, %848, %854 : vector<4x256xi1>, vector<4x256xf32>
    %c128_815 = arith.constant 128 : index
    %c0_816 = arith.constant 0 : index
    %856 = vector.load %arg8[%c128_815, %c0_816] : memref<216x256xf32, #tpu.memory_space<vmem>>, vector<4x256xf32>
    tpu.vector_store %arg8[%c128_815, %c0_816], %855 {strides = array<i32>} : memref<216x256xf32, #tpu.memory_space<vmem>>, vector<4x256xf32>,
    %c0_817 = arith.constant 0 : index
    %c32_818 = arith.constant 32 : index
    %857 = vector.load %arg9[%c0_817, %c32_818] : memref<8x290xf32, #tpu.memory_space<vmem>>, vector<4x256xf32>
    %c0_819 = arith.constant 0 : index
    %c0_820 = arith.constant 0 : index
    %858 = vector.load %arg6[%c0_819, %c0_820] : memref<2x256xf32, #tpu.memory_space<vmem>>, vector<1x256xf32>
    %cst_821 = arith.constant 5.000000e-01 : f32
    %859 = vector.broadcast %cst_821 : f32 to vector<1x256xf32>
    %860 = arith.cmpf ogt, %858, %859 : vector<1x256xf32>
    %cst_822 = arith.constant 0.000000e+00 : f32
    %861 = vector.shape_cast %860 : vector<1x256xi1> to vector<1x256xi1>
    %862 = vector.broadcast %861 : vector<1x256xi1> to vector<4x256xi1>
    %863 = vector.broadcast %cst_822 : f32 to vector<4x256xf32>
    %864 = arith.select %862, %857, %863 : vector<4x256xi1>, vector<4x256xf32>
    %c152_823 = arith.constant 152 : index
    %c0_824 = arith.constant 0 : index
    %865 = vector.load %arg8[%c152_823, %c0_824] : memref<216x256xf32, #tpu.memory_space<vmem>>, vector<4x256xf32>
    tpu.vector_store %arg8[%c152_823, %c0_824], %864 {strides = array<i32>} : memref<216x256xf32, #tpu.memory_space<vmem>>, vector<4x256xf32>,
    %c0_825 = arith.constant 0 : index
    %c33_826 = arith.constant 33 : index
    %866 = vector.load %arg9[%c0_825, %c33_826] : memref<8x290xf32, #tpu.memory_space<vmem>>, vector<4x256xf32>
    %c176_827 = arith.constant 176 : index
    %c0_828 = arith.constant 0 : index
    %867 = vector.load %arg8[%c176_827, %c0_828] : memref<216x256xf32, #tpu.memory_space<vmem>>, vector<4x256xf32>
    tpu.vector_store %arg8[%c176_827, %c0_828], %866 {strides = array<i32>} : memref<216x256xf32, #tpu.memory_space<vmem>>, vector<4x256xf32>,
    %c0_829 = arith.constant 0 : index
    %c34_830 = arith.constant 34 : index
    %868 = vector.load %arg9[%c0_829, %c34_830] : memref<8x290xf32, #tpu.memory_space<vmem>>, vector<4x256xf32>
    %c1_831 = arith.constant 1 : index
    %c0_832 = arith.constant 0 : index
    %869 = vector.load %arg6[%c1_831, %c0_832] : memref<2x256xf32, #tpu.memory_space<vmem>>, vector<1x256xf32>
    %cst_833 = arith.constant 5.000000e-01 : f32
    %870 = vector.broadcast %cst_833 : f32 to vector<1x256xf32>
    %871 = arith.cmpf ogt, %869, %870 : vector<1x256xf32>
    %cst_834 = arith.constant 0.000000e+00 : f32
    %872 = vector.shape_cast %871 : vector<1x256xi1> to vector<1x256xi1>
    %873 = vector.broadcast %872 : vector<1x256xi1> to vector<4x256xi1>
    %874 = vector.broadcast %cst_834 : f32 to vector<4x256xf32>
    %875 = arith.select %873, %868, %874 : vector<4x256xi1>, vector<4x256xf32>
    %c200_835 = arith.constant 200 : index
    %c0_836 = arith.constant 0 : index
    %876 = vector.load %arg8[%c200_835, %c0_836] : memref<216x256xf32, #tpu.memory_space<vmem>>, vector<4x256xf32>
    tpu.vector_store %arg8[%c200_835, %c0_836], %875 {strides = array<i32>} : memref<216x256xf32, #tpu.memory_space<vmem>>, vector<4x256xf32>,
    %c2_837 = arith.constant 2 : index
    %c1_838 = arith.constant 1 : index
    %c0_839 = arith.constant 0 : index
    %c0_840 = arith.constant 0 : index
    %877 = vector.load %arg2[%c2_837, %c1_838, %c0_839, %c0_840] : memref<3x4x4x216xf32, #tpu.memory_space<vmem>>, vector<1x1x4x216xf32>
    %878 = vector.shape_cast %877 : vector<1x1x4x216xf32> to vector<4x216xf32>
    %c2_841 = arith.constant 2 : index
    %c1_842 = arith.constant 1 : index
    %c0_843 = arith.constant 0 : index
    %c0_844 = arith.constant 0 : index
    %879 = vector.load %arg3[%c2_841, %c1_842, %c0_843, %c0_844] : memref<3x4x4x1xf32, #tpu.memory_space<vmem>>, vector<1x1x4x1xf32>
    %880 = vector.shape_cast %879 : vector<1x1x4x1xf32> to vector<4x1xf32>
    %c0_845 = arith.constant 0 : index
    %c0_846 = arith.constant 0 : index
    %881 = vector.load %arg8[%c0_845, %c0_846] : memref<216x256xf32, #tpu.memory_space<vmem>>, vector<216x256xf32>
    %cst_847 = arith.constant dense<0.000000e+00> : vector<4x256xf32>
    %882 = tpu.matmul %878, %881, %cst_847 {dimension_numbers = #tpu.dot_dimension_numbers<[1], [0], [0], [1], [0, 0, 1, 1], [], []>} : vector<4x216xf32>, vector<216x256xf32>, vector<4x256xf32> -> vector<4x256xf32>
    %883 = vector.broadcast %880 : vector<4x1xf32> to vector<4x256xf32>
    %884 = arith.addf %882, %883 : vector<4x256xf32>
    %cst_848 = arith.constant 0.000000e+00 : f32
    %885 = vector.broadcast %cst_848 : f32 to vector<4x256xf32>
    %886 = arith.cmpf oge, %884, %885 : vector<4x256xf32>
    %cst_849 = arith.constant 2.000000e-01 : f32
    %887 = vector.broadcast %cst_849 : f32 to vector<4x256xf32>
    %888 = arith.mulf %887, %884 : vector<4x256xf32>
    %889 = arith.select %886, %884, %888 : vector<4x256xi1>, vector<4x256xf32>
    %c0_850 = arith.constant 0 : index
    %c17_851 = arith.constant 17 : index
    %890 = vector.load %arg9[%c0_850, %c17_851] : memref<8x290xf32, #tpu.memory_space<vmem>>, vector<4x256xf32>
    tpu.vector_store %arg9[%c0_850, %c17_851], %889 {strides = array<i32>} : memref<8x290xf32, #tpu.memory_space<vmem>>, vector<4x256xf32>,
    %c0_852 = arith.constant 0 : index
    %c0_853 = arith.constant 0 : index
    %891 = vector.load %arg9[%c0_852, %c0_853] : memref<8x290xf32, #tpu.memory_space<vmem>>, vector<4x256xf32>
    %c0_854 = arith.constant 0 : index
    %c0_855 = arith.constant 0 : index
    %892 = vector.load %arg6[%c0_854, %c0_855] : memref<2x256xf32, #tpu.memory_space<vmem>>, vector<1x256xf32>
    %cst_856 = arith.constant 5.000000e-01 : f32
    %893 = vector.broadcast %cst_856 : f32 to vector<1x256xf32>
    %894 = arith.cmpf ogt, %892, %893 : vector<1x256xf32>
    %cst_857 = arith.constant 0.000000e+00 : f32
    %895 = vector.shape_cast %894 : vector<1x256xi1> to vector<1x256xi1>
    %896 = vector.broadcast %895 : vector<1x256xi1> to vector<4x256xi1>
    %897 = vector.broadcast %cst_857 : f32 to vector<4x256xf32>
    %898 = arith.select %896, %891, %897 : vector<4x256xi1>, vector<4x256xf32>
    %c12_858 = arith.constant 12 : index
    %c0_859 = arith.constant 0 : index
    %899 = vector.load %arg8[%c12_858, %c0_859] : memref<216x256xf32, #tpu.memory_space<vmem>>, vector<4x256xf32>
    tpu.vector_store %arg8[%c12_858, %c0_859], %898 {strides = array<i32>} : memref<216x256xf32, #tpu.memory_space<vmem>>, vector<4x256xf32>,
    %c0_860 = arith.constant 0 : index
    %c1_861 = arith.constant 1 : index
    %900 = vector.load %arg9[%c0_860, %c1_861] : memref<8x290xf32, #tpu.memory_space<vmem>>, vector<4x256xf32>
    %c36_862 = arith.constant 36 : index
    %c0_863 = arith.constant 0 : index
    %901 = vector.load %arg8[%c36_862, %c0_863] : memref<216x256xf32, #tpu.memory_space<vmem>>, vector<4x256xf32>
    tpu.vector_store %arg8[%c36_862, %c0_863], %900 {strides = array<i32>} : memref<216x256xf32, #tpu.memory_space<vmem>>, vector<4x256xf32>,
    %c0_864 = arith.constant 0 : index
    %c2_865 = arith.constant 2 : index
    %902 = vector.load %arg9[%c0_864, %c2_865] : memref<8x290xf32, #tpu.memory_space<vmem>>, vector<4x256xf32>
    %c1_866 = arith.constant 1 : index
    %c0_867 = arith.constant 0 : index
    %903 = vector.load %arg6[%c1_866, %c0_867] : memref<2x256xf32, #tpu.memory_space<vmem>>, vector<1x256xf32>
    %cst_868 = arith.constant 5.000000e-01 : f32
    %904 = vector.broadcast %cst_868 : f32 to vector<1x256xf32>
    %905 = arith.cmpf ogt, %903, %904 : vector<1x256xf32>
    %cst_869 = arith.constant 0.000000e+00 : f32
    %906 = vector.shape_cast %905 : vector<1x256xi1> to vector<1x256xi1>
    %907 = vector.broadcast %906 : vector<1x256xi1> to vector<4x256xi1>
    %908 = vector.broadcast %cst_869 : f32 to vector<4x256xf32>
    %909 = arith.select %907, %902, %908 : vector<4x256xi1>, vector<4x256xf32>
    %c60_870 = arith.constant 60 : index
    %c0_871 = arith.constant 0 : index
    %910 = vector.load %arg8[%c60_870, %c0_871] : memref<216x256xf32, #tpu.memory_space<vmem>>, vector<4x256xf32>
    tpu.vector_store %arg8[%c60_870, %c0_871], %909 {strides = array<i32>} : memref<216x256xf32, #tpu.memory_space<vmem>>, vector<4x256xf32>,
    %c0_872 = arith.constant 0 : index
    %c16_873 = arith.constant 16 : index
    %911 = vector.load %arg9[%c0_872, %c16_873] : memref<8x290xf32, #tpu.memory_space<vmem>>, vector<4x256xf32>
    %c0_874 = arith.constant 0 : index
    %c0_875 = arith.constant 0 : index
    %912 = vector.load %arg6[%c0_874, %c0_875] : memref<2x256xf32, #tpu.memory_space<vmem>>, vector<1x256xf32>
    %cst_876 = arith.constant 5.000000e-01 : f32
    %913 = vector.broadcast %cst_876 : f32 to vector<1x256xf32>
    %914 = arith.cmpf ogt, %912, %913 : vector<1x256xf32>
    %cst_877 = arith.constant 0.000000e+00 : f32
    %915 = vector.shape_cast %914 : vector<1x256xi1> to vector<1x256xi1>
    %916 = vector.broadcast %915 : vector<1x256xi1> to vector<4x256xi1>
    %917 = vector.broadcast %cst_877 : f32 to vector<4x256xf32>
    %918 = arith.select %916, %911, %917 : vector<4x256xi1>, vector<4x256xf32>
    %c84_878 = arith.constant 84 : index
    %c0_879 = arith.constant 0 : index
    %919 = vector.load %arg8[%c84_878, %c0_879] : memref<216x256xf32, #tpu.memory_space<vmem>>, vector<4x256xf32>
    tpu.vector_store %arg8[%c84_878, %c0_879], %918 {strides = array<i32>} : memref<216x256xf32, #tpu.memory_space<vmem>>, vector<4x256xf32>,
    %c0_880 = arith.constant 0 : index
    %c17_881 = arith.constant 17 : index
    %920 = vector.load %arg9[%c0_880, %c17_881] : memref<8x290xf32, #tpu.memory_space<vmem>>, vector<4x256xf32>
    %c108_882 = arith.constant 108 : index
    %c0_883 = arith.constant 0 : index
    %921 = vector.load %arg8[%c108_882, %c0_883] : memref<216x256xf32, #tpu.memory_space<vmem>>, vector<4x256xf32>
    tpu.vector_store %arg8[%c108_882, %c0_883], %920 {strides = array<i32>} : memref<216x256xf32, #tpu.memory_space<vmem>>, vector<4x256xf32>,
    %c0_884 = arith.constant 0 : index
    %c18_885 = arith.constant 18 : index
    %922 = vector.load %arg9[%c0_884, %c18_885] : memref<8x290xf32, #tpu.memory_space<vmem>>, vector<4x256xf32>
    %c1_886 = arith.constant 1 : index
    %c0_887 = arith.constant 0 : index
    %923 = vector.load %arg6[%c1_886, %c0_887] : memref<2x256xf32, #tpu.memory_space<vmem>>, vector<1x256xf32>
    %cst_888 = arith.constant 5.000000e-01 : f32
    %924 = vector.broadcast %cst_888 : f32 to vector<1x256xf32>
    %925 = arith.cmpf ogt, %923, %924 : vector<1x256xf32>
    %cst_889 = arith.constant 0.000000e+00 : f32
    %926 = vector.shape_cast %925 : vector<1x256xi1> to vector<1x256xi1>
    %927 = vector.broadcast %926 : vector<1x256xi1> to vector<4x256xi1>
    %928 = vector.broadcast %cst_889 : f32 to vector<4x256xf32>
    %929 = arith.select %927, %922, %928 : vector<4x256xi1>, vector<4x256xf32>
    %c132_890 = arith.constant 132 : index
    %c0_891 = arith.constant 0 : index
    %930 = vector.load %arg8[%c132_890, %c0_891] : memref<216x256xf32, #tpu.memory_space<vmem>>, vector<4x256xf32>
    tpu.vector_store %arg8[%c132_890, %c0_891], %929 {strides = array<i32>} : memref<216x256xf32, #tpu.memory_space<vmem>>, vector<4x256xf32>,
    %c0_892 = arith.constant 0 : index
    %c32_893 = arith.constant 32 : index
    %931 = vector.load %arg9[%c0_892, %c32_893] : memref<8x290xf32, #tpu.memory_space<vmem>>, vector<4x256xf32>
    %c0_894 = arith.constant 0 : index
    %c0_895 = arith.constant 0 : index
    %932 = vector.load %arg6[%c0_894, %c0_895] : memref<2x256xf32, #tpu.memory_space<vmem>>, vector<1x256xf32>
    %cst_896 = arith.constant 5.000000e-01 : f32
    %933 = vector.broadcast %cst_896 : f32 to vector<1x256xf32>
    %934 = arith.cmpf ogt, %932, %933 : vector<1x256xf32>
    %cst_897 = arith.constant 0.000000e+00 : f32
    %935 = vector.shape_cast %934 : vector<1x256xi1> to vector<1x256xi1>
    %936 = vector.broadcast %935 : vector<1x256xi1> to vector<4x256xi1>
    %937 = vector.broadcast %cst_897 : f32 to vector<4x256xf32>
    %938 = arith.select %936, %931, %937 : vector<4x256xi1>, vector<4x256xf32>
    %c156_898 = arith.constant 156 : index
    %c0_899 = arith.constant 0 : index
    %939 = vector.load %arg8[%c156_898, %c0_899] : memref<216x256xf32, #tpu.memory_space<vmem>>, vector<4x256xf32>
    tpu.vector_store %arg8[%c156_898, %c0_899], %938 {strides = array<i32>} : memref<216x256xf32, #tpu.memory_space<vmem>>, vector<4x256xf32>,
    %c0_900 = arith.constant 0 : index
    %c33_901 = arith.constant 33 : index
    %940 = vector.load %arg9[%c0_900, %c33_901] : memref<8x290xf32, #tpu.memory_space<vmem>>, vector<4x256xf32>
    %c180_902 = arith.constant 180 : index
    %c0_903 = arith.constant 0 : index
    %941 = vector.load %arg8[%c180_902, %c0_903] : memref<216x256xf32, #tpu.memory_space<vmem>>, vector<4x256xf32>
    tpu.vector_store %arg8[%c180_902, %c0_903], %940 {strides = array<i32>} : memref<216x256xf32, #tpu.memory_space<vmem>>, vector<4x256xf32>,
    %c0_904 = arith.constant 0 : index
    %c34_905 = arith.constant 34 : index
    %942 = vector.load %arg9[%c0_904, %c34_905] : memref<8x290xf32, #tpu.memory_space<vmem>>, vector<4x256xf32>
    %c1_906 = arith.constant 1 : index
    %c0_907 = arith.constant 0 : index
    %943 = vector.load %arg6[%c1_906, %c0_907] : memref<2x256xf32, #tpu.memory_space<vmem>>, vector<1x256xf32>
    %cst_908 = arith.constant 5.000000e-01 : f32
    %944 = vector.broadcast %cst_908 : f32 to vector<1x256xf32>
    %945 = arith.cmpf ogt, %943, %944 : vector<1x256xf32>
    %cst_909 = arith.constant 0.000000e+00 : f32
    %946 = vector.shape_cast %945 : vector<1x256xi1> to vector<1x256xi1>
    %947 = vector.broadcast %946 : vector<1x256xi1> to vector<4x256xi1>
    %948 = vector.broadcast %cst_909 : f32 to vector<4x256xf32>
    %949 = arith.select %947, %942, %948 : vector<4x256xi1>, vector<4x256xf32>
    %c204_910 = arith.constant 204 : index
    %c0_911 = arith.constant 0 : index
    %950 = vector.load %arg8[%c204_910, %c0_911] : memref<216x256xf32, #tpu.memory_space<vmem>>, vector<4x256xf32>
    tpu.vector_store %arg8[%c204_910, %c0_911], %949 {strides = array<i32>} : memref<216x256xf32, #tpu.memory_space<vmem>>, vector<4x256xf32>,
    %c2_912 = arith.constant 2 : index
    %c2_913 = arith.constant 2 : index
    %c0_914 = arith.constant 0 : index
    %c0_915 = arith.constant 0 : index
    %951 = vector.load %arg2[%c2_912, %c2_913, %c0_914, %c0_915] : memref<3x4x4x216xf32, #tpu.memory_space<vmem>>, vector<1x1x4x216xf32>
    %952 = vector.shape_cast %951 : vector<1x1x4x216xf32> to vector<4x216xf32>
    %c2_916 = arith.constant 2 : index
    %c2_917 = arith.constant 2 : index
    %c0_918 = arith.constant 0 : index
    %c0_919 = arith.constant 0 : index
    %953 = vector.load %arg3[%c2_916, %c2_917, %c0_918, %c0_919] : memref<3x4x4x1xf32, #tpu.memory_space<vmem>>, vector<1x1x4x1xf32>
    %954 = vector.shape_cast %953 : vector<1x1x4x1xf32> to vector<4x1xf32>
    %c0_920 = arith.constant 0 : index
    %c0_921 = arith.constant 0 : index
    %955 = vector.load %arg8[%c0_920, %c0_921] : memref<216x256xf32, #tpu.memory_space<vmem>>, vector<216x256xf32>
    %cst_922 = arith.constant dense<0.000000e+00> : vector<4x256xf32>
    %956 = tpu.matmul %952, %955, %cst_922 {dimension_numbers = #tpu.dot_dimension_numbers<[1], [0], [0], [1], [0, 0, 1, 1], [], []>} : vector<4x216xf32>, vector<216x256xf32>, vector<4x256xf32> -> vector<4x256xf32>
    %957 = vector.broadcast %954 : vector<4x1xf32> to vector<4x256xf32>
    %958 = arith.addf %956, %957 : vector<4x256xf32>
    %cst_923 = arith.constant 0.000000e+00 : f32
    %959 = vector.broadcast %cst_923 : f32 to vector<4x256xf32>
    %960 = arith.cmpf oge, %958, %959 : vector<4x256xf32>
    %cst_924 = arith.constant 2.000000e-01 : f32
    %961 = vector.broadcast %cst_924 : f32 to vector<4x256xf32>
    %962 = arith.mulf %961, %958 : vector<4x256xf32>
    %963 = arith.select %960, %958, %962 : vector<4x256xi1>, vector<4x256xf32>
    %c0_925 = arith.constant 0 : index
    %c17_926 = arith.constant 17 : index
    %964 = vector.load %arg9[%c0_925, %c17_926] : memref<8x290xf32, #tpu.memory_space<vmem>>, vector<4x256xf32>
    tpu.vector_store %arg9[%c0_925, %c17_926], %963 {strides = array<i32>} : memref<8x290xf32, #tpu.memory_space<vmem>>, vector<4x256xf32>,
    %c0_927 = arith.constant 0 : index
    %c0_928 = arith.constant 0 : index
    %965 = vector.load %arg9[%c0_927, %c0_928] : memref<8x290xf32, #tpu.memory_space<vmem>>, vector<4x256xf32>
    %c0_929 = arith.constant 0 : index
    %c0_930 = arith.constant 0 : index
    %966 = vector.load %arg6[%c0_929, %c0_930] : memref<2x256xf32, #tpu.memory_space<vmem>>, vector<1x256xf32>
    %cst_931 = arith.constant 5.000000e-01 : f32
    %967 = vector.broadcast %cst_931 : f32 to vector<1x256xf32>
    %968 = arith.cmpf ogt, %966, %967 : vector<1x256xf32>
    %cst_932 = arith.constant 0.000000e+00 : f32
    %969 = vector.shape_cast %968 : vector<1x256xi1> to vector<1x256xi1>
    %970 = vector.broadcast %969 : vector<1x256xi1> to vector<4x256xi1>
    %971 = vector.broadcast %cst_932 : f32 to vector<4x256xf32>
    %972 = arith.select %970, %965, %971 : vector<4x256xi1>, vector<4x256xf32>
    %c16_933 = arith.constant 16 : index
    %c0_934 = arith.constant 0 : index
    %973 = vector.load %arg8[%c16_933, %c0_934] : memref<216x256xf32, #tpu.memory_space<vmem>>, vector<4x256xf32>
    tpu.vector_store %arg8[%c16_933, %c0_934], %972 {strides = array<i32>} : memref<216x256xf32, #tpu.memory_space<vmem>>, vector<4x256xf32>,
    %c0_935 = arith.constant 0 : index
    %c1_936 = arith.constant 1 : index
    %974 = vector.load %arg9[%c0_935, %c1_936] : memref<8x290xf32, #tpu.memory_space<vmem>>, vector<4x256xf32>
    %c40_937 = arith.constant 40 : index
    %c0_938 = arith.constant 0 : index
    %975 = vector.load %arg8[%c40_937, %c0_938] : memref<216x256xf32, #tpu.memory_space<vmem>>, vector<4x256xf32>
    tpu.vector_store %arg8[%c40_937, %c0_938], %974 {strides = array<i32>} : memref<216x256xf32, #tpu.memory_space<vmem>>, vector<4x256xf32>,
    %c0_939 = arith.constant 0 : index
    %c2_940 = arith.constant 2 : index
    %976 = vector.load %arg9[%c0_939, %c2_940] : memref<8x290xf32, #tpu.memory_space<vmem>>, vector<4x256xf32>
    %c1_941 = arith.constant 1 : index
    %c0_942 = arith.constant 0 : index
    %977 = vector.load %arg6[%c1_941, %c0_942] : memref<2x256xf32, #tpu.memory_space<vmem>>, vector<1x256xf32>
    %cst_943 = arith.constant 5.000000e-01 : f32
    %978 = vector.broadcast %cst_943 : f32 to vector<1x256xf32>
    %979 = arith.cmpf ogt, %977, %978 : vector<1x256xf32>
    %cst_944 = arith.constant 0.000000e+00 : f32
    %980 = vector.shape_cast %979 : vector<1x256xi1> to vector<1x256xi1>
    %981 = vector.broadcast %980 : vector<1x256xi1> to vector<4x256xi1>
    %982 = vector.broadcast %cst_944 : f32 to vector<4x256xf32>
    %983 = arith.select %981, %976, %982 : vector<4x256xi1>, vector<4x256xf32>
    %c64_945 = arith.constant 64 : index
    %c0_946 = arith.constant 0 : index
    %984 = vector.load %arg8[%c64_945, %c0_946] : memref<216x256xf32, #tpu.memory_space<vmem>>, vector<4x256xf32>
    tpu.vector_store %arg8[%c64_945, %c0_946], %983 {strides = array<i32>} : memref<216x256xf32, #tpu.memory_space<vmem>>, vector<4x256xf32>,
    %c0_947 = arith.constant 0 : index
    %c16_948 = arith.constant 16 : index
    %985 = vector.load %arg9[%c0_947, %c16_948] : memref<8x290xf32, #tpu.memory_space<vmem>>, vector<4x256xf32>
    %c0_949 = arith.constant 0 : index
    %c0_950 = arith.constant 0 : index
    %986 = vector.load %arg6[%c0_949, %c0_950] : memref<2x256xf32, #tpu.memory_space<vmem>>, vector<1x256xf32>
    %cst_951 = arith.constant 5.000000e-01 : f32
    %987 = vector.broadcast %cst_951 : f32 to vector<1x256xf32>
    %988 = arith.cmpf ogt, %986, %987 : vector<1x256xf32>
    %cst_952 = arith.constant 0.000000e+00 : f32
    %989 = vector.shape_cast %988 : vector<1x256xi1> to vector<1x256xi1>
    %990 = vector.broadcast %989 : vector<1x256xi1> to vector<4x256xi1>
    %991 = vector.broadcast %cst_952 : f32 to vector<4x256xf32>
    %992 = arith.select %990, %985, %991 : vector<4x256xi1>, vector<4x256xf32>
    %c88_953 = arith.constant 88 : index
    %c0_954 = arith.constant 0 : index
    %993 = vector.load %arg8[%c88_953, %c0_954] : memref<216x256xf32, #tpu.memory_space<vmem>>, vector<4x256xf32>
    tpu.vector_store %arg8[%c88_953, %c0_954], %992 {strides = array<i32>} : memref<216x256xf32, #tpu.memory_space<vmem>>, vector<4x256xf32>,
    %c0_955 = arith.constant 0 : index
    %c17_956 = arith.constant 17 : index
    %994 = vector.load %arg9[%c0_955, %c17_956] : memref<8x290xf32, #tpu.memory_space<vmem>>, vector<4x256xf32>
    %c112_957 = arith.constant 112 : index
    %c0_958 = arith.constant 0 : index
    %995 = vector.load %arg8[%c112_957, %c0_958] : memref<216x256xf32, #tpu.memory_space<vmem>>, vector<4x256xf32>
    tpu.vector_store %arg8[%c112_957, %c0_958], %994 {strides = array<i32>} : memref<216x256xf32, #tpu.memory_space<vmem>>, vector<4x256xf32>,
    %c0_959 = arith.constant 0 : index
    %c18_960 = arith.constant 18 : index
    %996 = vector.load %arg9[%c0_959, %c18_960] : memref<8x290xf32, #tpu.memory_space<vmem>>, vector<4x256xf32>
    %c1_961 = arith.constant 1 : index
    %c0_962 = arith.constant 0 : index
    %997 = vector.load %arg6[%c1_961, %c0_962] : memref<2x256xf32, #tpu.memory_space<vmem>>, vector<1x256xf32>
    %cst_963 = arith.constant 5.000000e-01 : f32
    %998 = vector.broadcast %cst_963 : f32 to vector<1x256xf32>
    %999 = arith.cmpf ogt, %997, %998 : vector<1x256xf32>
    %cst_964 = arith.constant 0.000000e+00 : f32
    %1000 = vector.shape_cast %999 : vector<1x256xi1> to vector<1x256xi1>
    %1001 = vector.broadcast %1000 : vector<1x256xi1> to vector<4x256xi1>
    %1002 = vector.broadcast %cst_964 : f32 to vector<4x256xf32>
    %1003 = arith.select %1001, %996, %1002 : vector<4x256xi1>, vector<4x256xf32>
    %c136_965 = arith.constant 136 : index
    %c0_966 = arith.constant 0 : index
    %1004 = vector.load %arg8[%c136_965, %c0_966] : memref<216x256xf32, #tpu.memory_space<vmem>>, vector<4x256xf32>
    tpu.vector_store %arg8[%c136_965, %c0_966], %1003 {strides = array<i32>} : memref<216x256xf32, #tpu.memory_space<vmem>>, vector<4x256xf32>,
    %c0_967 = arith.constant 0 : index
    %c32_968 = arith.constant 32 : index
    %1005 = vector.load %arg9[%c0_967, %c32_968] : memref<8x290xf32, #tpu.memory_space<vmem>>, vector<4x256xf32>
    %c0_969 = arith.constant 0 : index
    %c0_970 = arith.constant 0 : index
    %1006 = vector.load %arg6[%c0_969, %c0_970] : memref<2x256xf32, #tpu.memory_space<vmem>>, vector<1x256xf32>
    %cst_971 = arith.constant 5.000000e-01 : f32
    %1007 = vector.broadcast %cst_971 : f32 to vector<1x256xf32>
    %1008 = arith.cmpf ogt, %1006, %1007 : vector<1x256xf32>
    %cst_972 = arith.constant 0.000000e+00 : f32
    %1009 = vector.shape_cast %1008 : vector<1x256xi1> to vector<1x256xi1>
    %1010 = vector.broadcast %1009 : vector<1x256xi1> to vector<4x256xi1>
    %1011 = vector.broadcast %cst_972 : f32 to vector<4x256xf32>
    %1012 = arith.select %1010, %1005, %1011 : vector<4x256xi1>, vector<4x256xf32>
    %c160_973 = arith.constant 160 : index
    %c0_974 = arith.constant 0 : index
    %1013 = vector.load %arg8[%c160_973, %c0_974] : memref<216x256xf32, #tpu.memory_space<vmem>>, vector<4x256xf32>
    tpu.vector_store %arg8[%c160_973, %c0_974], %1012 {strides = array<i32>} : memref<216x256xf32, #tpu.memory_space<vmem>>, vector<4x256xf32>,
    %c0_975 = arith.constant 0 : index
    %c33_976 = arith.constant 33 : index
    %1014 = vector.load %arg9[%c0_975, %c33_976] : memref<8x290xf32, #tpu.memory_space<vmem>>, vector<4x256xf32>
    %c184_977 = arith.constant 184 : index
    %c0_978 = arith.constant 0 : index
    %1015 = vector.load %arg8[%c184_977, %c0_978] : memref<216x256xf32, #tpu.memory_space<vmem>>, vector<4x256xf32>
    tpu.vector_store %arg8[%c184_977, %c0_978], %1014 {strides = array<i32>} : memref<216x256xf32, #tpu.memory_space<vmem>>, vector<4x256xf32>,
    %c0_979 = arith.constant 0 : index
    %c34_980 = arith.constant 34 : index
    %1016 = vector.load %arg9[%c0_979, %c34_980] : memref<8x290xf32, #tpu.memory_space<vmem>>, vector<4x256xf32>
    %c1_981 = arith.constant 1 : index
    %c0_982 = arith.constant 0 : index
    %1017 = vector.load %arg6[%c1_981, %c0_982] : memref<2x256xf32, #tpu.memory_space<vmem>>, vector<1x256xf32>
    %cst_983 = arith.constant 5.000000e-01 : f32
    %1018 = vector.broadcast %cst_983 : f32 to vector<1x256xf32>
    %1019 = arith.cmpf ogt, %1017, %1018 : vector<1x256xf32>
    %cst_984 = arith.constant 0.000000e+00 : f32
    %1020 = vector.shape_cast %1019 : vector<1x256xi1> to vector<1x256xi1>
    %1021 = vector.broadcast %1020 : vector<1x256xi1> to vector<4x256xi1>
    %1022 = vector.broadcast %cst_984 : f32 to vector<4x256xf32>
    %1023 = arith.select %1021, %1016, %1022 : vector<4x256xi1>, vector<4x256xf32>
    %c208_985 = arith.constant 208 : index
    %c0_986 = arith.constant 0 : index
    %1024 = vector.load %arg8[%c208_985, %c0_986] : memref<216x256xf32, #tpu.memory_space<vmem>>, vector<4x256xf32>
    tpu.vector_store %arg8[%c208_985, %c0_986], %1023 {strides = array<i32>} : memref<216x256xf32, #tpu.memory_space<vmem>>, vector<4x256xf32>,
    %c2_987 = arith.constant 2 : index
    %c3_988 = arith.constant 3 : index
    %c0_989 = arith.constant 0 : index
    %c0_990 = arith.constant 0 : index
    %1025 = vector.load %arg2[%c2_987, %c3_988, %c0_989, %c0_990] : memref<3x4x4x216xf32, #tpu.memory_space<vmem>>, vector<1x1x4x216xf32>
    %1026 = vector.shape_cast %1025 : vector<1x1x4x216xf32> to vector<4x216xf32>
    %c2_991 = arith.constant 2 : index
    %c3_992 = arith.constant 3 : index
    %c0_993 = arith.constant 0 : index
    %c0_994 = arith.constant 0 : index
    %1027 = vector.load %arg3[%c2_991, %c3_992, %c0_993, %c0_994] : memref<3x4x4x1xf32, #tpu.memory_space<vmem>>, vector<1x1x4x1xf32>
    %1028 = vector.shape_cast %1027 : vector<1x1x4x1xf32> to vector<4x1xf32>
    %c0_995 = arith.constant 0 : index
    %c0_996 = arith.constant 0 : index
    %1029 = vector.load %arg8[%c0_995, %c0_996] : memref<216x256xf32, #tpu.memory_space<vmem>>, vector<216x256xf32>
    %cst_997 = arith.constant dense<0.000000e+00> : vector<4x256xf32>
    %1030 = tpu.matmul %1026, %1029, %cst_997 {dimension_numbers = #tpu.dot_dimension_numbers<[1], [0], [0], [1], [0, 0, 1, 1], [], []>} : vector<4x216xf32>, vector<216x256xf32>, vector<4x256xf32> -> vector<4x256xf32>
    %1031 = vector.broadcast %1028 : vector<4x1xf32> to vector<4x256xf32>
    %1032 = arith.addf %1030, %1031 : vector<4x256xf32>
    %cst_998 = arith.constant 0.000000e+00 : f32
    %1033 = vector.broadcast %cst_998 : f32 to vector<4x256xf32>
    %1034 = arith.cmpf oge, %1032, %1033 : vector<4x256xf32>
    %cst_999 = arith.constant 2.000000e-01 : f32
    %1035 = vector.broadcast %cst_999 : f32 to vector<4x256xf32>
    %1036 = arith.mulf %1035, %1032 : vector<4x256xf32>
    %1037 = arith.select %1034, %1032, %1036 : vector<4x256xi1>, vector<4x256xf32>
    %c0_1000 = arith.constant 0 : index
    %c17_1001 = arith.constant 17 : index
    %1038 = vector.load %arg9[%c0_1000, %c17_1001] : memref<8x290xf32, #tpu.memory_space<vmem>>, vector<4x256xf32>
    tpu.vector_store %arg9[%c0_1000, %c17_1001], %1037 {strides = array<i32>} : memref<8x290xf32, #tpu.memory_space<vmem>>, vector<4x256xf32>,
    %c0_1002 = arith.constant 0 : index
    %c0_1003 = arith.constant 0 : index
    %1039 = vector.load %arg9[%c0_1002, %c0_1003] : memref<8x290xf32, #tpu.memory_space<vmem>>, vector<4x256xf32>
    %c0_1004 = arith.constant 0 : index
    %c0_1005 = arith.constant 0 : index
    %1040 = vector.load %arg6[%c0_1004, %c0_1005] : memref<2x256xf32, #tpu.memory_space<vmem>>, vector<1x256xf32>
    %cst_1006 = arith.constant 5.000000e-01 : f32
    %1041 = vector.broadcast %cst_1006 : f32 to vector<1x256xf32>
    %1042 = arith.cmpf ogt, %1040, %1041 : vector<1x256xf32>
    %cst_1007 = arith.constant 0.000000e+00 : f32
    %1043 = vector.shape_cast %1042 : vector<1x256xi1> to vector<1x256xi1>
    %1044 = vector.broadcast %1043 : vector<1x256xi1> to vector<4x256xi1>
    %1045 = vector.broadcast %cst_1007 : f32 to vector<4x256xf32>
    %1046 = arith.select %1044, %1039, %1045 : vector<4x256xi1>, vector<4x256xf32>
    %c20_1008 = arith.constant 20 : index
    %c0_1009 = arith.constant 0 : index
    %1047 = vector.load %arg8[%c20_1008, %c0_1009] : memref<216x256xf32, #tpu.memory_space<vmem>>, vector<4x256xf32>
    tpu.vector_store %arg8[%c20_1008, %c0_1009], %1046 {strides = array<i32>} : memref<216x256xf32, #tpu.memory_space<vmem>>, vector<4x256xf32>,
    %c0_1010 = arith.constant 0 : index
    %c1_1011 = arith.constant 1 : index
    %1048 = vector.load %arg9[%c0_1010, %c1_1011] : memref<8x290xf32, #tpu.memory_space<vmem>>, vector<4x256xf32>
    %c44_1012 = arith.constant 44 : index
    %c0_1013 = arith.constant 0 : index
    %1049 = vector.load %arg8[%c44_1012, %c0_1013] : memref<216x256xf32, #tpu.memory_space<vmem>>, vector<4x256xf32>
    tpu.vector_store %arg8[%c44_1012, %c0_1013], %1048 {strides = array<i32>} : memref<216x256xf32, #tpu.memory_space<vmem>>, vector<4x256xf32>,
    %c0_1014 = arith.constant 0 : index
    %c2_1015 = arith.constant 2 : index
    %1050 = vector.load %arg9[%c0_1014, %c2_1015] : memref<8x290xf32, #tpu.memory_space<vmem>>, vector<4x256xf32>
    %c1_1016 = arith.constant 1 : index
    %c0_1017 = arith.constant 0 : index
    %1051 = vector.load %arg6[%c1_1016, %c0_1017] : memref<2x256xf32, #tpu.memory_space<vmem>>, vector<1x256xf32>
    %cst_1018 = arith.constant 5.000000e-01 : f32
    %1052 = vector.broadcast %cst_1018 : f32 to vector<1x256xf32>
    %1053 = arith.cmpf ogt, %1051, %1052 : vector<1x256xf32>
    %cst_1019 = arith.constant 0.000000e+00 : f32
    %1054 = vector.shape_cast %1053 : vector<1x256xi1> to vector<1x256xi1>
    %1055 = vector.broadcast %1054 : vector<1x256xi1> to vector<4x256xi1>
    %1056 = vector.broadcast %cst_1019 : f32 to vector<4x256xf32>
    %1057 = arith.select %1055, %1050, %1056 : vector<4x256xi1>, vector<4x256xf32>
    %c68_1020 = arith.constant 68 : index
    %c0_1021 = arith.constant 0 : index
    %1058 = vector.load %arg8[%c68_1020, %c0_1021] : memref<216x256xf32, #tpu.memory_space<vmem>>, vector<4x256xf32>
    tpu.vector_store %arg8[%c68_1020, %c0_1021], %1057 {strides = array<i32>} : memref<216x256xf32, #tpu.memory_space<vmem>>, vector<4x256xf32>,
    %c0_1022 = arith.constant 0 : index
    %c16_1023 = arith.constant 16 : index
    %1059 = vector.load %arg9[%c0_1022, %c16_1023] : memref<8x290xf32, #tpu.memory_space<vmem>>, vector<4x256xf32>
    %c0_1024 = arith.constant 0 : index
    %c0_1025 = arith.constant 0 : index
    %1060 = vector.load %arg6[%c0_1024, %c0_1025] : memref<2x256xf32, #tpu.memory_space<vmem>>, vector<1x256xf32>
    %cst_1026 = arith.constant 5.000000e-01 : f32
    %1061 = vector.broadcast %cst_1026 : f32 to vector<1x256xf32>
    %1062 = arith.cmpf ogt, %1060, %1061 : vector<1x256xf32>
    %cst_1027 = arith.constant 0.000000e+00 : f32
    %1063 = vector.shape_cast %1062 : vector<1x256xi1> to vector<1x256xi1>
    %1064 = vector.broadcast %1063 : vector<1x256xi1> to vector<4x256xi1>
    %1065 = vector.broadcast %cst_1027 : f32 to vector<4x256xf32>
    %1066 = arith.select %1064, %1059, %1065 : vector<4x256xi1>, vector<4x256xf32>
    %c92_1028 = arith.constant 92 : index
    %c0_1029 = arith.constant 0 : index
    %1067 = vector.load %arg8[%c92_1028, %c0_1029] : memref<216x256xf32, #tpu.memory_space<vmem>>, vector<4x256xf32>
    tpu.vector_store %arg8[%c92_1028, %c0_1029], %1066 {strides = array<i32>} : memref<216x256xf32, #tpu.memory_space<vmem>>, vector<4x256xf32>,
    %c0_1030 = arith.constant 0 : index
    %c17_1031 = arith.constant 17 : index
    %1068 = vector.load %arg9[%c0_1030, %c17_1031] : memref<8x290xf32, #tpu.memory_space<vmem>>, vector<4x256xf32>
    %c116_1032 = arith.constant 116 : index
    %c0_1033 = arith.constant 0 : index
    %1069 = vector.load %arg8[%c116_1032, %c0_1033] : memref<216x256xf32, #tpu.memory_space<vmem>>, vector<4x256xf32>
    tpu.vector_store %arg8[%c116_1032, %c0_1033], %1068 {strides = array<i32>} : memref<216x256xf32, #tpu.memory_space<vmem>>, vector<4x256xf32>,
    %c0_1034 = arith.constant 0 : index
    %c18_1035 = arith.constant 18 : index
    %1070 = vector.load %arg9[%c0_1034, %c18_1035] : memref<8x290xf32, #tpu.memory_space<vmem>>, vector<4x256xf32>
    %c1_1036 = arith.constant 1 : index
    %c0_1037 = arith.constant 0 : index
    %1071 = vector.load %arg6[%c1_1036, %c0_1037] : memref<2x256xf32, #tpu.memory_space<vmem>>, vector<1x256xf32>
    %cst_1038 = arith.constant 5.000000e-01 : f32
    %1072 = vector.broadcast %cst_1038 : f32 to vector<1x256xf32>
    %1073 = arith.cmpf ogt, %1071, %1072 : vector<1x256xf32>
    %cst_1039 = arith.constant 0.000000e+00 : f32
    %1074 = vector.shape_cast %1073 : vector<1x256xi1> to vector<1x256xi1>
    %1075 = vector.broadcast %1074 : vector<1x256xi1> to vector<4x256xi1>
    %1076 = vector.broadcast %cst_1039 : f32 to vector<4x256xf32>
    %1077 = arith.select %1075, %1070, %1076 : vector<4x256xi1>, vector<4x256xf32>
    %c140_1040 = arith.constant 140 : index
    %c0_1041 = arith.constant 0 : index
    %1078 = vector.load %arg8[%c140_1040, %c0_1041] : memref<216x256xf32, #tpu.memory_space<vmem>>, vector<4x256xf32>
    tpu.vector_store %arg8[%c140_1040, %c0_1041], %1077 {strides = array<i32>} : memref<216x256xf32, #tpu.memory_space<vmem>>, vector<4x256xf32>,
    %c0_1042 = arith.constant 0 : index
    %c32_1043 = arith.constant 32 : index
    %1079 = vector.load %arg9[%c0_1042, %c32_1043] : memref<8x290xf32, #tpu.memory_space<vmem>>, vector<4x256xf32>
    %c0_1044 = arith.constant 0 : index
    %c0_1045 = arith.constant 0 : index
    %1080 = vector.load %arg6[%c0_1044, %c0_1045] : memref<2x256xf32, #tpu.memory_space<vmem>>, vector<1x256xf32>
    %cst_1046 = arith.constant 5.000000e-01 : f32
    %1081 = vector.broadcast %cst_1046 : f32 to vector<1x256xf32>
    %1082 = arith.cmpf ogt, %1080, %1081 : vector<1x256xf32>
    %cst_1047 = arith.constant 0.000000e+00 : f32
    %1083 = vector.shape_cast %1082 : vector<1x256xi1> to vector<1x256xi1>
    %1084 = vector.broadcast %1083 : vector<1x256xi1> to vector<4x256xi1>
    %1085 = vector.broadcast %cst_1047 : f32 to vector<4x256xf32>
    %1086 = arith.select %1084, %1079, %1085 : vector<4x256xi1>, vector<4x256xf32>
    %c164_1048 = arith.constant 164 : index
    %c0_1049 = arith.constant 0 : index
    %1087 = vector.load %arg8[%c164_1048, %c0_1049] : memref<216x256xf32, #tpu.memory_space<vmem>>, vector<4x256xf32>
    tpu.vector_store %arg8[%c164_1048, %c0_1049], %1086 {strides = array<i32>} : memref<216x256xf32, #tpu.memory_space<vmem>>, vector<4x256xf32>,
    %c0_1050 = arith.constant 0 : index
    %c33_1051 = arith.constant 33 : index
    %1088 = vector.load %arg9[%c0_1050, %c33_1051] : memref<8x290xf32, #tpu.memory_space<vmem>>, vector<4x256xf32>
    %c188_1052 = arith.constant 188 : index
    %c0_1053 = arith.constant 0 : index
    %1089 = vector.load %arg8[%c188_1052, %c0_1053] : memref<216x256xf32, #tpu.memory_space<vmem>>, vector<4x256xf32>
    tpu.vector_store %arg8[%c188_1052, %c0_1053], %1088 {strides = array<i32>} : memref<216x256xf32, #tpu.memory_space<vmem>>, vector<4x256xf32>,
    %c0_1054 = arith.constant 0 : index
    %c34_1055 = arith.constant 34 : index
    %1090 = vector.load %arg9[%c0_1054, %c34_1055] : memref<8x290xf32, #tpu.memory_space<vmem>>, vector<4x256xf32>
    %c1_1056 = arith.constant 1 : index
    %c0_1057 = arith.constant 0 : index
    %1091 = vector.load %arg6[%c1_1056, %c0_1057] : memref<2x256xf32, #tpu.memory_space<vmem>>, vector<1x256xf32>
    %cst_1058 = arith.constant 5.000000e-01 : f32
    %1092 = vector.broadcast %cst_1058 : f32 to vector<1x256xf32>
    %1093 = arith.cmpf ogt, %1091, %1092 : vector<1x256xf32>
    %cst_1059 = arith.constant 0.000000e+00 : f32
    %1094 = vector.shape_cast %1093 : vector<1x256xi1> to vector<1x256xi1>
    %1095 = vector.broadcast %1094 : vector<1x256xi1> to vector<4x256xi1>
    %1096 = vector.broadcast %cst_1059 : f32 to vector<4x256xf32>
    %1097 = arith.select %1095, %1090, %1096 : vector<4x256xi1>, vector<4x256xf32>
    %c212_1060 = arith.constant 212 : index
    %c0_1061 = arith.constant 0 : index
    %1098 = vector.load %arg8[%c212_1060, %c0_1061] : memref<216x256xf32, #tpu.memory_space<vmem>>, vector<4x256xf32>
    tpu.vector_store %arg8[%c212_1060, %c0_1061], %1097 {strides = array<i32>} : memref<216x256xf32, #tpu.memory_space<vmem>>, vector<4x256xf32>,
    %c2_1062 = arith.constant 2 : index
    %c0_1063 = arith.constant 0 : index
    %c0_1064 = arith.constant 0 : index
    %1099 = vector.load %arg4[%c2_1062, %c0_1063, %c0_1064] : memref<3x8x216xf32, #tpu.memory_space<vmem>>, vector<1x8x216xf32>
    %1100 = vector.shape_cast %1099 : vector<1x8x216xf32> to vector<8x216xf32>
    %c2_1065 = arith.constant 2 : index
    %c0_1066 = arith.constant 0 : index
    %c0_1067 = arith.constant 0 : index
    %1101 = vector.load %arg5[%c2_1065, %c0_1066, %c0_1067] : memref<3x8x1xf32, #tpu.memory_space<vmem>>, vector<1x8x1xf32>
    %1102 = vector.shape_cast %1101 : vector<1x8x1xf32> to vector<8x1xf32>
    %c0_1068 = arith.constant 0 : index
    %c0_1069 = arith.constant 0 : index
    %1103 = vector.load %arg8[%c0_1068, %c0_1069] : memref<216x256xf32, #tpu.memory_space<vmem>>, vector<216x256xf32>
    %cst_1070 = arith.constant dense<0.000000e+00> : vector<8x256xf32>
    %1104 = tpu.matmul %1100, %1103, %cst_1070 {dimension_numbers = #tpu.dot_dimension_numbers<[1], [0], [0], [1], [0, 0, 1, 1], [], []>} : vector<8x216xf32>, vector<216x256xf32>, vector<8x256xf32> -> vector<8x256xf32>
    %1105 = vector.broadcast %1102 : vector<8x1xf32> to vector<8x256xf32>
    %1106 = arith.addf %1104, %1105 : vector<8x256xf32>
    %cst_1071 = arith.constant 2.000000e-01 : f32
    %1107 = vector.broadcast %cst_1071 : f32 to vector<8x256xf32>
    %1108 = arith.mulf %1106, %1107 : vector<8x256xf32>
    %1109 = arith.addf %1108, %741 : vector<8x256xf32>
    %cst_1072 = arith.constant 2.000000e-01 : f32
    %1110 = vector.broadcast %cst_1072 : f32 to vector<8x256xf32>
    %1111 = arith.mulf %1109, %1110 : vector<8x256xf32>
    %1112 = arith.addf %1111, %5 : vector<8x256xf32>
    %c0_1073 = arith.constant 0 : index
    %c0_1074 = arith.constant 0 : index
    %c0_1075 = arith.constant 0 : index
    %1113 = vector.load %arg7[%c0_1073, %c0_1074, %c0_1075] : memref<1x8x256xf32, #tpu.memory_space<vmem>>, vector<1x8x256xf32>
    %1114 = vector.shape_cast %1113 : vector<1x8x256xf32> to vector<8x256xf32>
    %1115 = vector.shape_cast %1112 : vector<8x256xf32> to vector<1x8x256xf32>
    tpu.vector_store %arg7[%c0_1073, %c0_1074, %c0_1075], %1115 {strides = array<i32>} : memref<1x8x256xf32, #tpu.memory_space<vmem>>, vector<1x8x256xf32>,
    return
  }
  func.func @transform_0(%arg0: i32) -> (i32, i32, i32) {
    %c0_i32 = arith.constant 0 : i32
    %c0_i32_0 = arith.constant 0 : i32
    %c0_i32_1 = arith.constant 0 : i32
    return %arg0, %c0_i32, %c0_i32_0 : i32, i32, i32
  }
  func.func @transform_1(%arg0: i32) -> (i32, i32, i32, i32) {
    %c0_i32 = arith.constant 0 : i32
    %c0_i32_0 = arith.constant 0 : i32
    %c0_i32_1 = arith.constant 0 : i32
    %c0_i32_2 = arith.constant 0 : i32
    %c0_i32_3 = arith.constant 0 : i32
    return %c0_i32, %c0_i32_0, %c0_i32_1, %c0_i32_2 : i32, i32, i32, i32
  }
  func.func @transform_2(%arg0: i32) -> (i32, i32, i32, i32) {
    %c0_i32 = arith.constant 0 : i32
    %c0_i32_0 = arith.constant 0 : i32
    %c0_i32_1 = arith.constant 0 : i32
    %c0_i32_2 = arith.constant 0 : i32
    %c0_i32_3 = arith.constant 0 : i32
    return %c0_i32, %c0_i32_0, %c0_i32_1, %c0_i32_2 : i32, i32, i32, i32
  }
  func.func @transform_3(%arg0: i32) -> (i32, i32, i32) {
    %c0_i32 = arith.constant 0 : i32
    %c0_i32_0 = arith.constant 0 : i32
    %c0_i32_1 = arith.constant 0 : i32
    %c0_i32_2 = arith.constant 0 : i32
    return %c0_i32, %c0_i32_0, %c0_i32_1 : i32, i32, i32
  }
  func.func @transform_4(%arg0: i32) -> (i32, i32, i32) {
    %c0_i32 = arith.constant 0 : i32
    %c0_i32_0 = arith.constant 0 : i32
    %c0_i32_1 = arith.constant 0 : i32
    %c0_i32_2 = arith.constant 0 : i32
    return %c0_i32, %c0_i32_0, %c0_i32_1 : i32, i32, i32
  }
  func.func @transform_5(%arg0: i32) -> (i32, i32) {
    %c0_i32 = arith.constant 0 : i32
    %c0_i32_0 = arith.constant 0 : i32
    %c0_i32_1 = arith.constant 0 : i32
    return %c0_i32, %c0_i32_0 : i32, i32
  }
  func.func @transform_6(%arg0: i32) -> (i32, i32, i32) {
    %c0_i32 = arith.constant 0 : i32
    %c0_i32_0 = arith.constant 0 : i32
    %c0_i32_1 = arith.constant 0 : i32
    return %arg0, %c0_i32, %c0_i32_0 : i32, i32, i32
  }
}

</mosaic_0001>

<bundles_post_ra>
// kernel: rrdb_forward_nchw.1
= control target key start
LH: loop header
LB: loop body
LE: loop exit
PB: predicated region body
PF: predicated region fallthrough
CT: control target
= control target key end

     0   :  { %s7763_s21 = smov 0   ;;  %s10958_s0 = inlined_call_operand.vmem [shape: f32[2,8,256], index: 0, kind: input, shape index: {}]   ;;  %s10959_s1 = inlined_call_operand.vmem [shape: f32[3,4,4,216], index: 1, kind: input, shape index: {}]   ;;  %s10960_s2 = inlined_call_operand.vmem [shape: f32[3,4,4,1], index: 2, kind: input, shape index: {}]   ;;  %s10961_s3 = inlined_call_operand.vmem [shape: f32[3,8,216], index: 3, kind: input, shape index: {}]   ;;  %s10962_s4 = inlined_call_operand.vmem [shape: f32[3,8,1], index: 4, kind: input, shape index: {}]   ;;  %s10963_s5 = inlined_call_operand.vmem [shape: f32[2,256], index: 5, kind: input, shape index: {}]   ;;  %s10964_s6 = inlined_call_operand.vmem [shape: f32[2,8,256], index: 6, kind: output, shape index: {}]  }
   0x1 LB: > { %s6572_s22 = sadd.s32 4294967295, %s7713_s21   ;;  %p6576_p0 = scmp.ge.s32.totalorder %s7713_s21, 1  ;;  %s7713_s21 = sphi %s7763_s21, %s16_s21  }
   0x2   : > { %p212_p1 = scmp.lt.s32.totalorder %s7713_s21, 3 }
   0x4   : > { %p213_p2 = pnand %p6576_p0, %p212_p1 }
   0x5   : > { %p7773_p3 = scmp.lt.s32.totalorder (!%p213_p2), %s6572_s22, 1  ;;  %vm308_vm0 = vcmask (!%p213_p2), 277504   ;;  %v7715_v0 = vmov (!%p213_p2), 0.0   ;;  %v7716_v1 = vmov (!%p213_p2), 0   ;;  %s7717_s28 = smov (!%p213_p2), 17   ;;  %v332_v4 = vlaneseq (!%p213_p2)  ;;  %v7913_v23 = vld [vmem:[%s10959_s1] sm:$0xff] (!%p213_p2) }
   0x6   : > { %216 = sbr.rel (%p213_p2) target bundleno = 7795 (0x1e73), region = 44  ;;  %306 = vst [vmem:[#allocation3] sm:$0xff] (!%p213_p2), %v7715_v0  ;;  %254 = vst [vmem:[#allocation2 + $0x10] sm:$0xff] (!%p213_p2), %v7715_v0  ;;  %7472 = vset.pattern.permute.xlu0 (!%p213_p2), %v7716_v1  ;;  %7473 = vset.pattern.permute.xlu1 (!%p213_p2), %v7716_v1  ;;  %v329_v5 = vld [vmem:[%s10963_s5] ss:$2 sm:$0x3] (!%p213_p2)  ;;  %v636_v24 = vcombine.high (!%p213_p2), %v7913_v23, %v7913_v23 }
   0x7   : > { %255 = vst [vmem:[#allocation2 + $0x18] sm:$0xff] (!%p213_p2), %v7715_v0  ;;  %256 = vst [vmem:[#allocation2 + $0x20] sm:$0xff] (!%p213_p2), %v7715_v0  ;;  %v333_v6 = vshrl.u32 (!%p213_p2), %v332_v4, 7  ;;  %vm330_vm1 = vcmp.gt.f32.partialorder (!%p213_p2), %v329_v5, 0.5  ;;  %vm10965_vm2 = vcmask (!%p213_p2), 1047688   ;;  %vm10977_vm3 = vcmask (!%p213_p2), 138240  }
   0x8   : > { %257 = vst [vmem:[#allocation2 + $0x28] sm:$0xff] (!%p213_p2), %v7715_v0  ;;  %260 = vst [vmem:[#allocation2 + $0x40] sm:$0xff] (!%p213_p2), %v7715_v0  ;;  %v331_v8 = vsel (!%p213_p2), %vm330_vm1, 1, %v7716_v1  ;;  %s7718_s7 = smov (!%p213_p2), 127   ;;  %vm10975_vm6 = vmmov (!%p213_p2), 1   ;;  %s7720_s8 = smov (!%p213_p2), 126  }
   0x9   : > { %261 = vst [vmem:[#allocation2 + $0x48] sm:$0xff] (!%p213_p2), %v7715_v0  ;;  %262 = vst [vmem:[#allocation2 + $0x50] sm:$0xff] (!%p213_p2), %v7715_v0  ;;  %v7839_v7 = vsub.s32 (!%p213_p2), 1, %v333_v6  ;;  %v7842_v9 = vsub.s32 (!%p213_p2), 0, %v333_v6  ;;  %s7721_s9 = smov (!%p213_p2), 112   ;;  %s7722_s10 = smov (!%p213_p2), 111  }
   0xa   : > { %263 = vst [vmem:[#allocation2 + $0x58] sm:$0xff] (!%p213_p2), %v7715_v0  ;;  %266 = vst [vmem:[#allocation2 + $0x70] sm:$0xff] (!%p213_p2), %v7715_v0  ;;  %s7723_s11 = smov (!%p213_p2), 110   ;;  %s7724_s12 = smov (!%p213_p2), 96   ;;  %vm10971_vm9 = vcmask (!%p213_p2), 719872   ;;  %vm10970_vm12 = vcmask (!%p213_p2), 1039360  }
   0xb   : > { %267 = vst [vmem:[#allocation2 + $0x78] sm:$0xff] (!%p213_p2), %v7715_v0  ;;  %268 = vst [vmem:[#allocation2 + $0x80] sm:$0xff] (!%p213_p2), %v7715_v0  ;;  %v339_v10 = vrot.slane (!%p213_p2), %v331_v8, %v7839_v7  ;;  %v335_v12 = vrot.slane (!%p213_p2), %v331_v8, %v7842_v9  ;;  %s7725_s13 = smov (!%p213_p2), 95   ;;  %s7726_s14 = smov (!%p213_p2), 94   ;;  %6584 = vmatprep.mubr.msk.f32.mxu0 (!%p213_p2), %vm10971_vm9, %v636_v24  ;;  %v575_v25 = vld [vmem:[%s10960_s2] sm:$0xf] (!%p213_p2) }
   0xc   : > { %269 = vst [vmem:[#allocation2 + $0x88] sm:$0xff] (!%p213_p2), %v7715_v0  ;;  %272 = vst [vmem:[#allocation2 + $0xa0] sm:$0xff] (!%p213_p2), %v7715_v0  ;;  %v403_v26 = vld [vmem:[%s10963_s5] ss:$2 sm:$0x3] (!%p213_p2)  ;;  %vm10966_vm13 = vcmask (!%p213_p2), 916480  }
   0xd   : > { %273 = vst [vmem:[#allocation2 + $0xa8] sm:$0xff] %v7715_v0  ;;  %274 = vst [vmem:[#allocation2 + $0xb0] sm:$0xff] %v7715_v0  ;;  %s11438_s22 = smov (!%p7773_p3, %s6572_s22), 1  ;;  %vm341_vm4 = vcmp.eq.s32.totalorder %v339_v10, 1  ;;  %vm340_vm5 = vcmp.eq.s32.totalorder %v335_v12, 1  ;;  %vm404_vm10 = vcmp.gt.f32.partialorder %v403_v26, 0.5 }
   0xe   : > { %275 = vst [vmem:[#allocation2 + $0xb8] sm:$0xff] %v7715_v0  ;;  %278 = vst [vmem:[#allocation2 + $0xd0] sm:$0xff] %v7715_v0  ;;  %s6671_s24 = sshll.u32 %s11438_s22, 4  ;;  %v6581_v28 = vld [vmem:[%s10963_s5 + $0x1] ss:$2 sm:$0x3] }
   0xf   : > { %279 = vst [vmem:[#allocation2 + $0xd8] sm:$0xff] %v7715_v0  ;;  %280 = vst [vmem:[#allocation2 + $0xe0] sm:$0xff] %v7715_v0  ;;  %s7830_s27 = scalar_lea.vmem %s10958_s0, %s6671_s24  ;;  %v405_v31 = vsel %vm404_vm10, 1, %v7716_v1  ;;  %vm370_vm11 = vcmp.gt.f32.partialorder %v6581_v28, 0.5  ;;  %v7727_v48 = vmov 0.0|0.0   ;;  %s251_s23 = scalar_lea.vmem %s10964_s6, %s6671_s24 }
  0x10   : > { %281 = vst [vmem:[#allocation2 + $0xe8] sm:$0xff] %v7715_v0  ;;  %284 = vst [vmem:[#allocation2 + $0x100] sm:$0xff] %v7715_v0  ;;  %v310_v2 = vld [vmem:[%s7830_s27] sm:$0xff]  ;;  %v311_v3 = vld [vmem:[%s7830_s27 + $0x8] sm:$0xff]  ;;  %v409_v32 = vrot.slane %v405_v31, %v7842_v9  ;;  %v371_v35 = vsel %vm370_vm11, 1, %v7716_v1  ;;  %v413_v51 = vrot.slane %v405_v31, %v7839_v7  ;;  %vm10969_vm11 = vcmask 900096  }
  0x11   : > { %285 = vst [vmem:[#allocation2 + $0x108] sm:$0xff] %v7715_v0  ;;  %286 = vst [vmem:[#allocation2 + $0x110] sm:$0xff] %v7715_v0  ;;  %314 = vrot.lane.b32.xlu0 %v310_v2, %s7717_s28  ;;  %v6582_v40 = vld [vmem:[%s10963_s5 + $0x1] ss:$2 sm:$0x3]  ;;  %v375_v42 = vrot.slane %v371_v35, %v7842_v9  ;;  %v379_v43 = vrot.slane %v371_v35, %v7839_v7 }
  0x12   : > { %287 = vst [vmem:[#allocation2 + $0x118] sm:$0xff] %v7715_v0  ;;  %290 = vst [vmem:[#allocation2 + $0x130] sm:$0xff] %v7715_v0  ;;  %vm7945_vm14 = vcmp.eq.s32.totalorder %v409_v32, 1  ;;  %vm457_vm15 = vcmp.gt.f32.partialorder %v6582_v40, 0.5 }
  0x13   : > { %291 = vst [vmem:[#allocation2 + $0x138] sm:$0xff] %v7715_v0  ;;  %292 = vst [vmem:[#allocation2 + $0x140] sm:$0xff] %v7715_v0  ;;  %vm7957_vm1 = vcmp.eq.s32.totalorder %v375_v42, 1  ;;  %v458_v54 = vsel %vm457_vm15, 1, %v7716_v1 }
  0x14   : > { %293 = vst [vmem:[#allocation2 + $0x148] sm:$0xff] %v7715_v0  ;;  %296 = vst [vmem:[#allocation2 + $0x160] sm:$0xff] %v7715_v0  ;;  %v462_v60 = vrot.slane %v458_v54, %v7842_v9  ;;  %v490_v8 = vld [vmem:[%s10963_s5] ss:$2 sm:$0x3]  ;;  %v466_v24 = vrot.slane %v458_v54, %v7839_v7 }
  0x15   : > { %297 = vst [vmem:[#allocation2 + $0x168] sm:$0xff] %v7715_v0  ;;  %298 = vst [vmem:[#allocation2 + $0x170] sm:$0xff] %v7715_v0  ;;  %316 = vrot.lane.b32.xlu0 %v311_v3, %s7717_s28  ;;  %v6583_v40 = vld [vmem:[%s10963_s5 + $0x1] ss:$2 sm:$0x3] }
  0x16   : > { %299 = vst [vmem:[#allocation2 + $0x178] sm:$0xff] %v7715_v0  ;;  %302 = vst [vmem:[#allocation2 + $0x190] sm:$0xff] %v7715_v0 }
  0x17   : > { %303 = vst [vmem:[#allocation2 + $0x198] sm:$0xff] %v7715_v0  ;;  %304 = vst [vmem:[#allocation2 + $0x1a0] sm:$0xff] %v7715_v0 }
  0x18   : > { %305 = vst [vmem:[#allocation2 + $0x1a8] sm:$0xff] %v7715_v0  ;;  %309 = vst.msk [vmem:[#allocation3 + $0x10] sm:$0xff] %vm308_vm0, %v7715_v0  ;;  %vm10967_vm0 = vcmask 1031168  }
  0x19   : > { %vm7858_vm7 = vmpackc.low %vm10975_vm6, %vm341_vm4 }
  0x1a   : > { %vm7868_vm8 = vmpackc.low %vm10975_vm6, %vm340_vm5 }
  0x1b   : > { %vm8002_vm15 = vmpackc.low %vm10975_vm6, %vm7957_vm1 }
  0x83   : > { %v315_v11 = vpop.permute.xlu0 %314 }
  0x84   : > { %324 = vst.msk [vmem:[#allocation3] sm:$0xff] %vm10965_vm2, %v315_v11  ;;  %vm491_vm2 = vcmp.gt.f32.partialorder %v490_v8, 0.5 }
  0x87   : > { %v317_v13 = vpop.permute.xlu0 %316 }
  0x88   : > { %v7848_v14 = vsel %vm10977_vm3, %v315_v11, %v317_v13  ;;  %326 = vst.msk [vmem:[#allocation3 + $0x10] sm:$0xff] %vm10977_vm3, %v317_v13  ;;  %vm10980_vm3 = vcmask 1043592  }
  0x89   : > { %325 = vst [vmem:[#allocation3 + $0x8] sm:$0xff] %v7848_v14  ;;  %v343_v15 = vsel %vm341_vm4, %v7848_v14, 0.0  ;;  %v7492_v18 = vpack.c.bf16 %v7715_v0, %v7848_v14  ;;  %vm7961_vm4 = vcmp.eq.s32.totalorder %v379_v43, 1 }
  0x8a   : > { %345 = vst [vmem:[#allocation2 + $0x8] sm:$0xff] %v343_v15  ;;  %vm7989_vm10 = vmpackc.low %vm10975_vm6, %vm7961_vm4 }
  0x8b   : > { %v7853_v16 = vld [vmem:[#allocation3] sm:$0xff]  ;;  %7493 = vmatprep.subr.msk.bf16.mxu0 %vm7858_vm7, %v7492_v18 }
  0x8c   : > { %352 = vrot.lane.b32.xlu0 %v7853_v16, %s7718_s7  ;;  %v342_v19 = vsel %vm340_vm5, %v7853_v16, 0.0  ;;  %v7495_v22 = vpack.c.bf16 %v7715_v0, %v7853_v16  ;;  %vm7980_vm5 = vcmp.eq.s32.totalorder %v413_v51, 1 }
  0x8d   : > { %344 = vst [vmem:[#allocation2] sm:$0xff] %v342_v19 }
  0x8e   : > { %7496 = vmatpush1.bf16.msk.msra.mxu0 %vm7868_vm8, %v7495_v22 }
  0x8f   : > { %v367_v20 = vld [vmem:[#allocation3 + $0x10] sm:$0xff] }
  0x90   : > { %389 = vrot.lane.b32.xlu0 %v367_v20, %s7720_s8  ;;  %356 = vrot.lane.b32.xlu1 %v367_v20, %s7718_s7 }
  0x94   : > { %421 = vrot.lane.b32.xlu0 %v7848_v14, %s7721_s9  ;;  %354 = vrot.lane.b32.xlu1 %v7848_v14, %s7718_s7 }
  0x98   : > { %419 = vrot.lane.b32.xlu0 %v7853_v16, %s7721_s9  ;;  %385 = vrot.lane.b32.xlu1 %v7853_v16, %s7720_s8 }
  0x9c   : > { %444 = vrot.lane.b32.xlu0 %v367_v20, %s7722_s10  ;;  %387 = vrot.lane.b32.xlu1 %v7848_v14, %s7720_s8 }
  0xa0   : > { %474 = vrot.lane.b32.xlu0 %v7848_v14, %s7723_s11  ;;  %423 = vrot.lane.b32.xlu1 %v367_v20, %s7721_s9 }
  0xa4   : > { %472 = vrot.lane.b32.xlu0 %v7853_v16, %s7723_s11  ;;  %440 = vrot.lane.b32.xlu1 %v7853_v16, %s7722_s10 }
  0xa8   : > { %510 = vrot.lane.b32.xlu0 %v367_v20, %s7724_s12  ;;  %442 = vrot.lane.b32.xlu1 %v7848_v14, %s7722_s10 }
  0xac   : > { %529 = vrot.lane.b32.xlu0 %v7848_v14, %s7725_s13  ;;  %476 = vrot.lane.b32.xlu1 %v367_v20, %s7723_s11 }
  0xb0   : > { %527 = vrot.lane.b32.xlu0 %v7853_v16, %s7725_s13  ;;  %508 = vrot.lane.b32.xlu1 %v7848_v14, %s7724_s12 }
  0xb4   : > { %563 = vrot.lane.b32.xlu0 %v367_v20, %s7726_s14  ;;  %506 = vrot.lane.b32.xlu1 %v7853_v16, %s7724_s12 }
  0xb8   : > { %531 = vrot.lane.b32.xlu1 %v367_v20, %s7725_s13  ;;  %632 = vperm.xlu0 %7472, %v575_v25  }
  0xbc   : > { %561 = vrot.lane.b32.xlu1 %v7848_v14, %s7726_s14 }
  0xc0   : > { %559 = vrot.lane.b32.xlu1 %v7853_v16, %s7726_s14 }
  0xfe   : > { %v353_v27 = vpop.permute.xlu0 %352 }
 0x102   : > { %v357_v29 = vpop.permute.xlu1 %356  ;;  %v390_v30 = vpop.permute.xlu0 %389 }
 0x106   : > { %v355_v33 = vpop.permute.xlu1 %354  ;;  %v422_v34 = vpop.permute.xlu0 %421 }
 0x107   : > { %v359_v36 = vsel %vm10970_vm12, %v353_v27, %v355_v33  ;;  %v360_v37 = vsel %vm10970_vm12, %v355_v33, %v357_v29  ;;  %v492_v27 = vsel %vm491_vm2, 1, %v7716_v1  ;;  %vm10972_vm2 = vcmask 785408  }
 0x108   : > { %363 = vst [vmem:[#allocation2 + $0x30] sm:$0xff] %v359_v36  ;;  %364 = vst [vmem:[#allocation2 + $0x38] sm:$0xff] %v360_v37  ;;  %v7937_v38 = vpack.c.bf16 %v360_v37, %v7715_v0  ;;  %v7940_v39 = vpack.c.bf16 %v359_v36, %v7715_v0  ;;  %v500_v32 = vrot.slane %v492_v27, %v7839_v7  ;;  %vm544_vm12 = vcmp.gt.f32.partialorder %v6583_v40, 0.5 }
 0x109   : > { %v496_v42 = vrot.slane %v492_v27, %v7842_v9 }
 0x10a   : > { %v386_v44 = vpop.permute.xlu1 %385  ;;  %v420_v45 = vpop.permute.xlu0 %419  ;;  %6678 = vmatprep.subr.bf16.mxu0 %v7937_v38 }
 0x10b   : > { %v426_v46 = vsel %vm10966_vm13, %v420_v45, %v422_v34  ;;  %6680 = vmatpush1.bf16.msra.mxu0 %v7940_v39  ;;  %vm8111_vm9 = vcmp.eq.s32.totalorder %v496_v42, 1 }
 0x10c   : > { %v430_v47 = vsel %vm7945_vm14, %v426_v46, 0.0  ;;  %6682 = vmatprep.subr.bf16.mxu0 %v7727_v48  ;;  %v8041_v22 = vpack.c.bf16 %v426_v46, %v7715_v0 }
 0x10d   : > { %432 = vst [vmem:[#allocation2 + $0x90] sm:$0xff] %v430_v47 }
 0x10e   : > { %v388_v52 = vpop.permute.xlu1 %387  ;;  %v445_v53 = vpop.permute.xlu0 %444 }
 0x10f   : > { %v7968_v55 = vsel %vm10967_vm0, %v386_v44, %v388_v52  ;;  %v7971_v56 = vsel %vm10967_vm0, %v388_v52, %v390_v30  ;;  %6684 = vmatpush1.bf16.msra.mxu0 %v7727_v48  ;;  %vm8036_vm0 = vmpackc.low %vm7945_vm14, %vm10975_vm6  ;;  %vm8060_vm14 = vcmp.eq.s32.totalorder %v466_v24, 1 }
 0x110   : > { %v396_v57 = vsel %vm7957_vm1, %v7968_v55, 0.0  ;;  %v397_v58 = vsel %vm7961_vm4, %v7971_v56, 0.0  ;;  %v7498_v3 = vpack.c.bf16 %v7715_v0, %v7971_v56  ;;  %v7501_v6 = vpack.c.bf16 %v7715_v0, %v7968_v55  ;;  %vm8021_vm1 = vmpackc.low %vm7980_vm5, %vm10975_vm6 }
 0x111   : > { %398 = vst [vmem:[#allocation2 + $0x60] sm:$0xff] %v396_v57  ;;  %399 = vst [vmem:[#allocation2 + $0x68] sm:$0xff] %v397_v58  ;;  %vm8013_vm4 = vcmp.eq.s32.totalorder %v462_v60, 1  ;;  %v545_v57 = vsel %vm544_vm12, 1, %v7716_v1  ;;  %vm10974_vm12 = vcmask 769024  }
 0x112   : > { %v424_v61 = vpop.permute.xlu1 %423  ;;  %v475_v62 = vpop.permute.xlu0 %474  ;;  %7499 = vmatprep.subr.msk.bf16.mxu0 %vm7989_vm10, %v7498_v3  ;;  %v553_v60 = vrot.slane %v545_v57, %v7839_v7 }
 0x113   : > { %v427_v63 = vsel %vm10966_vm13, %v422_v34, %v424_v61  ;;  %7502 = vmatpush1.bf16.msk.msra.mxu0 %vm8002_vm15, %v7501_v6  ;;  %vm10968_vm13 = vcmask 908288  }
 0x114   : > { %v431_v4 = vsel %vm7980_vm5, %v427_v63, 0.0  ;;  %v8026_v18 = vpack.c.bf16 %v427_v63, %v7715_v0  ;;  %vm10973_vm5 = vcmask 777216  }
 0x115   : > { %433 = vst [vmem:[#allocation2 + $0x98] sm:$0xff] %v431_v4 }
 0x116   : > { %v441_v11 = vpop.permute.xlu1 %440  ;;  %v473_v12 = vpop.permute.xlu0 %472  ;;  %7505 = vmatprep.subr.msk.bf16.mxu0 %vm8021_vm1, %v8026_v18 }
 0x117   : > { %v479_v13 = vsel %vm10969_vm11, %v473_v12, %v475_v62  ;;  %7508 = vmatpush1.bf16.msk.msra.mxu0 %vm8036_vm0, %v8041_v22 }
 0x118   : > { %v483_v19 = vsel %vm8013_vm4, %v479_v13, 0.0  ;;  %6694 = vmatprep.subr.bf16.mxu0 %v7727_v48  ;;  %v8106_v52 = vpack.c.bf16 %v479_v13, %v7715_v0 }
 0x119   : > { %485 = vst [vmem:[#allocation2 + $0xf0] sm:$0xff] %v483_v19 }
 0x11a   : > { %v443_v25 = vpop.permute.xlu1 %442  ;;  %v511_v26 = vpop.permute.xlu0 %510 }
 0x11b   : > { %v8050_v28 = vsel %vm10968_vm13, %v441_v11, %v443_v25  ;;  %v8053_v29 = vsel %vm10968_vm13, %v443_v25, %v445_v53  ;;  %6696 = vmatpush1.bf16.msra.mxu0 %v7727_v48  ;;  %vm8073_vm13 = vcmp.eq.s32.totalorder %v500_v32, 1  ;;  %v549_v11 = vrot.slane %v545_v57, %v7842_v9 }
 0x11c   : > { %451 = vst [vmem:[#allocation2 + $0xc0] sm:$0xff] %v8050_v28  ;;  %452 = vst [vmem:[#allocation2 + $0xc8] sm:$0xff] %v8053_v29  ;;  %v6697_v30 = vpack.c.bf16 %v7715_v0, %v8053_v29  ;;  %v6699_v35 = vpack.c.bf16 %v7715_v0, %v8050_v28 }
 0x11e   : > { %v477_v33 = vpop.permute.xlu1 %476  ;;  %v530_v34 = vpop.permute.xlu0 %529  ;;  %6698 = vmatprep.subr.bf16.mxu0 %v6697_v30 }
 0x11f   : > { %v480_v36 = vsel %vm10969_vm11, %v475_v62, %v477_v33  ;;  %6700 = vmatpush1.bf16.msra.mxu0 %v6699_v35  ;;  %vm8085_vm11 = vmpackc.low %vm8060_vm14, %vm10975_vm6  ;;  %v11027_v33 = vmov 0 }
 0x120   : > { %v484_v37 = vsel %vm8060_vm14, %v480_v36, 0.0  ;;  %v8090_v49 = vpack.c.bf16 %v480_v36, %v7715_v0  ;;  %vm8101_vm14 = vmpackc.low %vm8013_vm4, %vm10975_vm6 }
 0x121   : > { %486 = vst [vmem:[#allocation2 + $0xf8] sm:$0xff] %v484_v37  ;;  %vm8128_vm4 = vmpackc.low %vm10975_vm6, %vm8073_vm13 }
 0x122   : > { %v509_v43 = vpop.permute.xlu1 %508  ;;  %v528_v44 = vpop.permute.xlu0 %527  ;;  %7511 = vmatprep.subr.msk.bf16.mxu0 %vm8085_vm11, %v8090_v49 }
 0x123   : > { %v8079_v45 = vsel %vm10972_vm2, %v509_v43, %v511_v26  ;;  %v534_v46 = vsel %vm10973_vm5, %v528_v44, %v530_v34  ;;  %7514 = vmatpush1.bf16.msk.msra.mxu0 %vm8101_vm14, %v8106_v52 }
 0x124   : > { %v518_v50 = vsel %vm8073_vm13, %v8079_v45, 0.0  ;;  %538 = vst [vmem:[#allocation2 + $0x150] sm:$0xff] %v534_v46  ;;  %6706 = vmatprep.subr.bf16.mxu0 %v7727_v48  ;;  %v7516_v62 = vpack.c.bf16 %v7715_v0, %v8079_v45  ;;  %vm8151_vm13 = vcmp.eq.s32.totalorder %v553_v60, 1  ;;  %v8158_v19 = vpack.c.bf16 %v534_v46, %v7715_v0  ;;  %v734_v46 = vld [vmem:[%s10963_s5] ss:$2 sm:$0x3] }
 0x125   : > { %520 = vst [vmem:[#allocation2 + $0x128] sm:$0xff] %v518_v50 }
 0x126   : > { %v507_v54 = vpop.permute.xlu1 %506  ;;  %v564_v12 = vpop.permute.xlu0 %563 }
 0x127   : > { %v8118_v58 = vsel %vm10972_vm2, %v507_v54, %v509_v43  ;;  %6708 = vmatpush1.bf16.msra.mxu0 %v7727_v48  ;;  %vm8140_vm2 = vmpackc.low %vm10975_vm6, %vm8111_vm9 }
 0x128   : > { %v517_v59 = vsel %vm8111_vm9, %v8118_v58, 0.0  ;;  %7517 = vmatprep.subr.msk.bf16.mxu0 %vm8128_vm4, %v7516_v62  ;;  %v7519_v6 = vpack.c.bf16 %v7715_v0, %v8118_v58  ;;  %vm554_vm9 = vcmp.eq.s32.totalorder %v549_v11, 1 }
 0x129   : > { %519 = vst [vmem:[#allocation2 + $0x120] sm:$0xff] %v517_v59 }
 0x12a   : > { %v532_v63 = vpop.permute.xlu1 %531 }
 0x12b   : > { %v535_v3 = vsel %vm10973_vm5, %v530_v34, %v532_v63  ;;  %7520 = vmatpush1.bf16.msk.msra.mxu0 %vm8140_vm2, %v7519_v6  ;;  %vm8176_vm5 = vmpackc.low %vm10975_vm6, %vm8151_vm13 }
 0x12c   : > { %539 = vst [vmem:[#allocation2 + $0x158] sm:$0xff] %v535_v3  ;;  %v8149_v8 = vpack.c.bf16 %v535_v3, %v7715_v0 }
 0x12e   : > { %v562_v13 = vpop.permute.xlu1 %561  ;;  %6714 = vmatprep.subr.bf16.mxu0 %v8149_v8 }
 0x12f   : > { %v8161_v24 = vsel %vm10974_vm12, %v562_v13, %v564_v12  ;;  %6716 = vmatpush1.bf16.msra.mxu0 %v8158_v19 }
 0x130   : > { %v571_v25 = vsel %vm8151_vm13, %v8161_v24, 0.0  ;;  %6718 = vmatprep.subr.bf16.mxu0 %v7727_v48  ;;  %v7522_v32 = vpack.c.bf16 %v7715_v0, %v8161_v24 }
 0x131   : > { %573 = vst [vmem:[#allocation2 + $0x188] sm:$0xff] %v571_v25 }
 0x132   : > { %v560_v26 = vpop.permute.xlu1 %559 }
 0x133   : > { %v8169_v27 = vsel %vm10974_vm12, %v560_v26, %v562_v13  ;;  %6720 = vmatpush1.bf16.msra.mxu0 %v7727_v48  ;;  %vm8185_vm12 = vmpackc.low %vm10975_vm6, %vm554_vm9  ;;  %vm735_vm6 = vcmp.gt.f32.partialorder %v734_v46, 0.5 }
 0x134   : > { %v570_v30 = vsel %vm554_vm9, %v8169_v27, 0.0  ;;  %7523 = vmatprep.subr.msk.bf16.mxu0 %vm8176_vm5, %v7522_v32  ;;  %v11028_v33 = vsel %vm8185_vm12, 4294967295, %v11027_v33  ;;  %v7525_v48 = vpack.c.bf16 %v7715_v0, %v8169_v27  ;;  %v736_v50 = vsel %vm735_vm6, 1, %v7716_v1 }
 0x135   : > { %572 = vst [vmem:[#allocation2 + $0x180] sm:$0xff] %v570_v30  ;;  %v740_v53 = vrot.slane %v736_v50, %v7842_v9  ;;  %v744_v59 = vrot.slane %v736_v50, %v7839_v7  ;;  %v6589_v50 = vld [vmem:[%s10960_s2 + $0x4] sm:$0xf] }
 0x137   : > { %7526 = vmatpush1.bf16.msk.msra.mxu0 %vm8185_vm12, %v7525_v48  ;;  %v633_v34 = vpop.permute.xlu0 %632  ;;  %vm10979_vm12 = vcmask 134144   ;;  %vm746_vm6 = vcmp.eq.s32.totalorder %v744_v59, 1  ;;  %v6585_v59 = vld [vmem:[%s10963_s5 + $0x1] ss:$2 sm:$0x3] }
 0x138   : > { %692 = vmatprep.subr.mxu0 %v7715_v0 }
 0x13b   : > { %693 = vmatpush1.msra.mxu0 %v7715_v0 }
 0x13c   : > { %705 = vmatmul.mubr.f32.vlgmr.msra.gmra.mrb[0].mxu0 %v7913_v23 }
 0x20f   : > { %v706_v35 = vpop.f32.mrb[0].mxu0 }
 0x210   : > { %v707_v36 = vadd.f32 %v706_v35, %v633_v34  ;;  %v708_v37 = vpop.f32.mrb[1].mxu0 }
 0x211   : > { %v709_v40 = vadd.f32 %v708_v37, %v633_v34 }
 0x212   : > { %vm711_vm13 = vcmp.ge.f32.partialorder %v707_v36, 0.0  ;;  %v713_v41 = vmul.f32 0.2, %v707_v36 }
 0x213   : > { %v714_v42 = vmul.f32 0.2, %v709_v40  ;;  %vm712_vm9 = vcmp.ge.f32.partialorder %v709_v40, 0.0 }
 0x214   : > { %v715_v43 = vsel %vm711_vm13, %v707_v36, %v713_v41  ;;  %vm11029_vm13 = vcmask 138240  }
 0x215   : > { %719 = vrot.lane.b32.xlu1 %v715_v43, %s7717_s28  ;;  %v716_v44 = vsel %vm712_vm9, %v709_v40, %v714_v42  ;;  %vm745_vm9 = vcmp.eq.s32.totalorder %v740_v53, 1 }
 0x219   : > { %721 = vrot.lane.b32.xlu1 %v716_v44, %s7717_s28 }
 0x287   : > { %v720_v23 = vpop.permute.xlu1 %719 }
 0x288   : > { %728 = vst.msk [vmem:[#allocation3] sm:$0xf] %vm10980_vm3, %v720_v23 }
 0x28b   : > { %v722_v54 = vpop.permute.xlu1 %721 }
 0x28c   : > { %v723_v57 = vsel %vm11029_vm13, %v720_v23, %v722_v54  ;;  %731 = vst.msk [vmem:[#allocation3 + $0x10] sm:$0xf] %vm10979_vm12, %v722_v54  ;;  %v8245_v54 = vld [vmem:[%s10959_s1 + $0x8] sm:$0xff]  ;;  %vm11031_vm13 = vcmask 1039360  }
 0x28d   : > { %729 = vst [vmem:[#allocation3 + $0x8] sm:$0xf] %v723_v57  ;;  %v1034_v57 = vcombine.high %v8245_v54, %v8245_v54 }
 0x28f   : > { %v751_v60 = vld [vmem:[#allocation3] sm:$0xf] }
 0x290   : > { %757 = vrot.lane.b32.xlu0 %v751_v60, %s7718_s7  ;;  %v732_v62 = vld [vmem:[#allocation3] sm:$0xf] }
 0x291   : > { %v747_v63 = vsel %vm745_vm9, %v732_v62, 0.0  ;;  %v769_v25 = vld [vmem:[#allocation3] sm:$0xf]  ;;  %vm11032_vm9 = vmmov %vm11031_vm13 }
 0x292   : > { %749 = vst [vmem:[#allocation2 + $0x10] sm:$0xf] %v747_v63  ;;  %v802_v26 = vld [vmem:[#allocation3] sm:$0xf] }
 0x293   : > { %v753_v3 = vld [vmem:[#allocation3 + $0x10] sm:$0xf]  ;;  %v835_v37 = vld [vmem:[#allocation3] sm:$0xf] }
 0x294   : > { %761 = vrot.lane.b32.xlu1 %v753_v3, %s7718_s7  ;;  %v752_v6 = vld [vmem:[#allocation3 + $0x8] sm:$0xf]  ;;  %v771_v13 = vld [vmem:[#allocation3 + $0x10] sm:$0xf]  ;;  %v853_v17 = vld [vmem:[#allocation3] sm:$0xf] }
 0x295   : > { %v733_v10 = vld [vmem:[#allocation3 + $0x8] sm:$0xf]  ;;  %759 = vrot.lane.b32.xlu0 %v752_v6, %s7718_s7  ;;  %v804_v48 = vld [vmem:[#allocation3 + $0x10] sm:$0xf]  ;;  %v886_v42 = vld [vmem:[#allocation3] sm:$0xf] }
 0x296   : > { %v748_v11 = vsel %vm746_vm6, %v733_v10, 0.0  ;;  %v770_v12 = vld [vmem:[#allocation3 + $0x8] sm:$0xf]  ;;  %v837_v40 = vld [vmem:[#allocation3 + $0x10] sm:$0xf] }
 0x297   : > { %750 = vst [vmem:[#allocation2 + $0x18] sm:$0xf] %v748_v11  ;;  %v803_v35 = vld [vmem:[#allocation3 + $0x8] sm:$0xf]  ;;  %v888_v41 = vld [vmem:[#allocation3 + $0x10] sm:$0xf] }
 0x298   : > { %790 = vrot.lane.b32.xlu1 %v770_v12, %s7720_s8  ;;  %v854_v21 = vld [vmem:[#allocation3 + $0x8] sm:$0xf]  ;;  %v921_v43 = vld [vmem:[#allocation3 + $0x10] sm:$0xf]  ;;  %v937_v53 = vld [vmem:[#allocation3] sm:$0xf] }
 0x299   : > { %792 = vrot.lane.b32.xlu0 %v771_v13, %s7720_s8  ;;  %v976_v30 = vld [vmem:[#allocation2 + $0x10] sm:$0xff]  ;;  %v920_v44 = vld [vmem:[#allocation3 + $0x8] sm:$0xf]  ;;  %v939_v23 = vld [vmem:[#allocation3 + $0x10] sm:$0xf] }
 0x29a   : > { %v7531_v36 = vpack.c.bf16 %v976_v30, %v7853_v16  ;;  %v855_v16 = vld [vmem:[#allocation3 + $0x10] sm:$0xf]  ;;  %v938_v46 = vld [vmem:[#allocation3 + $0x8] sm:$0xf] }
 0x29b   : > { %v805_v63 = vld [vmem:[%s10963_s5] ss:$2 sm:$0x3] }
 0x29c   : > { %788 = vrot.lane.b32.xlu1 %v769_v25, %s7720_s8  ;;  %vm806_vm6 = vcmp.gt.f32.partialorder %v805_v63, 0.5 }
 0x29d   : > { %821 = vrot.lane.b32.xlu0 %v802_v26, %s7721_s9  ;;  %v807_v30 = vsel %vm806_vm6, 1, %v7716_v1 }
 0x29e   : > { %v977_v32 = vld [vmem:[#allocation2 + $0x18] sm:$0xff] }
 0x29f   : > { %v7528_v34 = vpack.c.bf16 %v977_v32, %v7848_v14  ;;  %v836_v14 = vld [vmem:[#allocation3 + $0x8] sm:$0xf] }
 0x2a0   : > { %825 = vrot.lane.b32.xlu1 %v804_v48, %s7721_s9 }
 0x2a1   : > { %7529 = vmatprep.subr.msk.bf16.mxu1 %vm7858_vm7, %v7528_v34  ;;  %823 = vrot.lane.b32.xlu0 %v803_v35, %s7721_s9  ;;  %vm11030_vm7 = vcmask 719872   ;;  %v811_v35 = vrot.slane %v807_v30, %v7842_v9 }
 0x2a2   : > { %7532 = vmatpush1.bf16.msk.msra.mxu1 %vm7868_vm8, %v7531_v36  ;;  %6590 = vmatprep.mubr.msk.f32.mxu1 %vm11030_vm7, %v1034_v57  ;;  %vm773_vm8 = vcmp.gt.f32.partialorder %v6585_v59, 0.5  ;;  %v815_v36 = vrot.slane %v807_v30, %v7839_v7 }
 0x2a3   : > { %6730 = vmatprep.subr.bf16.mxu1 %v7937_v38  ;;  %v887_v38 = vld [vmem:[#allocation3 + $0x8] sm:$0xf]  ;;  %v774_v62 = vsel %vm773_vm8, 1, %v7716_v1  ;;  %vm11033_vm8 = vcmask 1031168  }
 0x2a4   : > { %841 = vrot.lane.b32.xlu1 %v835_v37, %s7722_s10  ;;  %v782_v6 = vrot.slane %v774_v62, %v7839_v7  ;;  %v778_v13 = vrot.slane %v774_v62, %v7842_v9  ;;  %vm817_vm6 = vcmp.eq.s32.totalorder %v815_v36, 1 }
 0x2a5   : > { %845 = vrot.lane.b32.xlu0 %v837_v40, %s7722_s10 }
 0x2a6   : > { %6732 = vmatpush1.bf16.msra.mxu1 %v7940_v39  ;;  %v919_v39 = vld [vmem:[#allocation3] sm:$0xf]  ;;  %vm784_vm7 = vcmp.eq.s32.totalorder %v782_v6, 1  ;;  %vm783_vm12 = vcmp.eq.s32.totalorder %v778_v13, 1 }
 0x2a8   : > { %843 = vrot.lane.b32.xlu1 %v836_v14, %s7722_s10 }
 0x2a9   : > { %872 = vrot.lane.b32.xlu0 %v853_v17, %s7723_s11 }
 0x2ac   : > { %876 = vrot.lane.b32.xlu1 %v855_v16, %s7723_s11 }
 0x2ad   : > { %874 = vrot.lane.b32.xlu0 %v854_v21, %s7723_s11 }
 0x2b0   : > { %907 = vrot.lane.b32.xlu1 %v887_v38, %s7724_s12 }
 0x2b1   : > { %909 = vrot.lane.b32.xlu0 %v888_v41, %s7724_s12  ;;  %v6586_v41 = vld [vmem:[%s10963_s5 + $0x1] ss:$2 sm:$0x3] }
 0x2b4   : > { %905 = vrot.lane.b32.xlu1 %v886_v42, %s7724_s12 }
 0x2b5   : > { %925 = vrot.lane.b32.xlu0 %v919_v39, %s7725_s13 }
 0x2b8   : > { %929 = vrot.lane.b32.xlu1 %v921_v43, %s7725_s13 }
 0x2b9   : > { %927 = vrot.lane.b32.xlu0 %v920_v44, %s7725_s13 }
 0x2bc   : > { %958 = vrot.lane.b32.xlu1 %v938_v46, %s7726_s14 }
 0x2bd   : > { %960 = vrot.lane.b32.xlu0 %v939_v23, %s7726_s14 }
 0x2c0   : > { %956 = vrot.lane.b32.xlu1 %v937_v53, %s7726_s14  ;;  %v889_v53 = vld [vmem:[%s10963_s5] ss:$2 sm:$0x3] }
 0x2c1   : > { %1030 = vperm.xlu0 %7472, %v6589_v50  }
 0x302   : > { %v758_v60 = vpop.permute.xlu0 %757 }
 0x306   : > { %v762_v3 = vpop.permute.xlu1 %761 }
 0x307   : > { %v760_v10 = vpop.permute.xlu0 %759 }
 0x308   : > { %v763_v11 = vsel %vm11031_vm13, %v758_v60, %v760_v10  ;;  %v764_v12 = vsel %vm11032_vm9, %v760_v10, %v762_v3  ;;  %vm11034_vm13 = vmmov %vm11033_vm8  ;;  %vm816_vm9 = vcmp.eq.s32.totalorder %v811_v35, 1 }
 0x309   : > { %767 = vst [vmem:[#allocation2 + $0x40] sm:$0xf] %v763_v11  ;;  %768 = vst [vmem:[#allocation2 + $0x48] sm:$0xf] %v764_v12 }
 0x30a   : > { %v791_v25 = vpop.permute.xlu1 %790 }
 0x30b   : > { %v793_v26 = vpop.permute.xlu0 %792 }
 0x30c   : > { %v795_v32 = vsel %vm11033_vm8, %v791_v25, %v793_v26 }
 0x30d   : > { %v799_v48 = vsel %vm784_vm7, %v795_v32, 0.0  ;;  %vm11035_vm7 = vcmask 916480  }
 0x30e   : > { %801 = vst [vmem:[#allocation2 + $0x78] sm:$0xf] %v799_v48  ;;  %v789_v34 = vpop.permute.xlu1 %788  ;;  %vm11036_vm8 = vmmov %vm11035_vm7 }
 0x30f   : > { %v794_v37 = vsel %vm11034_vm13, %v789_v34, %v791_v25  ;;  %v822_v40 = vpop.permute.xlu0 %821  ;;  %vm890_vm13 = vcmp.gt.f32.partialorder %v889_v53, 0.5 }
 0x310   : > { %v798_v14 = vsel %vm783_vm12, %v794_v37, 0.0  ;;  %v983_v17 = vld [vmem:[#allocation2 + $0x48] sm:$0xff]  ;;  %v982_v16 = vld [vmem:[#allocation2 + $0x40] sm:$0xff]  ;;  %vm857_vm12 = vcmp.gt.f32.partialorder %v6586_v41, 0.5 }
 0x311   : > { %800 = vst [vmem:[#allocation2 + $0x70] sm:$0xf] %v798_v14  ;;  %v6733_v21 = vpack.c.bf16 %v7715_v0, %v983_v17  ;;  %v6735_v38 = vpack.c.bf16 %v7715_v0, %v982_v16  ;;  %v858_v60 = vsel %vm857_vm12, 1, %v7716_v1  ;;  %v6587_v37 = vld [vmem:[%s10963_s5 + $0x1] ss:$2 sm:$0x3] }
 0x312   : > { %v826_v42 = vpop.permute.xlu1 %825  ;;  %v862_v6 = vrot.slane %v858_v60, %v7842_v9  ;;  %v866_v10 = vrot.slane %v858_v60, %v7839_v7  ;;  %vm941_vm12 = vcmp.gt.f32.partialorder %v6587_v37, 0.5 }
 0x313   : > { %v824_v39 = vpop.permute.xlu0 %823  ;;  %6734 = vmatprep.subr.bf16.mxu1 %v6733_v21 }
 0x314   : > { %v827_v43 = vsel %vm11035_vm7, %v822_v40, %v824_v39  ;;  %v828_v44 = vsel %vm11036_vm8, %v824_v39, %v826_v42  ;;  %6736 = vmatpush1.bf16.msra.mxu1 %v6735_v38  ;;  %vm868_vm7 = vcmp.eq.s32.totalorder %v866_v10, 1 }
 0x315   : > { %v831_v46 = vsel %vm816_vm9, %v827_v43, 0.0  ;;  %v832_v23 = vsel %vm817_vm6, %v828_v44, 0.0  ;;  %v989_v50 = vld [vmem:[#allocation2 + $0x78] sm:$0xff]  ;;  %vm11037_vm9 = vcmask 908288   ;;  %v942_v43 = vsel %vm941_vm12, 1, %v7716_v1 }
 0x316   : > { %833 = vst [vmem:[#allocation2 + $0xa0] sm:$0xf] %v831_v46  ;;  %834 = vst [vmem:[#allocation2 + $0xa8] sm:$0xf] %v832_v23  ;;  %v842_v57 = vpop.permute.xlu1 %841  ;;  %v7534_v62 = vpack.c.bf16 %v989_v50, %v7971_v56  ;;  %v891_v56 = vsel %vm890_vm13, 1, %v7716_v1  ;;  %v950_v23 = vrot.slane %v942_v43, %v7839_v7  ;;  %v946_v60 = vrot.slane %v942_v43, %v7842_v9 }
 0x317   : > { %v846_v59 = vpop.permute.xlu0 %845  ;;  %vm11038_vm6 = vmmov %vm11037_vm9  ;;  %v899_v32 = vrot.slane %v891_v56, %v7839_v7  ;;  %v895_v36 = vrot.slane %v891_v56, %v7842_v9 }
 0x318   : > { %7535 = vmatprep.subr.msk.bf16.mxu1 %vm7989_vm10, %v7534_v62  ;;  %v988_v63 = vld [vmem:[#allocation2 + $0x70] sm:$0xff]  ;;  %vm867_vm10 = vcmp.eq.s32.totalorder %v862_v6, 1 }
 0x319   : > { %v7537_v25 = vpack.c.bf16 %v988_v63, %v7968_v55  ;;  %vm900_vm13 = vcmp.eq.s32.totalorder %v895_v36, 1 }
 0x31a   : > { %v844_v3 = vpop.permute.xlu1 %843 }
 0x31b   : > { %v847_v11 = vsel %vm11037_vm9, %v842_v57, %v844_v3  ;;  %v848_v12 = vsel %vm11038_vm6, %v844_v3, %v846_v59  ;;  %v873_v13 = vpop.permute.xlu0 %872  ;;  %7538 = vmatpush1.bf16.msk.msra.mxu1 %vm8002_vm15, %v7537_v25  ;;  %vm11039_vm15 = vcmask 900096   ;;  %vm11043_vm6 = vcmask 777216  }
 0x31c   : > { %851 = vst [vmem:[#allocation2 + $0xd0] sm:$0xf] %v847_v11  ;;  %852 = vst [vmem:[#allocation2 + $0xd8] sm:$0xf] %v848_v12  ;;  %7541 = vmatprep.subr.msk.bf16.mxu1 %vm8021_vm1, %v8026_v18  ;;  %vm901_vm1 = vcmp.eq.s32.totalorder %v899_v32, 1 }
 0x31d   : > { %v995_v2 = vld [vmem:[#allocation2 + $0xa8] sm:$0xff]  ;;  %v994_v55 = vld [vmem:[#allocation2 + $0xa0] sm:$0xff]  ;;  %vm11040_vm8 = vmmov %vm11039_vm15 }
 0x31e   : > { %v877_v26 = vpop.permute.xlu1 %876  ;;  %v6745_v30 = vpack.c.bf16 %v7715_v0, %v995_v2  ;;  %v6747_v35 = vpack.c.bf16 %v7715_v0, %v994_v55 }
 0x31f   : > { %v875_v48 = vpop.permute.xlu0 %874  ;;  %7544 = vmatpush1.bf16.msk.msra.mxu1 %vm8036_vm0, %v8041_v22  ;;  %vm11041_vm0 = vcmask 785408  }
 0x320   : > { %v878_v5 = vsel %vm11039_vm15, %v873_v13, %v875_v48  ;;  %v879_v34 = vsel %vm11040_vm8, %v875_v48, %v877_v26  ;;  %6746 = vmatprep.subr.bf16.mxu1 %v6745_v30  ;;  %vm11042_vm9 = vmmov %vm11041_vm0  ;;  %v8338_v26 = vld [vmem:[#allocation2 + $0x20] sm:$0xff] }
 0x321   : > { %v882_v15 = vsel %vm867_vm10, %v878_v5, 0.0  ;;  %v883_v18 = vsel %vm868_vm7, %v879_v34, 0.0  ;;  %vm11044_vm10 = vmmov %vm11043_vm6  ;;  %vm11045_vm7 = vcmask 769024   ;;  %v1129_v48 = vld [vmem:[%s10963_s5] ss:$2 sm:$0x3] }
 0x322   : > { %884 = vst [vmem:[#allocation2 + $0x100] sm:$0xf] %v882_v15  ;;  %885 = vst [vmem:[#allocation2 + $0x108] sm:$0xf] %v883_v18  ;;  %v908_v40 = vpop.permute.xlu1 %907  ;;  %vm1130_vm8 = vcmp.gt.f32.partialorder %v1129_v48, 0.5 }
 0x323   : > { %v910_v20 = vpop.permute.xlu0 %909  ;;  %6748 = vmatpush1.bf16.msra.mxu1 %v6747_v35  ;;  %v1001_v22 = vld [vmem:[#allocation2 + $0xd8] sm:$0xff]  ;;  %v1000_v14 = vld [vmem:[#allocation2 + $0xd0] sm:$0xff]  ;;  %vm11046_vm15 = vmmov %vm11045_vm7 }
 0x324   : > { %v912_v17 = vsel %vm11041_vm0, %v908_v40, %v910_v20  ;;  %v6749_v16 = vpack.c.bf16 %v1001_v22, %v8053_v29  ;;  %v6751_v21 = vpack.c.bf16 %v1000_v14, %v8050_v28  ;;  %vm11049_vm0 = vcmask 134144   ;;  %v1215_v48 = vld [vmem:[%s10963_s5] ss:$2 sm:$0x3] }
 0x325   : > { %v916_v38 = vsel %vm901_vm1, %v912_v17, 0.0  ;;  %vm11048_vm1 = vcmask 138240  }
 0x326   : > { %918 = vst [vmem:[#allocation2 + $0x138] sm:$0xf] %v916_v38  ;;  %v906_v41 = vpop.permute.xlu1 %905  ;;  %6750 = vmatprep.subr.bf16.mxu1 %v6749_v16 }
 0x327   : > { %v911_v42 = vsel %vm11042_vm9, %v906_v41, %v908_v40  ;;  %v926_v39 = vpop.permute.xlu0 %925  ;;  %6752 = vmatpush1.bf16.msra.mxu1 %v6751_v21  ;;  %vm11050_vm9 = vcmask 719872  }
 0x328   : > { %v915_v44 = vsel %vm900_vm13, %v911_v42, 0.0  ;;  %7547 = vmatprep.subr.msk.bf16.mxu1 %vm8085_vm11, %v8090_v49  ;;  %vm952_vm11 = vcmp.eq.s32.totalorder %v950_v23, 1 }
 0x329   : > { %917 = vst [vmem:[#allocation2 + $0x130] sm:$0xf] %v915_v44  ;;  %v1007_v29 = vld [vmem:[#allocation2 + $0x108] sm:$0xff]  ;;  %v1006_v50 = vld [vmem:[#allocation2 + $0x100] sm:$0xff] }
 0x32a   : > { %v930_v28 = vpop.permute.xlu1 %929  ;;  %v6757_v46 = vpack.c.bf16 %v7715_v0, %v1007_v29  ;;  %v6759_v47 = vpack.c.bf16 %v7715_v0, %v1006_v50  ;;  %v1415_v29 = vld [vmem:[#allocation2 + $0x8] sm:$0xff] }
 0x32b   : > { %v928_v53 = vpop.permute.xlu0 %927  ;;  %7550 = vmatpush1.bf16.msk.msra.mxu1 %vm8101_vm14, %v8106_v52  ;;  %vm951_vm14 = vcmp.eq.s32.totalorder %v946_v60, 1 }
 0x32c   : > { %v931_v57 = vsel %vm11043_vm6, %v926_v39, %v928_v53  ;;  %v932_v59 = vsel %vm11044_vm10, %v928_v53, %v930_v28  ;;  %6758 = vmatprep.subr.bf16.mxu1 %v6757_v46  ;;  %v8362_v53 = vld [vmem:[#allocation2 + $0x38] sm:$0xff]  ;;  %vm1216_vm10 = vcmp.gt.f32.partialorder %v1215_v48, 0.5 }
 0x32d   : > { %935 = vst [vmem:[#allocation2 + $0x160] sm:$0xf] %v931_v57  ;;  %936 = vst [vmem:[#allocation2 + $0x168] sm:$0xf] %v932_v59  ;;  %v1013_v49 = vld [vmem:[#allocation2 + $0x138] sm:$0xff]  ;;  %v6781_v60 = vpack.c.bf16 %v8362_v53, %v8338_v26 }
 0x32e   : > { %v959_v62 = vpop.permute.xlu1 %958  ;;  %v7552_v51 = vpack.c.bf16 %v1013_v49, %v8079_v45 }
 0x32f   : > { %v961_v63 = vpop.permute.xlu0 %960  ;;  %6760 = vmatpush1.bf16.msra.mxu1 %v6759_v47  ;;  %v1414_v47 = vld [vmem:[#allocation2] sm:$0xff] }
 0x330   : > { %v963_v3 = vsel %vm11045_vm7, %v959_v62, %v961_v63  ;;  %7553 = vmatprep.subr.msk.bf16.mxu1 %vm8128_vm4, %v7552_v51  ;;  %v1012_v52 = vld [vmem:[#allocation2 + $0x130] sm:$0xff] }
 0x331   : > { %v967_v6 = vsel %vm952_vm11, %v963_v3, 0.0  ;;  %v7555_v12 = vpack.c.bf16 %v1012_v52, %v8118_v58  ;;  %v8372_v63 = vld [vmem:[#allocation2 + $0x30] sm:$0xff]  ;;  %vm11051_vm11 = vcmask 1039360  }
 0x332   : > { %969 = vst [vmem:[#allocation2 + $0x198] sm:$0xf] %v967_v6  ;;  %v957_v10 = vpop.permute.xlu1 %956  ;;  %v6783_v6 = vpack.c.bf16 %v8372_v63, %v8338_v26  ;;  %vm11052_vm7 = vmmov %vm11051_vm11 }
 0x333   : > { %v962_v11 = vsel %vm11046_vm15, %v957_v10, %v959_v62  ;;  %7556 = vmatpush1.bf16.msk.msra.mxu1 %vm8140_vm2, %v7555_v12  ;;  %vm11047_vm2 = vnez %v11028_v33 }
 0x334   : > { %v966_v13 = vsel %vm951_vm14, %v962_v11, 0.0  ;;  %6766 = vmatprep.subr.bf16.mxu1 %v8149_v8  ;;  %v1019_v25 = vld [vmem:[#allocation2 + $0x168] sm:$0xff]  ;;  %v1018_v61 = vld [vmem:[#allocation2 + $0x160] sm:$0xff] }
 0x335   : > { %968 = vst [vmem:[#allocation2 + $0x190] sm:$0xf] %v966_v13  ;;  %v6769_v45 = vpack.c.bf16 %v7715_v0, %v1019_v25  ;;  %v6771_v56 = vpack.c.bf16 %v7715_v0, %v1018_v61 }
 0x337   : > { %6768 = vmatpush1.bf16.msra.mxu1 %v8158_v19 }
 0x338   : > { %6770 = vmatprep.subr.bf16.mxu1 %v6769_v45 }
 0x339   : > { %v1025_v2 = vld [vmem:[#allocation2 + $0x198] sm:$0xff] }
 0x33a   : > { %v7558_v58 = vpack.c.bf16 %v1025_v2, %v8161_v24 }
 0x33b   : > { %6772 = vmatpush1.bf16.msra.mxu1 %v6771_v56 }
 0x33c   : > { %7559 = vmatprep.subr.msk.bf16.mxu1 %vm8176_vm5, %v7558_v58  ;;  %v1024_v4 = vld [vmem:[#allocation2 + $0x190] sm:$0xff] }
 0x33d   : > { %v7561_v8 = vpack.c.bf16 %v1024_v4, %v8169_v27 }
 0x33f   : > { %7562 = vmatpush1.bf16.msk.msra.mxu1 %vm11047_vm2, %v7561_v8  ;;  %vm11053_vm2 = vcmask 1031168  }
 0x340   : > { %1089 = vmatprep.subr.mxu1 %v8338_v26  ;;  %v1031_v0 = vpop.permute.xlu0 %1030 }
 0x343   : > { %1090 = vmatpush1.msra.mxu1 %v8338_v26 }
 0x344   : > { %1102 = vmatmul.mubr.f32.vlgmr.msra.gmra.mrb[0].mxu1 %v8245_v54  ;;  %v1131_v54 = vsel %vm1130_vm8, 1, %v7716_v1  ;;  %vm11055_vm8 = vcmask 916480  }
 0x345   : > { %v1135_v18 = vrot.slane %v1131_v54, %v7842_v9  ;;  %v1139_v35 = vrot.slane %v1131_v54, %v7839_v7 }
 0x347   : > { %vm1140_vm12 = vcmp.eq.s32.totalorder %v1135_v18, 1  ;;  %vm1141_vm13 = vcmp.eq.s32.totalorder %v1139_v35, 1 }
 0x417   : > { %v1103_v19 = vpop.f32.mrb[0].mxu1 }
 0x418   : > { %v1104_v24 = vadd.f32 %v1103_v19, %v1031_v0  ;;  %v1105_v30 = vpop.f32.mrb[1].mxu1 }
 0x419   : > { %v1106_v31 = vadd.f32 %v1105_v30, %v1031_v0 }
 0x41a   : > { %v1110_v32 = vmul.f32 0.2, %v1104_v24  ;;  %vm1108_vm5 = vcmp.ge.f32.partialorder %v1104_v24, 0.0 }
 0x41b   : > { %v1111_v55 = vmul.f32 0.2, %v1106_v31  ;;  %vm1109_vm4 = vcmp.ge.f32.partialorder %v1106_v31, 0.0 }
 0x41c   : > { %v1112_v27 = vsel %vm1108_vm5, %v1104_v24, %v1110_v32  ;;  %v8397_v32 = vld [vmem:[%s10959_s1 + $0x10] sm:$0xff]  ;;  %vm11054_vm5 = vmmov %vm11053_vm2 }
 0x41d   : > { %1116 = vrot.lane.b32.xlu1 %v1112_v27, %s7717_s28  ;;  %v1113_v33 = vsel %vm1109_vm4, %v1106_v31, %v1111_v55  ;;  %v1474_v55 = vcombine.high %v8397_v32, %v8397_v32  ;;  %v6595_v27 = vld [vmem:[%s10960_s2 + $0x8] sm:$0xf] }
 0x41e   : > { %1118 = vrot.lane.b32.xlu0 %v1113_v33, %s7717_s28  ;;  %v6591_v33 = vld [vmem:[%s10963_s5 + $0x1] ss:$2 sm:$0x3] }
 0x41f   : > { %6596 = vmatprep.mubr.msk.f32.mxu0 %vm11050_vm9, %v1474_v55  ;;  %vm1177_vm6 = vcmp.gt.f32.partialorder %v6591_v33, 0.5 }
 0x48f   : > { %v1117_v5 = vpop.permute.xlu1 %1116 }
 0x490   : > { %1124 = vst.msk [vmem:[#allocation3] sm:$0xf] %vm10980_vm3, %v1117_v5  ;;  %v1119_v34 = vpop.permute.xlu0 %1118 }
 0x491   : > { %v1120_v15 = vsel %vm11048_vm1, %v1117_v5, %v1119_v34  ;;  %1126 = vst.msk [vmem:[#allocation3 + $0x10] sm:$0xf] %vm11049_vm0, %v1119_v34  ;;  %v1178_v34 = vsel %vm1177_vm6, 1, %v7716_v1 }
 0x492   : > { %1125 = vst [vmem:[#allocation3 + $0x8] sm:$0xf] %v1120_v15  ;;  %v1182_v15 = vrot.slane %v1178_v34, %v7842_v9  ;;  %v1186_v18 = vrot.slane %v1178_v34, %v7839_v7 }
 0x494   : > { %vm1187_vm14 = vcmp.eq.s32.totalorder %v1182_v15, 1  ;;  %vm1188_vm15 = vcmp.eq.s32.totalorder %v1186_v18, 1 }
 0x497   : > { %v1152_v36 = vld [vmem:[#allocation3] sm:$0xf] }
 0x498   : > { %v1127_v37 = vld [vmem:[#allocation3] sm:$0xf]  ;;  %v1158_v40 = vrot.slane %v1152_v36, 4  ;;  %v1154_v20 = vld [vmem:[#allocation3 + $0x10] sm:$0xf] }
 0x499   : > { %v1142_v22 = vsel %vm1140_vm12, %v1127_v37, 0.0  ;;  %v1174_v14 = vld [vmem:[#allocation3 + $0x8] sm:$0xf]  ;;  %v1160_v38 = vrot.slane %v1154_v20, 4  ;;  %v1173_v43 = vld [vmem:[#allocation3] sm:$0xf]  ;;  %vm11056_vm12 = vmmov %vm11055_vm8 }
 0x49a   : > { %v1153_v17 = vld [vmem:[#allocation3 + $0x8] sm:$0xf]  ;;  %v1146_v16 = vrot.slane %v1142_v22, 4  ;;  %1161 = vrot.lane.b32.xlu1 %v1158_v40, %s7718_s7  ;;  %1194 = vrot.lane.b32.xlu0 %v1174_v14, %s7720_s8  ;;  %v1175_v44 = vld [vmem:[#allocation3 + $0x10] sm:$0xf]  ;;  %v1217_v37 = vsel %vm1216_vm10, 1, %v7716_v1 }
 0x49b   : > { %v1128_v21 = vld [vmem:[#allocation3 + $0x8] sm:$0xf]  ;;  %v1159_v41 = vrot.slane %v1153_v17, 4  ;;  %v1214_v28 = vld [vmem:[#allocation3 + $0x10] sm:$0xf]  ;;  %v1225_v22 = vrot.slane %v1217_v37, %v7839_v7 }
 0x49c   : > { %1150 = vst [vmem:[#allocation2 + $0x10] sm:$0xf0] %v1146_v16  ;;  %v1143_v42 = vsel %vm1141_vm13, %v1128_v21, 0.0  ;;  %v1213_v46 = vld [vmem:[#allocation3 + $0x8] sm:$0xf]  ;;  %vm11057_vm13 = vcmask 908288  }
 0x49d   : > { %v1147_v39 = vrot.slane %v1143_v42, 4  ;;  %v1251_v57 = vld [vmem:[#allocation3] sm:$0xf]  ;;  %v1252_v3 = vld [vmem:[#allocation3 + $0x8] sm:$0xf]  ;;  %vm1227_vm4 = vcmp.eq.s32.totalorder %v1225_v22, 1  ;;  %vm11058_vm6 = vmmov %vm11057_vm13 }
 0x49e   : > { %1165 = vrot.lane.b32.xlu0 %v1160_v38, %s7718_s7  ;;  %1163 = vrot.lane.b32.xlu1 %v1159_v41, %s7718_s7  ;;  %v1257_v62 = vrot.slane %v1251_v57, 4  ;;  %v1212_v51 = vld [vmem:[#allocation3] sm:$0xf]  ;;  %v1253_v52 = vld [vmem:[#allocation3 + $0x10] sm:$0xf]  ;;  %v1258_v10 = vrot.slane %v1252_v3, 4 }
 0x49f   : > { %1151 = vst [vmem:[#allocation2 + $0x18] sm:$0xf0] %v1147_v39  ;;  %v1259_v11 = vrot.slane %v1253_v52, 4  ;;  %v1274_v12 = vld [vmem:[#allocation3 + $0x10] sm:$0xf] }
 0x4a0   : > { %v1273_v13 = vld [vmem:[#allocation3 + $0x8] sm:$0xf]  ;;  %v1272_v45 = vld [vmem:[#allocation3] sm:$0xf]  ;;  %v1352_v56 = vld [vmem:[#allocation3 + $0x10] sm:$0xf] }
 0x4a1   : > { %v1312_v25 = vld [vmem:[#allocation3 + $0x8] sm:$0xf]  ;;  %v1311_v61 = vld [vmem:[#allocation3] sm:$0xf]  ;;  %v1313_v2 = vld [vmem:[#allocation3 + $0x10] sm:$0xf] }
 0x4a2   : > { %1192 = vrot.lane.b32.xlu0 %v1173_v43, %s7720_s8  ;;  %1196 = vrot.lane.b32.xlu1 %v1175_v44, %s7720_s8  ;;  %v1350_v58 = vld [vmem:[#allocation3] sm:$0xf]  ;;  %v1358_v4 = vrot.slane %v1352_v56, 4  ;;  %v1351_v0 = vld [vmem:[#allocation3 + $0x8] sm:$0xf] }
 0x4a3   : > { %v1416_v23 = vld [vmem:[#allocation2 + $0x10] sm:$0xff]  ;;  %v1356_v8 = vrot.slane %v1350_v58, 4  ;;  %v1372_v19 = vld [vmem:[#allocation3 + $0x8] sm:$0xf]  ;;  %v1357_v24 = vrot.slane %v1351_v0, 4 }
 0x4a4   : > { %v8366_v49 = vpack.c.bf16 %v1416_v23, %v1414_v47  ;;  %v1371_v30 = vld [vmem:[#allocation3] sm:$0xf]  ;;  %v1373_v31 = vld [vmem:[#allocation3 + $0x10] sm:$0xf] }
 0x4a6   : > { %1235 = vrot.lane.b32.xlu0 %v1214_v28, %s7721_s9  ;;  %1233 = vrot.lane.b32.xlu1 %v1213_v46, %s7721_s9  ;;  %v1417_v50 = vld [vmem:[#allocation2 + $0x18] sm:$0xff]  ;;  %v1221_v46 = vrot.slane %v1217_v37, %v7842_v9 }
 0x4a7   : > { %v8364_v59 = vpack.c.bf16 %v1417_v50, %v1415_v29  ;;  %v6592_v29 = vld [vmem:[%s10963_s5 + $0x1] ss:$2 sm:$0x3] }
 0x4a8   : > { %vm1276_vm1 = vcmp.gt.f32.partialorder %v6592_v29, 0.5  ;;  %vm1226_vm0 = vcmp.eq.s32.totalorder %v1221_v46, 1  ;;  %v8482_v46 = vld [vmem:[#allocation2 + $0xf8] sm:$0xff] }
 0x4a9   : > { %6778 = vmatprep.subr.bf16.mxu0 %v8364_v59  ;;  %6830 = vmatprep.subr.bf16.mxu1 %v8364_v59  ;;  %v1277_v52 = vsel %vm1276_vm1, 1, %v7716_v1  ;;  %vm11067_vm1 = vcmask 777216  }
 0x4aa   : > { %6780 = vmatpush1.bf16.msra.mxu0 %v8366_v49  ;;  %6832 = vmatpush1.bf16.msra.mxu1 %v8366_v49  ;;  %v1281_v33 = vrot.slane %v1277_v52, %v7842_v9 }
 0x4ab   : > { %6782 = vmatprep.subr.bf16.mxu0 %v6781_v60  ;;  %1260 = vrot.lane.b32.xlu0 %v1257_v62, %s7722_s10 }
 0x4ac   : > { %1231 = vrot.lane.b32.xlu1 %v1212_v51, %s7721_s9 }
 0x4ae   : > { %6784 = vmatpush1.bf16.msra.mxu0 %v6783_v6 }
 0x4af   : > { %1262 = vrot.lane.b32.xlu0 %v1258_v10, %s7722_s10  ;;  %v1427_v10 = vld [vmem:[#allocation2 + $0x68] sm:$0xff] }
 0x4b0   : > { %1264 = vrot.lane.b32.xlu1 %v1259_v11, %s7722_s10  ;;  %v1426_v11 = vld [vmem:[#allocation2 + $0x60] sm:$0xff] }
 0x4b3   : > { %1295 = vrot.lane.b32.xlu0 %v1274_v12, %s7723_s11  ;;  %v1314_v12 = vld [vmem:[%s10963_s5] ss:$2 sm:$0x3] }
 0x4b4   : > { %1293 = vrot.lane.b32.xlu1 %v1273_v13, %s7723_s11  ;;  %vm1315_vm9 = vcmp.gt.f32.partialorder %v1314_v12, 0.5 }
 0x4b5   : > { %v1316_v48 = vsel %vm1315_vm9, 1, %v7716_v1  ;;  %vm11069_vm9 = vcmask 769024  }
 0x4b7   : > { %1332 = vrot.lane.b32.xlu0 %v1312_v25, %s7724_s12 }
 0x4b8   : > { %1291 = vrot.lane.b32.xlu1 %v1272_v45, %s7723_s11 }
 0x4bb   : > { %1330 = vrot.lane.b32.xlu0 %v1311_v61, %s7724_s12  ;;  %v8438_v61 = vld [vmem:[#allocation2 + $0x98] sm:$0xff] }
 0x4bc   : > { %1334 = vrot.lane.b32.xlu1 %v1313_v2, %s7724_s12 }
 0x4bf   : > { %1363 = vrot.lane.b32.xlu0 %v1358_v4, %s7725_s13  ;;  %v1285_v4 = vrot.slane %v1277_v52, %v7839_v7 }
 0x4c0   : > { %1359 = vrot.lane.b32.xlu1 %v1356_v8, %s7725_s13 }
 0x4c1   : > { %vm1287_vm10 = vcmp.eq.s32.totalorder %v1285_v4, 1 }
 0x4c3   : > { %1392 = vrot.lane.b32.xlu0 %v1372_v19, %s7726_s14 }
 0x4c4   : > { %1361 = vrot.lane.b32.xlu1 %v1357_v24, %s7725_s13 }
 0x4c7   : > { %1390 = vrot.lane.b32.xlu0 %v1371_v30, %s7726_s14  ;;  %v6793_v30 = vpack.c.bf16 %v8438_v61, %v8338_v26 }
 0x4c8   : > { %1394 = vrot.lane.b32.xlu1 %v1373_v31, %s7726_s14  ;;  %v8450_v31 = vld [vmem:[#allocation2 + $0x90] sm:$0xff] }
 0x4cc   : > { %1470 = vperm.xlu1 %7473, %v6595_v27  }
 0x50c   : > { %v1162_v54 = vpop.permute.xlu1 %1161  ;;  %v1195_v5 = vpop.permute.xlu0 %1194 }
 0x510   : > { %v1166_v35 = vpop.permute.xlu0 %1165  ;;  %v1164_v36 = vpop.permute.xlu1 %1163 }
 0x511   : > { %v1167_v40 = vsel %vm11051_vm11, %v1162_v54, %v1164_v36  ;;  %v1168_v20 = vsel %vm11052_vm7, %v1164_v36, %v1166_v35  ;;  %vm11059_vm11 = vcmask 900096   ;;  %v1320_v35 = vrot.slane %v1316_v48, %v7842_v9 }
 0x512   : > { %1171 = vst [vmem:[#allocation2 + $0x40] sm:$0xf0] %v1167_v40  ;;  %1172 = vst [vmem:[#allocation2 + $0x48] sm:$0xf0] %v1168_v20  ;;  %vm1286_vm7 = vcmp.eq.s32.totalorder %v1281_v33, 1  ;;  %v1324_v40 = vrot.slane %v1316_v48, %v7839_v7 }
 0x514   : > { %v1193_v14 = vpop.permute.xlu0 %1192  ;;  %v1197_v17 = vpop.permute.xlu1 %1196 }
 0x515   : > { %v1198_v16 = vsel %vm11053_vm2, %v1193_v14, %v1195_v5  ;;  %v1199_v21 = vsel %vm11054_vm5, %v1195_v5, %v1197_v17  ;;  %v6795_v5 = vpack.c.bf16 %v8450_v31, %v8338_v26  ;;  %vm8478_vm2 = vcmp.eq.s32.totalorder %v1324_v40, 1 }
 0x516   : > { %v1202_v38 = vsel %vm1187_vm14, %v1198_v16, 0.0  ;;  %v1203_v41 = vsel %vm1188_vm15, %v1199_v21, 0.0  ;;  %vm11060_vm14 = vmmov %vm11059_vm11  ;;  %v1439_v16 = vld [vmem:[#allocation2 + $0xc8] sm:$0xff]  ;;  %vm8472_vm15 = vcmp.eq.s32.totalorder %v1320_v35, 1  ;;  %vm11065_vm5 = vcmask 785408  }
 0x517   : > { %v1206_v42 = vrot.slane %v1202_v38, 4  ;;  %v1207_v39 = vrot.slane %v1203_v41, 4  ;;  %v6593_v38 = vld [vmem:[%s10963_s5 + $0x1] ss:$2 sm:$0x3] }
 0x518   : > { %v1236_v43 = vpop.permute.xlu0 %1235  ;;  %v1234_v44 = vpop.permute.xlu1 %1233 }
 0x519   : > { %1210 = vst [vmem:[#allocation2 + $0x70] sm:$0xf0] %v1206_v42  ;;  %1211 = vst [vmem:[#allocation2 + $0x78] sm:$0xf0] %v1207_v39  ;;  %v1238_v28 = vsel %vm11055_vm8, %v1234_v44, %v1236_v43  ;;  %v8425_v23 = vld [vmem:[#allocation2 + $0x48] sm:$0xff]  ;;  %v8427_v50 = vld [vmem:[#allocation2 + $0x40] sm:$0xff] }
 0x51a   : > { %v1242_v57 = vsel %vm1227_vm4, %v1238_v28, 0.0  ;;  %v6785_v47 = vpack.c.bf16 %v8338_v26, %v8425_v23  ;;  %v6787_v60 = vpack.c.bf16 %v8338_v26, %v8427_v50  ;;  %vm1375_vm4 = vcmp.gt.f32.partialorder %v6593_v38, 0.5  ;;  %vm11066_vm8 = vmmov %vm11065_vm5 }
 0x51b   : > { %v1246_v62 = vrot.slane %v1242_v57, 4 }
 0x51c   : > { %6786 = vmatprep.subr.bf16.mxu0 %v6785_v47 }
 0x51d   : > { %1250 = vst [vmem:[#allocation2 + $0xa8] sm:$0xf0] %v1246_v62  ;;  %v1261_v3 = vpop.permute.xlu0 %1260  ;;  %6788 = vmatpush1.bf16.msra.mxu0 %v6787_v60  ;;  %v1438_v60 = vld [vmem:[#allocation2 + $0xc0] sm:$0xff] }
 0x51e   : > { %v1232_v51 = vpop.permute.xlu1 %1231 }
 0x51f   : > { %v1237_v6 = vsel %vm11056_vm12, %v1232_v51, %v1234_v44 }
 0x520   : > { %v1241_v13 = vsel %vm1226_vm0, %v1237_v6, 0.0  ;;  %v1429_v25 = vld [vmem:[#allocation2 + $0x78] sm:$0xff]  ;;  %v1428_v45 = vld [vmem:[#allocation2 + $0x70] sm:$0xff]  ;;  %vm11068_vm0 = vmmov %vm11067_vm1 }
 0x521   : > { %v1245_v56 = vrot.slane %v1241_v13, 4  ;;  %v1263_v2 = vpop.permute.xlu0 %1262  ;;  %v8440_v58 = vpack.c.bf16 %v1429_v25, %v1427_v10  ;;  %v8443_v8 = vpack.c.bf16 %v1428_v45, %v1426_v11  ;;  %v6805_v10 = vpack.c.bf16 %v8482_v46, %v8338_v26  ;;  %v8495_v11 = vld [vmem:[#allocation2 + $0xf0] sm:$0xff] }
 0x522   : > { %v1266_v0 = vsel %vm11057_vm13, %v1261_v3, %v1263_v2  ;;  %v1265_v19 = vpop.permute.xlu1 %1264  ;;  %v1376_v25 = vsel %vm1375_vm4, 1, %v7716_v1  ;;  %vm11073_vm4 = vcmask 719872  }
 0x523   : > { %1249 = vst [vmem:[#allocation2 + $0xa0] sm:$0xf0] %v1245_v56  ;;  %1270 = vst [vmem:[#allocation2 + $0xd0] sm:$0xf0] %v1266_v0  ;;  %v1267_v24 = vsel %vm11058_vm6, %v1263_v2, %v1265_v19  ;;  %6790 = vmatprep.subr.bf16.mxu0 %v8440_v58  ;;  %v6807_v2 = vpack.c.bf16 %v8495_v11, %v8338_v26  ;;  %v1380_v0 = vrot.slane %v1376_v25, %v7842_v9 }
 0x524   : > { %1271 = vst [vmem:[#allocation2 + $0xd8] sm:$0xf0] %v1267_v24  ;;  %6792 = vmatpush1.bf16.msra.mxu0 %v8443_v8  ;;  %v8453_v55 = vld [vmem:[#allocation2 + $0xa8] sm:$0xff]  ;;  %v1384_v24 = vrot.slane %v1376_v25, %v7839_v7  ;;  %vm11070_vm6 = vmmov %vm11069_vm9 }
 0x525   : > { %v1296_v27 = vpop.permute.xlu0 %1295  ;;  %6794 = vmatprep.subr.bf16.mxu0 %v6793_v30  ;;  %v6797_v15 = vpack.c.bf16 %v8338_v26, %v8453_v55  ;;  %vm1385_vm12 = vcmp.eq.s32.totalorder %v1380_v0, 1 }
 0x526   : > { %v1294_v54 = vpop.permute.xlu1 %1293  ;;  %vm1386_vm13 = vcmp.eq.s32.totalorder %v1384_v24, 1 }
 0x527   : > { %v1298_v34 = vsel %vm11059_vm11, %v1294_v54, %v1296_v27 }
 0x528   : > { %v1302_v18 = vsel %vm1287_vm10, %v1298_v34, 0.0  ;;  %6796 = vmatpush1.bf16.msra.mxu0 %v6795_v5  ;;  %v1450_v34 = vld [vmem:[#allocation2 + $0x120] sm:$0xff] }
 0x529   : > { %v1306_v36 = vrot.slane %v1302_v18, 4  ;;  %v1333_v37 = vpop.permute.xlu0 %1332  ;;  %6798 = vmatprep.subr.bf16.mxu0 %v6797_v15 }
 0x52a   : > { %v1292_v20 = vpop.permute.xlu1 %1291  ;;  %v8464_v22 = vld [vmem:[#allocation2 + $0xa0] sm:$0xff]  ;;  %v1440_v43 = vld [vmem:[#allocation2 + $0xd0] sm:$0xff] }
 0x52b   : > { %1310 = vst [vmem:[#allocation2 + $0x108] sm:$0xf0] %v1306_v36  ;;  %v1297_v14 = vsel %vm11060_vm14, %v1292_v20, %v1294_v54  ;;  %v6799_v17 = vpack.c.bf16 %v8338_v26, %v8464_v22  ;;  %v1441_v21 = vld [vmem:[#allocation2 + $0xd8] sm:$0xff]  ;;  %v8489_v51 = vpack.c.bf16 %v1440_v43, %v1438_v60  ;;  %v1451_v36 = vld [vmem:[#allocation2 + $0x128] sm:$0xff]  ;;  %v8524_v43 = vld [vmem:[#allocation2 + $0x150] sm:$0xff]  ;;  %vm11071_vm14 = vcmask 138240  }
 0x52c   : > { %v1301_v41 = vsel %vm1286_vm7, %v1297_v14, 0.0  ;;  %v8476_v39 = vpack.c.bf16 %v1441_v21, %v1439_v16  ;;  %v8516_v20 = vld [vmem:[#allocation2 + $0x158] sm:$0xff]  ;;  %v1462_v60 = vld [vmem:[#allocation2 + $0x180] sm:$0xff] }
 0x52d   : > { %v1305_v44 = vrot.slane %v1301_v41, 4  ;;  %v1331_v29 = vpop.permute.xlu0 %1330  ;;  %6800 = vmatpush1.bf16.msra.mxu0 %v6799_v17  ;;  %v6817_v42 = vpack.c.bf16 %v8516_v20, %v8338_v26 }
 0x52e   : > { %v1336_v57 = vsel %vm11065_vm5, %v1331_v29, %v1333_v37  ;;  %v1335_v47 = vpop.permute.xlu1 %1334  ;;  %6802 = vmatprep.subr.bf16.mxu0 %v8476_v39  ;;  %v6819_v29 = vpack.c.bf16 %v8524_v43, %v8338_v26 }
 0x52f   : > { %1309 = vst [vmem:[#allocation2 + $0x100] sm:$0xf0] %v1305_v44  ;;  %v1340_v62 = vsel %vm8472_vm15, %v1336_v57, 0.0  ;;  %v1337_v3 = vsel %vm11066_vm8, %v1333_v37, %v1335_v47  ;;  %vm11072_vm15 = vcmask 134144  }
 0x530   : > { %v1344_v52 = vrot.slane %v1340_v62, 4  ;;  %v1341_v6 = vsel %vm8478_vm2, %v1337_v3, 0.0  ;;  %v1463_v3 = vld [vmem:[#allocation2 + $0x188] sm:$0xff] }
 0x531   : > { %v1345_v12 = vrot.slane %v1341_v6, 4  ;;  %v1364_v13 = vpop.permute.xlu0 %1363  ;;  %6804 = vmatpush1.bf16.msra.mxu0 %v8489_v51 }
 0x532   : > { %1348 = vst [vmem:[#allocation2 + $0x130] sm:$0xf0] %v1344_v52  ;;  %v1360_v45 = vpop.permute.xlu1 %1359  ;;  %6806 = vmatprep.subr.bf16.mxu0 %v6805_v10  ;;  %v8499_v56 = vld [vmem:[#allocation2 + $0x108] sm:$0xff] }
 0x533   : > { %1349 = vst [vmem:[#allocation2 + $0x138] sm:$0xf0] %v1345_v12  ;;  %v6809_v4 = vpack.c.bf16 %v8338_v26, %v8499_v56 }
 0x535   : > { %v1393_v19 = vpop.permute.xlu0 %1392  ;;  %6808 = vmatpush1.bf16.msra.mxu0 %v6807_v2 }
 0x536   : > { %v1362_v30 = vpop.permute.xlu1 %1361  ;;  %6810 = vmatprep.subr.bf16.mxu0 %v6809_v4  ;;  %v8507_v27 = vld [vmem:[#allocation2 + $0x100] sm:$0xff] }
 0x537   : > { %v1365_v33 = vsel %vm11067_vm1, %v1360_v45, %v1362_v30  ;;  %v1366_v48 = vsel %vm11068_vm0, %v1362_v30, %v1364_v13  ;;  %v6811_v54 = vpack.c.bf16 %v8338_v26, %v8507_v27  ;;  %vm11074_vm0 = vcmask 1039360  }
 0x538   : > { %1369 = vst [vmem:[#allocation2 + $0x160] sm:$0xf0] %v1365_v33  ;;  %1370 = vst [vmem:[#allocation2 + $0x168] sm:$0xf0] %v1366_v48 }
 0x539   : > { %v1391_v5 = vpop.permute.xlu0 %1390  ;;  %6812 = vmatpush1.bf16.msra.mxu0 %v6811_v54  ;;  %v1452_v15 = vld [vmem:[#allocation2 + $0x130] sm:$0xff] }
 0x53a   : > { %v1396_v18 = vsel %vm11069_vm9, %v1391_v5, %v1393_v19  ;;  %v1395_v35 = vpop.permute.xlu1 %1394  ;;  %v1453_v37 = vld [vmem:[#allocation2 + $0x138] sm:$0xff]  ;;  %v8514_v40 = vpack.c.bf16 %v1452_v15, %v1450_v34 }
 0x53b   : > { %v1400_v14 = vsel %vm1385_vm12, %v1396_v18, 0.0  ;;  %v1397_v17 = vsel %vm11070_vm6, %v1393_v19, %v1395_v35  ;;  %v8519_v16 = vpack.c.bf16 %v1453_v37, %v1451_v36  ;;  %vm11075_vm12 = vmmov %vm11074_vm0  ;;  %vm11076_vm6 = vcmask 1031168  }
 0x53c   : > { %v1404_v21 = vrot.slane %v1400_v14, 4  ;;  %v1401_v38 = vsel %vm1386_vm13, %v1397_v17, 0.0 }
 0x53d   : > { %v1405_v41 = vrot.slane %v1401_v38, 4  ;;  %6814 = vmatprep.subr.bf16.mxu0 %v8519_v16 }
 0x53e   : > { %1408 = vst [vmem:[#allocation2 + $0x190] sm:$0xf0] %v1404_v21  ;;  %6816 = vmatpush1.bf16.msra.mxu0 %v8514_v40 }
 0x53f   : > { %1409 = vst [vmem:[#allocation2 + $0x198] sm:$0xf0] %v1405_v41  ;;  %6818 = vmatprep.subr.bf16.mxu0 %v6817_v42  ;;  %v8527_v44 = vld [vmem:[#allocation2 + $0x168] sm:$0xff]  ;;  %v8533_v57 = vld [vmem:[#allocation2 + $0x160] sm:$0xff] }
 0x540   : > { %v6821_v28 = vpack.c.bf16 %v8338_v26, %v8527_v44  ;;  %v6823_v47 = vpack.c.bf16 %v8338_v26, %v8533_v57 }
 0x542   : > { %6820 = vmatpush1.bf16.msra.mxu0 %v6819_v29 }
 0x543   : > { %6822 = vmatprep.subr.bf16.mxu0 %v6821_v28 }
 0x545   : > { %v1464_v62 = vld [vmem:[#allocation2 + $0x190] sm:$0xff] }
 0x546   : > { %6824 = vmatpush1.bf16.msra.mxu0 %v6823_v47  ;;  %v1465_v52 = vld [vmem:[#allocation2 + $0x198] sm:$0xff]  ;;  %v8537_v6 = vpack.c.bf16 %v1464_v62, %v1462_v60 }
 0x547   : > { %v8539_v10 = vpack.c.bf16 %v1465_v52, %v1463_v3 }
 0x549   : > { %6826 = vmatprep.subr.bf16.mxu0 %v8539_v10 }
 0x54a   : > { %6828 = vmatpush1.bf16.msra.mxu0 %v8537_v6 }
 0x54b   : > { %1529 = vmatprep.subr.mxu0 %v8338_v26  ;;  %v1471_v12 = vpop.permute.xlu1 %1470 }
 0x54e   : > { %1530 = vmatpush1.msra.mxu0 %v8338_v26  ;;  %v1569_v26 = vld [vmem:[%s10963_s5] ss:$2 sm:$0x3] }
 0x54f   : > { %1542 = vmatmul.mubr.f32.vlgmr.msra.gmra.mrb[2].mxu0 %v8397_v32  ;;  %6882 = vmatprep.subr.bf16.mxu0 %v8364_v59  ;;  %vm1570_vm7 = vcmp.gt.f32.partialorder %v1569_v26, 0.5  ;;  %v8587_v26 = vld [vmem:[%s10959_s1 + $0x18] sm:$0xff] }
 0x550   : > { %6884 = vmatpush1.bf16.msra.mxu0 %v8366_v49  ;;  %v1571_v32 = vsel %vm1570_vm7, 1, %v7716_v1  ;;  %vm11078_vm7 = vcmask 916480  }
 0x551   : > { %v1575_v33 = vrot.slane %v1571_v32, %v7842_v9  ;;  %v1579_v48 = vrot.slane %v1571_v32, %v7839_v7  ;;  %v6597_v32 = vld [vmem:[%s10963_s5 + $0x1] ss:$2 sm:$0x3] }
 0x552   : > { %vm1608_vm8 = vcmp.gt.f32.partialorder %v6597_v32, 0.5 }
 0x553   : > { %vm1580_vm2 = vcmp.eq.s32.totalorder %v1575_v33, 1  ;;  %vm1581_vm5 = vcmp.eq.s32.totalorder %v1579_v48, 1 }
 0x622   : > { %v1543_v13 = vpop.f32.mrb[2].mxu0 }
 0x623   : > { %v1544_v25 = vadd.f32 %v1543_v13, %v1471_v12  ;;  %v1545_v45 = vpop.f32.mrb[3].mxu0 }
 0x624   : > { %v1546_v2 = vadd.f32 %v1545_v45, %v1471_v12 }
 0x625   : > { %v1550_v4 = vmul.f32 0.2, %v1544_v25  ;;  %vm1548_vm10 = vcmp.ge.f32.partialorder %v1544_v25, 0.0 }
 0x626   : > { %v1551_v0 = vmul.f32 0.2, %v1546_v2  ;;  %vm1549_vm11 = vcmp.ge.f32.partialorder %v1546_v2, 0.0 }
 0x627   : > { %v1552_v19 = vsel %vm1548_vm10, %v1544_v25, %v1550_v4  ;;  %vm11077_vm10 = vmmov %vm11076_vm6 }
 0x628   : > { %1556 = vrot.lane.b32.xlu0 %v1552_v19, %s7717_s28  ;;  %v1553_v24 = vsel %vm1549_vm11, %v1546_v2, %v1551_v0 }
 0x629   : > { %1558 = vrot.lane.b32.xlu1 %v1553_v24, %s7717_s28 }
 0x69a   : > { %v1557_v59 = vpop.permute.xlu0 %1556 }
 0x69b   : > { %1564 = vst.msk [vmem:[#allocation3] sm:$0xf] %vm10980_vm3, %v1557_v59  ;;  %v1559_v49 = vpop.permute.xlu1 %1558 }
 0x69c   : > { %v1560_v30 = vsel %vm11071_vm14, %v1557_v59, %v1559_v49  ;;  %1566 = vst.msk [vmem:[#allocation3 + $0x10] sm:$0xf] %vm11072_vm15, %v1559_v49  ;;  %v6601_v59 = vld [vmem:[%s10960_s2 + $0xc] sm:$0xf]  ;;  %v1869_v49 = vcombine.high %v8587_v26, %v8587_v26 }
 0x69d   : > { %1565 = vst [vmem:[#allocation3 + $0x8] sm:$0xf] %v1560_v30  ;;  %v1640_v30 = vld [vmem:[%s10963_s5] ss:$2 sm:$0x3] }
 0x69e   : > { %6602 = vmatprep.mubr.msk.f32.mxu1 %vm11073_vm4, %v1869_v49  ;;  %vm1641_vm1 = vcmp.gt.f32.partialorder %v1640_v30, 0.5  ;;  %vm11080_vm4 = vcmask 908288  }
 0x6a2   : > { %v1586_v54 = vld [vmem:[#allocation3] sm:$0xf] }
 0x6a3   : > { %v1567_v5 = vld [vmem:[#allocation3] sm:$0xf]  ;;  %1592 = vrot.lane.b32.xlu0 %v1586_v54, %s7718_s7  ;;  %v1588_v34 = vld [vmem:[#allocation3 + $0x10] sm:$0xf]  ;;  %v1609_v54 = vsel %vm1608_vm8, 1, %v7716_v1  ;;  %vm11081_vm8 = vmmov %vm11080_vm4 }
 0x6a4   : > { %1596 = vrot.lane.b32.xlu1 %v1588_v34, %s7718_s7  ;;  %v1568_v15 = vld [vmem:[#allocation3 + $0x8] sm:$0xf]  ;;  %v1582_v18 = vsel %vm1580_vm2, %v1567_v5, 0.0  ;;  %v1604_v37 = vld [vmem:[#allocation3] sm:$0xf]  ;;  %v1613_v34 = vrot.slane %v1609_v54, %v7842_v9  ;;  %vm11079_vm2 = vmmov %vm11078_vm7 }
 0x6a5   : > { %v1587_v35 = vld [vmem:[#allocation3 + $0x8] sm:$0xf]  ;;  %v1583_v36 = vsel %vm1581_vm5, %v1568_v15, 0.0  ;;  %1584 = vst [vmem:[#allocation2 + $0x20] sm:$0xf] %v1582_v18  ;;  %v1617_v15 = vrot.slane %v1609_v54, %v7839_v7 }
 0x6a6   : > { %1585 = vst [vmem:[#allocation2 + $0x28] sm:$0xf] %v1583_v36  ;;  %v1606_v14 = vld [vmem:[#allocation3 + $0x10] sm:$0xf]  ;;  %v1605_v17 = vld [vmem:[#allocation3 + $0x8] sm:$0xf] }
 0x6a7   : > { %1594 = vrot.lane.b32.xlu0 %v1587_v35, %s7718_s7  ;;  %v1638_v38 = vld [vmem:[#allocation3 + $0x8] sm:$0xf]  ;;  %v1639_v42 = vld [vmem:[#allocation3 + $0x10] sm:$0xf]  ;;  %v1637_v47 = vld [vmem:[#allocation3] sm:$0xf] }
 0x6a8   : > { %1623 = vrot.lane.b32.xlu1 %v1604_v37, %s7720_s8  ;;  %v1670_v60 = vld [vmem:[#allocation3] sm:$0xf]  ;;  %v1672_v62 = vld [vmem:[#allocation3 + $0x10] sm:$0xf]  ;;  %v1671_v3 = vld [vmem:[#allocation3 + $0x8] sm:$0xf] }
 0x6a9   : > { %v1689_v52 = vld [vmem:[#allocation3 + $0x8] sm:$0xf]  ;;  %v1723_v13 = vld [vmem:[#allocation3 + $0x10] sm:$0xf]  ;;  %v1721_v25 = vld [vmem:[#allocation3] sm:$0xf] }
 0x6aa   : > { %v1722_v12 = vld [vmem:[#allocation3 + $0x8] sm:$0xf]  ;;  %v1756_v2 = vld [vmem:[#allocation3 + $0x10] sm:$0xf]  ;;  %v1754_v4 = vld [vmem:[#allocation3] sm:$0xf] }
 0x6ab   : > { %1627 = vrot.lane.b32.xlu0 %v1606_v14, %s7720_s8  ;;  %v1755_v45 = vld [vmem:[#allocation3 + $0x8] sm:$0xf]  ;;  %v1774_v19 = vld [vmem:[#allocation3 + $0x10] sm:$0xf]  ;;  %v1772_v24 = vld [vmem:[#allocation3] sm:$0xf] }
 0x6ac   : > { %1625 = vrot.lane.b32.xlu1 %v1605_v17, %s7720_s8  ;;  %v1813_v21 = vld [vmem:[#allocation2 + $0x20] sm:$0xff]  ;;  %v1773_v0 = vld [vmem:[#allocation3 + $0x8] sm:$0xf]  ;;  %v1642_v37 = vsel %vm1641_vm1, 1, %v7716_v1  ;;  %vm1618_vm13 = vcmp.eq.s32.totalorder %v1613_v34, 1  ;;  %vm1619_vm9 = vcmp.eq.s32.totalorder %v1617_v15, 1 }
 0x6ad   : > { %v1814_v41 = vld [vmem:[#allocation2 + $0x28] sm:$0xff]  ;;  %v6835_v28 = vpack.c.bf16 %v8372_v63, %v1813_v21  ;;  %v1688_v63 = vld [vmem:[#allocation3] sm:$0xf]  ;;  %v1650_v17 = vrot.slane %v1642_v37, %v7839_v7 }
 0x6ae   : > { %v6833_v29 = vpack.c.bf16 %v8362_v53, %v1814_v41  ;;  %v1690_v53 = vld [vmem:[#allocation3 + $0x10] sm:$0xf] }
 0x6af   : > { %1658 = vrot.lane.b32.xlu0 %v1638_v38, %s7721_s9  ;;  %vm1652_vm11 = vcmp.eq.s32.totalorder %v1650_v17, 1 }
 0x6b0   : > { %1660 = vrot.lane.b32.xlu1 %v1639_v42, %s7721_s9  ;;  %6834 = vmatprep.subr.bf16.mxu1 %v6833_v29 }
 0x6b1   : > { %6836 = vmatpush1.bf16.msra.mxu1 %v6835_v28  ;;  %v1646_v28 = vrot.slane %v1642_v37, %v7842_v9 }
 0x6b3   : > { %1656 = vrot.lane.b32.xlu0 %v1637_v47, %s7721_s9  ;;  %v6598_v47 = vld [vmem:[%s10963_s5 + $0x1] ss:$2 sm:$0x3]  ;;  %vm1651_vm15 = vcmp.eq.s32.totalorder %v1646_v28, 1 }
 0x6b4   : > { %1676 = vrot.lane.b32.xlu1 %v1670_v60, %s7722_s10  ;;  %vm1692_vm14 = vcmp.gt.f32.partialorder %v6598_v47, 0.5 }
 0x6b7   : > { %1680 = vrot.lane.b32.xlu0 %v1672_v62, %s7722_s10 }
 0x6b8   : > { %1678 = vrot.lane.b32.xlu1 %v1671_v3, %s7722_s10 }
 0x6bb   : > { %1709 = vrot.lane.b32.xlu0 %v1689_v52, %s7723_s11 }
 0x6bc   : > { %1711 = vrot.lane.b32.xlu1 %v1690_v53, %s7723_s11 }
 0x6bf   : > { %1707 = vrot.lane.b32.xlu0 %v1688_v63, %s7723_s11 }
 0x6c0   : > { %1742 = vrot.lane.b32.xlu1 %v1722_v12, %s7724_s12 }
 0x6c3   : > { %1744 = vrot.lane.b32.xlu0 %v1723_v13, %s7724_s12 }
 0x6c4   : > { %1740 = vrot.lane.b32.xlu1 %v1721_v25, %s7724_s12 }
 0x6c7   : > { %1762 = vrot.lane.b32.xlu0 %v1755_v45, %s7725_s13 }
 0x6c8   : > { %1764 = vrot.lane.b32.xlu1 %v1756_v2, %s7725_s13 }
 0x6cb   : > { %1760 = vrot.lane.b32.xlu0 %v1754_v4, %s7725_s13  ;;  %v1693_v4 = vsel %vm1692_vm14, 1, %v7716_v1  ;;  %vm11086_vm14 = vcmask 777216  }
 0x6cc   : > { %1793 = vrot.lane.b32.xlu1 %v1773_v0, %s7726_s14  ;;  %v1697_v54 = vrot.slane %v1693_v4, %v7842_v9 }
 0x6cf   : > { %1795 = vrot.lane.b32.xlu0 %v1774_v19, %s7726_s14 }
 0x6d0   : > { %1791 = vrot.lane.b32.xlu1 %v1772_v24, %s7726_s14 }
 0x6d3   : > { %1865 = vperm.xlu0 %7472, %v6601_v59   ;;  %v1701_v59 = vrot.slane %v1693_v4, %v7839_v7 }
 0x6d5   : > { %vm1703_vm1 = vcmp.eq.s32.totalorder %v1701_v59, 1 }
 0x715   : > { %v1593_v33 = vpop.permute.xlu0 %1592 }
 0x716   : > { %v1597_v48 = vpop.permute.xlu1 %1596 }
 0x719   : > { %v1595_v5 = vpop.permute.xlu0 %1594 }
 0x71a   : > { %v1598_v18 = vsel %vm11074_vm0, %v1593_v33, %v1595_v5  ;;  %v1599_v35 = vsel %vm11075_vm12, %v1595_v5, %v1597_v48  ;;  %v1624_v36 = vpop.permute.xlu1 %1623  ;;  %vm11082_vm0 = vcmask 900096   ;;  %vm1702_vm12 = vcmp.eq.s32.totalorder %v1697_v54, 1 }
 0x71b   : > { %1602 = vst [vmem:[#allocation2 + $0x50] sm:$0xf] %v1598_v18  ;;  %1603 = vst [vmem:[#allocation2 + $0x58] sm:$0xf] %v1599_v35 }
 0x71d   : > { %v1628_v14 = vpop.permute.xlu0 %1627 }
 0x71e   : > { %v1626_v21 = vpop.permute.xlu1 %1625 }
 0x71f   : > { %v1629_v38 = vsel %vm11076_vm6, %v1624_v36, %v1626_v21  ;;  %v1630_v41 = vsel %vm11077_vm10, %v1626_v21, %v1628_v14  ;;  %vm11084_vm10 = vcmask 785408  }
 0x720   : > { %v1633_v42 = vsel %vm1618_vm13, %v1629_v38, 0.0  ;;  %v1634_v29 = vsel %vm1619_vm9, %v1630_v41, 0.0  ;;  %vm11083_vm13 = vmmov %vm11082_vm0  ;;  %v6599_v41 = vld [vmem:[%s10963_s5 + $0x1] ss:$2 sm:$0x3] }
 0x721   : > { %1635 = vst [vmem:[#allocation2 + $0x80] sm:$0xf] %v1633_v42  ;;  %1636 = vst [vmem:[#allocation2 + $0x88] sm:$0xf] %v1634_v29  ;;  %v1659_v60 = vpop.permute.xlu0 %1658 }
 0x722   : > { %v1661_v62 = vpop.permute.xlu1 %1660  ;;  %v1820_v3 = vld [vmem:[#allocation2 + $0x58] sm:$0xff]  ;;  %v1819_v52 = vld [vmem:[#allocation2 + $0x50] sm:$0xff] }
 0x723   : > { %v1663_v53 = vsel %vm11078_vm7, %v1659_v60, %v1661_v62  ;;  %v6837_v63 = vpack.c.bf16 %v1820_v3, %v8425_v23  ;;  %v6839_v12 = vpack.c.bf16 %v1819_v52, %v8427_v50  ;;  %v1724_v23 = vld [vmem:[%s10963_s5] ss:$2 sm:$0x3]  ;;  %vm11085_vm7 = vmmov %vm11084_vm10 }
 0x724   : > { %v1667_v13 = vsel %vm1652_vm11, %v1663_v53, 0.0  ;;  %vm1725_vm5 = vcmp.gt.f32.partialorder %v1724_v23, 0.5  ;;  %vm1776_vm11 = vcmp.gt.f32.partialorder %v6599_v41, 0.5 }
 0x725   : > { %1669 = vst [vmem:[#allocation2 + $0xb8] sm:$0xf] %v1667_v13  ;;  %v1657_v25 = vpop.permute.xlu0 %1656  ;;  %6838 = vmatprep.subr.bf16.mxu1 %v6837_v63  ;;  %v1726_v34 = vsel %vm1725_vm5, 1, %v7716_v1  ;;  %v1777_v63 = vsel %vm1776_vm11, 1, %v7716_v1  ;;  %vm11092_vm11 = vcmask 719872  }
 0x726   : > { %v1662_v45 = vsel %vm11079_vm2, %v1657_v25, %v1659_v60  ;;  %v1677_v2 = vpop.permute.xlu1 %1676  ;;  %6840 = vmatpush1.bf16.msra.mxu1 %v6839_v12  ;;  %v1730_v14 = vrot.slane %v1726_v34, %v7842_v9 }
 0x727   : > { %v1666_v0 = vsel %vm1651_vm15, %v1662_v45, 0.0  ;;  %6842 = vmatprep.subr.bf16.mxu1 %v8440_v58  ;;  %v1785_v45 = vrot.slane %v1777_v63, %v7839_v7  ;;  %vm11087_vm15 = vmmov %vm11086_vm14 }
 0x728   : > { %1668 = vst [vmem:[#allocation2 + $0xb0] sm:$0xf] %v1666_v0  ;;  %v1826_v50 = vld [vmem:[#allocation2 + $0x88] sm:$0xff]  ;;  %v1825_v49 = vld [vmem:[#allocation2 + $0x80] sm:$0xff]  ;;  %vm1735_vm6 = vcmp.eq.s32.totalorder %v1730_v14, 1 }
 0x729   : > { %v1681_v19 = vpop.permute.xlu0 %1680  ;;  %v6845_v24 = vpack.c.bf16 %v8438_v61, %v1826_v50  ;;  %v6847_v33 = vpack.c.bf16 %v8450_v31, %v1825_v49  ;;  %v1734_v31 = vrot.slane %v1726_v34, %v7839_v7  ;;  %vm1787_vm2 = vcmp.eq.s32.totalorder %v1785_v45, 1 }
 0x72a   : > { %v1679_v32 = vpop.permute.xlu1 %1678  ;;  %6844 = vmatpush1.bf16.msra.mxu1 %v8443_v8 }
 0x72b   : > { %v1682_v30 = vsel %vm11080_vm4, %v1677_v2, %v1679_v32  ;;  %v1683_v58 = vsel %vm11081_vm8, %v1679_v32, %v1681_v19  ;;  %6846 = vmatprep.subr.bf16.mxu1 %v6845_v24  ;;  %vm1736_vm9 = vcmp.eq.s32.totalorder %v1734_v31, 1  ;;  %vm11088_vm4 = vcmask 769024  }
 0x72c   : > { %1686 = vst [vmem:[#allocation2 + $0xe0] sm:$0xf] %v1682_v30  ;;  %1687 = vst [vmem:[#allocation2 + $0xe8] sm:$0xf] %v1683_v58  ;;  %v1832_v48 = vld [vmem:[#allocation2 + $0xb8] sm:$0xff] }
 0x72d   : > { %v1710_v61 = vpop.permute.xlu0 %1709  ;;  %v6849_v5 = vpack.c.bf16 %v1832_v48, %v8453_v55  ;;  %vm11089_vm8 = vmmov %vm11088_vm4 }
 0x72e   : > { %v1712_v8 = vpop.permute.xlu1 %1711  ;;  %6848 = vmatpush1.bf16.msra.mxu1 %v6847_v33 }
 0x72f   : > { %v1714_v15 = vsel %vm11082_vm0, %v1710_v61, %v1712_v8  ;;  %6850 = vmatprep.subr.bf16.mxu1 %v6849_v5  ;;  %v1831_v18 = vld [vmem:[#allocation2 + $0xb0] sm:$0xff] }
 0x730   : > { %v1718_v35 = vsel %vm1703_vm1, %v1714_v15, 0.0  ;;  %v6851_v36 = vpack.c.bf16 %v1831_v18, %v8464_v22 }
 0x731   : > { %1720 = vst [vmem:[#allocation2 + $0x118] sm:$0xf] %v1718_v35  ;;  %v1708_v37 = vpop.permute.xlu0 %1707 }
 0x732   : > { %v1713_v55 = vsel %vm11083_vm13, %v1708_v37, %v1710_v61  ;;  %v1743_v17 = vpop.permute.xlu1 %1742  ;;  %6852 = vmatpush1.bf16.msra.mxu1 %v6851_v36  ;;  %vm11090_vm13 = vcmask 138240  }
 0x733   : > { %v1717_v21 = vsel %vm1702_vm12, %v1713_v55, 0.0  ;;  %6854 = vmatprep.subr.bf16.mxu1 %v8476_v39  ;;  %v1838_v38 = vld [vmem:[#allocation2 + $0xe8] sm:$0xff]  ;;  %v1837_v29 = vld [vmem:[#allocation2 + $0xe0] sm:$0xff] }
 0x734   : > { %1719 = vst [vmem:[#allocation2 + $0x110] sm:$0xf] %v1717_v21  ;;  %v6857_v22 = vpack.c.bf16 %v8482_v46, %v1838_v38  ;;  %v6859_v3 = vpack.c.bf16 %v8495_v11, %v1837_v29  ;;  %v1781_v11 = vrot.slane %v1777_v63, %v7842_v9 }
 0x735   : > { %v1745_v42 = vpop.permute.xlu0 %1744 }
 0x736   : > { %v1747_v28 = vsel %vm11084_vm10, %v1743_v17, %v1745_v42  ;;  %v1741_v47 = vpop.permute.xlu1 %1740  ;;  %6856 = vmatpush1.bf16.msra.mxu1 %v8489_v51  ;;  %vm1786_vm5 = vcmp.eq.s32.totalorder %v1781_v11, 1 }
 0x737   : > { %v1751_v60 = vsel %vm1736_vm9, %v1747_v28, 0.0  ;;  %v1746_v39 = vsel %vm11085_vm7, %v1741_v47, %v1743_v17  ;;  %6858 = vmatprep.subr.bf16.mxu1 %v6857_v22  ;;  %vm11091_vm9 = vcmask 134144  }
 0x738   : > { %1753 = vst [vmem:[#allocation2 + $0x148] sm:$0xf] %v1751_v60  ;;  %v1750_v62 = vsel %vm1735_vm6, %v1746_v39, 0.0  ;;  %v1844_v52 = vld [vmem:[#allocation2 + $0x118] sm:$0xff] }
 0x739   : > { %1752 = vst [vmem:[#allocation2 + $0x140] sm:$0xf] %v1750_v62  ;;  %v1763_v46 = vpop.permute.xlu0 %1762  ;;  %v6861_v53 = vpack.c.bf16 %v1844_v52, %v8499_v56  ;;  %v2255_v52 = vld [vmem:[#allocation2 + $0x38] sm:$0xff] }
 0x73a   : > { %v1765_v12 = vpop.permute.xlu1 %1764  ;;  %6860 = vmatpush1.bf16.msra.mxu1 %v6859_v3 }
 0x73b   : > { %v1767_v51 = vsel %vm11086_vm14, %v1763_v46, %v1765_v12  ;;  %6862 = vmatprep.subr.bf16.mxu1 %v6861_v53  ;;  %v1843_v13 = vld [vmem:[#allocation2 + $0x110] sm:$0xff] }
 0x73c   : > { %1771 = vst [vmem:[#allocation2 + $0x178] sm:$0xf] %v1767_v51  ;;  %v6863_v25 = vpack.c.bf16 %v1843_v13, %v8507_v27  ;;  %v2254_v13 = vld [vmem:[#allocation2 + $0x30] sm:$0xff] }
 0x73d   : > { %v1761_v2 = vpop.permute.xlu0 %1760 }
 0x73e   : > { %v1766_v4 = vsel %vm11087_vm15, %v1761_v2, %v1763_v46  ;;  %v1794_v0 = vpop.permute.xlu1 %1793  ;;  %6864 = vmatpush1.bf16.msra.mxu1 %v6863_v25  ;;  %vm11093_vm15 = vcmask 1039360  }
 0x73f   : > { %1770 = vst [vmem:[#allocation2 + $0x170] sm:$0xf] %v1766_v4  ;;  %6866 = vmatprep.subr.bf16.mxu1 %v8519_v16  ;;  %v1850_v56 = vld [vmem:[#allocation2 + $0x148] sm:$0xff] }
 0x740   : > { %v6869_v23 = vpack.c.bf16 %v8516_v20, %v1850_v56  ;;  %v1849_v19 = vld [vmem:[#allocation2 + $0x140] sm:$0xff] }
 0x741   : > { %v1796_v50 = vpop.permute.xlu0 %1795  ;;  %v6871_v16 = vpack.c.bf16 %v8524_v43, %v1849_v19 }
 0x742   : > { %v1798_v27 = vsel %vm11088_vm4, %v1794_v0, %v1796_v50  ;;  %v1792_v24 = vpop.permute.xlu1 %1791  ;;  %6868 = vmatpush1.bf16.msra.mxu1 %v8514_v40 }
 0x743   : > { %v1802_v59 = vsel %vm1787_vm2, %v1798_v27, 0.0  ;;  %v1797_v49 = vsel %vm11089_vm8, %v1792_v24, %v1794_v0  ;;  %6870 = vmatprep.subr.bf16.mxu1 %v6869_v23  ;;  %v1856_v32 = vld [vmem:[#allocation2 + $0x178] sm:$0xff]  ;;  %vm11094_vm2 = vmmov %vm11093_vm15  ;;  %vm11095_vm8 = vcmask 1031168  }
 0x744   : > { %1804 = vst [vmem:[#allocation2 + $0x1a8] sm:$0xf] %v1802_v59  ;;  %v1801_v30 = vsel %vm1786_vm5, %v1797_v49, 0.0  ;;  %v6873_v58 = vpack.c.bf16 %v1856_v32, %v8527_v44 }
 0x745   : > { %1803 = vst [vmem:[#allocation2 + $0x1a0] sm:$0xf] %v1801_v30 }
 0x746   : > { %6872 = vmatpush1.bf16.msra.mxu1 %v6871_v16  ;;  %v1855_v20 = vld [vmem:[#allocation2 + $0x170] sm:$0xff] }
 0x747   : > { %6874 = vmatprep.subr.bf16.mxu1 %v6873_v58  ;;  %v6875_v33 = vpack.c.bf16 %v1855_v20, %v8533_v57 }
 0x74a   : > { %6876 = vmatpush1.bf16.msra.mxu1 %v6875_v33 }
 0x74b   : > { %6878 = vmatprep.subr.bf16.mxu1 %v8539_v10  ;;  %v1862_v40 = vld [vmem:[#allocation2 + $0x1a8] sm:$0xff] }
 0x74c   : > { %v1861_v48 = vld [vmem:[#allocation2 + $0x1a0] sm:$0xff] }
 0x74e   : > { %6880 = vmatpush1.bf16.msra.mxu1 %v8537_v6  ;;  %v1964_v6 = vld [vmem:[%s10963_s5] ss:$2 sm:$0x3] }
 0x74f   : > { %1924 = vmatprep.subr.mxu1 %v1862_v40  ;;  %vm1965_vm12 = vcmp.gt.f32.partialorder %v1964_v6, 0.5 }
 0x752   : > { %1925 = vmatpush1.msra.mxu1 %v1861_v48  ;;  %v1866_v43 = vpop.permute.xlu0 %1865 }
 0x753   : > { %1937 = vmatmul.mubr.f32.vlgmr.msra.gmra.mrb[2].mxu1 %v8587_v26  ;;  %v1966_v26 = vsel %vm1965_vm12, 1, %v7716_v1  ;;  %vm11099_vm12 = vcmask 916480  }
 0x754   : > { %v1970_v36 = vrot.slane %v1966_v26, %v7842_v9  ;;  %v1974_v31 = vrot.slane %v1966_v26, %v7839_v7 }
 0x756   : > { %vm1975_vm6 = vcmp.eq.s32.totalorder %v1970_v36, 1  ;;  %vm1976_vm10 = vcmp.eq.s32.totalorder %v1974_v31, 1 }
 0x826   : > { %v1938_v54 = vpop.f32.mrb[2].mxu1 }
 0x827   : > { %v1939_v44 = vadd.f32 %v1938_v54, %v1866_v43  ;;  %v1940_v61 = vpop.f32.mrb[3].mxu1  ;;  %v2246_v54 = vld [vmem:[%s10961_s3 + $0x8] sm:$0xff] }
 0x828   : > { %v1941_v5 = vadd.f32 %v1940_v61, %v1866_v43  ;;  %v2247_v43 = vld [vmem:[%s10962_s4] sm:$0xff]  ;;  %6606 = vmatprep.mubr.msk.f32.mxu0 %vm11092_vm11, %v2246_v54  ;;  %vm11103_vm11 = vcmask 908288  }
 0x829   : > { %vm1943_vm1 = vcmp.ge.f32.partialorder %v1939_v44, 0.0  ;;  %v1945_v34 = vmul.f32 0.2, %v1939_v44  ;;  %v2050_v61 = vld [vmem:[%s10963_s5] ss:$2 sm:$0x3] }
 0x82a   : > { %vm1944_vm0 = vcmp.ge.f32.partialorder %v1941_v5, 0.0  ;;  %v1946_v57 = vmul.f32 0.2, %v1941_v5  ;;  %vm2051_vm14 = vcmp.gt.f32.partialorder %v2050_v61, 0.5 }
 0x82b   : > { %v1947_v8 = vsel %vm1943_vm1, %v1939_v44, %v1945_v34  ;;  %v6603_v44 = vld [vmem:[%s10963_s5 + $0x1] ss:$2 sm:$0x3]  ;;  %vm11096_vm1 = vmmov %vm11095_vm8 }
 0x82c   : > { %1951 = vrot.lane.b32.xlu1 %v1947_v8, %s7717_s28  ;;  %v1948_v10 = vsel %vm1944_vm0, %v1941_v5, %v1946_v57  ;;  %vm2012_vm7 = vcmp.gt.f32.partialorder %v6603_v44, 0.5 }
 0x82d   : > { %1953 = vrot.lane.b32.xlu0 %v1948_v10, %s7717_s28  ;;  %v2013_v34 = vsel %vm2012_vm7, 1, %v7716_v1  ;;  %vm11104_vm7 = vmmov %vm11103_vm11 }
 0x82e   : > { %v2021_v8 = vrot.slane %v2013_v34, %v7839_v7  ;;  %v2017_v6 = vrot.slane %v2013_v34, %v7842_v9 }
 0x830   : > { %vm2023_vm5 = vcmp.eq.s32.totalorder %v2021_v8, 1  ;;  %vm2022_vm4 = vcmp.eq.s32.totalorder %v2017_v6, 1  ;;  %v2269_v8 = vld [vmem:[#allocation2 + $0xa8] sm:$0xff] }
 0x89e   : > { %v1952_v15 = vpop.permute.xlu1 %1951 }
 0x89f   : > { %1959 = vst.msk [vmem:[#allocation3] sm:$0xf] %vm10980_vm3, %v1952_v15  ;;  %v1954_v18 = vpop.permute.xlu0 %1953 }
 0x8a0   : > { %v1955_v35 = vsel %vm11090_vm13, %v1952_v15, %v1954_v18  ;;  %1961 = vst.msk [vmem:[#allocation3 + $0x10] sm:$0xf] %vm11091_vm9, %v1954_v18 }
 0x8a1   : > { %1960 = vst [vmem:[#allocation3 + $0x8] sm:$0xf] %v1955_v35  ;;  %v2052_v35 = vsel %vm2051_vm14, 1, %v7716_v1 }
 0x8a2   : > { %v2060_v31 = vrot.slane %v2052_v35, %v7839_v7 }
 0x8a4   : > { %vm8732_vm0 = vcmp.eq.s32.totalorder %v2060_v31, 1 }
 0x8a6   : > { %v1987_v37 = vld [vmem:[#allocation3] sm:$0xf] }
 0x8a7   : > { %v1962_v14 = vld [vmem:[#allocation3] sm:$0xf]  ;;  %v1993_v55 = vrot.slane %v1987_v37, 4  ;;  %v1989_v17 = vld [vmem:[#allocation3 + $0x10] sm:$0xf] }
 0x8a8   : > { %v1977_v21 = vsel %vm1975_vm6, %v1962_v14, 0.0  ;;  %v1995_v38 = vrot.slane %v1989_v17, 4  ;;  %v1988_v41 = vld [vmem:[#allocation3 + $0x8] sm:$0xf]  ;;  %v2010_v39 = vld [vmem:[#allocation3 + $0x10] sm:$0xf]  ;;  %vm11102_vm6 = vmmov %vm11099_vm12 }
 0x8a9   : > { %v1981_v22 = vrot.slane %v1977_v21, 4  ;;  %1996 = vrot.lane.b32.xlu1 %v1993_v55, %s7718_s7  ;;  %v1963_v42 = vld [vmem:[#allocation3 + $0x8] sm:$0xf]  ;;  %v1994_v29 = vrot.slane %v1988_v41, 4  ;;  %v2008_v62 = vld [vmem:[#allocation3] sm:$0xf]  ;;  %v2056_v41 = vrot.slane %v2052_v35, %v7842_v9 }
 0x8aa   : > { %2000 = vrot.lane.b32.xlu0 %v1995_v38, %s7718_s7  ;;  %v1978_v28 = vsel %vm1976_vm10, %v1963_v42, 0.0  ;;  %v2009_v60 = vld [vmem:[#allocation3 + $0x8] sm:$0xf]  ;;  %v2049_v53 = vld [vmem:[#allocation3 + $0x10] sm:$0xf] }
 0x8ab   : > { %1985 = vst [vmem:[#allocation2 + $0x20] sm:$0xf0] %v1981_v22  ;;  %v1982_v47 = vrot.slane %v1978_v28, 4  ;;  %v2048_v3 = vld [vmem:[#allocation3 + $0x8] sm:$0xf]  ;;  %vm8745_vm9 = vcmp.eq.s32.totalorder %v2056_v41, 1 }
 0x8ac   : > { %v2086_v12 = vld [vmem:[#allocation3] sm:$0xf]  ;;  %v2088_v11 = vld [vmem:[#allocation3 + $0x10] sm:$0xf]  ;;  %v2087_v4 = vld [vmem:[#allocation3 + $0x8] sm:$0xf] }
 0x8ad   : > { %1998 = vrot.lane.b32.xlu1 %v1994_v29, %s7718_s7  ;;  %1986 = vst [vmem:[#allocation2 + $0x28] sm:$0xf0] %v1982_v47  ;;  %v2047_v45 = vld [vmem:[#allocation3] sm:$0xf]  ;;  %v2092_v2 = vrot.slane %v2086_v12, 4  ;;  %v2094_v0 = vrot.slane %v2088_v11, 4 }
 0x8ae   : > { %2029 = vrot.lane.b32.xlu0 %v2009_v60, %s7720_s8  ;;  %v2093_v56 = vrot.slane %v2087_v4, 4  ;;  %v2108_v23 = vld [vmem:[#allocation3 + $0x8] sm:$0xf]  ;;  %v2109_v50 = vld [vmem:[#allocation3 + $0x10] sm:$0xf]  ;;  %v2257_v47 = vld [vmem:[#allocation2 + $0x48] sm:$0xff] }
 0x8af   : > { %v2107_v19 = vld [vmem:[#allocation3] sm:$0xf]  ;;  %v2147_v27 = vld [vmem:[#allocation3 + $0x8] sm:$0xf]  ;;  %v2148_v24 = vld [vmem:[#allocation3 + $0x10] sm:$0xf] }
 0x8b0   : > { %v2186_v59 = vld [vmem:[#allocation3 + $0x8] sm:$0xf]  ;;  %v2146_v49 = vld [vmem:[#allocation3] sm:$0xf]  ;;  %v2187_v32 = vld [vmem:[#allocation3 + $0x10] sm:$0xf] }
 0x8b1   : > { %2031 = vrot.lane.b32.xlu1 %v2010_v39, %s7720_s8  ;;  %v2192_v30 = vrot.slane %v2186_v59, 4  ;;  %v2193_v16 = vrot.slane %v2187_v32, 4  ;;  %v2185_v58 = vld [vmem:[#allocation3] sm:$0xf]  ;;  %v2207_v33 = vld [vmem:[#allocation3 + $0x8] sm:$0xf] }
 0x8b2   : > { %2027 = vrot.lane.b32.xlu0 %v2008_v62, %s7720_s8  ;;  %v8682_v46 = vld [vmem:[#allocation2 + $0x20] sm:$0xff]  ;;  %v2191_v20 = vrot.slane %v2185_v58, 4  ;;  %v2206_v48 = vld [vmem:[#allocation3] sm:$0xf] }
 0x8b3   : > { %v6887_v25 = vpack.c.bf16 %v2254_v13, %v8682_v46  ;;  %v2208_v40 = vld [vmem:[#allocation3 + $0x10] sm:$0xf]  ;;  %v8791_v28 = vld [vmem:[#allocation2 + $0xd0] sm:$0xff] }
 0x8b4   : > { %v8685_v63 = vld [vmem:[#allocation2 + $0x28] sm:$0xff]  ;;  %v6604_v22 = vld [vmem:[%s10963_s5 + $0x1] ss:$2 sm:$0x3] }
 0x8b5   : > { %2068 = vrot.lane.b32.xlu1 %v2048_v3, %s7721_s9  ;;  %v6885_v51 = vpack.c.bf16 %v2255_v52, %v8685_v63  ;;  %v2256_v60 = vld [vmem:[#allocation2 + $0x40] sm:$0xff]  ;;  %v8736_v52 = vld [vmem:[#allocation2 + $0x78] sm:$0xff]  ;;  %vm2111_vm13 = vcmp.gt.f32.partialorder %v6604_v22, 0.5  ;;  %v2273_v22 = vld [vmem:[#allocation2 + $0xc8] sm:$0xff] }
 0x8b6   : > { %2070 = vrot.lane.b32.xlu0 %v2049_v53, %s7721_s9 }
 0x8b7   : > { %6886 = vmatprep.subr.bf16.mxu0 %v6885_v51 }
 0x8b8   : > { %6888 = vmatpush1.bf16.msra.mxu0 %v6887_v25 }
 0x8b9   : > { %2066 = vrot.lane.b32.xlu1 %v2047_v45, %s7721_s9  ;;  %v2261_v45 = vld [vmem:[#allocation2 + $0x68] sm:$0xff] }
 0x8ba   : > { %2095 = vrot.lane.b32.xlu0 %v2092_v2, %s7722_s10  ;;  %v6893_v4 = vpack.c.bf16 %v8736_v52, %v2261_v45 }
 0x8bd   : > { %2099 = vrot.lane.b32.xlu1 %v2094_v0, %s7722_s10  ;;  %v8751_v0 = vld [vmem:[#allocation2 + $0x70] sm:$0xff] }
 0x8be   : > { %2097 = vrot.lane.b32.xlu0 %v2093_v56, %s7722_s10 }
 0x8c1   : > { %2128 = vrot.lane.b32.xlu1 %v2108_v23, %s7723_s11 }
 0x8c2   : > { %2130 = vrot.lane.b32.xlu0 %v2109_v50, %s7723_s11  ;;  %v2112_v50 = vsel %vm2111_vm13, 1, %v7716_v1  ;;  %vm11113_vm13 = vcmask 777216  }
 0x8c3   : > { %v2120_v58 = vrot.slane %v2112_v50, %v7839_v7  ;;  %v2116_v61 = vrot.slane %v2112_v50, %v7842_v9 }
 0x8c5   : > { %2126 = vrot.lane.b32.xlu1 %v2107_v19, %s7723_s11  ;;  %vm2122_vm14 = vcmp.eq.s32.totalorder %v2120_v58, 1  ;;  %v2281_v58 = vld [vmem:[#allocation2 + $0x108] sm:$0xff] }
 0x8c6   : > { %2167 = vrot.lane.b32.xlu0 %v2147_v27, %s7724_s12  ;;  %v2260_v27 = vld [vmem:[#allocation2 + $0x60] sm:$0xff] }
 0x8c9   : > { %2169 = vrot.lane.b32.xlu1 %v2148_v24, %s7724_s12  ;;  %v2149_v24 = vld [vmem:[%s10963_s5] ss:$2 sm:$0x3] }
 0x8ca   : > { %2165 = vrot.lane.b32.xlu0 %v2146_v49, %s7724_s12  ;;  %v6895_v49 = vpack.c.bf16 %v8751_v0, %v2260_v27  ;;  %vm2150_vm10 = vcmp.gt.f32.partialorder %v2149_v24, 0.5 }
 0x8cb   : > { %v2151_v34 = vsel %vm2150_vm10, 1, %v7716_v1 }
 0x8cc   : > { %v2159_v35 = vrot.slane %v2151_v34, %v7839_v7 }
 0x8cd   : > { %2196 = vrot.lane.b32.xlu1 %v2192_v30, %s7725_s13 }
 0x8ce   : > { %2198 = vrot.lane.b32.xlu0 %v2193_v16, %s7725_s13  ;;  %v2267_v16 = vld [vmem:[#allocation2 + $0x98] sm:$0xff] }
 0x8d1   : > { %2194 = vrot.lane.b32.xlu1 %v2191_v20, %s7725_s13 }
 0x8d2   : > { %2227 = vrot.lane.b32.xlu0 %v2207_v33, %s7726_s14 }
 0x8d5   : > { %2229 = vrot.lane.b32.xlu1 %v2208_v40, %s7726_s14 }
 0x8d6   : > { %2225 = vrot.lane.b32.xlu0 %v2206_v48, %s7726_s14  ;;  %v2266_v48 = vld [vmem:[#allocation2 + $0x90] sm:$0xff] }
 0x8d9   : > { %2304 = vperm.xlu1 %7473, %v2247_v43  }
 0x91b   : > { %v1997_v5 = vpop.permute.xlu1 %1996 }
 0x91c   : > { %v2001_v57 = vpop.permute.xlu0 %2000 }
 0x91f   : > { %v1999_v10 = vpop.permute.xlu1 %1998 }
 0x920   : > { %v2002_v26 = vsel %vm11093_vm15, %v1997_v5, %v1999_v10  ;;  %v2003_v15 = vsel %vm11094_vm2, %v1999_v10, %v2001_v57  ;;  %v2030_v18 = vpop.permute.xlu0 %2029  ;;  %vm11105_vm15 = vcmask 900096   ;;  %vm8776_vm2 = vcmp.eq.s32.totalorder %v2116_v61, 1  ;;  %v2280_v61 = vld [vmem:[#allocation2 + $0x100] sm:$0xff] }
 0x921   : > { %2006 = vst [vmem:[#allocation2 + $0x50] sm:$0xf0] %v2002_v26  ;;  %2007 = vst [vmem:[#allocation2 + $0x58] sm:$0xf0] %v2003_v15 }
 0x923   : > { %v2032_v36 = vpop.permute.xlu1 %2031 }
 0x924   : > { %v2034_v37 = vsel %vm11095_vm8, %v2030_v18, %v2032_v36  ;;  %v2028_v14 = vpop.permute.xlu0 %2027  ;;  %v8781_v36 = vld [vmem:[#allocation2 + $0xd8] sm:$0xff] }
 0x925   : > { %v2038_v55 = vsel %vm2023_vm5, %v2034_v37, 0.0  ;;  %v2033_v17 = vsel %vm11096_vm1, %v2028_v14, %v2030_v18  ;;  %v2268_v14 = vld [vmem:[#allocation2 + $0xa0] sm:$0xff]  ;;  %vm11108_vm5 = vmmov %vm11105_vm15  ;;  %vm11111_vm1 = vcmask 785408   ;;  %v8825_v18 = vld [vmem:[#allocation2 + $0x130] sm:$0xff] }
 0x926   : > { %v2042_v21 = vrot.slane %v2038_v55, 4  ;;  %v2037_v38 = vsel %vm2022_vm4, %v2033_v17, 0.0  ;;  %v2155_v17 = vrot.slane %v2151_v34, %v7842_v9  ;;  %vm8797_vm4 = vcmp.eq.s32.totalorder %v2159_v35, 1 }
 0x927   : > { %v2041_v42 = vrot.slane %v2037_v38, 4  ;;  %v2069_v29 = vpop.permute.xlu1 %2068 }
 0x928   : > { %2046 = vst [vmem:[#allocation2 + $0x88] sm:$0xf0] %v2042_v21  ;;  %v2071_v39 = vpop.permute.xlu0 %2070  ;;  %v2259_v62 = vld [vmem:[#allocation2 + $0x58] sm:$0xff]  ;;  %v2258_v3 = vld [vmem:[#allocation2 + $0x50] sm:$0xff]  ;;  %vm2160_vm8 = vcmp.eq.s32.totalorder %v2155_v17, 1 }
 0x929   : > { %2045 = vst [vmem:[#allocation2 + $0x80] sm:$0xf0] %v2041_v42  ;;  %v2073_v53 = vsel %vm11099_vm12, %v2069_v29, %v2071_v39  ;;  %v8739_v12 = vpack.c.bf16 %v2259_v62, %v2257_v47  ;;  %v8741_v51 = vpack.c.bf16 %v2258_v3, %v2256_v60  ;;  %v6605_v47 = vld [vmem:[%s10963_s5 + $0x1] ss:$2 sm:$0x3]  ;;  %vm11112_vm12 = vmmov %vm11111_vm1 }
 0x92a   : > { %v2077_v13 = vsel %vm8732_vm0, %v2073_v53, 0.0  ;;  %v2272_v53 = vld [vmem:[#allocation2 + $0xc0] sm:$0xff]  ;;  %vm2210_vm0 = vcmp.gt.f32.partialorder %v6605_v47, 0.5 }
 0x92b   : > { %v2081_v2 = vrot.slane %v2077_v13, 4  ;;  %v2067_v11 = vpop.permute.xlu1 %2066  ;;  %6890 = vmatprep.subr.bf16.mxu0 %v8739_v12  ;;  %v6907_v45 = vpack.c.bf16 %v8791_v28, %v2272_v53  ;;  %v2290_v53 = vld [vmem:[#allocation2 + $0x150] sm:$0xff] }
 0x92c   : > { %v2072_v56 = vsel %vm11102_vm6, %v2067_v11, %v2069_v29  ;;  %v2096_v23 = vpop.permute.xlu0 %2095  ;;  %6892 = vmatpush1.bf16.msra.mxu0 %v8741_v51  ;;  %v6905_v29 = vpack.c.bf16 %v8781_v36, %v2273_v22 }
 0x92d   : > { %2085 = vst [vmem:[#allocation2 + $0xb8] sm:$0xf0] %v2081_v2  ;;  %v2076_v19 = vsel %vm8745_vm9, %v2072_v56, 0.0  ;;  %6894 = vmatprep.subr.bf16.mxu0 %v6893_v4  ;;  %v2279_v2 = vld [vmem:[#allocation2 + $0xf8] sm:$0xff]  ;;  %vm11114_vm9 = vmmov %vm11113_vm13 }
 0x92e   : > { %v2080_v59 = vrot.slane %v2076_v19, 4 }
 0x92f   : > { %v2100_v32 = vpop.permute.xlu1 %2099  ;;  %v8762_v30 = vld [vmem:[#allocation2 + $0x88] sm:$0xff] }
 0x930   : > { %2084 = vst [vmem:[#allocation2 + $0xb0] sm:$0xf0] %v2080_v59  ;;  %v2098_v20 = vpop.permute.xlu0 %2097  ;;  %6896 = vmatpush1.bf16.msra.mxu0 %v6895_v49  ;;  %v6897_v33 = vpack.c.bf16 %v2267_v16, %v8762_v30  ;;  %v8766_v40 = vld [vmem:[#allocation2 + $0x80] sm:$0xff]  ;;  %v2278_v59 = vld [vmem:[#allocation2 + $0xf0] sm:$0xff]  ;;  %v2211_v49 = vsel %vm2210_vm0, 1, %v7716_v1 }
 0x931   : > { %v2101_v43 = vsel %vm11103_vm11, %v2096_v23, %v2098_v20  ;;  %v2102_v54 = vsel %vm11104_vm7, %v2098_v20, %v2100_v32  ;;  %v6899_v44 = vpack.c.bf16 %v2266_v48, %v8766_v40  ;;  %v2215_v34 = vrot.slane %v2211_v49, %v7842_v9 }
 0x932   : > { %2105 = vst [vmem:[#allocation2 + $0xe0] sm:$0xf0] %v2101_v43  ;;  %2106 = vst [vmem:[#allocation2 + $0xe8] sm:$0xf0] %v2102_v54  ;;  %6898 = vmatprep.subr.bf16.mxu0 %v6897_v33  ;;  %v2219_v43 = vrot.slane %v2211_v49, %v7839_v7  ;;  %v8817_v54 = vld [vmem:[#allocation2 + $0x138] sm:$0xff]  ;;  %vm11115_vm11 = vcmask 769024  }
 0x933   : > { %v2129_v5 = vpop.permute.xlu1 %2128  ;;  %vm2220_vm10 = vcmp.eq.s32.totalorder %v2215_v34, 1  ;;  %vm11116_vm7 = vmmov %vm11115_vm11  ;;  %v7487_v34 = vld [vmem:[%s7830_s27] sm:$0xff] }
 0x934   : > { %v2131_v57 = vpop.permute.xlu0 %2130  ;;  %6900 = vmatpush1.bf16.msra.mxu0 %v6899_v44  ;;  %v2271_v10 = vld [vmem:[#allocation2 + $0xb8] sm:$0xff]  ;;  %vm2221_vm6 = vcmp.eq.s32.totalorder %v2219_v43, 1 }
 0x935   : > { %v2133_v6 = vsel %vm11105_vm15, %v2129_v5, %v2131_v57  ;;  %v8774_v26 = vpack.c.bf16 %v2271_v10, %v2269_v8 }
 0x936   : > { %v2137_v15 = vsel %vm2122_vm14, %v2133_v6, 0.0  ;;  %v2285_v6 = vld [vmem:[#allocation2 + $0x128] sm:$0xff] }
 0x937   : > { %v2141_v31 = vrot.slane %v2137_v15, 4  ;;  %v2127_v37 = vpop.permute.xlu1 %2126  ;;  %6902 = vmatprep.subr.bf16.mxu0 %v8774_v26  ;;  %v2270_v55 = vld [vmem:[#allocation2 + $0xb0] sm:$0xff]  ;;  %v6917_v15 = vpack.c.bf16 %v8817_v54, %v2285_v6 }
 0x938   : > { %v2132_v21 = vsel %vm11108_vm5, %v2127_v37, %v2129_v5  ;;  %v2168_v38 = vpop.permute.xlu0 %2167  ;;  %v8786_v41 = vpack.c.bf16 %v2270_v55, %v2268_v14  ;;  %v2291_v14 = vld [vmem:[#allocation2 + $0x158] sm:$0xff]  ;;  %vm11118_vm5 = vcmask 138240  }
 0x939   : > { %2145 = vst [vmem:[#allocation2 + $0x118] sm:$0xf0] %v2141_v31  ;;  %v2136_v42 = vsel %vm8776_vm2, %v2132_v21, 0.0  ;;  %v8801_v62 = vld [vmem:[#allocation2 + $0xe8] sm:$0xff]  ;;  %v8809_v23 = vld [vmem:[#allocation2 + $0xe0] sm:$0xff]  ;;  %vm11117_vm2 = vcmask 1047688  }
 0x93a   : > { %v2140_v60 = vrot.slane %v2136_v42, 4  ;;  %6904 = vmatpush1.bf16.msra.mxu0 %v8786_v41  ;;  %v6909_v56 = vpack.c.bf16 %v2279_v2, %v8801_v62  ;;  %v6911_v16 = vpack.c.bf16 %v2278_v59, %v8809_v23  ;;  %v2284_v31 = vld [vmem:[#allocation2 + $0x120] sm:$0xff] }
 0x93b   : > { %v2170_v3 = vpop.permute.xlu1 %2169  ;;  %6906 = vmatprep.subr.bf16.mxu0 %v6905_v29  ;;  %v6919_v21 = vpack.c.bf16 %v8825_v18, %v2284_v31 }
 0x93c   : > { %2144 = vst [vmem:[#allocation2 + $0x110] sm:$0xf0] %v2140_v60  ;;  %v2172_v13 = vsel %vm11111_vm1, %v2168_v38, %v2170_v3  ;;  %v2166_v25 = vpop.permute.xlu0 %2165  ;;  %vm11120_vm1 = vmmov 1  }
 0x93d   : > { %v2176_v11 = vsel %vm8797_vm4, %v2172_v13, 0.0  ;;  %v2171_v4 = vsel %vm11112_vm12, %v2166_v25, %v2168_v38  ;;  %v2293_v25 = vld [vmem:[#allocation2 + $0x168] sm:$0xff]  ;;  %vm11119_vm4 = vmmov %vm11118_vm5 }
 0x93e   : > { %v2180_v50 = vrot.slane %v2176_v11, 4  ;;  %v2175_v19 = vsel %vm2160_vm8, %v2171_v4, 0.0  ;;  %6908 = vmatpush1.bf16.msra.mxu0 %v6907_v45  ;;  %v8839_v11 = vld [vmem:[#allocation2 + $0x198] sm:$0xff]  ;;  %v2292_v4 = vld [vmem:[#allocation2 + $0x160] sm:$0xff] }
 0x93f   : > { %v2179_v27 = vrot.slane %v2175_v19, 4  ;;  %v2197_v24 = vpop.permute.xlu1 %2196  ;;  %6910 = vmatprep.subr.bf16.mxu0 %v6909_v56 }
 0x940   : > { %2184 = vst [vmem:[#allocation2 + $0x148] sm:$0xf0] %v2180_v50  ;;  %v2199_v32 = vpop.permute.xlu0 %2198  ;;  %v2283_v20 = vld [vmem:[#allocation2 + $0x118] sm:$0xff]  ;;  %v2297_v50 = vld [vmem:[#allocation2 + $0x188] sm:$0xff] }
 0x941   : > { %2183 = vst [vmem:[#allocation2 + $0x140] sm:$0xf0] %v2179_v27  ;;  %v2201_v33 = vsel %vm11113_vm13, %v2197_v24, %v2199_v32  ;;  %v8814_v48 = vpack.c.bf16 %v2283_v20, %v2281_v58  ;;  %v6929_v19 = vpack.c.bf16 %v8839_v11, %v2297_v50  ;;  %v8845_v27 = vld [vmem:[#allocation2 + $0x190] sm:$0xff]  ;;  %v2245_v32 = vld [vmem:[%s10961_s3] sm:$0xff]  ;;  %vm11125_vm13 = vcmask 719872  }
 0x942   : > { %2205 = vst [vmem:[#allocation2 + $0x178] sm:$0xf0] %v2201_v33  ;;  %6912 = vmatpush1.bf16.msra.mxu0 %v6911_v16 }
 0x943   : > { %v2195_v44 = vpop.permute.xlu1 %2194  ;;  %6914 = vmatprep.subr.bf16.mxu0 %v8814_v48  ;;  %v2282_v5 = vld [vmem:[#allocation2 + $0x110] sm:$0xff] }
 0x944   : > { %v2200_v57 = vsel %vm11114_vm9, %v2195_v44, %v2197_v24  ;;  %v2228_v8 = vpop.permute.xlu0 %2227  ;;  %v8822_v10 = vpack.c.bf16 %v2282_v5, %v2280_v61  ;;  %v2296_v24 = vld [vmem:[#allocation2 + $0x180] sm:$0xff] }
 0x945   : > { %2204 = vst [vmem:[#allocation2 + $0x170] sm:$0xf0] %v2200_v57  ;;  %v6931_v59 = vpack.c.bf16 %v8845_v27, %v2296_v24  ;;  %v2471_v24 = vld [vmem:[%s10963_s5] ss:$2 sm:$0x3] }
 0x946   : > { %6916 = vmatpush1.bf16.msra.mxu0 %v8822_v10 }
 0x947   : > { %v2230_v35 = vpop.permute.xlu1 %2229  ;;  %6918 = vmatprep.subr.bf16.mxu0 %v6917_v15  ;;  %v8828_v37 = vld [vmem:[#allocation2 + $0x148] sm:$0xff]  ;;  %v2400_v15 = vld [vmem:[%s10963_s5] ss:$2 sm:$0x3] }
 0x948   : > { %v2232_v55 = vsel %vm11115_vm11, %v2228_v8, %v2230_v35  ;;  %v2226_v17 = vpop.permute.xlu0 %2225  ;;  %v6921_v38 = vpack.c.bf16 %v2291_v14, %v8828_v37  ;;  %v8834_v29 = vld [vmem:[#allocation2 + $0x140] sm:$0xff]  ;;  %vm2401_vm14 = vcmp.gt.f32.partialorder %v2400_v15, 0.5 }
 0x949   : > { %v2236_v22 = vsel %vm2221_vm6, %v2232_v55, 0.0  ;;  %v2231_v42 = vsel %vm11116_vm7, %v2226_v17, %v2228_v8  ;;  %v2295_v39 = vld [vmem:[#allocation2 + $0x178] sm:$0xff]  ;;  %v6923_v13 = vpack.c.bf16 %v2290_v53, %v8834_v29  ;;  %v7488_v8 = vld [vmem:[%s7830_s27 + $0x8] sm:$0xff]  ;;  %v2402_v35 = vsel %vm2401_vm14, 1, %v7716_v1  ;;  %v2642_v53 = vld [vmem:[#allocation2 + $0x10] sm:$0xff] }
 0x94a   : > { %v2240_v47 = vrot.slane %v2236_v22, 4  ;;  %v2235_v60 = vsel %vm2220_vm10, %v2231_v42, 0.0  ;;  %6920 = vmatpush1.bf16.msra.mxu0 %v6919_v21  ;;  %v8837_v45 = vpack.c.bf16 %v2295_v39, %v2293_v25  ;;  %v2410_v31 = vrot.slane %v2402_v35, %v7839_v7  ;;  %v2643_v22 = vld [vmem:[#allocation2 + $0x18] sm:$0xff] }
 0x94b   : > { %v2239_v3 = vrot.slane %v2235_v60, 4  ;;  %6922 = vmatprep.subr.bf16.mxu0 %v6921_v38  ;;  %v2406_v21 = vrot.slane %v2402_v35, %v7842_v9  ;;  %vm2472_vm6 = vcmp.gt.f32.partialorder %v2471_v24, 0.5  ;;  %vm11126_vm10 = vcmask 1039360  }
 0x94c   : > { %2244 = vst [vmem:[#allocation2 + $0x1a8] sm:$0xf0] %v2240_v47  ;;  %v2294_v2 = vld [vmem:[#allocation2 + $0x170] sm:$0xff]  ;;  %vm2412_vm15 = vcmp.eq.s32.totalorder %v2410_v31, 1  ;;  %vm11127_vm11 = vmmov %vm11126_vm10 }
 0x94d   : > { %2243 = vst [vmem:[#allocation2 + $0x1a0] sm:$0xf0] %v2239_v3  ;;  %v8842_v56 = vpack.c.bf16 %v2294_v2, %v2292_v4  ;;  %vm2411_vm8 = vcmp.eq.s32.totalorder %v2406_v21, 1  ;;  %vm8882_vm0 = vmpackc.low %vm11120_vm1, %vm2412_vm15  ;;  %v6611_v2 = vld [vmem:[%s10960_s2 + $0x10] sm:$0xf]  ;;  %v8946_v4 = vld [vmem:[%s10959_s1 + $0x20] sm:$0xff] }
 0x94e   : > { %6924 = vmatpush1.bf16.msra.mxu0 %v6923_v13  ;;  %vm8896_vm12 = vmpackc.low %vm11120_vm1, %vm2411_vm8  ;;  %v2700_v50 = vcombine.high %v8946_v4, %v8946_v4 }
 0x94f   : > { %6926 = vmatprep.subr.bf16.mxu0 %v8837_v45 }
 0x950   : > { %6612 = vmatprep.mubr.msk.f32.mxu1 %vm11125_vm13, %v2700_v50 }
 0x952   : > { %6928 = vmatpush1.bf16.msra.mxu0 %v8842_v56 }
 0x953   : > { %6930 = vmatprep.subr.bf16.mxu0 %v6929_v19  ;;  %v8849_v49 = vld [vmem:[#allocation2 + $0x1a8] sm:$0xff]  ;;  %v6607_v19 = vld [vmem:[%s10963_s5 + $0x1] ss:$2 sm:$0x3] }
 0x954   : > { %v8855_v16 = vld [vmem:[#allocation2 + $0x1a0] sm:$0xff]  ;;  %vm2439_vm9 = vcmp.gt.f32.partialorder %v6607_v19, 0.5 }
 0x956   : > { %6932 = vmatpush1.bf16.msra.mxu0 %v6931_v59 }
 0x957   : > { %2362 = vmatprep.subr.mxu0 %v8849_v49 }
 0x958   : > { %v2305_v58 = vpop.permute.xlu1 %2304 }
 0x95a   : > { %2363 = vmatpush1.msra.mxu0 %v8855_v16 }
 0x95b   : > { %2375 = vmatmul.mubr.f32.vlgmr.msra.gmra.mrb[4].mxu0 %v2245_v32 }
 0xa2e   : > { %v2376_v20 = vpop.f32.mrb[4].mxu0 }
 0xa2f   : > { %v2377_v33 = vadd.f32 %v2376_v20, %v2305_v58  ;;  %v2378_v43 = vpop.f32.mrb[5].mxu0 }
 0xa30   : > { %v2379_v44 = vadd.f32 %v2378_v43, %v2305_v58  ;;  %v2440_v58 = vsel %vm2439_vm9, 1, %v7716_v1 }
 0xa31   : > { %v2381_v61 = vmul.f32 0.2, %v2377_v33  ;;  %v2444_v33 = vrot.slane %v2440_v58, %v7842_v9  ;;  %v2448_v43 = vrot.slane %v2440_v58, %v7839_v7  ;;  %v9332_v58 = vld [vmem:[#allocation2 + $0xb8] sm:$0xff] }
 0xa32   : > { %v2382_v5 = vmul.f32 0.2, %v2379_v44 }
 0xa33   : > { %v8859_v57 = vadd.f32 %v7487_v34, %v2381_v61  ;;  %v2473_v34 = vsel %vm2472_vm6, 1, %v7716_v1  ;;  %vm8973_vm7 = vcmp.eq.s32.totalorder %v2444_v33, 1  ;;  %vm8977_vm14 = vcmp.eq.s32.totalorder %v2448_v43, 1 }
 0xa34   : > { %v8862_v6 = vadd.f32 %v7488_v8, %v2382_v5 }
 0xa35   : > { %2387 = vrot.lane.b32.xlu0 %v8859_v57, %s7717_s28 }
 0xa36   : > { %2389 = vrot.lane.b32.xlu1 %v8862_v6, %s7717_s28 }
 0xaa7   : > { %v2388_v14 = vpop.permute.xlu0 %2387 }
 0xaa8   : > { %2395 = vst.msk [vmem:[#allocation3] sm:$0xff] %vm11117_vm2, %v2388_v14  ;;  %v2390_v55 = vpop.permute.xlu1 %2389 }
 0xaa9   : > { %v8875_v17 = vsel %vm11118_vm5, %v2388_v14, %v2390_v55  ;;  %2397 = vst.msk [vmem:[#allocation3 + $0x10] sm:$0xff] %vm11119_vm4, %v2390_v55  ;;  %v2481_v55 = vrot.slane %v2473_v34, %v7839_v7  ;;  %vm11136_vm4 = vcmask 916480  }
 0xaaa   : > { %2396 = vst [vmem:[#allocation3 + $0x8] sm:$0xff] %v8875_v17  ;;  %v2414_v38 = vsel %vm2412_vm15, %v8875_v17, 0.0  ;;  %v7564_v47 = vpack.c.bf16 %v2643_v22, %v8875_v17  ;;  %vm11132_vm15 = vcmask 1031168   ;;  %vm11141_vm6 = vmmov %vm11136_vm4 }
 0xaab   : > { %2416 = vst [vmem:[#allocation2 + $0x8] sm:$0xff] %v2414_v38  ;;  %vm11133_vm2 = vmmov %vm11132_vm15  ;;  %vm8999_vm5 = vcmp.eq.s32.totalorder %v2481_v55, 1 }
 0xaac   : > { %7565 = vmatprep.subr.msk.bf16.mxu1 %vm8882_vm0, %v7564_v47  ;;  %v2477_v47 = vrot.slane %v2473_v34, %v7842_v9 }
 0xaae   : > { %vm9021_vm9 = vcmp.eq.s32.totalorder %v2477_v47, 1 }
 0xaaf   : > { %v8889_v60 = vld [vmem:[#allocation3] sm:$0xff] }
 0xab0   : > { %2423 = vrot.lane.b32.xlu0 %v8889_v60, %s7718_s7  ;;  %v2419_v39 = vld [vmem:[#allocation3 + $0x10] sm:$0xff]  ;;  %v2413_v3 = vsel %vm2411_vm8, %v8889_v60, 0.0  ;;  %v7567_v25 = vpack.c.bf16 %v2642_v53, %v8889_v60  ;;  %vm9010_vm8 = vmpackc.low %vm11120_vm1, %vm8977_vm14 }
 0xab1   : > { %2427 = vrot.lane.b32.xlu1 %v2419_v39, %s7718_s7  ;;  %2415 = vst [vmem:[#allocation2] sm:$0xff] %v2413_v3 }
 0xab2   : > { %7568 = vmatpush1.bf16.msk.msra.mxu1 %vm8896_vm12, %v7567_v25 }
 0xab4   : > { %2425 = vrot.lane.b32.xlu0 %v8875_v17, %s7718_s7 }
 0xab5   : > { %2454 = vrot.lane.b32.xlu1 %v8889_v60, %s7720_s8 }
 0xab8   : > { %2458 = vrot.lane.b32.xlu0 %v2419_v39, %s7720_s8 }
 0xab9   : > { %2456 = vrot.lane.b32.xlu1 %v8875_v17, %s7720_s8 }
 0xabc   : > { %2489 = vrot.lane.b32.xlu0 %v8875_v17, %s7721_s9 }
 0xabd   : > { %2491 = vrot.lane.b32.xlu1 %v2419_v39, %s7721_s9 }
 0xac0   : > { %2487 = vrot.lane.b32.xlu0 %v8889_v60, %s7721_s9 }
 0xac1   : > { %2507 = vrot.lane.b32.xlu1 %v8889_v60, %s7722_s10 }
 0xac4   : > { %2511 = vrot.lane.b32.xlu0 %v2419_v39, %s7722_s10 }
 0xac5   : > { %2509 = vrot.lane.b32.xlu1 %v8875_v17, %s7722_s10 }
 0xac8   : > { %2540 = vrot.lane.b32.xlu0 %v8875_v17, %s7723_s11 }
 0xac9   : > { %2542 = vrot.lane.b32.xlu1 %v2419_v39, %s7723_s11 }
 0xacc   : > { %2538 = vrot.lane.b32.xlu0 %v8889_v60, %s7723_s11 }
 0xacd   : > { %2573 = vrot.lane.b32.xlu1 %v8875_v17, %s7724_s12 }
 0xad0   : > { %2575 = vrot.lane.b32.xlu0 %v2419_v39, %s7724_s12 }
 0xad1   : > { %2571 = vrot.lane.b32.xlu1 %v8889_v60, %s7724_s12 }
 0xad4   : > { %2593 = vrot.lane.b32.xlu0 %v8875_v17, %s7725_s13 }
 0xad5   : > { %2595 = vrot.lane.b32.xlu1 %v2419_v39, %s7725_s13 }
 0xad8   : > { %2591 = vrot.lane.b32.xlu0 %v8889_v60, %s7725_s13 }
 0xad9   : > { %2624 = vrot.lane.b32.xlu1 %v8875_v17, %s7726_s14 }
 0xadc   : > { %2626 = vrot.lane.b32.xlu0 %v2419_v39, %s7726_s14  ;;  %v6608_v39 = vld [vmem:[%s10963_s5 + $0x1] ss:$2 sm:$0x3] }
 0xadd   : > { %2622 = vrot.lane.b32.xlu1 %v8889_v60, %s7726_s14  ;;  %vm2523_vm13 = vcmp.gt.f32.partialorder %v6608_v39, 0.5 }
 0xae0   : > { %2696 = vperm.xlu0 %7472, %v6611_v2   ;;  %v9328_v2 = vld [vmem:[#allocation2 + $0x80] sm:$0xff] }
 0xb22   : > { %v2424_v59 = vpop.permute.xlu0 %2423 }
 0xb23   : > { %v2428_v32 = vpop.permute.xlu1 %2427 }
 0xb26   : > { %v2426_v20 = vpop.permute.xlu0 %2425 }
 0xb27   : > { %v8961_v44 = vsel %vm11126_vm10, %v2424_v59, %v2426_v20  ;;  %v8964_v61 = vsel %vm11127_vm11, %v2426_v20, %v2428_v32  ;;  %v2455_v5 = vpop.permute.xlu1 %2454  ;;  %vm9032_vm10 = vmpackc.low %vm11120_vm1, %vm8973_vm7 }
 0xb28   : > { %2433 = vst [vmem:[#allocation2 + $0x30] sm:$0xff] %v8961_v44  ;;  %2434 = vst [vmem:[#allocation2 + $0x38] sm:$0xff] %v8964_v61  ;;  %v6937_v8 = vpack.c.bf16 %v8964_v61, %v8685_v63  ;;  %v6939_v15 = vpack.c.bf16 %v8961_v44, %v8682_v46 }
 0xb29   : > { %vm9046_vm11 = vmpackc.low %vm8999_vm5, %vm11120_vm1 }
 0xb2a   : > { %v2459_v35 = vpop.permute.xlu0 %2458  ;;  %6938 = vmatprep.subr.bf16.mxu1 %v6937_v8 }
 0xb2b   : > { %v2457_v21 = vpop.permute.xlu1 %2456  ;;  %6940 = vmatpush1.bf16.msra.mxu1 %v6939_v15 }
 0xb2c   : > { %v8983_v38 = vsel %vm11132_vm15, %v2455_v5, %v2457_v21  ;;  %v8986_v63 = vsel %vm11133_vm2, %v2457_v21, %v2459_v35  ;;  %6942 = vmatprep.subr.bf16.mxu1 %v8739_v12  ;;  %vm11148_vm15 = vcmask 908288  }
 0xb2d   : > { %v2464_v46 = vsel %vm8973_vm7, %v8983_v38, 0.0  ;;  %v2465_v22 = vsel %vm8977_vm14, %v8986_v63, 0.0  ;;  %v7570_v50 = vpack.c.bf16 %v8736_v52, %v8986_v63  ;;  %v2524_v52 = vsel %vm2523_vm13, 1, %v7716_v1  ;;  %vm9061_vm7 = vmpackc.low %vm9021_vm9, %vm11120_vm1 }
 0xb2e   : > { %2466 = vst [vmem:[#allocation2 + $0x60] sm:$0xff] %v2464_v46  ;;  %2467 = vst [vmem:[#allocation2 + $0x68] sm:$0xff] %v2465_v22  ;;  %v2490_v3 = vpop.permute.xlu0 %2489  ;;  %v7573_v20 = vpack.c.bf16 %v8751_v0, %v8983_v38  ;;  %v2555_v0 = vld [vmem:[%s10963_s5] ss:$2 sm:$0x3]  ;;  %v2532_v8 = vrot.slane %v2524_v52, %v7839_v7  ;;  %v2528_v55 = vrot.slane %v2524_v52, %v7842_v9 }
 0xb2f   : > { %v2492_v12 = vpop.permute.xlu1 %2491  ;;  %6944 = vmatpush1.bf16.msra.mxu1 %v8741_v51  ;;  %vm2556_vm14 = vcmp.gt.f32.partialorder %v2555_v0, 0.5  ;;  %vm11149_vm2 = vmmov %vm11148_vm15 }
 0xb30   : > { %v9005_v25 = vsel %vm11136_vm4, %v2490_v3, %v2492_v12  ;;  %7571 = vmatprep.subr.msk.bf16.mxu1 %vm9010_vm8, %v7570_v50  ;;  %v2557_v22 = vsel %vm2556_vm14, 1, %v7716_v1  ;;  %vm11152_vm4 = vcmask 900096   ;;  %vm9093_vm13 = vcmp.eq.s32.totalorder %v2528_v55, 1 }
 0xb31   : > { %v2498_v51 = vsel %vm8999_vm5, %v9005_v25, 0.0  ;;  %v7576_v5 = vpack.c.bf16 %v9005_v25, %v8762_v30  ;;  %vm9081_vm5 = vcmp.eq.s32.totalorder %v2532_v8, 1 }
 0xb32   : > { %2500 = vst [vmem:[#allocation2 + $0x98] sm:$0xff] %v2498_v51  ;;  %v2488_v24 = vpop.permute.xlu0 %2487 }
 0xb33   : > { %v9026_v59 = vsel %vm11141_vm6, %v2488_v24, %v2490_v3  ;;  %v2508_v32 = vpop.permute.xlu1 %2507  ;;  %7574 = vmatpush1.bf16.msk.msra.mxu1 %vm9032_vm10, %v7573_v20  ;;  %v2565_v3 = vrot.slane %v2557_v22, %v7839_v7  ;;  %vm9110_vm6 = vmpackc.low %vm9081_vm5, %vm11120_vm1 }
 0xb34   : > { %v2497_v33 = vsel %vm9021_vm9, %v9026_v59, 0.0  ;;  %7577 = vmatprep.subr.msk.bf16.mxu1 %vm9046_vm11, %v7576_v5  ;;  %v7579_v30 = vpack.c.bf16 %v9026_v59, %v8766_v40  ;;  %vm11155_vm9 = vmmov %vm11152_vm4 }
 0xb35   : > { %2499 = vst [vmem:[#allocation2 + $0x90] sm:$0xff] %v2497_v33  ;;  %vm9121_vm14 = vcmp.eq.s32.totalorder %v2565_v3, 1 }
 0xb36   : > { %v2512_v34 = vpop.permute.xlu0 %2511 }
 0xb37   : > { %v2510_v15 = vpop.permute.xlu1 %2509  ;;  %7580 = vmatpush1.bf16.msk.msra.mxu1 %vm9061_vm7, %v7579_v30 }
 0xb38   : > { %v9070_v31 = vsel %vm11148_vm15, %v2508_v32, %v2510_v15  ;;  %v9073_v14 = vsel %vm11149_vm2, %v2510_v15, %v2512_v34  ;;  %6954 = vmatprep.subr.bf16.mxu1 %v8774_v26  ;;  %v6609_v32 = vld [vmem:[%s10963_s5 + $0x1] ss:$2 sm:$0x3]  ;;  %vm11162_vm2 = vcmask 785408  }
 0xb39   : > { %2517 = vst [vmem:[#allocation2 + $0xc0] sm:$0xff] %v9070_v31  ;;  %2518 = vst [vmem:[#allocation2 + $0xc8] sm:$0xff] %v9073_v14  ;;  %v6957_v40 = vpack.c.bf16 %v8781_v36, %v9073_v14  ;;  %v6959_v53 = vpack.c.bf16 %v8791_v28, %v9070_v31 }
 0xb3a   : > { %v2541_v21 = vpop.permute.xlu0 %2540 }
 0xb3b   : > { %v2543_v47 = vpop.permute.xlu1 %2542  ;;  %6956 = vmatpush1.bf16.msra.mxu1 %v8786_v41  ;;  %v2561_v41 = vrot.slane %v2557_v22, %v7842_v9 }
 0xb3c   : > { %v9088_v26 = vsel %vm11152_vm4, %v2541_v21, %v2543_v47  ;;  %6958 = vmatprep.subr.bf16.mxu1 %v6957_v40  ;;  %vm2607_vm4 = vcmp.gt.f32.partialorder %v6609_v32, 0.5 }
 0xb3d   : > { %v2549_v39 = vsel %vm9081_vm5, %v9088_v26, 0.0  ;;  %v7582_v28 = vpack.c.bf16 %v9088_v26, %v8801_v62  ;;  %vm9125_vm15 = vcmp.eq.s32.totalorder %v2561_v41, 1  ;;  %vm9135_vm5 = vmpackc.low %vm9093_vm13, %vm11120_vm1  ;;  %v2608_v55 = vsel %vm2607_vm4, 1, %v7716_v1 }
 0xb3e   : > { %2551 = vst [vmem:[#allocation2 + $0xf8] sm:$0xff] %v2549_v39  ;;  %v2539_v12 = vpop.permute.xlu0 %2538  ;;  %v2612_v39 = vrot.slane %v2608_v55, %v7842_v9  ;;  %vm9180_vm4 = vmpackc.low %vm11120_vm1, %vm9125_vm15 }
 0xb3f   : > { %v9102_v50 = vsel %vm11155_vm9, %v2539_v12, %v2541_v21  ;;  %v2574_v51 = vpop.permute.xlu1 %2573  ;;  %6960 = vmatpush1.bf16.msra.mxu1 %v6959_v53  ;;  %vm11165_vm9 = vmmov %vm11162_vm2 }
 0xb40   : > { %v2548_v19 = vsel %vm9093_vm13, %v9102_v50, 0.0  ;;  %7583 = vmatprep.subr.msk.bf16.mxu1 %vm9110_vm6, %v7582_v28  ;;  %v7585_v34 = vpack.c.bf16 %v9102_v50, %v8809_v23  ;;  %vm11166_vm13 = vcmask 777216  }
 0xb41   : > { %2550 = vst [vmem:[#allocation2 + $0xf0] sm:$0xff] %v2548_v19 }
 0xb42   : > { %v2576_v20 = vpop.permute.xlu0 %2575 }
 0xb43   : > { %v9130_v5 = vsel %vm11162_vm2, %v2574_v51, %v2576_v20  ;;  %v2572_v62 = vpop.permute.xlu1 %2571  ;;  %7586 = vmatpush1.bf16.msk.msra.mxu1 %vm9135_vm5, %v7585_v34  ;;  %vm9161_vm2 = vmpackc.low %vm11120_vm1, %vm9121_vm14 }
 0xb44   : > { %v2582_v8 = vsel %vm9121_vm14, %v9130_v5, 0.0  ;;  %v9147_v15 = vsel %vm11165_vm9, %v2572_v62, %v2574_v51  ;;  %6966 = vmatprep.subr.bf16.mxu1 %v8814_v48  ;;  %v7588_v46 = vpack.c.bf16 %v8817_v54, %v9130_v5  ;;  %vm11169_vm14 = vmmov %vm11166_vm13 }
 0xb45   : > { %2584 = vst [vmem:[#allocation2 + $0x128] sm:$0xff] %v2582_v8  ;;  %v2581_v30 = vsel %vm9125_vm15, %v9147_v15, 0.0  ;;  %v7591_v53 = vpack.c.bf16 %v8825_v18, %v9147_v15 }
 0xb46   : > { %2583 = vst [vmem:[#allocation2 + $0x120] sm:$0xff] %v2581_v30  ;;  %v2594_v23 = vpop.permute.xlu0 %2593 }
 0xb47   : > { %v2596_v40 = vpop.permute.xlu1 %2595  ;;  %6968 = vmatpush1.bf16.msra.mxu1 %v8822_v10  ;;  %v2616_v10 = vrot.slane %v2608_v55, %v7839_v7 }
 0xb48   : > { %v9156_v21 = vsel %vm11166_vm13, %v2594_v23, %v2596_v40  ;;  %7589 = vmatprep.subr.msk.bf16.mxu1 %vm9161_vm2, %v7588_v46  ;;  %vm2617_vm13 = vcmp.eq.s32.totalorder %v2612_v39, 1 }
 0xb49   : > { %2602 = vst [vmem:[#allocation2 + $0x158] sm:$0xff] %v9156_v21  ;;  %v6973_v22 = vpack.c.bf16 %v9156_v21, %v8828_v37  ;;  %vm2618_vm9 = vcmp.eq.s32.totalorder %v2616_v10, 1 }
 0xb4a   : > { %v2592_v47 = vpop.permute.xlu0 %2591  ;;  %vm9202_vm3 = vmpackc.low %vm11120_vm1, %vm2618_vm9 }
 0xb4b   : > { %v9175_v36 = vsel %vm11169_vm14, %v2592_v47, %v2594_v23  ;;  %v2625_v3 = vpop.permute.xlu1 %2624  ;;  %7592 = vmatpush1.bf16.msk.msra.mxu1 %vm9180_vm4, %v7591_v53  ;;  %vm11172_vm14 = vcmask 769024  }
 0xb4c   : > { %2601 = vst [vmem:[#allocation2 + $0x150] sm:$0xff] %v9175_v36  ;;  %6974 = vmatprep.subr.bf16.mxu1 %v6973_v22  ;;  %v6975_v37 = vpack.c.bf16 %v9175_v36, %v8834_v29  ;;  %vm11173_vm15 = vmmov %vm11172_vm14  ;;  %v11174_v29 = vmov 0 }
 0xb4d   : > { %v11175_v29 = vsel %vm9202_vm3, 4294967295, %v11174_v29 }
 0xb4e   : > { %v2627_v12 = vpop.permute.xlu0 %2626 }
 0xb4f   : > { %v9192_v41 = vsel %vm11172_vm14, %v2625_v3, %v2627_v12  ;;  %v2623_v51 = vpop.permute.xlu1 %2622  ;;  %6976 = vmatpush1.bf16.msra.mxu1 %v6975_v37  ;;  %vm9211_vm14 = vmpackc.low %vm11120_vm1, %vm2617_vm13  ;;  %vm11178_vm1 = vcmask 1043592  }
 0xb50   : > { %v2633_v19 = vsel %vm2618_vm9, %v9192_v41, 0.0  ;;  %v9196_v18 = vsel %vm11173_vm15, %v2623_v51, %v2625_v3  ;;  %6978 = vmatprep.subr.bf16.mxu1 %v8837_v45  ;;  %v7594_v32 = vpack.c.bf16 %v8839_v11, %v9192_v41  ;;  %v11176_v45 = vmov 0 }
 0xb51   : > { %2635 = vst [vmem:[#allocation2 + $0x188] sm:$0xff] %v2633_v19  ;;  %v2632_v28 = vsel %vm2617_vm13, %v9196_v18, 0.0  ;;  %v11177_v45 = vsel %vm9211_vm14, 4294967295, %v11176_v45  ;;  %v7597_v52 = vpack.c.bf16 %v8845_v27, %v9196_v18 }
 0xb52   : > { %2634 = vst [vmem:[#allocation2 + $0x180] sm:$0xff] %v2632_v28 }
 0xb53   : > { %6980 = vmatpush1.bf16.msra.mxu1 %v8842_v56 }
 0xb54   : > { %7595 = vmatprep.subr.msk.bf16.mxu1 %vm9202_vm3, %v7594_v32  ;;  %vm11180_vm3 = vcmask 134144  }
 0xb57   : > { %7598 = vmatpush1.bf16.msk.msra.mxu1 %vm9211_vm14, %v7597_v52  ;;  %vm11179_vm14 = vcmask 138240  }
 0xb58   : > { %2755 = vmatprep.subr.mxu1 %v8849_v49  ;;  %v2795_v49 = vld [vmem:[%s10963_s5] ss:$2 sm:$0x3] }
 0xb59   : > { %vm2796_vm15 = vcmp.gt.f32.partialorder %v2795_v49, 0.5 }
 0xb5a   : > { %v2797_v55 = vsel %vm2796_vm15, 1, %v7716_v1 }
 0xb5b   : > { %2756 = vmatpush1.msra.mxu1 %v8855_v16  ;;  %v2805_v40 = vrot.slane %v2797_v55, %v7839_v7  ;;  %v2801_v46 = vrot.slane %v2797_v55, %v7842_v9 }
 0xb5c   : > { %2768 = vmatmul.mubr.f32.vlgmr.msra.gmra.mrb[4].mxu1 %v8946_v4 }
 0xb5f   : > { %v2697_v11 = vpop.permute.xlu0 %2696 }
 0xc2f   : > { %v2769_v56 = vpop.f32.mrb[4].mxu1 }
 0xc30   : > { %v2770_v20 = vadd.f32 %v2769_v56, %v2697_v11  ;;  %v2771_v33 = vpop.f32.mrb[5].mxu1  ;;  %v9240_v56 = vld [vmem:[#allocation2 + $0x28] sm:$0xff] }
 0xc31   : > { %v2772_v62 = vadd.f32 %v2771_v33, %v2697_v11  ;;  %v6989_v33 = vpack.c.bf16 %v8964_v61, %v9240_v56 }
 0xc32   : > { %vm2774_vm9 = vcmp.ge.f32.partialorder %v2770_v20, 0.0  ;;  %v2776_v34 = vmul.f32 0.2, %v2770_v20 }
 0xc33   : > { %vm2775_vm13 = vcmp.ge.f32.partialorder %v2772_v62, 0.0  ;;  %v2777_v8 = vmul.f32 0.2, %v2772_v62 }
 0xc34   : > { %v2778_v30 = vsel %vm2774_vm9, %v2770_v20, %v2776_v34  ;;  %vm2807_vm9 = vcmp.eq.s32.totalorder %v2805_v40, 1 }
 0xc35   : > { %2782 = vrot.lane.b32.xlu1 %v2778_v30, %s7717_s28  ;;  %v2779_v27 = vsel %vm2775_vm13, %v2772_v62, %v2777_v8  ;;  %vm2806_vm13 = vcmp.eq.s32.totalorder %v2801_v46, 1  ;;  %v9251_v8 = vld [vmem:[#allocation2 + $0x20] sm:$0xff] }
 0xc36   : > { %2784 = vrot.lane.b32.xlu0 %v2779_v27, %s7717_s28 }
 0xca7   : > { %v2783_v16 = vpop.permute.xlu1 %2782 }
 0xca8   : > { %2790 = vst.msk [vmem:[#allocation3] sm:$0xf] %vm11178_vm1, %v2783_v16  ;;  %v2785_v4 = vpop.permute.xlu0 %2784 }
 0xca9   : > { %v2786_v23 = vsel %vm11179_vm14, %v2783_v16, %v2785_v4  ;;  %2792 = vst.msk [vmem:[#allocation3 + $0x10] sm:$0xf] %vm11180_vm3, %v2785_v4  ;;  %vm11181_vm3 = vcmask 719872  }
 0xcaa   : > { %2791 = vst [vmem:[#allocation3 + $0x8] sm:$0xf] %v2786_v23 }
 0xcaf   : > { %v2812_v10 = vld [vmem:[#allocation3] sm:$0xf] }
 0xcb0   : > { %2818 = vrot.lane.b32.xlu1 %v2812_v10, %s7718_s7  ;;  %v2814_v22 = vld [vmem:[#allocation3 + $0x10] sm:$0xf]  ;;  %v2793_v3 = vld [vmem:[#allocation3] sm:$0xf] }
 0xcb1   : > { %2822 = vrot.lane.b32.xlu0 %v2814_v22, %s7718_s7  ;;  %v2794_v47 = vld [vmem:[#allocation3 + $0x8] sm:$0xf]  ;;  %v2808_v37 = vsel %vm2806_vm13, %v2793_v3, 0.0  ;;  %v2832_v51 = vld [vmem:[#allocation3 + $0x10] sm:$0xf]  ;;  %vm11184_vm13 = vcmask 1031168  }
 0xcb2   : > { %v2809_v39 = vsel %vm2807_vm9, %v2794_v47, 0.0  ;;  %v2813_v53 = vld [vmem:[#allocation3 + $0x8] sm:$0xf]  ;;  %2810 = vst [vmem:[#allocation2 + $0x10] sm:$0xf] %v2808_v37  ;;  %v9277_v47 = vld [vmem:[%s10959_s1 + $0x28] sm:$0xff] }
 0xcb3   : > { %2811 = vst [vmem:[#allocation2 + $0x18] sm:$0xf] %v2809_v39  ;;  %v2831_v12 = vld [vmem:[#allocation3 + $0x8] sm:$0xf]  ;;  %v2830_v19 = vld [vmem:[#allocation3] sm:$0xf]  ;;  %v3095_v39 = vcombine.high %v9277_v47, %v9277_v47 }
 0xcb4   : > { %2820 = vrot.lane.b32.xlu1 %v2813_v53, %s7718_s7  ;;  %v2863_v32 = vld [vmem:[#allocation3] sm:$0xf]  ;;  %v2865_v11 = vld [vmem:[#allocation3 + $0x10] sm:$0xf]  ;;  %v2864_v34 = vld [vmem:[#allocation3 + $0x8] sm:$0xf] }
 0xcb5   : > { %2851 = vrot.lane.b32.xlu0 %v2831_v12, %s7720_s8  ;;  %v2896_v30 = vld [vmem:[#allocation3] sm:$0xf]  ;;  %v2898_v42 = vld [vmem:[#allocation3 + $0x10] sm:$0xf]  ;;  %v2915_v27 = vld [vmem:[#allocation3 + $0x8] sm:$0xf]  ;;  %6618 = vmatprep.mubr.msk.f32.mxu0 %vm11181_vm3, %v3095_v39 }
 0xcb6   : > { %v2914_v13 = vld [vmem:[#allocation3] sm:$0xf]  ;;  %v2916_v61 = vld [vmem:[#allocation3 + $0x10] sm:$0xf]  ;;  %v2948_v49 = vld [vmem:[#allocation3 + $0x8] sm:$0xf] }
 0xcb7   : > { %v2947_v16 = vld [vmem:[#allocation3] sm:$0xf]  ;;  %v2982_v23 = vld [vmem:[#allocation3 + $0x10] sm:$0xf]  ;;  %v2981_v55 = vld [vmem:[#allocation3 + $0x8] sm:$0xf] }
 0xcb8   : > { %2853 = vrot.lane.b32.xlu1 %v2832_v51, %s7720_s8  ;;  %v2980_v4 = vld [vmem:[#allocation3] sm:$0xf]  ;;  %v2999_v40 = vld [vmem:[#allocation3 + $0x8] sm:$0xf]  ;;  %v3000_v46 = vld [vmem:[#allocation3 + $0x10] sm:$0xf] }
 0xcb9   : > { %2849 = vrot.lane.b32.xlu0 %v2830_v19, %s7720_s8  ;;  %v3037_v52 = vld [vmem:[#allocation2 + $0x10] sm:$0xff]  ;;  %v6613_v3 = vld [vmem:[%s10963_s5 + $0x1] ss:$2 sm:$0x3]  ;;  %vm11185_vm3 = vmmov %vm11184_vm13 }
 0xcba   : > { %v3038_v28 = vld [vmem:[#allocation2 + $0x18] sm:$0xff]  ;;  %v7603_v62 = vpack.c.bf16 %v3037_v52, %v8889_v60  ;;  %v2998_v10 = vld [vmem:[#allocation3] sm:$0xf]  ;;  %v6617_v22 = vld [vmem:[%s10960_s2 + $0x14] sm:$0xf]  ;;  %vm2834_vm1 = vcmp.gt.f32.partialorder %v6613_v3, 0.5 }
 0xcbb   : > { %v7600_v20 = vpack.c.bf16 %v3038_v28, %v8875_v17  ;;  %v6991_v17 = vpack.c.bf16 %v8961_v44, %v9251_v8  ;;  %v2897_v60 = vld [vmem:[#allocation3 + $0x8] sm:$0xf]  ;;  %v2949_v44 = vld [vmem:[#allocation3 + $0x10] sm:$0xf]  ;;  %v2835_v37 = vsel %vm2834_vm1, 1, %v7716_v1 }
 0xcbc   : > { %2882 = vrot.lane.b32.xlu1 %v2863_v32, %s7721_s9  ;;  %v2866_v51 = vld [vmem:[%s10963_s5] ss:$2 sm:$0x3]  ;;  %v2843_v19 = vrot.slane %v2835_v37, %v7839_v7  ;;  %v2839_v32 = vrot.slane %v2835_v37, %v7842_v9 }
 0xcbd   : > { %2886 = vrot.lane.b32.xlu0 %v2865_v11, %s7721_s9  ;;  %7601 = vmatprep.subr.msk.bf16.mxu0 %vm8882_vm0, %v7600_v20  ;;  %vm11182_vm0 = vcmask 1039360   ;;  %vm2867_vm14 = vcmp.gt.f32.partialorder %v2866_v51, 0.5  ;;  %v2950_v51 = vld [vmem:[%s10963_s5] ss:$2 sm:$0x3] }
 0xcbe   : > { %7604 = vmatpush1.bf16.msk.msra.mxu0 %vm8896_vm12, %v7603_v62  ;;  %vm11183_vm12 = vmmov %vm11182_vm0  ;;  %vm2845_vm15 = vcmp.eq.s32.totalorder %v2843_v19, 1  ;;  %vm2844_vm9 = vcmp.eq.s32.totalorder %v2839_v32, 1  ;;  %v2868_v62 = vsel %vm2867_vm14, 1, %v7716_v1  ;;  %vm11186_vm14 = vcmask 916480  }
 0xcbf   : > { %6990 = vmatprep.subr.bf16.mxu0 %v6989_v33 }
 0xcc0   : > { %2884 = vrot.lane.b32.xlu1 %v2864_v34, %s7721_s9 }
 0xcc1   : > { %2902 = vrot.lane.b32.xlu0 %v2896_v30, %s7722_s10 }
 0xcc2   : > { %6992 = vmatpush1.bf16.msra.mxu0 %v6991_v17 }
 0xcc4   : > { %2906 = vrot.lane.b32.xlu1 %v2898_v42, %s7722_s10 }
 0xcc5   : > { %2904 = vrot.lane.b32.xlu0 %v2897_v60, %s7722_s10 }
 0xcc8   : > { %2933 = vrot.lane.b32.xlu1 %v2914_v13, %s7723_s11  ;;  %v2872_v13 = vrot.slane %v2868_v62, %v7842_v9 }
 0xcc9   : > { %2937 = vrot.lane.b32.xlu0 %v2916_v61, %s7723_s11  ;;  %v2876_v61 = vrot.slane %v2868_v62, %v7839_v7 }
 0xcca   : > { %vm2877_vm1 = vcmp.eq.s32.totalorder %v2872_v13, 1  ;;  %v7615_v13 = vpack.c.bf16 %v9026_v59, %v9328_v2 }
 0xccc   : > { %2935 = vrot.lane.b32.xlu1 %v2915_v27, %s7723_s11 }
 0xccd   : > { %2968 = vrot.lane.b32.xlu0 %v2948_v49, %s7724_s12  ;;  %v9298_v49 = vld [vmem:[#allocation2 + $0x58] sm:$0xff] }
 0xcd0   : > { %2970 = vrot.lane.b32.xlu1 %v2949_v44, %s7724_s12  ;;  %v9300_v44 = vld [vmem:[#allocation2 + $0x50] sm:$0xff] }
 0xcd1   : > { %2966 = vrot.lane.b32.xlu0 %v2947_v16, %s7724_s12 }
 0xcd4   : > { %2986 = vrot.lane.b32.xlu1 %v2980_v4, %s7725_s13 }
 0xcd5   : > { %2990 = vrot.lane.b32.xlu0 %v2982_v23, %s7725_s13 }
 0xcd8   : > { %2988 = vrot.lane.b32.xlu1 %v2981_v55, %s7725_s13  ;;  %v6614_v55 = vld [vmem:[%s10963_s5 + $0x1] ss:$2 sm:$0x3] }
 0xcd9   : > { %3019 = vrot.lane.b32.xlu0 %v2999_v40, %s7726_s14 }
 0xcdc   : > { %3021 = vrot.lane.b32.xlu1 %v3000_v46, %s7726_s14 }
 0xcdd   : > { %3017 = vrot.lane.b32.xlu0 %v2998_v10, %s7726_s14 }
 0xce0   : > { %3091 = vperm.xlu1 %7473, %v6617_v22  }
 0xd22   : > { %v2819_v53 = vpop.permute.xlu1 %2818 }
 0xd23   : > { %v2823_v12 = vpop.permute.xlu0 %2822 }
 0xd26   : > { %v2821_v28 = vpop.permute.xlu1 %2820 }
 0xd27   : > { %v2824_v52 = vsel %vm11182_vm0, %v2819_v53, %v2821_v28  ;;  %v2825_v11 = vsel %vm11183_vm12, %v2821_v28, %v2823_v12  ;;  %v2852_v20 = vpop.permute.xlu0 %2851  ;;  %vm2878_vm0 = vcmp.eq.s32.totalorder %v2876_v61, 1  ;;  %vm2918_vm12 = vcmp.gt.f32.partialorder %v6614_v55, 0.5 }
 0xd28   : > { %2828 = vst [vmem:[#allocation2 + $0x40] sm:$0xf] %v2824_v52  ;;  %2829 = vst [vmem:[#allocation2 + $0x48] sm:$0xf] %v2825_v11  ;;  %v2919_v28 = vsel %vm2918_vm12, 1, %v7716_v1  ;;  %v9313_v52 = vld [vmem:[#allocation2 + $0x88] sm:$0xff] }
 0xd29   : > { %vm11196_vm12 = vcmask 785408  }
 0xd2a   : > { %v2854_v33 = vpop.permute.xlu1 %2853 }
 0xd2b   : > { %v2856_v34 = vsel %vm11184_vm13, %v2852_v20, %v2854_v33  ;;  %v2850_v30 = vpop.permute.xlu0 %2849  ;;  %vm11188_vm13 = vcmask 908288  }
 0xd2c   : > { %v2860_v17 = vsel %vm2845_vm15, %v2856_v34, 0.0  ;;  %v2855_v42 = vsel %vm11185_vm3, %v2850_v30, %v2852_v20  ;;  %vm11187_vm15 = vmmov %vm11186_vm14  ;;  %v2923_v30 = vrot.slane %v2919_v28, %v7842_v9 }
 0xd2d   : > { %2862 = vst [vmem:[#allocation2 + $0x78] sm:$0xf] %v2860_v17  ;;  %v2859_v60 = vsel %vm2844_vm9, %v2855_v42, 0.0  ;;  %vm2951_vm9 = vcmp.gt.f32.partialorder %v2950_v51, 0.5  ;;  %vm11189_vm3 = vmmov %vm11188_vm13  ;;  %v2927_v17 = vrot.slane %v2919_v28, %v7839_v7  ;;  %v9363_v28 = vld [vmem:[#allocation2 + $0xe8] sm:$0xff] }
 0xd2e   : > { %2861 = vst [vmem:[#allocation2 + $0x70] sm:$0xf] %v2859_v60  ;;  %v2883_v27 = vpop.permute.xlu1 %2882 }
 0xd2f   : > { %v2887_v16 = vpop.permute.xlu0 %2886  ;;  %v3044_v4 = vld [vmem:[#allocation2 + $0x48] sm:$0xff]  ;;  %v3043_v23 = vld [vmem:[#allocation2 + $0x40] sm:$0xff] }
 0xd30   : > { %v6993_v40 = vpack.c.bf16 %v9298_v49, %v3044_v4  ;;  %v6995_v46 = vpack.c.bf16 %v9300_v44, %v3043_v23 }
 0xd32   : > { %v2885_v10 = vpop.permute.xlu1 %2884  ;;  %6994 = vmatprep.subr.bf16.mxu0 %v6993_v40 }
 0xd33   : > { %v2888_v22 = vsel %vm11186_vm14, %v2883_v27, %v2885_v10  ;;  %v2889_v39 = vsel %vm11187_vm15, %v2885_v10, %v2887_v16  ;;  %v2903_v3 = vpop.permute.xlu0 %2902  ;;  %6996 = vmatpush1.bf16.msra.mxu0 %v6995_v46  ;;  %v9342_v27 = vld [vmem:[#allocation2 + $0xb0] sm:$0xff]  ;;  %vm11197_vm15 = vmmov %vm11196_vm12 }
 0xd34   : > { %v2892_v53 = vsel %vm2877_vm1, %v2888_v22, 0.0  ;;  %v2893_v37 = vsel %vm2878_vm0, %v2889_v39, 0.0  ;;  %v3050_v12 = vld [vmem:[#allocation2 + $0x78] sm:$0xff]  ;;  %v6615_v22 = vld [vmem:[%s10963_s5 + $0x1] ss:$2 sm:$0x3] }
 0xd35   : > { %2894 = vst [vmem:[#allocation2 + $0xa0] sm:$0xf] %v2892_v53  ;;  %2895 = vst [vmem:[#allocation2 + $0xa8] sm:$0xf] %v2893_v37  ;;  %v3049_v19 = vld [vmem:[#allocation2 + $0x70] sm:$0xff]  ;;  %v7606_v20 = vpack.c.bf16 %v3050_v12, %v8986_v63  ;;  %v7612_v63 = vpack.c.bf16 %v9005_v25, %v9313_v52  ;;  %vm3002_vm14 = vcmp.gt.f32.partialorder %v6615_v22, 0.5 }
 0xd36   : > { %v2907_v32 = vpop.permute.xlu1 %2906  ;;  %v7609_v34 = vpack.c.bf16 %v3049_v19, %v8983_v38  ;;  %v2952_v38 = vsel %vm2951_vm9, 1, %v7716_v1 }
 0xd37   : > { %v2905_v11 = vpop.permute.xlu0 %2904  ;;  %7607 = vmatprep.subr.msk.bf16.mxu0 %vm9010_vm8, %v7606_v20  ;;  %vm9338_vm8 = vcmp.eq.s32.totalorder %v2923_v30, 1  ;;  %v2960_v59 = vrot.slane %v2952_v38, %v7839_v7  ;;  %v2956_v55 = vrot.slane %v2952_v38, %v7842_v9  ;;  %v3003_v30 = vsel %vm3002_vm14, 1, %v7716_v1 }
 0xd38   : > { %v2908_v33 = vsel %vm11188_vm13, %v2903_v3, %v2905_v11  ;;  %v2909_v62 = vsel %vm11189_vm3, %v2905_v11, %v2907_v32  ;;  %7610 = vmatpush1.bf16.msk.msra.mxu0 %vm9032_vm10, %v7609_v34  ;;  %vm9344_vm10 = vcmp.eq.s32.totalorder %v2927_v17, 1  ;;  %v9374_v17 = vld [vmem:[#allocation2 + $0x118] sm:$0xff]  ;;  %v3011_v25 = vrot.slane %v3003_v30, %v7839_v7 }
 0xd39   : > { %2912 = vst [vmem:[#allocation2 + $0xd0] sm:$0xf] %v2908_v33  ;;  %2913 = vst [vmem:[#allocation2 + $0xd8] sm:$0xf] %v2909_v62  ;;  %7613 = vmatprep.subr.msk.bf16.mxu0 %vm9046_vm11, %v7612_v63  ;;  %vm11194_vm11 = vcmask 900096   ;;  %vm2962_vm1 = vcmp.eq.s32.totalorder %v2960_v59, 1 }
 0xd3a   : > { %v2934_v42 = vpop.permute.xlu1 %2933  ;;  %vm2961_vm0 = vcmp.eq.s32.totalorder %v2956_v55, 1  ;;  %vm11200_vm3 = vcmask 769024  }
 0xd3b   : > { %v2938_v60 = vpop.permute.xlu0 %2937 }
 0xd3c   : > { %7616 = vmatpush1.bf16.msk.msra.mxu0 %vm9061_vm7, %v7615_v13  ;;  %v3056_v43 = vld [vmem:[#allocation2 + $0xa8] sm:$0xff]  ;;  %v3055_v61 = vld [vmem:[#allocation2 + $0xa0] sm:$0xff]  ;;  %vm11195_vm7 = vmmov %vm11194_vm11 }
 0xd3d   : > { %v7005_v4 = vpack.c.bf16 %v9332_v58, %v3056_v43  ;;  %v7007_v23 = vpack.c.bf16 %v9342_v27, %v3055_v61  ;;  %v3007_v61 = vrot.slane %v3003_v30, %v7842_v9 }
 0xd3e   : > { %v2936_v35 = vpop.permute.xlu1 %2935 }
 0xd3f   : > { %v2939_v40 = vsel %vm11194_vm11, %v2934_v42, %v2936_v35  ;;  %v2940_v46 = vsel %vm11195_vm7, %v2936_v35, %v2938_v60  ;;  %v2969_v10 = vpop.permute.xlu0 %2968  ;;  %7006 = vmatprep.subr.bf16.mxu0 %v7005_v4  ;;  %v9380_v60 = vld [vmem:[#allocation2 + $0x110] sm:$0xff]  ;;  %vm3012_vm13 = vcmp.eq.s32.totalorder %v3007_v61, 1  ;;  %v9388_v35 = vld [vmem:[#allocation2 + $0x148] sm:$0xff] }
 0xd40   : > { %v2943_v39 = vsel %vm9338_vm8, %v2939_v40, 0.0  ;;  %v2944_v3 = vsel %vm9344_vm10, %v2940_v46, 0.0  ;;  %7008 = vmatpush1.bf16.msra.mxu0 %v7007_v23  ;;  %v3062_v53 = vld [vmem:[#allocation2 + $0xd8] sm:$0xff]  ;;  %v3061_v37 = vld [vmem:[#allocation2 + $0xd0] sm:$0xff]  ;;  %vm11201_vm8 = vmmov %vm11200_vm3 }
 0xd41   : > { %2945 = vst [vmem:[#allocation2 + $0x100] sm:$0xf] %v2943_v39  ;;  %2946 = vst [vmem:[#allocation2 + $0x108] sm:$0xf] %v2944_v3  ;;  %v7009_v12 = vpack.c.bf16 %v3062_v53, %v9073_v14  ;;  %v7011_v51 = vpack.c.bf16 %v3061_v37, %v9070_v31  ;;  %v7618_v14 = vpack.c.bf16 %v9088_v26, %v9363_v28  ;;  %v9371_v31 = vld [vmem:[#allocation2 + $0xe0] sm:$0xff] }
 0xd42   : > { %v2971_v19 = vpop.permute.xlu1 %2970  ;;  %v7621_v42 = vpack.c.bf16 %v9102_v50, %v9371_v31  ;;  %v9400_v37 = vld [vmem:[#allocation2 + $0x140] sm:$0xff] }
 0xd43   : > { %v2973_v32 = vsel %vm11196_vm12, %v2969_v10, %v2971_v19  ;;  %v2967_v11 = vpop.permute.xlu0 %2966  ;;  %7010 = vmatprep.subr.bf16.mxu0 %v7009_v12  ;;  %v9404_v12 = vld [vmem:[#allocation2 + $0x178] sm:$0xff]  ;;  %vm11206_vm12 = vcmask 134144  }
 0xd44   : > { %v2977_v20 = vsel %vm2962_vm1, %v2973_v32, 0.0  ;;  %v2972_v33 = vsel %vm11197_vm15, %v2967_v11, %v2969_v10  ;;  %7012 = vmatpush1.bf16.msra.mxu0 %v7011_v51  ;;  %v7025_v10 = vpack.c.bf16 %v9156_v21, %v9388_v35  ;;  %vm11204_vm1 = vcmask 1043592  }
 0xd45   : > { %2979 = vst [vmem:[#allocation2 + $0x138] sm:$0xf] %v2977_v20  ;;  %v2976_v62 = vsel %vm2961_vm0, %v2972_v33, 0.0  ;;  %7619 = vmatprep.subr.msk.bf16.mxu0 %vm9110_vm6, %v7618_v14  ;;  %vm11198_vm6 = vcmask 777216   ;;  %v9416_v20 = vld [vmem:[#allocation2 + $0x1a8] sm:$0xff]  ;;  %v9419_v33 = vld [vmem:[#allocation2 + $0x1a0] sm:$0xff] }
 0xd46   : > { %2978 = vst [vmem:[#allocation2 + $0x130] sm:$0xf] %v2976_v62  ;;  %v2987_v34 = vpop.permute.xlu1 %2986  ;;  %vm11199_vm9 = vmmov %vm11198_vm6  ;;  %vm11205_vm0 = vcmask 138240  }
 0xd47   : > { %v2991_v63 = vpop.permute.xlu0 %2990 }
 0xd48   : > { %7622 = vmatpush1.bf16.msk.msra.mxu0 %vm9135_vm5, %v7621_v42  ;;  %v3068_v38 = vld [vmem:[#allocation2 + $0x108] sm:$0xff]  ;;  %v3067_v26 = vld [vmem:[#allocation2 + $0x100] sm:$0xff]  ;;  %vm3013_vm5 = vcmp.eq.s32.totalorder %v3011_v25, 1 }
 0xd49   : > { %v7017_v24 = vpack.c.bf16 %v9374_v17, %v3068_v38  ;;  %v7019_v13 = vpack.c.bf16 %v9380_v60, %v3067_v26  ;;  %v3190_v42 = vld [vmem:[%s10963_s5] ss:$2 sm:$0x3] }
 0xd4a   : > { %v2989_v43 = vpop.permute.xlu1 %2988  ;;  %vm3191_vm7 = vcmp.gt.f32.partialorder %v3190_v42, 0.5 }
 0xd4b   : > { %v2992_v16 = vsel %vm11198_vm6, %v2987_v34, %v2989_v43  ;;  %v2993_v50 = vsel %vm11199_vm9, %v2989_v43, %v2991_v63  ;;  %v3020_v4 = vpop.permute.xlu0 %3019  ;;  %7018 = vmatprep.subr.bf16.mxu0 %v7017_v24  ;;  %vm11207_vm6 = vcmask 719872  }
 0xd4c   : > { %2996 = vst [vmem:[#allocation2 + $0x160] sm:$0xf] %v2992_v16  ;;  %2997 = vst [vmem:[#allocation2 + $0x168] sm:$0xf] %v2993_v50  ;;  %7020 = vmatpush1.bf16.msra.mxu0 %v7019_v13  ;;  %v3074_v0 = vld [vmem:[#allocation2 + $0x138] sm:$0xff] }
 0xd4d   : > { %v3073_v23 = vld [vmem:[#allocation2 + $0x130] sm:$0xff]  ;;  %v7624_v46 = vpack.c.bf16 %v3074_v0, %v9130_v5  ;;  %v7027_v5 = vpack.c.bf16 %v9175_v36, %v9400_v37 }
 0xd4e   : > { %v3022_v59 = vpop.permute.xlu1 %3021  ;;  %v7627_v3 = vpack.c.bf16 %v3073_v23, %v9147_v15  ;;  %v9407_v15 = vld [vmem:[#allocation2 + $0x170] sm:$0xff] }
 0xd4f   : > { %v3024_v55 = vsel %vm11200_vm3, %v3020_v4, %v3022_v59  ;;  %v3018_v40 = vpop.permute.xlu0 %3017  ;;  %7625 = vmatprep.subr.msk.bf16.mxu0 %vm9161_vm2, %v7624_v46  ;;  %vm11202_vm2 = vnez %v11175_v29 }
 0xd50   : > { %v3028_v22 = vsel %vm3013_vm5, %v3024_v55, 0.0  ;;  %v3023_v39 = vsel %vm11201_vm8, %v3018_v40, %v3020_v4  ;;  %7628 = vmatpush1.bf16.msk.msra.mxu0 %vm9180_vm4, %v7627_v3  ;;  %vm11203_vm4 = vnez %v11177_v45 }
 0xd51   : > { %3030 = vst [vmem:[#allocation2 + $0x198] sm:$0xf] %v3028_v22  ;;  %v3027_v53 = vsel %vm3012_vm13, %v3023_v39, 0.0  ;;  %7026 = vmatprep.subr.bf16.mxu0 %v7025_v10  ;;  %vm11208_vm13 = vcmask 1039360  }
 0xd52   : > { %3029 = vst [vmem:[#allocation2 + $0x190] sm:$0xf] %v3027_v53  ;;  %v3476_v53 = vld [vmem:[#allocation2 + $0x8] sm:$0xff]  ;;  %vm11209_vm3 = vmmov %vm11208_vm13 }
 0xd53   : > { %v3080_v48 = vld [vmem:[#allocation2 + $0x168] sm:$0xff]  ;;  %v3079_v21 = vld [vmem:[#allocation2 + $0x160] sm:$0xff] }
 0xd54   : > { %7028 = vmatpush1.bf16.msra.mxu0 %v7027_v5  ;;  %v7029_v51 = vpack.c.bf16 %v9404_v12, %v3080_v48  ;;  %v7031_v54 = vpack.c.bf16 %v9407_v15, %v3079_v21 }
 0xd56   : > { %7030 = vmatprep.subr.bf16.mxu0 %v7029_v51 }
 0xd58   : > { %7032 = vmatpush1.bf16.msra.mxu0 %v7031_v54  ;;  %v3086_v19 = vld [vmem:[#allocation2 + $0x198] sm:$0xff] }
 0xd59   : > { %v3085_v32 = vld [vmem:[#allocation2 + $0x190] sm:$0xff]  ;;  %v7630_v11 = vpack.c.bf16 %v3086_v19, %v9192_v41  ;;  %v9442_v54 = vld [vmem:[#allocation2 + $0x38] sm:$0xff] }
 0xd5a   : > { %v7633_v36 = vpack.c.bf16 %v3085_v32, %v9196_v18 }
 0xd5b   : > { %7631 = vmatprep.subr.msk.bf16.mxu0 %vm11202_vm2, %v7630_v11  ;;  %v3475_v11 = vld [vmem:[#allocation2] sm:$0xff] }
 0xd5c   : > { %7634 = vmatpush1.bf16.msk.msra.mxu0 %vm11203_vm4, %v7633_v36  ;;  %vm11210_vm4 = vcmask 1031168  }
 0xd5d   : > { %3150 = vmatprep.subr.mxu0 %v9416_v20 }
 0xd5f   : > { %v3092_v62 = vpop.permute.xlu1 %3091 }
 0xd60   : > { %3151 = vmatpush1.msra.mxu0 %v9419_v33 }
 0xd61   : > { %3163 = vmatmul.mubr.f32.vlgmr.msra.gmra.mrb[6].mxu0 %v9277_v47  ;;  %v3192_v47 = vsel %vm3191_vm7, 1, %v7716_v1  ;;  %vm11212_vm7 = vcmask 916480  }
 0xd62   : > { %v3196_v13 = vrot.slane %v3192_v47, %v7842_v9  ;;  %v3200_v25 = vrot.slane %v3192_v47, %v7839_v7 }
 0xd64   : > { %vm3201_vm14 = vcmp.eq.s32.totalorder %v3196_v13, 1  ;;  %vm3202_vm15 = vcmp.eq.s32.totalorder %v3200_v25, 1 }
 0xe34   : > { %v3164_v41 = vpop.f32.mrb[6].mxu0 }
 0xe35   : > { %v3165_v14 = vadd.f32 %v3164_v41, %v3092_v62  ;;  %v3166_v29 = vpop.f32.mrb[7].mxu0 }
 0xe36   : > { %v3167_v34 = vadd.f32 %v3166_v29, %v3092_v62  ;;  %v7041_v62 = vpack.c.bf16 %v9442_v54, %v9240_v56 }
 0xe37   : > { %vm3169_vm10 = vcmp.ge.f32.partialorder %v3165_v14, 0.0  ;;  %v3171_v18 = vmul.f32 0.2, %v3165_v14 }
 0xe38   : > { %vm3170_vm11 = vcmp.ge.f32.partialorder %v3167_v34, 0.0  ;;  %v3172_v45 = vmul.f32 0.2, %v3167_v34 }
 0xe39   : > { %v3173_v30 = vsel %vm3169_vm10, %v3165_v14, %v3171_v18  ;;  %v9452_v14 = vld [vmem:[#allocation2 + $0x30] sm:$0xff]  ;;  %vm11211_vm10 = vmmov %vm11210_vm4 }
 0xe3a   : > { %3177 = vrot.lane.b32.xlu0 %v3173_v30, %s7717_s28  ;;  %v3174_v63 = vsel %vm3170_vm11, %v3167_v34, %v3172_v45  ;;  %v7043_v45 = vpack.c.bf16 %v9452_v14, %v9251_v8 }
 0xe3b   : > { %3179 = vrot.lane.b32.xlu1 %v3174_v63, %s7717_s28 }
 0xeac   : > { %v3178_v38 = vpop.permute.xlu0 %3177 }
 0xead   : > { %3185 = vst.msk [vmem:[#allocation3] sm:$0xf] %vm11204_vm1, %v3178_v38  ;;  %v3180_v26 = vpop.permute.xlu1 %3179 }
 0xeae   : > { %v3181_v24 = vsel %vm11205_vm0, %v3178_v38, %v3180_v26  ;;  %3187 = vst.msk [vmem:[#allocation3 + $0x10] sm:$0xf] %vm11206_vm12, %v3180_v26  ;;  %vm11213_vm12 = vmmov %vm11212_vm7 }
 0xeaf   : > { %3186 = vst [vmem:[#allocation3 + $0x8] sm:$0xf] %v3181_v24 }
 0xeb4   : > { %v3213_v43 = vld [vmem:[#allocation3] sm:$0xf] }
 0xeb5   : > { %v3188_v61 = vld [vmem:[#allocation3] sm:$0xf]  ;;  %v3219_v16 = vrot.slane %v3213_v43, 4  ;;  %v3215_v50 = vld [vmem:[#allocation3 + $0x10] sm:$0xf] }
 0xeb6   : > { %v3203_v4 = vsel %vm3201_vm14, %v3188_v61, 0.0  ;;  %v3235_v0 = vld [vmem:[#allocation3 + $0x8] sm:$0xf]  ;;  %v3221_v40 = vrot.slane %v3215_v50, 4  ;;  %v3234_v39 = vld [vmem:[#allocation3] sm:$0xf] }
 0xeb7   : > { %v3214_v23 = vld [vmem:[#allocation3 + $0x8] sm:$0xf]  ;;  %v3207_v59 = vrot.slane %v3203_v4, 4  ;;  %3222 = vrot.lane.b32.xlu0 %v3219_v16, %s7718_s7  ;;  %3255 = vrot.lane.b32.xlu1 %v3235_v0, %s7720_s8  ;;  %v3236_v3 = vld [vmem:[#allocation3 + $0x10] sm:$0xf]  ;;  %vm11214_vm14 = vcmask 908288  }
 0xeb8   : > { %v3189_v55 = vld [vmem:[#allocation3 + $0x8] sm:$0xf]  ;;  %v3220_v46 = vrot.slane %v3214_v23, 4  ;;  %v3275_v5 = vld [vmem:[#allocation3 + $0x10] sm:$0xf] }
 0xeb9   : > { %3211 = vst [vmem:[#allocation2 + $0x10] sm:$0xf0] %v3207_v59  ;;  %v3204_v10 = vsel %vm3202_vm15, %v3189_v55, 0.0  ;;  %v3274_v48 = vld [vmem:[#allocation3 + $0x8] sm:$0xf]  ;;  %v9480_v59 = vld [vmem:[%s10959_s1 + $0x30] sm:$0xff] }
 0xeba   : > { %v3208_v22 = vrot.slane %v3204_v10, 4  ;;  %v3312_v19 = vld [vmem:[#allocation3] sm:$0xf]  ;;  %v3313_v29 = vld [vmem:[#allocation3 + $0x8] sm:$0xf]  ;;  %v3535_v55 = vcombine.high %v9480_v59, %v9480_v59 }
 0xebb   : > { %3226 = vrot.lane.b32.xlu1 %v3221_v40, %s7718_s7  ;;  %3224 = vrot.lane.b32.xlu0 %v3220_v46, %s7718_s7  ;;  %v3318_v41 = vrot.slane %v3312_v19, 4  ;;  %v3273_v34 = vld [vmem:[#allocation3] sm:$0xf]  ;;  %v3314_v18 = vld [vmem:[#allocation3 + $0x10] sm:$0xf]  ;;  %v3319_v30 = vrot.slane %v3313_v29, 4 }
 0xebc   : > { %3212 = vst [vmem:[#allocation2 + $0x18] sm:$0xf0] %v3208_v22  ;;  %v3320_v56 = vrot.slane %v3314_v18, 4  ;;  %v3335_v63 = vld [vmem:[#allocation3 + $0x10] sm:$0xf]  ;;  %6624 = vmatprep.mubr.msk.f32.mxu1 %vm11207_vm6, %v3535_v55  ;;  %vm11215_vm6 = vmmov %vm11214_vm14 }
 0xebd   : > { %v3334_v42 = vld [vmem:[#allocation3 + $0x8] sm:$0xf]  ;;  %v3333_v38 = vld [vmem:[#allocation3] sm:$0xf]  ;;  %v3413_v26 = vld [vmem:[#allocation3 + $0x10] sm:$0xf] }
 0xebe   : > { %v3373_v47 = vld [vmem:[#allocation3 + $0x8] sm:$0xf]  ;;  %v3372_v8 = vld [vmem:[#allocation3] sm:$0xf]  ;;  %v3374_v24 = vld [vmem:[#allocation3 + $0x10] sm:$0xf] }
 0xebf   : > { %3253 = vrot.lane.b32.xlu1 %v3234_v39, %s7720_s8  ;;  %3257 = vrot.lane.b32.xlu0 %v3236_v3, %s7720_s8  ;;  %v3411_v13 = vld [vmem:[#allocation3] sm:$0xf]  ;;  %v3419_v25 = vrot.slane %v3413_v26, 4  ;;  %v3412_v61 = vld [vmem:[#allocation3 + $0x8] sm:$0xf]  ;;  %v3487_v55 = vld [vmem:[#allocation2 + $0x60] sm:$0xff] }
 0xec0   : > { %v3477_v21 = vld [vmem:[#allocation2 + $0x10] sm:$0xff]  ;;  %v3417_v43 = vrot.slane %v3411_v13, 4  ;;  %v3433_v16 = vld [vmem:[#allocation3 + $0x8] sm:$0xf]  ;;  %v3418_v50 = vrot.slane %v3412_v61, 4 }
 0xec1   : > { %v9446_v36 = vpack.c.bf16 %v3477_v21, %v3475_v11  ;;  %v3432_v4 = vld [vmem:[#allocation3] sm:$0xf]  ;;  %v3434_v0 = vld [vmem:[#allocation3 + $0x10] sm:$0xf]  ;;  %v6623_v23 = vld [vmem:[%s10960_s2 + $0x18] sm:$0xf] }
 0xec2   : > { %v6619_v40 = vld [vmem:[%s10963_s5 + $0x1] ss:$2 sm:$0x3]  ;;  %v3276_v46 = vld [vmem:[%s10963_s5] ss:$2 sm:$0x3] }
 0xec3   : > { %3296 = vrot.lane.b32.xlu1 %v3275_v5, %s7721_s9  ;;  %3294 = vrot.lane.b32.xlu0 %v3274_v48, %s7721_s9  ;;  %v3478_v51 = vld [vmem:[#allocation2 + $0x18] sm:$0xff]  ;;  %vm3238_vm9 = vcmp.gt.f32.partialorder %v6619_v40, 0.5  ;;  %vm3277_vm5 = vcmp.gt.f32.partialorder %v3276_v46, 0.5 }
 0xec4   : > { %v9444_v32 = vpack.c.bf16 %v3478_v51, %v3476_v53  ;;  %v3239_v39 = vsel %vm3238_vm9, 1, %v7716_v1  ;;  %v3278_v21 = vsel %vm3277_vm5, 1, %v7716_v1  ;;  %vm11216_vm5 = vcmask 900096  }
 0xec5   : > { %v3243_v3 = vrot.slane %v3239_v39, %v7842_v9  ;;  %v3247_v53 = vrot.slane %v3239_v39, %v7839_v7  ;;  %v3286_v11 = vrot.slane %v3278_v21, %v7839_v7 }
 0xec6   : > { %7038 = vmatprep.subr.bf16.mxu1 %v9444_v32  ;;  %7090 = vmatprep.subr.bf16.mxu0 %v9444_v32 }
 0xec7   : > { %7040 = vmatpush1.bf16.msra.mxu1 %v9446_v36  ;;  %7092 = vmatpush1.bf16.msra.mxu0 %v9446_v36  ;;  %vm3248_vm8 = vcmp.eq.s32.totalorder %v3243_v3, 1  ;;  %vm3249_vm2 = vcmp.eq.s32.totalorder %v3247_v53, 1  ;;  %vm3288_vm11 = vcmp.eq.s32.totalorder %v3286_v11, 1  ;;  %v9530_v11 = vld [vmem:[#allocation2 + $0x90] sm:$0xff] }
 0xec8   : > { %7042 = vmatprep.subr.bf16.mxu1 %v7041_v62  ;;  %3321 = vrot.lane.b32.xlu1 %v3318_v41, %s7722_s10 }
 0xec9   : > { %3292 = vrot.lane.b32.xlu0 %v3273_v34, %s7721_s9 }
 0xecb   : > { %7044 = vmatpush1.bf16.msra.mxu1 %v7043_v45 }
 0xecc   : > { %3323 = vrot.lane.b32.xlu1 %v3319_v30, %s7722_s10 }
 0xecd   : > { %3325 = vrot.lane.b32.xlu0 %v3320_v56, %s7722_s10 }
 0xed0   : > { %3356 = vrot.lane.b32.xlu1 %v3335_v63, %s7723_s11 }
 0xed1   : > { %3354 = vrot.lane.b32.xlu0 %v3334_v42, %s7723_s11 }
 0xed4   : > { %3393 = vrot.lane.b32.xlu1 %v3373_v47, %s7724_s12  ;;  %v6620_v47 = vld [vmem:[%s10963_s5 + $0x1] ss:$2 sm:$0x3] }
 0xed5   : > { %3352 = vrot.lane.b32.xlu0 %v3333_v38, %s7723_s11  ;;  %vm3337_vm1 = vcmp.gt.f32.partialorder %v6620_v47, 0.5 }
 0xed8   : > { %3391 = vrot.lane.b32.xlu1 %v3372_v8, %s7724_s12  ;;  %v3282_v8 = vrot.slane %v3278_v21, %v7842_v9 }
 0xed9   : > { %3395 = vrot.lane.b32.xlu0 %v3374_v24, %s7724_s12 }
 0xeda   : > { %vm3287_vm0 = vcmp.eq.s32.totalorder %v3282_v8, 1 }
 0xedc   : > { %3424 = vrot.lane.b32.xlu1 %v3419_v25, %s7725_s13 }
 0xedd   : > { %3420 = vrot.lane.b32.xlu0 %v3417_v43, %s7725_s13 }
 0xee0   : > { %3453 = vrot.lane.b32.xlu1 %v3433_v16, %s7726_s14 }
 0xee1   : > { %3422 = vrot.lane.b32.xlu0 %v3418_v50, %s7725_s13 }
 0xee4   : > { %3451 = vrot.lane.b32.xlu1 %v3432_v4, %s7726_s14  ;;  %v3338_v4 = vsel %vm3337_vm1, 1, %v7716_v1 }
 0xee5   : > { %3455 = vrot.lane.b32.xlu0 %v3434_v0, %s7726_s14  ;;  %v3346_v53 = vrot.slane %v3338_v4, %v7839_v7 }
 0xee7   : > { %vm3348_vm9 = vcmp.eq.s32.totalorder %v3346_v53, 1 }
 0xee9   : > { %3531 = vperm.xlu0 %7472, %v6623_v23   ;;  %v3488_v23 = vld [vmem:[#allocation2 + $0x68] sm:$0xff] }
 0xf29   : > { %v3223_v10 = vpop.permute.xlu0 %3222  ;;  %v3256_v22 = vpop.permute.xlu1 %3255 }
 0xf2d   : > { %v3227_v5 = vpop.permute.xlu1 %3226  ;;  %v3225_v48 = vpop.permute.xlu0 %3224 }
 0xf2e   : > { %v3228_v51 = vsel %vm11208_vm13, %v3223_v10, %v3225_v48  ;;  %v3229_v19 = vsel %vm11209_vm3, %v3225_v48, %v3227_v5  ;;  %v9518_v10 = vld [vmem:[#allocation2 + $0x98] sm:$0xff]  ;;  %vm11217_vm3 = vmmov %vm11216_vm5 }
 0xf2f   : > { %3232 = vst [vmem:[#allocation2 + $0x40] sm:$0xf0] %v3228_v51  ;;  %3233 = vst [vmem:[#allocation2 + $0x48] sm:$0xf0] %v3229_v19  ;;  %v7053_v19 = vpack.c.bf16 %v9518_v10, %v9313_v52 }
 0xf31   : > { %v3254_v62 = vpop.permute.xlu1 %3253  ;;  %v3258_v41 = vpop.permute.xlu0 %3257 }
 0xf32   : > { %v3259_v29 = vsel %vm11210_vm4, %v3254_v62, %v3256_v22  ;;  %v3260_v34 = vsel %vm11211_vm10, %v3256_v22, %v3258_v41  ;;  %vm11222_vm4 = vcmask 785408  }
 0xf33   : > { %v3263_v18 = vsel %vm3248_vm8, %v3259_v29, 0.0  ;;  %v3264_v45 = vsel %vm3249_vm2, %v3260_v34, 0.0  ;;  %v3342_v29 = vrot.slane %v3338_v4, %v7842_v9 }
 0xf34   : > { %v3267_v30 = vrot.slane %v3263_v18, 4  ;;  %v3268_v56 = vrot.slane %v3264_v45, 4  ;;  %v7055_v45 = vpack.c.bf16 %v9530_v11, %v9328_v2 }
 0xf35   : > { %v3297_v63 = vpop.permute.xlu1 %3296  ;;  %v3295_v42 = vpop.permute.xlu0 %3294  ;;  %vm3347_vm13 = vcmp.eq.s32.totalorder %v3342_v29, 1 }
 0xf36   : > { %3271 = vst [vmem:[#allocation2 + $0x70] sm:$0xf0] %v3267_v30  ;;  %3272 = vst [vmem:[#allocation2 + $0x78] sm:$0xf0] %v3268_v56  ;;  %v3299_v38 = vsel %vm11212_vm7, %v3295_v42, %v3297_v63  ;;  %v9505_v26 = vld [vmem:[#allocation2 + $0x48] sm:$0xff]  ;;  %v9507_v24 = vld [vmem:[#allocation2 + $0x40] sm:$0xff] }
 0xf37   : > { %v3303_v13 = vsel %vm3288_vm11, %v3299_v38, 0.0  ;;  %v7045_v25 = vpack.c.bf16 %v9298_v49, %v9505_v26  ;;  %v7047_v43 = vpack.c.bf16 %v9300_v44, %v9507_v24  ;;  %v3375_v49 = vld [vmem:[%s10963_s5] ss:$2 sm:$0x3]  ;;  %vm11223_vm11 = vmmov %vm11222_vm4  ;;  %vm11224_vm7 = vcmask 777216  }
 0xf38   : > { %v3307_v61 = vrot.slane %v3303_v13, 4  ;;  %vm3376_vm15 = vcmp.gt.f32.partialorder %v3375_v49, 0.5  ;;  %vm11225_vm1 = vmmov %vm11224_vm7 }
 0xf39   : > { %7046 = vmatprep.subr.bf16.mxu1 %v7045_v25  ;;  %v3377_v34 = vsel %vm3376_vm15, 1, %v7716_v1 }
 0xf3a   : > { %3311 = vst [vmem:[#allocation2 + $0xa8] sm:$0xf0] %v3307_v61  ;;  %v3322_v16 = vpop.permute.xlu1 %3321  ;;  %7048 = vmatpush1.bf16.msra.mxu1 %v7047_v43  ;;  %v3381_v63 = vrot.slane %v3377_v34, %v7842_v9  ;;  %v3385_v38 = vrot.slane %v3377_v34, %v7839_v7  ;;  %v6621_v61 = vld [vmem:[%s10963_s5 + $0x1] ss:$2 sm:$0x3] }
 0xf3b   : > { %v3293_v50 = vpop.permute.xlu0 %3292  ;;  %vm3436_vm10 = vcmp.gt.f32.partialorder %v6621_v61, 0.5  ;;  %v3512_v61 = vld [vmem:[#allocation2 + $0x128] sm:$0xff] }
 0xf3c   : > { %v3298_v0 = vsel %vm11213_vm12, %v3293_v50, %v3295_v42  ;;  %vm9552_vm8 = vcmp.eq.s32.totalorder %v3381_v63, 1  ;;  %vm9558_vm2 = vcmp.eq.s32.totalorder %v3385_v38, 1  ;;  %v3437_v34 = vsel %vm3436_vm10, 1, %v7716_v1 }
 0xf3d   : > { %v3302_v40 = vsel %vm3287_vm0, %v3298_v0, 0.0  ;;  %v3490_v44 = vld [vmem:[#allocation2 + $0x78] sm:$0xff]  ;;  %v3489_v46 = vld [vmem:[#allocation2 + $0x70] sm:$0xff]  ;;  %v3445_v63 = vrot.slane %v3437_v34, %v7839_v7  ;;  %vm11231_vm10 = vcmask 719872  }
 0xf3e   : > { %v3306_v22 = vrot.slane %v3302_v40, 4  ;;  %v3324_v39 = vpop.permute.xlu1 %3323  ;;  %v9520_v3 = vpack.c.bf16 %v3490_v44, %v3488_v23  ;;  %v9523_v5 = vpack.c.bf16 %v3489_v46, %v3487_v55  ;;  %v3499_v46 = vld [vmem:[#allocation2 + $0xc0] sm:$0xff] }
 0xf3f   : > { %v3327_v48 = vsel %vm11214_vm14, %v3322_v16, %v3324_v39  ;;  %v3326_v21 = vpop.permute.xlu0 %3325  ;;  %vm3447_vm12 = vcmp.eq.s32.totalorder %v3445_v63, 1  ;;  %vm11226_vm14 = vcmask 769024  }
 0xf40   : > { %3310 = vst [vmem:[#allocation2 + $0xa0] sm:$0xf0] %v3306_v22  ;;  %3331 = vst [vmem:[#allocation2 + $0xd0] sm:$0xf0] %v3327_v48  ;;  %v3328_v51 = vsel %vm11215_vm6, %v3324_v39, %v3326_v21  ;;  %7050 = vmatprep.subr.bf16.mxu1 %v9520_v3 }
 0xf41   : > { %3332 = vst [vmem:[#allocation2 + $0xd8] sm:$0xf0] %v3328_v51  ;;  %7052 = vmatpush1.bf16.msra.mxu1 %v9523_v5  ;;  %v9533_v62 = vld [vmem:[#allocation2 + $0xa8] sm:$0xff]  ;;  %vm11227_vm15 = vmmov %vm11226_vm14 }
 0xf42   : > { %v3357_v41 = vpop.permute.xlu1 %3356  ;;  %7054 = vmatprep.subr.bf16.mxu1 %v7053_v19  ;;  %v7057_v30 = vpack.c.bf16 %v9332_v58, %v9533_v62  ;;  %v3500_v58 = vld [vmem:[#allocation2 + $0xc8] sm:$0xff]  ;;  %v9575_v19 = vld [vmem:[#allocation2 + $0xf0] sm:$0xff] }
 0xf43   : > { %v3355_v18 = vpop.permute.xlu0 %3354 }
 0xf44   : > { %v3359_v52 = vsel %vm11216_vm5, %v3355_v18, %v3357_v41 }
 0xf45   : > { %v3363_v56 = vsel %vm3348_vm9, %v3359_v52, 0.0  ;;  %7056 = vmatpush1.bf16.msra.mxu1 %v7055_v45  ;;  %v7067_v52 = vpack.c.bf16 %v9575_v19, %v9371_v31 }
 0xf46   : > { %v3367_v42 = vrot.slane %v3363_v56, 4  ;;  %v3394_v47 = vpop.permute.xlu1 %3393  ;;  %7058 = vmatprep.subr.bf16.mxu1 %v7057_v30  ;;  %v3441_v30 = vrot.slane %v3437_v34, %v7842_v9  ;;  %v3524_v34 = vld [vmem:[#allocation2 + $0x188] sm:$0xff] }
 0xf47   : > { %v3353_v8 = vpop.permute.xlu0 %3352  ;;  %v9544_v13 = vld [vmem:[#allocation2 + $0xa0] sm:$0xff]  ;;  %v3501_v0 = vld [vmem:[#allocation2 + $0xd0] sm:$0xff] }
 0xf48   : > { %3371 = vst [vmem:[#allocation2 + $0x108] sm:$0xf0] %v3367_v42  ;;  %v3358_v2 = vsel %vm11217_vm3, %v3353_v8, %v3355_v18  ;;  %v7059_v25 = vpack.c.bf16 %v9342_v27, %v9544_v13  ;;  %v3502_v43 = vld [vmem:[#allocation2 + $0xd8] sm:$0xff]  ;;  %v9569_v53 = vpack.c.bf16 %v3501_v0, %v3499_v46  ;;  %vm3446_vm0 = vcmp.eq.s32.totalorder %v3441_v30, 1 }
 0xf49   : > { %v3362_v16 = vsel %vm3347_vm13, %v3358_v2, 0.0  ;;  %v9556_v4 = vpack.c.bf16 %v3502_v43, %v3500_v58  ;;  %v9562_v27 = vld [vmem:[#allocation2 + $0xf8] sm:$0xff]  ;;  %v3511_v2 = vld [vmem:[#allocation2 + $0x120] sm:$0xff]  ;;  %vm11228_vm13 = vcmask 1043592   ;;  %vm11229_vm3 = vcmask 138240  }
 0xf4a   : > { %v3366_v23 = vrot.slane %v3362_v16, 4  ;;  %v3392_v55 = vpop.permute.xlu1 %3391  ;;  %7060 = vmatpush1.bf16.msra.mxu1 %v7059_v25  ;;  %v7065_v51 = vpack.c.bf16 %v9562_v27, %v9363_v28  ;;  %v9596_v0 = vld [vmem:[#allocation2 + $0x158] sm:$0xff] }
 0xf4b   : > { %v3397_v40 = vsel %vm11222_vm4, %v3392_v55, %v3394_v47  ;;  %v3396_v44 = vpop.permute.xlu0 %3395  ;;  %7062 = vmatprep.subr.bf16.mxu1 %v9556_v4  ;;  %v7077_v46 = vpack.c.bf16 %v9596_v0, %v9388_v35 }
 0xf4c   : > { %3370 = vst [vmem:[#allocation2 + $0x100] sm:$0xf0] %v3366_v23  ;;  %v3401_v22 = vsel %vm9552_vm8, %v3397_v40, 0.0  ;;  %v3398_v39 = vsel %vm11223_vm11, %v3394_v47, %v3396_v44  ;;  %vm11230_vm8 = vcmask 134144  }
 0xf4d   : > { %v3405_v48 = vrot.slane %v3401_v22, 4  ;;  %v3402_v21 = vsel %vm9558_vm2, %v3398_v39, 0.0  ;;  %v9604_v22 = vld [vmem:[#allocation2 + $0x150] sm:$0xff] }
 0xf4e   : > { %v3406_v41 = vrot.slane %v3402_v21, 4  ;;  %v3425_v29 = vpop.permute.xlu1 %3424  ;;  %7064 = vmatpush1.bf16.msra.mxu1 %v9569_v53 }
 0xf4f   : > { %3409 = vst [vmem:[#allocation2 + $0x130] sm:$0xf0] %v3405_v48  ;;  %v3421_v18 = vpop.permute.xlu0 %3420  ;;  %7066 = vmatprep.subr.bf16.mxu1 %v7065_v51  ;;  %v9579_v45 = vld [vmem:[#allocation2 + $0x108] sm:$0xff]  ;;  %v7079_v48 = vpack.c.bf16 %v9604_v22, %v9400_v37 }
 0xf50   : > { %3410 = vst [vmem:[#allocation2 + $0x138] sm:$0xf0] %v3406_v41  ;;  %v7069_v28 = vpack.c.bf16 %v9374_v17, %v9579_v45  ;;  %v3523_v41 = vld [vmem:[#allocation2 + $0x180] sm:$0xff] }
 0xf52   : > { %v3454_v56 = vpop.permute.xlu1 %3453  ;;  %7068 = vmatpush1.bf16.msra.mxu1 %v7067_v52 }
 0xf53   : > { %v3423_v42 = vpop.permute.xlu0 %3422  ;;  %7070 = vmatprep.subr.bf16.mxu1 %v7069_v28  ;;  %v9587_v47 = vld [vmem:[#allocation2 + $0x100] sm:$0xff] }
 0xf54   : > { %v3426_v38 = vsel %vm11224_vm7, %v3421_v18, %v3423_v42  ;;  %v3427_v8 = vsel %vm11225_vm1, %v3423_v42, %v3425_v29  ;;  %v7071_v31 = vpack.c.bf16 %v9380_v60, %v9587_v47  ;;  %vm11232_vm1 = vcmask 1039360  }
 0xf55   : > { %3430 = vst [vmem:[#allocation2 + $0x160] sm:$0xf0] %v3426_v38  ;;  %3431 = vst [vmem:[#allocation2 + $0x168] sm:$0xf0] %v3427_v8 }
 0xf56   : > { %v3452_v17 = vpop.permute.xlu1 %3451  ;;  %7072 = vmatpush1.bf16.msra.mxu1 %v7071_v31  ;;  %v3513_v25 = vld [vmem:[#allocation2 + $0x130] sm:$0xff] }
 0xf57   : > { %v3457_v58 = vsel %vm11226_vm14, %v3452_v17, %v3454_v56  ;;  %v3456_v43 = vpop.permute.xlu0 %3455  ;;  %v3514_v16 = vld [vmem:[#allocation2 + $0x138] sm:$0xff]  ;;  %v9594_v50 = vpack.c.bf16 %v3513_v25, %v3511_v2 }
 0xf58   : > { %v3461_v23 = vsel %vm3446_vm0, %v3457_v58, 0.0  ;;  %v3458_v60 = vsel %vm11227_vm15, %v3454_v56, %v3456_v43  ;;  %v9599_v55 = vpack.c.bf16 %v3514_v16, %v3512_v61  ;;  %vm11233_vm0 = vmmov %vm11232_vm1  ;;  %vm11234_vm15 = vcmask 1031168  }
 0xf59   : > { %v3465_v49 = vrot.slane %v3461_v23, 4  ;;  %v3462_v40 = vsel %vm3447_vm12, %v3458_v60, 0.0 }
 0xf5a   : > { %v3466_v44 = vrot.slane %v3462_v40, 4  ;;  %7074 = vmatprep.subr.bf16.mxu1 %v9599_v55 }
 0xf5b   : > { %3469 = vst [vmem:[#allocation2 + $0x190] sm:$0xf0] %v3465_v49  ;;  %7076 = vmatpush1.bf16.msra.mxu1 %v9594_v50 }
 0xf5c   : > { %3470 = vst [vmem:[#allocation2 + $0x198] sm:$0xf0] %v3466_v44  ;;  %7078 = vmatprep.subr.bf16.mxu1 %v7077_v46  ;;  %v9607_v39 = vld [vmem:[#allocation2 + $0x168] sm:$0xff]  ;;  %v9613_v51 = vld [vmem:[#allocation2 + $0x160] sm:$0xff] }
 0xf5d   : > { %v7081_v21 = vpack.c.bf16 %v9404_v12, %v9607_v39  ;;  %v7083_v35 = vpack.c.bf16 %v9407_v15, %v9613_v51 }
 0xf5f   : > { %7080 = vmatpush1.bf16.msra.mxu1 %v7079_v48 }
 0xf60   : > { %7082 = vmatprep.subr.bf16.mxu1 %v7081_v21 }
 0xf62   : > { %v3525_v29 = vld [vmem:[#allocation2 + $0x190] sm:$0xff] }
 0xf63   : > { %7084 = vmatpush1.bf16.msra.mxu1 %v7083_v35  ;;  %v3526_v18 = vld [vmem:[#allocation2 + $0x198] sm:$0xff]  ;;  %v9617_v52 = vpack.c.bf16 %v3525_v29, %v3523_v41 }
 0xf64   : > { %v9619_v28 = vpack.c.bf16 %v3526_v18, %v3524_v34 }
 0xf66   : > { %7086 = vmatprep.subr.bf16.mxu1 %v9619_v28 }
 0xf67   : > { %7088 = vmatpush1.bf16.msra.mxu1 %v9617_v52 }
 0xf68   : > { %3590 = vmatprep.subr.mxu1 %v9416_v20  ;;  %v3532_v37 = vpop.permute.xlu0 %3531 }
 0xf6b   : > { %3591 = vmatpush1.msra.mxu1 %v9419_v33  ;;  %v3630_v33 = vld [vmem:[%s10963_s5] ss:$2 sm:$0x3] }
 0xf6c   : > { %3603 = vmatmul.mubr.f32.vlgmr.msra.gmra.mrb[6].mxu1 %v9480_v59  ;;  %7142 = vmatprep.subr.bf16.mxu1 %v9444_v32  ;;  %vm3631_vm5 = vcmp.gt.f32.partialorder %v3630_v33, 0.5 }
 0xf6d   : > { %7144 = vmatpush1.bf16.msra.mxu1 %v9446_v36  ;;  %v3632_v59 = vsel %vm3631_vm5, 1, %v7716_v1  ;;  %vm11236_vm5 = vcmask 916480  }
 0xf6e   : > { %v3636_v31 = vrot.slane %v3632_v59, %v7842_v9  ;;  %v3640_v17 = vrot.slane %v3632_v59, %v7839_v7  ;;  %v6629_v59 = vld [vmem:[%s10960_s2 + $0x1c] sm:$0xf] }
 0xf70   : > { %vm3641_vm2 = vcmp.eq.s32.totalorder %v3636_v31, 1  ;;  %vm3642_vm4 = vcmp.eq.s32.totalorder %v3640_v17, 1  ;;  %v6625_v31 = vld [vmem:[%s10963_s5 + $0x1] ss:$2 sm:$0x3] }
 0xf71   : > { %vm3669_vm11 = vcmp.gt.f32.partialorder %v6625_v31, 0.5  ;;  %v3701_v17 = vld [vmem:[%s10963_s5] ss:$2 sm:$0x3] }
 0xf72   : > { %vm3702_vm7 = vcmp.gt.f32.partialorder %v3701_v17, 0.5 }
0x103f   : > { %v3604_v12 = vpop.f32.mrb[6].mxu1 }
0x1040   : > { %v3605_v15 = vadd.f32 %v3604_v12, %v3532_v37  ;;  %v3606_v30 = vpop.f32.mrb[7].mxu1 }
0x1041   : > { %v3607_v56 = vadd.f32 %v3606_v30, %v3532_v37 }
0x1042   : > { %vm3609_vm6 = vcmp.ge.f32.partialorder %v3605_v15, 0.0  ;;  %v3611_v63 = vmul.f32 0.2, %v3605_v15 }
0x1043   : > { %vm3610_vm9 = vcmp.ge.f32.partialorder %v3607_v56, 0.0  ;;  %v3612_v42 = vmul.f32 0.2, %v3607_v56 }
0x1044   : > { %v3613_v38 = vsel %vm3609_vm6, %v3605_v15, %v3611_v63  ;;  %vm11235_vm6 = vmmov %vm11234_vm15 }
0x1045   : > { %3617 = vrot.lane.b32.xlu1 %v3613_v38, %s7717_s28  ;;  %v3614_v20 = vsel %vm3610_vm9, %v3607_v56, %v3612_v42 }
0x1046   : > { %3619 = vrot.lane.b32.xlu0 %v3614_v20, %s7717_s28 }
0x10b7   : > { %v3618_v32 = vpop.permute.xlu1 %3617 }
0x10b8   : > { %3625 = vst.msk [vmem:[#allocation3] sm:$0xf] %vm11228_vm13, %v3618_v32  ;;  %v3620_v36 = vpop.permute.xlu0 %3619 }
0x10b9   : > { %v3621_v8 = vsel %vm11229_vm3, %v3618_v32, %v3620_v36  ;;  %3627 = vst.msk [vmem:[#allocation3 + $0x10] sm:$0xf] %vm11230_vm8, %v3620_v36  ;;  %v9667_v36 = vld [vmem:[%s10959_s1 + $0x38] sm:$0xff]  ;;  %vm11237_vm8 = vmmov %vm11236_vm5 }
0x10ba   : > { %3626 = vst [vmem:[#allocation3 + $0x8] sm:$0xf] %v3621_v8  ;;  %v3930_v8 = vcombine.high %v9667_v36, %v9667_v36 }
0x10bc   : > { %6630 = vmatprep.mubr.msk.f32.mxu0 %vm11231_vm10, %v3930_v8 }
0x10bf   : > { %v3647_v2 = vld [vmem:[#allocation3] sm:$0xf] }
0x10c0   : > { %v3628_v25 = vld [vmem:[#allocation3] sm:$0xf]  ;;  %3653 = vrot.lane.b32.xlu1 %v3647_v2, %s7718_s7  ;;  %v3649_v58 = vld [vmem:[#allocation3 + $0x10] sm:$0xf] }
0x10c1   : > { %3657 = vrot.lane.b32.xlu0 %v3649_v58, %s7718_s7  ;;  %v3629_v43 = vld [vmem:[#allocation3 + $0x8] sm:$0xf]  ;;  %v3643_v61 = vsel %vm3641_vm2, %v3628_v25, 0.0  ;;  %v3665_v60 = vld [vmem:[#allocation3] sm:$0xf]  ;;  %v3670_v58 = vsel %vm3669_vm11, 1, %v7716_v1 }
0x10c2   : > { %v3648_v16 = vld [vmem:[#allocation3 + $0x8] sm:$0xf]  ;;  %v3644_v23 = vsel %vm3642_vm4, %v3629_v43, 0.0  ;;  %3645 = vst [vmem:[#allocation2 + $0x20] sm:$0xf] %v3643_v61  ;;  %v3674_v61 = vrot.slane %v3670_v58, %v7842_v9  ;;  %vm11238_vm4 = vcmask 908288  }
0x10c3   : > { %3646 = vst [vmem:[#allocation2 + $0x28] sm:$0xf] %v3644_v23  ;;  %v3667_v49 = vld [vmem:[#allocation3 + $0x10] sm:$0xf]  ;;  %v3666_v40 = vld [vmem:[#allocation3 + $0x8] sm:$0xf]  ;;  %vm11239_vm10 = vmmov %vm11238_vm4 }
0x10c4   : > { %3655 = vrot.lane.b32.xlu1 %v3648_v16, %s7718_s7  ;;  %v3699_v46 = vld [vmem:[#allocation3 + $0x8] sm:$0xf]  ;;  %v3700_v21 = vld [vmem:[#allocation3 + $0x10] sm:$0xf]  ;;  %v3698_v29 = vld [vmem:[#allocation3] sm:$0xf]  ;;  %v3678_v16 = vrot.slane %v3670_v58, %v7839_v7 }
0x10c5   : > { %3684 = vrot.lane.b32.xlu0 %v3665_v60, %s7720_s8  ;;  %v3731_v34 = vld [vmem:[#allocation3] sm:$0xf]  ;;  %v3733_v18 = vld [vmem:[#allocation3 + $0x10] sm:$0xf]  ;;  %v3732_v37 = vld [vmem:[#allocation3 + $0x8] sm:$0xf] }
0x10c6   : > { %v3750_v12 = vld [vmem:[#allocation3 + $0x8] sm:$0xf]  ;;  %v3784_v30 = vld [vmem:[#allocation3 + $0x10] sm:$0xf]  ;;  %v3782_v56 = vld [vmem:[#allocation3] sm:$0xf] }
0x10c7   : > { %v3783_v15 = vld [vmem:[#allocation3 + $0x8] sm:$0xf]  ;;  %v3817_v42 = vld [vmem:[#allocation3 + $0x10] sm:$0xf]  ;;  %v3815_v38 = vld [vmem:[#allocation3] sm:$0xf] }
0x10c8   : > { %3688 = vrot.lane.b32.xlu1 %v3667_v49, %s7720_s8  ;;  %v3816_v63 = vld [vmem:[#allocation3 + $0x8] sm:$0xf]  ;;  %v3835_v33 = vld [vmem:[#allocation3 + $0x10] sm:$0xf]  ;;  %v3833_v32 = vld [vmem:[#allocation3] sm:$0xf] }
0x10c9   : > { %3686 = vrot.lane.b32.xlu0 %v3666_v40, %s7720_s8  ;;  %v3874_v44 = vld [vmem:[#allocation2 + $0x20] sm:$0xff]  ;;  %v3834_v20 = vld [vmem:[#allocation3 + $0x8] sm:$0xf]  ;;  %v3703_v40 = vsel %vm3702_vm7, 1, %v7716_v1  ;;  %vm3679_vm12 = vcmp.eq.s32.totalorder %v3674_v61, 1  ;;  %vm3680_vm14 = vcmp.eq.s32.totalorder %v3678_v16, 1 }
0x10ca   : > { %v3875_v48 = vld [vmem:[#allocation2 + $0x28] sm:$0xff]  ;;  %v7095_v41 = vpack.c.bf16 %v9452_v14, %v3874_v44  ;;  %v3749_v14 = vld [vmem:[#allocation3] sm:$0xf]  ;;  %vm11240_vm7 = vcmask 900096  }
0x10cb   : > { %v7093_v35 = vpack.c.bf16 %v9442_v54, %v3875_v48  ;;  %v3751_v54 = vld [vmem:[#allocation3 + $0x10] sm:$0xf] }
0x10cc   : > { %3719 = vrot.lane.b32.xlu1 %v3699_v46, %s7721_s9  ;;  %v3711_v46 = vrot.slane %v3703_v40, %v7839_v7 }
0x10cd   : > { %3721 = vrot.lane.b32.xlu0 %v3700_v21, %s7721_s9  ;;  %7094 = vmatprep.subr.bf16.mxu0 %v7093_v35 }
0x10ce   : > { %7096 = vmatpush1.bf16.msra.mxu0 %v7095_v41  ;;  %vm3713_vm9 = vcmp.eq.s32.totalorder %v3711_v46, 1 }
0x10d0   : > { %3717 = vrot.lane.b32.xlu1 %v3698_v29, %s7721_s9 }
0x10d1   : > { %3737 = vrot.lane.b32.xlu0 %v3731_v34, %s7722_s10  ;;  %v3707_v34 = vrot.slane %v3703_v40, %v7842_v9 }
0x10d3   : > { %vm3712_vm3 = vcmp.eq.s32.totalorder %v3707_v34, 1 }
0x10d4   : > { %3741 = vrot.lane.b32.xlu1 %v3733_v18, %s7722_s10  ;;  %v6626_v18 = vld [vmem:[%s10963_s5 + $0x1] ss:$2 sm:$0x3] }
0x10d5   : > { %3739 = vrot.lane.b32.xlu0 %v3732_v37, %s7722_s10  ;;  %vm3753_vm13 = vcmp.gt.f32.partialorder %v6626_v18, 0.5 }
0x10d8   : > { %3770 = vrot.lane.b32.xlu1 %v3750_v12, %s7723_s11 }
0x10d9   : > { %3772 = vrot.lane.b32.xlu0 %v3751_v54, %s7723_s11 }
0x10dc   : > { %3768 = vrot.lane.b32.xlu1 %v3749_v14, %s7723_s11 }
0x10dd   : > { %3803 = vrot.lane.b32.xlu0 %v3783_v15, %s7724_s12 }
0x10e0   : > { %3805 = vrot.lane.b32.xlu1 %v3784_v30, %s7724_s12 }
0x10e1   : > { %3801 = vrot.lane.b32.xlu0 %v3782_v56, %s7724_s12 }
0x10e4   : > { %3823 = vrot.lane.b32.xlu1 %v3816_v63, %s7725_s13 }
0x10e5   : > { %3825 = vrot.lane.b32.xlu0 %v3817_v42, %s7725_s13 }
0x10e8   : > { %3821 = vrot.lane.b32.xlu1 %v3815_v38, %s7725_s13 }
0x10e9   : > { %3854 = vrot.lane.b32.xlu0 %v3834_v20, %s7726_s14 }
0x10ec   : > { %3856 = vrot.lane.b32.xlu1 %v3835_v33, %s7726_s14  ;;  %v3754_v33 = vsel %vm3753_vm13, 1, %v7716_v1 }
0x10ed   : > { %3852 = vrot.lane.b32.xlu0 %v3833_v32, %s7726_s14  ;;  %v3762_v31 = vrot.slane %v3754_v33, %v7839_v7  ;;  %v3758_v61 = vrot.slane %v3754_v33, %v7842_v9 }
0x10ef   : > { %vm3764_vm11 = vcmp.eq.s32.totalorder %v3762_v31, 1 }
0x10f0   : > { %3926 = vperm.xlu1 %7473, %v6629_v59  }
0x1132   : > { %v3654_v2 = vpop.permute.xlu1 %3653 }
0x1133   : > { %v3658_v25 = vpop.permute.xlu0 %3657 }
0x1136   : > { %v3656_v43 = vpop.permute.xlu1 %3655 }
0x1137   : > { %v3659_v23 = vsel %vm11232_vm1, %v3654_v2, %v3656_v43  ;;  %v3660_v60 = vsel %vm11233_vm0, %v3656_v43, %v3658_v25  ;;  %v3685_v49 = vpop.permute.xlu0 %3684  ;;  %vm3763_vm1 = vcmp.eq.s32.totalorder %v3758_v61, 1  ;;  %vm11241_vm0 = vmmov %vm11240_vm7 }
0x1138   : > { %3663 = vst [vmem:[#allocation2 + $0x50] sm:$0xf] %v3659_v23  ;;  %3664 = vst [vmem:[#allocation2 + $0x58] sm:$0xf] %v3660_v60 }
0x113a   : > { %v3689_v44 = vpop.permute.xlu1 %3688 }
0x113b   : > { %v3687_v48 = vpop.permute.xlu0 %3686 }
0x113c   : > { %v3690_v21 = vsel %vm11234_vm15, %v3685_v49, %v3687_v48  ;;  %v3691_v35 = vsel %vm11235_vm6, %v3687_v48, %v3689_v44  ;;  %vm11242_vm15 = vcmask 785408  }
0x113d   : > { %v3694_v41 = vsel %vm3679_vm12, %v3690_v21, 0.0  ;;  %v3695_v29 = vsel %vm3680_vm14, %v3691_v35, 0.0 }
0x113e   : > { %3696 = vst [vmem:[#allocation2 + $0x80] sm:$0xf] %v3694_v41  ;;  %3697 = vst [vmem:[#allocation2 + $0x88] sm:$0xf] %v3695_v29  ;;  %v3720_v37 = vpop.permute.xlu1 %3719 }
0x113f   : > { %v3722_v12 = vpop.permute.xlu0 %3721  ;;  %v3881_v54 = vld [vmem:[#allocation2 + $0x58] sm:$0xff]  ;;  %v3880_v14 = vld [vmem:[#allocation2 + $0x50] sm:$0xff]  ;;  %v6627_v29 = vld [vmem:[%s10963_s5 + $0x1] ss:$2 sm:$0x3] }
0x1140   : > { %v3724_v15 = vsel %vm11236_vm5, %v3720_v37, %v3722_v12  ;;  %v7097_v30 = vpack.c.bf16 %v3881_v54, %v9505_v26  ;;  %v7099_v56 = vpack.c.bf16 %v3880_v14, %v9507_v24  ;;  %v3785_v26 = vld [vmem:[%s10963_s5] ss:$2 sm:$0x3]  ;;  %vm3837_vm6 = vcmp.gt.f32.partialorder %v6627_v29, 0.5 }
0x1141   : > { %v3728_v63 = vsel %vm3713_vm9, %v3724_v15, 0.0  ;;  %vm3786_vm2 = vcmp.gt.f32.partialorder %v3785_v26, 0.5  ;;  %vm11243_vm9 = vmmov %vm11242_vm15  ;;  %vm11244_vm5 = vcmask 777216  }
0x1142   : > { %3730 = vst [vmem:[#allocation2 + $0xb8] sm:$0xf] %v3728_v63  ;;  %v3718_v42 = vpop.permute.xlu1 %3717  ;;  %7098 = vmatprep.subr.bf16.mxu0 %v7097_v30  ;;  %v3787_v23 = vsel %vm3786_vm2, 1, %v7716_v1  ;;  %v3838_v63 = vsel %vm3837_vm6, 1, %v7716_v1  ;;  %vm11245_vm13 = vmmov %vm11244_vm5  ;;  %vm11246_vm2 = vcmask 769024   ;;  %vm11251_vm6 = vcmask 719872  }
0x1143   : > { %v3723_v38 = vsel %vm11237_vm8, %v3718_v42, %v3720_v37  ;;  %v3738_v20 = vpop.permute.xlu0 %3737  ;;  %7100 = vmatpush1.bf16.msra.mxu0 %v7099_v56  ;;  %v3791_v48 = vrot.slane %v3787_v23, %v7842_v9  ;;  %v3846_v33 = vrot.slane %v3838_v63, %v7839_v7 }
0x1144   : > { %v3727_v32 = vsel %vm3712_vm3, %v3723_v38, 0.0  ;;  %7102 = vmatprep.subr.bf16.mxu0 %v9520_v3 }
0x1145   : > { %3729 = vst [vmem:[#allocation2 + $0xb0] sm:$0xf] %v3727_v32  ;;  %v3887_v24 = vld [vmem:[#allocation2 + $0x88] sm:$0xff]  ;;  %v3886_v17 = vld [vmem:[#allocation2 + $0x80] sm:$0xff]  ;;  %vm3796_vm14 = vcmp.eq.s32.totalorder %v3791_v48, 1  ;;  %vm3848_vm3 = vcmp.eq.s32.totalorder %v3846_v33, 1 }
0x1146   : > { %v3742_v59 = vpop.permute.xlu1 %3741  ;;  %v7105_v8 = vpack.c.bf16 %v9518_v10, %v3887_v24  ;;  %v7107_v58 = vpack.c.bf16 %v9530_v11, %v3886_v17  ;;  %v3795_v11 = vrot.slane %v3787_v23, %v7839_v7  ;;  %v4317_v33 = vld [vmem:[#allocation2 + $0x30] sm:$0xff] }
0x1147   : > { %v3740_v2 = vpop.permute.xlu0 %3739  ;;  %7104 = vmatpush1.bf16.msra.mxu0 %v9523_v5 }
0x1148   : > { %v3743_v25 = vsel %vm11238_vm4, %v3738_v20, %v3740_v2  ;;  %v3744_v3 = vsel %vm11239_vm10, %v3740_v2, %v3742_v59  ;;  %7106 = vmatprep.subr.bf16.mxu0 %v7105_v8  ;;  %vm3797_vm12 = vcmp.eq.s32.totalorder %v3795_v11, 1  ;;  %vm11247_vm4 = vmmov %vm11246_vm2 }
0x1149   : > { %3747 = vst [vmem:[#allocation2 + $0xe0] sm:$0xf] %v3743_v25  ;;  %3748 = vst [vmem:[#allocation2 + $0xe8] sm:$0xf] %v3744_v3  ;;  %v3893_v43 = vld [vmem:[#allocation2 + $0xb8] sm:$0xff] }
0x114a   : > { %v3771_v10 = vpop.permute.xlu1 %3770  ;;  %v7109_v16 = vpack.c.bf16 %v3893_v43, %v9533_v62 }
0x114b   : > { %v3773_v5 = vpop.permute.xlu0 %3772  ;;  %7108 = vmatpush1.bf16.msra.mxu0 %v7107_v58 }
0x114c   : > { %v3775_v60 = vsel %vm11240_vm7, %v3771_v10, %v3773_v5  ;;  %7110 = vmatprep.subr.bf16.mxu0 %v7109_v16  ;;  %v3892_v49 = vld [vmem:[#allocation2 + $0xb0] sm:$0xff] }
0x114d   : > { %v3779_v40 = vsel %vm3764_vm11, %v3775_v60, 0.0  ;;  %v7111_v44 = vpack.c.bf16 %v3892_v49, %v9544_v13 }
0x114e   : > { %3781 = vst [vmem:[#allocation2 + $0x118] sm:$0xf] %v3779_v40  ;;  %v3769_v46 = vpop.permute.xlu1 %3768 }
0x114f   : > { %v3774_v62 = vsel %vm11241_vm0, %v3769_v46, %v3771_v10  ;;  %v3804_v21 = vpop.permute.xlu0 %3803  ;;  %7112 = vmatpush1.bf16.msra.mxu0 %v7111_v44  ;;  %vm11249_vm0 = vcmask 138240  }
0x1150   : > { %v3778_v35 = vsel %vm3763_vm1, %v3774_v62, 0.0  ;;  %7114 = vmatprep.subr.bf16.mxu0 %v9556_v4  ;;  %v3899_v41 = vld [vmem:[#allocation2 + $0xe8] sm:$0xff]  ;;  %v3898_v18 = vld [vmem:[#allocation2 + $0xe0] sm:$0xff]  ;;  %vm11248_vm1 = vcmask 1043592  }
0x1151   : > { %3780 = vst [vmem:[#allocation2 + $0x110] sm:$0xf] %v3778_v35  ;;  %v7117_v13 = vpack.c.bf16 %v9562_v27, %v3899_v41  ;;  %v7119_v15 = vpack.c.bf16 %v9575_v19, %v3898_v18  ;;  %v3842_v19 = vrot.slane %v3838_v63, %v7842_v9 }
0x1152   : > { %v3806_v34 = vpop.permute.xlu1 %3805 }
0x1153   : > { %v3808_v37 = vsel %vm11242_vm15, %v3804_v21, %v3806_v34  ;;  %v3802_v12 = vpop.permute.xlu0 %3801  ;;  %7116 = vmatpush1.bf16.msra.mxu0 %v9569_v53  ;;  %vm3847_vm8 = vcmp.eq.s32.totalorder %v3842_v19, 1 }
0x1154   : > { %v3812_v54 = vsel %vm3797_vm12, %v3808_v37, 0.0  ;;  %v3807_v4 = vsel %vm11243_vm9, %v3802_v12, %v3804_v21  ;;  %7118 = vmatprep.subr.bf16.mxu0 %v7117_v13  ;;  %vm11250_vm12 = vcmask 134144  }
0x1155   : > { %3814 = vst [vmem:[#allocation2 + $0x148] sm:$0xf] %v3812_v54  ;;  %v3811_v14 = vsel %vm3796_vm14, %v3807_v4, 0.0  ;;  %v3905_v30 = vld [vmem:[#allocation2 + $0x118] sm:$0xff] }
0x1156   : > { %3813 = vst [vmem:[#allocation2 + $0x140] sm:$0xf] %v3811_v14  ;;  %v3824_v27 = vpop.permute.xlu1 %3823  ;;  %v7121_v56 = vpack.c.bf16 %v3905_v30, %v9579_v45 }
0x1157   : > { %v3826_v42 = vpop.permute.xlu0 %3825  ;;  %7120 = vmatpush1.bf16.msra.mxu0 %v7119_v15 }
0x1158   : > { %v3828_v53 = vsel %vm11244_vm5, %v3824_v27, %v3826_v42  ;;  %7122 = vmatprep.subr.bf16.mxu0 %v7121_v56  ;;  %v3904_v38 = vld [vmem:[#allocation2 + $0x110] sm:$0xff]  ;;  %v4318_v56 = vld [vmem:[#allocation2 + $0x38] sm:$0xff] }
0x1159   : > { %3832 = vst [vmem:[#allocation2 + $0x178] sm:$0xf] %v3828_v53  ;;  %v7123_v20 = vpack.c.bf16 %v3904_v38, %v9587_v47 }
0x115a   : > { %v3822_v32 = vpop.permute.xlu1 %3821 }
0x115b   : > { %v3827_v26 = vsel %vm11245_vm13, %v3822_v32, %v3824_v27  ;;  %v3855_v24 = vpop.permute.xlu0 %3854  ;;  %7124 = vmatpush1.bf16.msra.mxu0 %v7123_v20  ;;  %vm11252_vm13 = vcmask 1039360  }
0x115c   : > { %3831 = vst [vmem:[#allocation2 + $0x170] sm:$0xf] %v3827_v26  ;;  %7126 = vmatprep.subr.bf16.mxu0 %v9599_v55  ;;  %v3911_v45 = vld [vmem:[#allocation2 + $0x148] sm:$0xff] }
0x115d   : > { %v7129_v59 = vpack.c.bf16 %v9596_v0, %v3911_v45  ;;  %v3910_v31 = vld [vmem:[#allocation2 + $0x140] sm:$0xff] }
0x115e   : > { %v3857_v8 = vpop.permute.xlu1 %3856  ;;  %v7131_v55 = vpack.c.bf16 %v9604_v22, %v3910_v31 }
0x115f   : > { %v3859_v47 = vsel %vm11246_vm2, %v3855_v24, %v3857_v8  ;;  %v3853_v17 = vpop.permute.xlu0 %3852  ;;  %7128 = vmatpush1.bf16.msra.mxu0 %v9594_v50 }
0x1160   : > { %v3863_v2 = vsel %vm3848_vm3, %v3859_v47, 0.0  ;;  %v3858_v25 = vsel %vm11247_vm4, %v3853_v17, %v3855_v24  ;;  %7130 = vmatprep.subr.bf16.mxu0 %v7129_v59  ;;  %v3917_v3 = vld [vmem:[#allocation2 + $0x178] sm:$0xff]  ;;  %vm11253_vm3 = vmmov %vm11252_vm13  ;;  %vm11254_vm4 = vcmask 1031168  }
0x1161   : > { %3865 = vst [vmem:[#allocation2 + $0x1a8] sm:$0xf] %v3863_v2  ;;  %v3862_v58 = vsel %vm3847_vm8, %v3858_v25, 0.0  ;;  %v7133_v43 = vpack.c.bf16 %v3917_v3, %v9607_v39 }
0x1162   : > { %3864 = vst [vmem:[#allocation2 + $0x1a0] sm:$0xf] %v3862_v58 }
0x1163   : > { %7132 = vmatpush1.bf16.msra.mxu0 %v7131_v55  ;;  %v3916_v0 = vld [vmem:[#allocation2 + $0x170] sm:$0xff] }
0x1164   : > { %7134 = vmatprep.subr.bf16.mxu0 %v7133_v43  ;;  %v7135_v61 = vpack.c.bf16 %v3916_v0, %v9613_v51 }
0x1167   : > { %7136 = vmatpush1.bf16.msra.mxu0 %v7135_v61 }
0x1168   : > { %7138 = vmatprep.subr.bf16.mxu0 %v9619_v28  ;;  %v3923_v50 = vld [vmem:[#allocation2 + $0x1a8] sm:$0xff] }
0x1169   : > { %v3922_v10 = vld [vmem:[#allocation2 + $0x1a0] sm:$0xff] }
0x116b   : > { %7140 = vmatpush1.bf16.msra.mxu0 %v9617_v52  ;;  %v4025_v52 = vld [vmem:[%s10963_s5] ss:$2 sm:$0x3] }
0x116c   : > { %3985 = vmatprep.subr.mxu0 %v3923_v50  ;;  %vm4026_vm7 = vcmp.gt.f32.partialorder %v4025_v52, 0.5 }
0x116f   : > { %3986 = vmatpush1.msra.mxu0 %v3922_v10  ;;  %v3927_v22 = vpop.permute.xlu1 %3926 }
0x1170   : > { %3998 = vmatmul.mubr.f32.vlgmr.msra.gmra.mrb[8].mxu0 %v9667_v36  ;;  %v4027_v36 = vsel %vm4026_vm7, 1, %v7716_v1  ;;  %vm11258_vm7 = vcmask 916480  }
0x1171   : > { %v4031_v46 = vrot.slane %v4027_v36, %v7842_v9  ;;  %v4035_v48 = vrot.slane %v4027_v36, %v7839_v7 }
0x1173   : > { %vm4036_vm14 = vcmp.eq.s32.totalorder %v4031_v46, 1  ;;  %vm4037_vm15 = vcmp.eq.s32.totalorder %v4035_v48, 1 }
0x1243   : > { %v3999_v16 = vpop.f32.mrb[8].mxu0 }
0x1244   : > { %v4000_v39 = vadd.f32 %v3999_v16, %v3927_v22  ;;  %v4001_v23 = vpop.f32.mrb[9].mxu0 }
0x1245   : > { %v4002_v5 = vadd.f32 %v4001_v23, %v3927_v22  ;;  %v6635_v23 = vld [vmem:[%s10961_s3 + $0x18] sm:$0xff] }
0x1246   : > { %vm4004_vm10 = vcmp.ge.f32.partialorder %v4000_v39, 0.0  ;;  %v4006_v60 = vmul.f32 0.2, %v4000_v39  ;;  %6637 = vmatprep.mubr.msk.f32.mxu1 %vm11251_vm6, %v6635_v23  ;;  %v4329_v23 = vld [vmem:[#allocation2 + $0x90] sm:$0xff] }
0x1247   : > { %vm4005_vm11 = vcmp.ge.f32.partialorder %v4002_v5, 0.0  ;;  %v4007_v51 = vmul.f32 0.2, %v4002_v5 }
0x1248   : > { %v4008_v49 = vsel %vm4004_vm10, %v4000_v39, %v4006_v60  ;;  %v6636_v39 = vld [vmem:[%s10962_s4 + $0x8] sm:$0xff]  ;;  %v4111_v60 = vld [vmem:[%s10963_s5] ss:$2 sm:$0x3]  ;;  %vm11255_vm10 = vmmov %vm11254_vm4 }
0x1249   : > { %4012 = vrot.lane.b32.xlu0 %v4008_v49, %s7717_s28  ;;  %v4009_v28 = vsel %vm4005_vm11, %v4002_v5, %v4007_v51  ;;  %v6631_v5 = vld [vmem:[%s10963_s5 + $0x1] ss:$2 sm:$0x3]  ;;  %vm4112_vm5 = vcmp.gt.f32.partialorder %v4111_v60, 0.5 }
0x124a   : > { %4014 = vrot.lane.b32.xlu1 %v4009_v28, %s7717_s28  ;;  %vm4073_vm9 = vcmp.gt.f32.partialorder %v6631_v5, 0.5  ;;  %v4113_v48 = vsel %vm4112_vm5, 1, %v7716_v1  ;;  %vm11264_vm5 = vcmask 900096  }
0x124b   : > { %v4074_v49 = vsel %vm4073_vm9, 1, %v7716_v1 }
0x124c   : > { %v4082_v52 = vrot.slane %v4074_v49, %v7839_v7 }
0x124e   : > { %vm4084_vm8 = vcmp.eq.s32.totalorder %v4082_v52, 1 }
0x12bb   : > { %v4013_v40 = vpop.permute.xlu0 %4012 }
0x12bc   : > { %4020 = vst.msk [vmem:[#allocation3] sm:$0xf] %vm11248_vm1, %v4013_v40  ;;  %v4015_v44 = vpop.permute.xlu1 %4014 }
0x12bd   : > { %v4016_v11 = vsel %vm11249_vm0, %v4013_v40, %v4015_v44  ;;  %4022 = vst.msk [vmem:[#allocation3 + $0x10] sm:$0xf] %vm11250_vm12, %v4015_v44  ;;  %v4078_v40 = vrot.slane %v4074_v49, %v7842_v9  ;;  %vm11261_vm12 = vmmov %vm11258_vm7 }
0x12be   : > { %4021 = vst [vmem:[#allocation3 + $0x8] sm:$0xf] %v4016_v11 }
0x12bf   : > { %vm4083_vm2 = vcmp.eq.s32.totalorder %v4078_v40, 1  ;;  %v4332_v40 = vld [vmem:[#allocation2 + $0xa8] sm:$0xff] }
0x12c3   : > { %v4048_v62 = vld [vmem:[#allocation3] sm:$0xf] }
0x12c4   : > { %v4023_v21 = vld [vmem:[#allocation3] sm:$0xf]  ;;  %v4054_v35 = vrot.slane %v4048_v62, 4  ;;  %v4050_v41 = vld [vmem:[#allocation3 + $0x10] sm:$0xf] }
0x12c5   : > { %v4038_v29 = vsel %vm4036_vm14, %v4023_v21, 0.0  ;;  %v4056_v13 = vrot.slane %v4050_v41, 4  ;;  %v4049_v34 = vld [vmem:[#allocation3 + $0x8] sm:$0xf]  ;;  %v4071_v15 = vld [vmem:[#allocation3 + $0x10] sm:$0xf]  ;;  %v4121_v21 = vrot.slane %v4113_v48, %v7839_v7 }
0x12c6   : > { %v4042_v18 = vrot.slane %v4038_v29, 4  ;;  %4057 = vrot.lane.b32.xlu0 %v4054_v35, %s7718_s7  ;;  %v4024_v37 = vld [vmem:[#allocation3 + $0x8] sm:$0xf]  ;;  %v4055_v12 = vrot.slane %v4049_v34, 4  ;;  %v4069_v30 = vld [vmem:[#allocation3] sm:$0xf] }
0x12c7   : > { %4061 = vrot.lane.b32.xlu1 %v4056_v13, %s7718_s7  ;;  %v4039_v54 = vsel %vm4037_vm15, %v4024_v37, 0.0  ;;  %v4070_v14 = vld [vmem:[#allocation3 + $0x8] sm:$0xf]  ;;  %v4110_v42 = vld [vmem:[#allocation3 + $0x10] sm:$0xf]  ;;  %v4117_v37 = vrot.slane %v4113_v48, %v7842_v9  ;;  %vm9812_vm11 = vcmp.eq.s32.totalorder %v4121_v21, 1 }
0x12c8   : > { %4046 = vst [vmem:[#allocation2 + $0x20] sm:$0xf0] %v4042_v18  ;;  %v4043_v4 = vrot.slane %v4039_v54, 4  ;;  %v4109_v27 = vld [vmem:[#allocation3 + $0x8] sm:$0xf]  ;;  %vm11262_vm15 = vcmask 908288  }
0x12c9   : > { %v4147_v38 = vld [vmem:[#allocation3] sm:$0xf]  ;;  %v4149_v24 = vld [vmem:[#allocation3 + $0x10] sm:$0xf]  ;;  %v4148_v45 = vld [vmem:[#allocation3 + $0x8] sm:$0xf] }
0x12ca   : > { %4059 = vrot.lane.b32.xlu0 %v4055_v12, %s7718_s7  ;;  %4047 = vst [vmem:[#allocation2 + $0x28] sm:$0xf0] %v4043_v4  ;;  %v4108_v19 = vld [vmem:[#allocation3] sm:$0xf]  ;;  %v4153_v26 = vrot.slane %v4147_v38, 4  ;;  %v4155_v59 = vrot.slane %v4149_v24, 4  ;;  %vm11263_vm6 = vmmov %vm11262_vm15 }
0x12cb   : > { %4090 = vrot.lane.b32.xlu1 %v4070_v14, %s7720_s8  ;;  %v4154_v8 = vrot.slane %v4148_v45, 4  ;;  %v4169_v31 = vld [vmem:[#allocation3 + $0x8] sm:$0xf]  ;;  %v4170_v47 = vld [vmem:[#allocation3 + $0x10] sm:$0xf]  ;;  %vm9825_vm0 = vcmp.eq.s32.totalorder %v4117_v37, 1 }
0x12cc   : > { %v4168_v17 = vld [vmem:[#allocation3] sm:$0xf]  ;;  %v4208_v2 = vld [vmem:[#allocation3 + $0x8] sm:$0xf]  ;;  %v4209_v25 = vld [vmem:[#allocation3 + $0x10] sm:$0xf] }
0x12cd   : > { %v4247_v3 = vld [vmem:[#allocation3 + $0x8] sm:$0xf]  ;;  %v4207_v58 = vld [vmem:[#allocation3] sm:$0xf]  ;;  %v4248_v55 = vld [vmem:[#allocation3 + $0x10] sm:$0xf] }
0x12ce   : > { %4092 = vrot.lane.b32.xlu0 %v4071_v15, %s7720_s8  ;;  %v4253_v43 = vrot.slane %v4247_v3, 4  ;;  %v4254_v0 = vrot.slane %v4248_v55, 4  ;;  %v4246_v61 = vld [vmem:[#allocation3] sm:$0xf]  ;;  %v4268_v10 = vld [vmem:[#allocation3 + $0x8] sm:$0xf] }
0x12cf   : > { %4088 = vrot.lane.b32.xlu1 %v4069_v30, %s7720_s8  ;;  %v9762_v63 = vld [vmem:[#allocation2 + $0x20] sm:$0xff]  ;;  %v4252_v50 = vrot.slane %v4246_v61, 4  ;;  %v4267_v16 = vld [vmem:[#allocation3] sm:$0xf]  ;;  %v4320_v15 = vld [vmem:[#allocation2 + $0x48] sm:$0xff] }
0x12d0   : > { %v7147_v32 = vpack.c.bf16 %v4317_v33, %v9762_v63  ;;  %v4269_v22 = vld [vmem:[#allocation3 + $0x10] sm:$0xf]  ;;  %v9816_v38 = vld [vmem:[#allocation2 + $0x78] sm:$0xff]  ;;  %v4324_v24 = vld [vmem:[#allocation2 + $0x68] sm:$0xff] }
0x12d1   : > { %v9765_v53 = vld [vmem:[#allocation2 + $0x28] sm:$0xff]  ;;  %v6632_v12 = vld [vmem:[%s10963_s5 + $0x1] ss:$2 sm:$0x3] }
0x12d2   : > { %4129 = vrot.lane.b32.xlu0 %v4109_v27, %s7721_s9  ;;  %v7145_v20 = vpack.c.bf16 %v4318_v56, %v9765_v53  ;;  %v4319_v30 = vld [vmem:[#allocation2 + $0x40] sm:$0xff]  ;;  %vm4172_vm1 = vcmp.gt.f32.partialorder %v6632_v12, 0.5 }
0x12d3   : > { %4131 = vrot.lane.b32.xlu1 %v4110_v42, %s7721_s9  ;;  %v4323_v3 = vld [vmem:[#allocation2 + $0x60] sm:$0xff] }
0x12d4   : > { %7146 = vmatprep.subr.bf16.mxu1 %v7145_v20 }
0x12d5   : > { %7148 = vmatpush1.bf16.msra.mxu1 %v7147_v32 }
0x12d6   : > { %4127 = vrot.lane.b32.xlu0 %v4108_v19, %s7721_s9 }
0x12d7   : > { %4156 = vrot.lane.b32.xlu1 %v4153_v26, %s7722_s10  ;;  %v4335_v26 = vld [vmem:[#allocation2 + $0xc0] sm:$0xff] }
0x12da   : > { %4160 = vrot.lane.b32.xlu0 %v4155_v59, %s7722_s10 }
0x12db   : > { %4158 = vrot.lane.b32.xlu1 %v4154_v8, %s7722_s10  ;;  %v7153_v8 = vpack.c.bf16 %v9816_v38, %v4324_v24 }
0x12de   : > { %4189 = vrot.lane.b32.xlu0 %v4169_v31, %s7723_s11  ;;  %v9831_v31 = vld [vmem:[#allocation2 + $0x70] sm:$0xff] }
0x12df   : > { %4191 = vrot.lane.b32.xlu1 %v4170_v47, %s7723_s11 }
0x12e2   : > { %4187 = vrot.lane.b32.xlu0 %v4168_v17, %s7723_s11 }
0x12e3   : > { %4228 = vrot.lane.b32.xlu1 %v4208_v2, %s7724_s12  ;;  %v4173_v2 = vsel %vm4172_vm1, 1, %v7716_v1 }
0x12e4   : > { %v4177_v49 = vrot.slane %v4173_v2, %v7842_v9 }
0x12e6   : > { %4230 = vrot.lane.b32.xlu0 %v4209_v25, %s7724_s12 }
0x12e7   : > { %4226 = vrot.lane.b32.xlu1 %v4207_v58, %s7724_s12  ;;  %v4210_v58 = vld [vmem:[%s10963_s5] ss:$2 sm:$0x3] }
0x12e8   : > { %vm4211_vm14 = vcmp.gt.f32.partialorder %v4210_v58, 0.5 }
0x12e9   : > { %v4212_v52 = vsel %vm4211_vm14, 1, %v7716_v1  ;;  %vm11274_vm14 = vcmask 769024  }
0x12ea   : > { %4257 = vrot.lane.b32.xlu0 %v4253_v43, %s7725_s13  ;;  %v7155_v43 = vpack.c.bf16 %v9831_v31, %v4323_v3  ;;  %v4220_v21 = vrot.slane %v4212_v52, %v7839_v7 }
0x12eb   : > { %4259 = vrot.lane.b32.xlu1 %v4254_v0, %s7725_s13 }
0x12ee   : > { %4255 = vrot.lane.b32.xlu0 %v4252_v50, %s7725_s13  ;;  %v4330_v50 = vld [vmem:[#allocation2 + $0x98] sm:$0xff] }
0x12ef   : > { %4288 = vrot.lane.b32.xlu1 %v4268_v10, %s7726_s14  ;;  %v4181_v10 = vrot.slane %v4173_v2, %v7839_v7 }
0x12f1   : > { %vm4183_vm9 = vcmp.eq.s32.totalorder %v4181_v10, 1 }
0x12f2   : > { %4290 = vrot.lane.b32.xlu0 %v4269_v22, %s7726_s14 }
0x12f3   : > { %4286 = vrot.lane.b32.xlu1 %v4267_v16, %s7726_s14 }
0x12f6   : > { %4367 = vperm.xlu0 %7472, %v6636_v39  }
0x1338   : > { %v4058_v51 = vpop.permute.xlu0 %4057 }
0x1339   : > { %v4062_v28 = vpop.permute.xlu1 %4061 }
0x133c   : > { %v4060_v36 = vpop.permute.xlu0 %4059 }
0x133d   : > { %v4063_v44 = vsel %vm11252_vm13, %v4058_v51, %v4060_v36  ;;  %v4064_v11 = vsel %vm11253_vm3, %v4060_v36, %v4062_v28  ;;  %v4091_v46 = vpop.permute.xlu1 %4090  ;;  %vm9856_vm13 = vcmp.eq.s32.totalorder %v4177_v49, 1  ;;  %vm11267_vm3 = vmmov %vm11264_vm5  ;;  %v9897_v49 = vld [vmem:[#allocation2 + $0x138] sm:$0xff] }
0x133e   : > { %4067 = vst [vmem:[#allocation2 + $0x50] sm:$0xf0] %v4063_v44  ;;  %4068 = vst [vmem:[#allocation2 + $0x58] sm:$0xf0] %v4064_v11 }
0x1340   : > { %v4093_v62 = vpop.permute.xlu0 %4092 }
0x1341   : > { %v4095_v35 = vsel %vm11254_vm4, %v4091_v46, %v4093_v62  ;;  %v4089_v41 = vpop.permute.xlu1 %4088  ;;  %vm11270_vm4 = vcmask 785408   ;;  %v4348_v62 = vld [vmem:[#allocation2 + $0x128] sm:$0xff] }
0x1342   : > { %v4099_v29 = vsel %vm4084_vm8, %v4095_v35, 0.0  ;;  %v4094_v13 = vsel %vm11255_vm10, %v4089_v41, %v4091_v46  ;;  %v9861_v35 = vld [vmem:[#allocation2 + $0xd8] sm:$0xff]  ;;  %vm9877_vm8 = vcmp.eq.s32.totalorder %v4220_v21, 1  ;;  %v7177_v21 = vpack.c.bf16 %v9897_v49, %v4348_v62 }
0x1343   : > { %v4103_v34 = vrot.slane %v4099_v29, 4  ;;  %v4098_v18 = vsel %vm4083_vm2, %v4094_v13, 0.0  ;;  %v4331_v13 = vld [vmem:[#allocation2 + $0xa0] sm:$0xff] }
0x1344   : > { %v4102_v54 = vrot.slane %v4098_v18, 4  ;;  %v4130_v4 = vpop.permute.xlu0 %4129  ;;  %v4216_v18 = vrot.slane %v4212_v52, %v7842_v9  ;;  %v4343_v52 = vld [vmem:[#allocation2 + $0x100] sm:$0xff] }
0x1345   : > { %4107 = vst [vmem:[#allocation2 + $0x88] sm:$0xf0] %v4103_v34  ;;  %v4132_v27 = vpop.permute.xlu1 %4131  ;;  %v4322_v56 = vld [vmem:[#allocation2 + $0x58] sm:$0xff]  ;;  %v4321_v42 = vld [vmem:[#allocation2 + $0x50] sm:$0xff] }
0x1346   : > { %4106 = vst [vmem:[#allocation2 + $0x80] sm:$0xf0] %v4102_v54  ;;  %v4134_v20 = vsel %vm11258_vm7, %v4130_v4, %v4132_v27  ;;  %v9819_v33 = vpack.c.bf16 %v4322_v56, %v4320_v15  ;;  %v9821_v32 = vpack.c.bf16 %v4321_v42, %v4319_v30  ;;  %v9871_v30 = vld [vmem:[#allocation2 + $0xd0] sm:$0xff]  ;;  %v6633_v27 = vld [vmem:[%s10963_s5 + $0x1] ss:$2 sm:$0x3] }
0x1347   : > { %v4138_v19 = vsel %vm9812_vm11, %v4134_v20, 0.0  ;;  %vm4221_vm2 = vcmp.eq.s32.totalorder %v4216_v18, 1  ;;  %vm4271_vm10 = vcmp.gt.f32.partialorder %v6633_v27, 0.5  ;;  %vm11271_vm11 = vmmov %vm11270_vm4  ;;  %vm11272_vm7 = vcmask 777216   ;;  %v4354_v18 = vld [vmem:[#allocation2 + $0x158] sm:$0xff] }
0x1348   : > { %v4142_v45 = vrot.slane %v4138_v19, 4  ;;  %v4128_v59 = vpop.permute.xlu0 %4127  ;;  %7150 = vmatprep.subr.bf16.mxu1 %v9819_v33  ;;  %vm11273_vm1 = vmmov %vm11272_vm7 }
0x1349   : > { %v4133_v47 = vsel %vm11261_vm12, %v4128_v59, %v4130_v4  ;;  %v4157_v17 = vpop.permute.xlu1 %4156  ;;  %7152 = vmatpush1.bf16.msra.mxu1 %v9821_v32  ;;  %v4336_v4 = vld [vmem:[#allocation2 + $0xc8] sm:$0xff]  ;;  %v7167_v59 = vpack.c.bf16 %v9871_v30, %v4335_v26 }
0x134a   : > { %4146 = vst [vmem:[#allocation2 + $0xb8] sm:$0xf0] %v4142_v45  ;;  %v4137_v25 = vsel %vm9825_vm0, %v4133_v47, 0.0  ;;  %7154 = vmatprep.subr.bf16.mxu1 %v7153_v8  ;;  %v7165_v15 = vpack.c.bf16 %v9861_v35, %v4336_v4  ;;  %v4342_v8 = vld [vmem:[#allocation2 + $0xf8] sm:$0xff] }
0x134b   : > { %v4141_v55 = vrot.slane %v4137_v25, 4 }
0x134c   : > { %v4161_v0 = vpop.permute.xlu0 %4160  ;;  %v9842_v61 = vld [vmem:[#allocation2 + $0x88] sm:$0xff] }
0x134d   : > { %4145 = vst [vmem:[#allocation2 + $0xb0] sm:$0xf0] %v4141_v55  ;;  %v4159_v22 = vpop.permute.xlu1 %4158  ;;  %7156 = vmatpush1.bf16.msra.mxu1 %v7155_v43  ;;  %v7157_v16 = vpack.c.bf16 %v4330_v50, %v9842_v61  ;;  %v9846_v39 = vld [vmem:[#allocation2 + $0x80] sm:$0xff]  ;;  %v4272_v50 = vsel %vm4271_vm10, 1, %v7716_v1 }
0x134e   : > { %v4162_v5 = vsel %vm11262_vm15, %v4157_v17, %v4159_v22  ;;  %v4163_v60 = vsel %vm11263_vm6, %v4159_v22, %v4161_v0  ;;  %v7159_v51 = vpack.c.bf16 %v4329_v23, %v9846_v39  ;;  %v4341_v0 = vld [vmem:[#allocation2 + $0xf0] sm:$0xff]  ;;  %vm11275_vm15 = vmmov %vm11274_vm14 }
0x134f   : > { %4166 = vst [vmem:[#allocation2 + $0xe0] sm:$0xf0] %v4162_v5  ;;  %4167 = vst [vmem:[#allocation2 + $0xe8] sm:$0xf0] %v4163_v60  ;;  %7158 = vmatprep.subr.bf16.mxu1 %v7157_v16  ;;  %v4344_v16 = vld [vmem:[#allocation2 + $0x108] sm:$0xff] }
0x1350   : > { %v4190_v28 = vpop.permute.xlu0 %4189 }
0x1351   : > { %v4192_v36 = vpop.permute.xlu1 %4191  ;;  %7160 = vmatpush1.bf16.msra.mxu1 %v7159_v51  ;;  %v4334_v44 = vld [vmem:[#allocation2 + $0xb8] sm:$0xff]  ;;  %v4280_v51 = vrot.slane %v4272_v50, %v7839_v7 }
0x1352   : > { %v4194_v11 = vsel %vm11264_vm5, %v4190_v28, %v4192_v36  ;;  %v9854_v46 = vpack.c.bf16 %v4334_v44, %v4332_v40  ;;  %v4276_v40 = vrot.slane %v4272_v50, %v7842_v9  ;;  %v4359_v50 = vld [vmem:[#allocation2 + $0x180] sm:$0xff]  ;;  %vm11276_vm5 = vcmask 1047688  }
0x1353   : > { %v4198_v48 = vsel %vm4183_vm9, %v4194_v11, 0.0  ;;  %vm4282_vm0 = vcmp.eq.s32.totalorder %v4280_v51, 1 }
0x1354   : > { %v4202_v41 = vrot.slane %v4198_v48, 4  ;;  %v4188_v29 = vpop.permute.xlu0 %4187  ;;  %7162 = vmatprep.subr.bf16.mxu1 %v9854_v46  ;;  %v4333_v34 = vld [vmem:[#allocation2 + $0xb0] sm:$0xff]  ;;  %vm4281_vm12 = vcmp.eq.s32.totalorder %v4276_v40, 1 }
0x1355   : > { %v4193_v37 = vsel %vm11267_vm3, %v4188_v29, %v4190_v28  ;;  %v4229_v12 = vpop.permute.xlu1 %4228  ;;  %v9866_v54 = vpack.c.bf16 %v4333_v34, %v4331_v13  ;;  %v4347_v13 = vld [vmem:[#allocation2 + $0x120] sm:$0xff] }
0x1356   : > { %4206 = vst [vmem:[#allocation2 + $0x118] sm:$0xf0] %v4202_v41  ;;  %v4197_v14 = vsel %vm9856_vm13, %v4193_v37, 0.0  ;;  %v9881_v20 = vld [vmem:[#allocation2 + $0xe8] sm:$0xff]  ;;  %v9889_v25 = vld [vmem:[#allocation2 + $0xe0] sm:$0xff]  ;;  %v9905_v41 = vld [vmem:[#allocation2 + $0x130] sm:$0xff] }
0x1357   : > { %v4201_v56 = vrot.slane %v4197_v14, 4  ;;  %7164 = vmatpush1.bf16.msra.mxu1 %v9866_v54  ;;  %v7169_v2 = vpack.c.bf16 %v4342_v8, %v9881_v20  ;;  %v7171_v22 = vpack.c.bf16 %v4341_v0, %v9889_v25  ;;  %v7179_v4 = vpack.c.bf16 %v9905_v41, %v4347_v13  ;;  %v4356_v8 = vld [vmem:[#allocation2 + $0x168] sm:$0xff]  ;;  %v9925_v0 = vld [vmem:[#allocation2 + $0x190] sm:$0xff] }
0x1358   : > { %v4231_v19 = vpop.permute.xlu0 %4230  ;;  %7166 = vmatprep.subr.bf16.mxu1 %v7165_v15  ;;  %vm11277_vm13 = vcmask 138240  }
0x1359   : > { %4205 = vst [vmem:[#allocation2 + $0x110] sm:$0xf0] %v4201_v56  ;;  %v4233_v24 = vsel %vm11270_vm4, %v4229_v12, %v4231_v19  ;;  %v4227_v45 = vpop.permute.xlu1 %4226  ;;  %vm11278_vm3 = vmmov %vm11277_vm13 }
0x135a   : > { %v4237_v47 = vsel %vm9877_vm8, %v4233_v24, 0.0  ;;  %v4232_v17 = vsel %vm11271_vm11, %v4227_v45, %v4229_v12  ;;  %v4353_v45 = vld [vmem:[#allocation2 + $0x150] sm:$0xff]  ;;  %vm11284_vm11 = vcmask 719872  }
0x135b   : > { %v4241_v3 = vrot.slane %v4237_v47, 4  ;;  %v4236_v58 = vsel %vm4221_vm2, %v4232_v17, 0.0  ;;  %7168 = vmatpush1.bf16.msra.mxu1 %v7167_v59  ;;  %vm11279_vm2 = vmmov 1  }
0x135c   : > { %v4240_v55 = vrot.slane %v4236_v58, 4  ;;  %v4258_v43 = vpop.permute.xlu0 %4257  ;;  %7170 = vmatprep.subr.bf16.mxu1 %v7169_v2  ;;  %v9919_v2 = vld [vmem:[#allocation2 + $0x198] sm:$0xff] }
0x135d   : > { %4245 = vst [vmem:[#allocation2 + $0x148] sm:$0xf0] %v4241_v3  ;;  %v4260_v10 = vpop.permute.xlu1 %4259  ;;  %v4346_v23 = vld [vmem:[#allocation2 + $0x118] sm:$0xff]  ;;  %v4355_v3 = vld [vmem:[#allocation2 + $0x160] sm:$0xff] }
0x135e   : > { %4244 = vst [vmem:[#allocation2 + $0x140] sm:$0xf0] %v4240_v55  ;;  %v4262_v5 = vsel %vm11272_vm7, %v4258_v43, %v4260_v10  ;;  %v9894_v60 = vpack.c.bf16 %v4346_v23, %v4344_v16  ;;  %v4360_v55 = vld [vmem:[#allocation2 + $0x188] sm:$0xff]  ;;  %v7191_v10 = vpack.c.bf16 %v9925_v0, %v4359_v50  ;;  %v6634_v16 = vld [vmem:[%s10961_s3 + $0x10] sm:$0xff] }
0x135f   : > { %4266 = vst [vmem:[#allocation2 + $0x178] sm:$0xf0] %v4262_v5  ;;  %7172 = vmatpush1.bf16.msra.mxu1 %v7171_v22 }
0x1360   : > { %v4256_v28 = vpop.permute.xlu0 %4255  ;;  %7174 = vmatprep.subr.bf16.mxu1 %v9894_v60  ;;  %v4345_v36 = vld [vmem:[#allocation2 + $0x110] sm:$0xff] }
0x1361   : > { %v4261_v44 = vsel %vm11273_vm1, %v4256_v28, %v4258_v43  ;;  %v4289_v11 = vpop.permute.xlu1 %4288  ;;  %v9902_v48 = vpack.c.bf16 %v4345_v36, %v4343_v52  ;;  %v7189_v43 = vpack.c.bf16 %v9919_v2, %v4360_v55  ;;  %v4534_v55 = vld [vmem:[%s10963_s5] ss:$2 sm:$0x3] }
0x1362   : > { %4265 = vst [vmem:[#allocation2 + $0x170] sm:$0xf0] %v4261_v44  ;;  %vm4535_vm1 = vcmp.gt.f32.partialorder %v4534_v55, 0.5 }
0x1363   : > { %7176 = vmatpush1.bf16.msra.mxu1 %v9902_v48 }
0x1364   : > { %v4291_v29 = vpop.permute.xlu0 %4290  ;;  %7178 = vmatprep.subr.bf16.mxu1 %v7177_v21  ;;  %v9908_v34 = vld [vmem:[#allocation2 + $0x148] sm:$0xff]  ;;  %v4463_v21 = vld [vmem:[%s10963_s5] ss:$2 sm:$0x3] }
0x1365   : > { %v4293_v37 = vsel %vm11274_vm14, %v4289_v11, %v4291_v29  ;;  %v4287_v12 = vpop.permute.xlu1 %4286  ;;  %v7181_v14 = vpack.c.bf16 %v4354_v18, %v9908_v34  ;;  %v9914_v56 = vld [vmem:[#allocation2 + $0x140] sm:$0xff]  ;;  %vm4464_vm6 = vcmp.gt.f32.partialorder %v4463_v21, 0.5 }
0x1366   : > { %v4297_v15 = vsel %vm4282_vm0, %v4293_v37, 0.0  ;;  %v4292_v27 = vsel %vm11275_vm15, %v4287_v12, %v4289_v11  ;;  %v4358_v26 = vld [vmem:[#allocation2 + $0x178] sm:$0xff]  ;;  %v7183_v59 = vpack.c.bf16 %v4353_v45, %v9914_v56  ;;  %v4465_v29 = vsel %vm4464_vm6, 1, %v7716_v1 }
0x1367   : > { %v4301_v42 = vrot.slane %v4297_v15, 4  ;;  %v4296_v19 = vsel %vm4281_vm12, %v4292_v27, 0.0  ;;  %7180 = vmatpush1.bf16.msra.mxu1 %v7179_v4  ;;  %v9917_v47 = vpack.c.bf16 %v4358_v26, %v4356_v8  ;;  %v4473_v13 = vrot.slane %v4465_v29, %v7839_v7  ;;  %v4706_v4 = vld [vmem:[#allocation2 + $0x18] sm:$0xff]  ;;  %v4705_v26 = vld [vmem:[#allocation2 + $0x10] sm:$0xff]  ;;  %v10026_v8 = vld [vmem:[%s10959_s1 + $0x40] sm:$0xff] }
0x1368   : > { %v4300_v24 = vrot.slane %v4296_v19, 4  ;;  %7182 = vmatprep.subr.bf16.mxu1 %v7181_v14  ;;  %v4469_v37 = vrot.slane %v4465_v29, %v7842_v9  ;;  %vm11285_vm0 = vcmask 1039360   ;;  %vm11291_vm6 = vcmask 1031168  }
0x1369   : > { %4305 = vst [vmem:[#allocation2 + $0x1a8] sm:$0xf0] %v4301_v42  ;;  %v4357_v17 = vld [vmem:[#allocation2 + $0x170] sm:$0xff]  ;;  %vm4475_vm9 = vcmp.eq.s32.totalorder %v4473_v13, 1  ;;  %vm11286_vm12 = vmmov %vm11285_vm0 }
0x136a   : > { %4304 = vst [vmem:[#allocation2 + $0x1a0] sm:$0xf0] %v4300_v24  ;;  %v9922_v58 = vpack.c.bf16 %v4357_v17, %v4355_v3  ;;  %vm4474_vm8 = vcmp.eq.s32.totalorder %v4469_v37, 1  ;;  %vm9962_vm4 = vmpackc.low %vm11279_vm2, %vm4475_vm9  ;;  %v4763_v17 = vcombine.high %v10026_v8, %v10026_v8  ;;  %v6638_v3 = vld [vmem:[%s10963_s5 + $0x1] ss:$2 sm:$0x3] }
0x136b   : > { %7184 = vmatpush1.bf16.msra.mxu1 %v7183_v59  ;;  %vm9976_vm10 = vmpackc.low %vm11279_vm2, %vm4474_vm8  ;;  %v6642_v59 = vld [vmem:[%s10960_s2 + $0x20] sm:$0xf]  ;;  %vm4502_vm7 = vcmp.gt.f32.partialorder %v6638_v3, 0.5 }
0x136c   : > { %7186 = vmatprep.subr.bf16.mxu1 %v9917_v47  ;;  %6643 = vmatprep.mubr.msk.f32.mxu0 %vm11284_vm11, %v4763_v17 }
0x136f   : > { %7188 = vmatpush1.bf16.msra.mxu1 %v9922_v58 }
0x1370   : > { %7190 = vmatprep.subr.bf16.mxu1 %v7189_v43  ;;  %v9929_v22 = vld [vmem:[#allocation2 + $0x1a8] sm:$0xff] }
0x1371   : > { %v9935_v23 = vld [vmem:[#allocation2 + $0x1a0] sm:$0xff] }
0x1373   : > { %7192 = vmatpush1.bf16.msra.mxu1 %v7191_v10  ;;  %v4503_v10 = vsel %vm4502_vm7, 1, %v7716_v1 }
0x1374   : > { %4425 = vmatprep.subr.mxu1 %v9929_v22 }
0x1375   : > { %v4368_v5 = vpop.permute.xlu0 %4367 }
0x1377   : > { %4426 = vmatpush1.msra.mxu1 %v9935_v23 }
0x1378   : > { %4438 = vmatmul.mubr.f32.vlgmr.msra.gmra.mrb[8].mxu1 %v6634_v16 }
0x144b   : > { %v4439_v51 = vpop.f32.mrb[8].mxu1 }
0x144c   : > { %v4440_v28 = vadd.f32 %v4439_v51, %v4368_v5  ;;  %v4441_v52 = vpop.f32.mrb[9].mxu1  ;;  %v4511_v51 = vrot.slane %v4503_v10, %v7839_v7 }
0x144d   : > { %v4442_v36 = vadd.f32 %v4441_v52, %v4368_v5  ;;  %v4507_v5 = vrot.slane %v4503_v10, %v7842_v9  ;;  %v10412_v10 = vld [vmem:[#allocation2 + $0xb8] sm:$0xff] }
0x144e   : > { %v4444_v40 = vmul.f32 0.2, %v4440_v28  ;;  %vm10057_vm15 = vcmp.eq.s32.totalorder %v4511_v51, 1 }
0x144f   : > { %v4445_v44 = vmul.f32 0.2, %v4442_v36  ;;  %vm10053_vm14 = vcmp.eq.s32.totalorder %v4507_v5, 1 }
0x1450   : > { %v9939_v11 = vadd.f32 %v4444_v40, %v8859_v57  ;;  %v4536_v40 = vsel %vm4535_vm1, 1, %v7716_v1  ;;  %vm10112_vm1 = vmpackc.low %vm11279_vm2, %vm10053_vm14 }
0x1451   : > { %v9942_v62 = vadd.f32 %v4445_v44, %v8862_v6 }
0x1452   : > { %4450 = vrot.lane.b32.xlu1 %v9939_v11, %s7717_s28 }
0x1453   : > { %4452 = vrot.lane.b32.xlu0 %v9942_v62, %s7717_s28 }
0x14c4   : > { %v4451_v57 = vpop.permute.xlu1 %4450 }
0x14c5   : > { %4458 = vst.msk [vmem:[#allocation3] sm:$0xff] %vm11276_vm5, %v4451_v57  ;;  %v4453_v6 = vpop.permute.xlu0 %4452 }
0x14c6   : > { %v9955_v18 = vsel %vm11277_vm13, %v4451_v57, %v4453_v6  ;;  %4460 = vst.msk [vmem:[#allocation3 + $0x10] sm:$0xff] %vm11278_vm3, %v4453_v6  ;;  %v4544_v6 = vrot.slane %v4536_v40, %v7839_v7  ;;  %vm11295_vm13 = vcmask 916480   ;;  %vm10090_vm3 = vmpackc.low %vm11279_vm2, %vm10057_vm15 }
0x14c7   : > { %4459 = vst [vmem:[#allocation3 + $0x8] sm:$0xff] %v9955_v18  ;;  %v4477_v12 = vsel %vm4475_vm9, %v9955_v18, 0.0  ;;  %v7636_v15 = vpack.c.bf16 %v4706_v4, %v9955_v18  ;;  %vm11292_vm9 = vmmov %vm11291_vm6 }
0x14c8   : > { %4479 = vst [vmem:[#allocation2 + $0x8] sm:$0xff] %v4477_v12  ;;  %vm10079_vm5 = vcmp.eq.s32.totalorder %v4544_v6, 1  ;;  %vm11300_vm7 = vmmov %vm11295_vm13 }
0x14c9   : > { %7637 = vmatprep.subr.msk.bf16.mxu0 %vm9962_vm4, %v7636_v15  ;;  %v4540_v15 = vrot.slane %v4536_v40, %v7842_v9 }
0x14cb   : > { %vm10101_vm11 = vcmp.eq.s32.totalorder %v4540_v15, 1 }
0x14cc   : > { %v9969_v27 = vld [vmem:[#allocation3] sm:$0xff] }
0x14cd   : > { %4486 = vrot.lane.b32.xlu1 %v9969_v27, %s7718_s7  ;;  %v4482_v42 = vld [vmem:[#allocation3 + $0x10] sm:$0xff]  ;;  %v4476_v19 = vsel %vm4474_vm8, %v9969_v27, 0.0  ;;  %v7639_v45 = vpack.c.bf16 %v4705_v26, %v9969_v27 }
0x14ce   : > { %4490 = vrot.lane.b32.xlu0 %v4482_v42, %s7718_s7  ;;  %4478 = vst [vmem:[#allocation2] sm:$0xff] %v4476_v19 }
0x14cf   : > { %7640 = vmatpush1.bf16.msk.msra.mxu0 %vm9976_vm10, %v7639_v45 }
0x14d1   : > { %4488 = vrot.lane.b32.xlu1 %v9955_v18, %s7718_s7 }
0x14d2   : > { %4517 = vrot.lane.b32.xlu0 %v9969_v27, %s7720_s8 }
0x14d5   : > { %4521 = vrot.lane.b32.xlu1 %v4482_v42, %s7720_s8 }
0x14d6   : > { %4519 = vrot.lane.b32.xlu0 %v9955_v18, %s7720_s8 }
0x14d9   : > { %4552 = vrot.lane.b32.xlu1 %v9955_v18, %s7721_s9 }
0x14da   : > { %4554 = vrot.lane.b32.xlu0 %v4482_v42, %s7721_s9 }
0x14dd   : > { %4550 = vrot.lane.b32.xlu1 %v9969_v27, %s7721_s9 }
0x14de   : > { %4570 = vrot.lane.b32.xlu0 %v9969_v27, %s7722_s10 }
0x14e1   : > { %4574 = vrot.lane.b32.xlu1 %v4482_v42, %s7722_s10 }
0x14e2   : > { %4572 = vrot.lane.b32.xlu0 %v9955_v18, %s7722_s10 }
0x14e5   : > { %4603 = vrot.lane.b32.xlu1 %v9955_v18, %s7723_s11 }
0x14e6   : > { %4605 = vrot.lane.b32.xlu0 %v4482_v42, %s7723_s11 }
0x14e9   : > { %4601 = vrot.lane.b32.xlu1 %v9969_v27, %s7723_s11 }
0x14ea   : > { %4636 = vrot.lane.b32.xlu0 %v9955_v18, %s7724_s12 }
0x14ed   : > { %4638 = vrot.lane.b32.xlu1 %v4482_v42, %s7724_s12 }
0x14ee   : > { %4634 = vrot.lane.b32.xlu0 %v9969_v27, %s7724_s12 }
0x14f1   : > { %4656 = vrot.lane.b32.xlu1 %v9955_v18, %s7725_s13 }
0x14f2   : > { %4658 = vrot.lane.b32.xlu0 %v4482_v42, %s7725_s13 }
0x14f5   : > { %4654 = vrot.lane.b32.xlu1 %v9969_v27, %s7725_s13 }
0x14f6   : > { %4687 = vrot.lane.b32.xlu0 %v9955_v18, %s7726_s14 }
0x14f9   : > { %4689 = vrot.lane.b32.xlu1 %v4482_v42, %s7726_s14  ;;  %v6639_v42 = vld [vmem:[%s10963_s5 + $0x1] ss:$2 sm:$0x3] }
0x14fa   : > { %4685 = vrot.lane.b32.xlu0 %v9969_v27, %s7726_s14  ;;  %vm4586_vm8 = vcmp.gt.f32.partialorder %v6639_v42, 0.5 }
0x14fd   : > { %4759 = vperm.xlu1 %7473, %v6642_v59   ;;  %v10408_v59 = vld [vmem:[#allocation2 + $0x80] sm:$0xff] }
0x153f   : > { %v4487_v43 = vpop.permute.xlu1 %4486 }
0x1540   : > { %v4491_v50 = vpop.permute.xlu0 %4490 }
0x1543   : > { %v4489_v16 = vpop.permute.xlu1 %4488 }
0x1544   : > { %v10041_v28 = vsel %vm11285_vm0, %v4487_v43, %v4489_v16  ;;  %v10044_v52 = vsel %vm11286_vm12, %v4489_v16, %v4491_v50  ;;  %v4518_v36 = vpop.permute.xlu0 %4517  ;;  %vm10126_vm0 = vmpackc.low %vm10079_vm5, %vm11279_vm2 }
0x1545   : > { %4496 = vst [vmem:[#allocation2 + $0x30] sm:$0xff] %v10041_v28  ;;  %4497 = vst [vmem:[#allocation2 + $0x38] sm:$0xff] %v10044_v52  ;;  %v7197_v44 = vpack.c.bf16 %v10044_v52, %v9765_v53  ;;  %v7199_v21 = vpack.c.bf16 %v10041_v28, %v9762_v63 }
0x1546   : > { %vm10141_vm12 = vmpackc.low %vm10101_vm11, %vm11279_vm2 }
0x1547   : > { %v4522_v29 = vpop.permute.xlu1 %4521  ;;  %7198 = vmatprep.subr.bf16.mxu0 %v7197_v44 }
0x1548   : > { %v4520_v37 = vpop.permute.xlu0 %4519  ;;  %7200 = vmatpush1.bf16.msra.mxu0 %v7199_v21 }
0x1549   : > { %v10063_v12 = vsel %vm11291_vm6, %v4518_v36, %v4520_v37  ;;  %v10066_v53 = vsel %vm11292_vm9, %v4520_v37, %v4522_v29  ;;  %7202 = vmatprep.subr.bf16.mxu0 %v9819_v33 }
0x154a   : > { %v4527_v63 = vsel %vm10053_vm14, %v10063_v12, 0.0  ;;  %v4528_v4 = vsel %vm10057_vm15, %v10066_v53, 0.0  ;;  %v7642_v17 = vpack.c.bf16 %v9816_v38, %v10066_v53  ;;  %v4587_v38 = vsel %vm4586_vm8, 1, %v7716_v1 }
0x154b   : > { %4529 = vst [vmem:[#allocation2 + $0x60] sm:$0xff] %v4527_v63  ;;  %4530 = vst [vmem:[#allocation2 + $0x68] sm:$0xff] %v4528_v4  ;;  %v4553_v19 = vpop.permute.xlu1 %4552  ;;  %v7645_v16 = vpack.c.bf16 %v9831_v31, %v10063_v12  ;;  %v4618_v31 = vld [vmem:[%s10963_s5] ss:$2 sm:$0x3]  ;;  %v4595_v44 = vrot.slane %v4587_v38, %v7839_v7  ;;  %vm11307_vm15 = vcmask 908288   ;;  %v4591_v6 = vrot.slane %v4587_v38, %v7842_v9 }
0x154c   : > { %v4555_v33 = vpop.permute.xlu0 %4554  ;;  %7204 = vmatpush1.bf16.msra.mxu0 %v9821_v32  ;;  %vm4619_vm14 = vcmp.gt.f32.partialorder %v4618_v31, 0.5  ;;  %vm11308_vm6 = vmmov %vm11307_vm15 }
0x154d   : > { %v10085_v45 = vsel %vm11295_vm13, %v4553_v19, %v4555_v33  ;;  %7643 = vmatprep.subr.msk.bf16.mxu0 %vm10090_vm3, %v7642_v17  ;;  %vm10161_vm9 = vcmp.eq.s32.totalorder %v4595_v44, 1  ;;  %v4620_v4 = vsel %vm4619_vm14, 1, %v7716_v1  ;;  %vm10173_vm13 = vcmp.eq.s32.totalorder %v4591_v6, 1 }
0x154e   : > { %v4561_v32 = vsel %vm10079_vm5, %v10085_v45, 0.0  ;;  %v7648_v36 = vpack.c.bf16 %v10085_v45, %v9842_v61  ;;  %vm11311_vm5 = vcmask 900096  }
0x154f   : > { %4563 = vst [vmem:[#allocation2 + $0x98] sm:$0xff] %v4561_v32  ;;  %v4551_v55 = vpop.permute.xlu1 %4550  ;;  %vm11314_vm8 = vmmov %vm11311_vm5 }
0x1550   : > { %v10106_v43 = vsel %vm11300_vm7, %v4551_v55, %v4553_v19  ;;  %v4571_v50 = vpop.permute.xlu0 %4570  ;;  %7646 = vmatpush1.bf16.msk.msra.mxu0 %vm10112_vm1, %v7645_v16  ;;  %v4628_v19 = vrot.slane %v4620_v4, %v7839_v7 }
0x1551   : > { %v4560_v5 = vsel %vm10101_vm11, %v10106_v43, 0.0  ;;  %7649 = vmatprep.subr.msk.bf16.mxu0 %vm10126_vm0, %v7648_v36  ;;  %v7651_v61 = vpack.c.bf16 %v10106_v43, %v9846_v39  ;;  %vm10190_vm11 = vmpackc.low %vm10161_vm9, %vm11279_vm2 }
0x1552   : > { %4562 = vst [vmem:[#allocation2 + $0x90] sm:$0xff] %v4560_v5  ;;  %vm10201_vm7 = vcmp.eq.s32.totalorder %v4628_v19, 1 }
0x1553   : > { %v4575_v40 = vpop.permute.xlu1 %4574 }
0x1554   : > { %v4573_v21 = vpop.permute.xlu0 %4572  ;;  %7652 = vmatpush1.bf16.msk.msra.mxu0 %vm10141_vm12, %v7651_v61 }
0x1555   : > { %v10150_v13 = vsel %vm11307_vm15, %v4571_v50, %v4573_v21  ;;  %v10153_v57 = vsel %vm11308_vm6, %v4573_v21, %v4575_v40  ;;  %7214 = vmatprep.subr.bf16.mxu0 %v9854_v46  ;;  %v6640_v50 = vld [vmem:[%s10963_s5 + $0x1] ss:$2 sm:$0x3]  ;;  %vm11321_vm15 = vcmask 785408   ;;  %vm10215_vm6 = vmpackc.low %vm10173_vm13, %vm11279_vm2 }
0x1556   : > { %4580 = vst [vmem:[#allocation2 + $0xc0] sm:$0xff] %v10150_v13  ;;  %4581 = vst [vmem:[#allocation2 + $0xc8] sm:$0xff] %v10153_v57  ;;  %v7217_v39 = vpack.c.bf16 %v9861_v35, %v10153_v57  ;;  %v7219_v26 = vpack.c.bf16 %v9871_v30, %v10150_v13 }
0x1557   : > { %v4604_v37 = vpop.permute.xlu1 %4603 }
0x1558   : > { %v4606_v15 = vpop.permute.xlu0 %4605  ;;  %7216 = vmatpush1.bf16.msra.mxu0 %v9866_v54  ;;  %v4624_v54 = vrot.slane %v4620_v4, %v7842_v9 }
0x1559   : > { %v10168_v46 = vsel %vm11311_vm5, %v4604_v37, %v4606_v15  ;;  %7218 = vmatprep.subr.bf16.mxu0 %v7217_v39  ;;  %vm11324_vm5 = vmmov %vm11321_vm15 }
0x155a   : > { %v4612_v42 = vsel %vm10161_vm9, %v10168_v46, 0.0  ;;  %v7654_v30 = vpack.c.bf16 %v10168_v46, %v9881_v20  ;;  %vm10205_vm14 = vcmp.eq.s32.totalorder %v4624_v54, 1  ;;  %vm4670_vm9 = vcmp.gt.f32.partialorder %v6640_v50, 0.5 }
0x155b   : > { %4614 = vst [vmem:[#allocation2 + $0xf8] sm:$0xff] %v4612_v42  ;;  %v4602_v33 = vpop.permute.xlu1 %4601  ;;  %v4671_v6 = vsel %vm4670_vm9, 1, %v7716_v1 }
0x155c   : > { %v10182_v17 = vsel %vm11314_vm8, %v4602_v33, %v4604_v37  ;;  %v4637_v32 = vpop.permute.xlu0 %4636  ;;  %7220 = vmatpush1.bf16.msra.mxu0 %v7219_v26  ;;  %vm10241_vm8 = vmpackc.low %vm11279_vm2, %vm10201_vm7  ;;  %v4675_v42 = vrot.slane %v4671_v6, %v7842_v9 }
0x155d   : > { %v4611_v3 = vsel %vm10173_vm13, %v10182_v17, 0.0  ;;  %7655 = vmatprep.subr.msk.bf16.mxu0 %vm10190_vm11, %v7654_v30  ;;  %v7657_v40 = vpack.c.bf16 %v10182_v17, %v9889_v25  ;;  %vm11325_vm13 = vcmask 777216  }
0x155e   : > { %4613 = vst [vmem:[#allocation2 + $0xf0] sm:$0xff] %v4611_v3 }
0x155f   : > { %v4639_v16 = vpop.permute.xlu1 %4638 }
0x1560   : > { %v10210_v36 = vsel %vm11321_vm15, %v4637_v32, %v4639_v16  ;;  %v4635_v20 = vpop.permute.xlu0 %4634  ;;  %7658 = vmatpush1.bf16.msk.msra.mxu0 %vm10215_vm6, %v7657_v40  ;;  %vm10260_vm15 = vmpackc.low %vm11279_vm2, %vm10205_vm14 }
0x1561   : > { %v4645_v44 = vsel %vm10201_vm7, %v10210_v36, 0.0  ;;  %v10227_v21 = vsel %vm11324_vm5, %v4635_v20, %v4637_v32  ;;  %7226 = vmatprep.subr.bf16.mxu0 %v9894_v60  ;;  %v7660_v63 = vpack.c.bf16 %v9897_v49, %v10210_v36  ;;  %vm11328_vm7 = vmmov %vm11325_vm13  ;;  %vm4680_vm5 = vcmp.eq.s32.totalorder %v4675_v42, 1 }
0x1562   : > { %4647 = vst [vmem:[#allocation2 + $0x128] sm:$0xff] %v4645_v44  ;;  %v4644_v61 = vsel %vm10205_vm14, %v10227_v21, 0.0  ;;  %v7663_v26 = vpack.c.bf16 %v9905_v41, %v10227_v21 }
0x1563   : > { %4646 = vst [vmem:[#allocation2 + $0x120] sm:$0xff] %v4644_v61  ;;  %v4657_v25 = vpop.permute.xlu1 %4656 }
0x1564   : > { %v4659_v39 = vpop.permute.xlu0 %4658  ;;  %7228 = vmatpush1.bf16.msra.mxu0 %v9902_v48  ;;  %v4679_v48 = vrot.slane %v4671_v6, %v7839_v7 }
0x1565   : > { %v10236_v37 = vsel %vm11325_vm13, %v4657_v25, %v4659_v39  ;;  %7661 = vmatprep.subr.msk.bf16.mxu0 %vm10241_vm8, %v7660_v63  ;;  %vm11331_vm13 = vcmask 769024  }
0x1566   : > { %4665 = vst [vmem:[#allocation2 + $0x158] sm:$0xff] %v10236_v37  ;;  %v7233_v4 = vpack.c.bf16 %v10236_v37, %v9908_v34  ;;  %vm4681_vm9 = vcmp.eq.s32.totalorder %v4679_v48, 1  ;;  %vm11332_vm14 = vmmov %vm11331_vm13 }
0x1567   : > { %v4655_v15 = vpop.permute.xlu1 %4654 }
0x1568   : > { %v10255_v35 = vsel %vm11328_vm7, %v4655_v15, %v4657_v25  ;;  %v4688_v19 = vpop.permute.xlu0 %4687  ;;  %7664 = vmatpush1.bf16.msk.msra.mxu0 %vm10260_vm15, %v7663_v26  ;;  %vm10282_vm7 = vmpackc.low %vm11279_vm2, %vm4681_vm9 }
0x1569   : > { %4664 = vst [vmem:[#allocation2 + $0x150] sm:$0xff] %v10255_v35  ;;  %7234 = vmatprep.subr.bf16.mxu0 %v7233_v4  ;;  %v7235_v34 = vpack.c.bf16 %v10255_v35, %v9914_v56  ;;  %v11333_v56 = vmov 0 }
0x156a   : > { %v11334_v56 = vsel %vm10282_vm7, 4294967295, %v11333_v56 }
0x156b   : > { %v4690_v33 = vpop.permute.xlu1 %4689 }
0x156c   : > { %v10272_v54 = vsel %vm11331_vm13, %v4688_v19, %v4690_v33  ;;  %v4686_v32 = vpop.permute.xlu0 %4685  ;;  %7236 = vmatpush1.bf16.msra.mxu0 %v7235_v34  ;;  %vm10291_vm13 = vmpackc.low %vm11279_vm2, %vm4680_vm5 }
0x156d   : > { %v4696_v3 = vsel %vm4681_vm9, %v10272_v54, 0.0  ;;  %v10276_v41 = vsel %vm11332_vm14, %v4686_v32, %v4688_v19  ;;  %7238 = vmatprep.subr.bf16.mxu0 %v9917_v47  ;;  %v7666_v50 = vpack.c.bf16 %v9919_v2, %v10272_v54  ;;  %v11335_v47 = vmov 0 }
0x156e   : > { %4698 = vst [vmem:[#allocation2 + $0x188] sm:$0xff] %v4696_v3  ;;  %v4695_v30 = vsel %vm4680_vm5, %v10276_v41, 0.0  ;;  %v11336_v47 = vsel %vm10291_vm13, 4294967295, %v11335_v47  ;;  %v7669_v38 = vpack.c.bf16 %v9925_v0, %v10276_v41  ;;  %vm11337_vm14 = vcmask 1043592  }
0x156f   : > { %4697 = vst [vmem:[#allocation2 + $0x180] sm:$0xff] %v4695_v30 }
0x1570   : > { %7240 = vmatpush1.bf16.msra.mxu0 %v9922_v58 }
0x1571   : > { %7667 = vmatprep.subr.msk.bf16.mxu0 %vm10282_vm7, %v7666_v50  ;;  %vm11339_vm7 = vcmask 134144  }
0x1574   : > { %7670 = vmatpush1.bf16.msk.msra.mxu0 %vm10291_vm13, %v7669_v38  ;;  %vm11338_vm13 = vcmask 138240  }
0x1575   : > { %4818 = vmatprep.subr.mxu0 %v9929_v22  ;;  %v4858_v22 = vld [vmem:[%s10963_s5] ss:$2 sm:$0x3] }
0x1576   : > { %vm4859_vm5 = vcmp.gt.f32.partialorder %v4858_v22, 0.5 }
0x1578   : > { %4819 = vmatpush1.msra.mxu0 %v9935_v23  ;;  %v4860_v23 = vsel %vm4859_vm5, 1, %v7716_v1 }
0x1579   : > { %4831 = vmatmul.mubr.f32.vlgmr.msra.gmra.mrb[10].mxu0 %v10026_v8  ;;  %v4864_v39 = vrot.slane %v4860_v23, %v7842_v9  ;;  %v4868_v63 = vrot.slane %v4860_v23, %v7839_v7 }
0x157c   : > { %v4760_v2 = vpop.permute.xlu1 %4759 }
0x164c   : > { %v4832_v58 = vpop.f32.mrb[10].mxu0 }
0x164d   : > { %v4833_v16 = vadd.f32 %v4832_v58, %v4760_v2  ;;  %v4834_v5 = vpop.f32.mrb[11].mxu0  ;;  %v10320_v58 = vld [vmem:[#allocation2 + $0x28] sm:$0xff] }
0x164e   : > { %v4835_v20 = vadd.f32 %v4834_v5, %v4760_v2  ;;  %v7249_v5 = vpack.c.bf16 %v10044_v52, %v10320_v58 }
0x164f   : > { %vm4837_vm2 = vcmp.ge.f32.partialorder %v4833_v16, 0.0  ;;  %v4839_v40 = vmul.f32 0.2, %v4833_v16 }
0x1650   : > { %vm4838_vm9 = vcmp.ge.f32.partialorder %v4835_v20, 0.0  ;;  %v4840_v44 = vmul.f32 0.2, %v4835_v20 }
0x1651   : > { %v4841_v61 = vsel %vm4837_vm2, %v4833_v16, %v4839_v40  ;;  %vm4869_vm2 = vcmp.eq.s32.totalorder %v4864_v39, 1 }
0x1652   : > { %4845 = vrot.lane.b32.xlu0 %v4841_v61, %s7717_s28  ;;  %v4842_v0 = vsel %vm4838_vm9, %v4835_v20, %v4840_v44  ;;  %vm4870_vm9 = vcmp.eq.s32.totalorder %v4868_v63, 1  ;;  %v10331_v44 = vld [vmem:[#allocation2 + $0x20] sm:$0xff] }
0x1653   : > { %4847 = vrot.lane.b32.xlu1 %v4842_v0, %s7717_s28 }
0x16c4   : > { %v4846_v8 = vpop.permute.xlu0 %4845 }
0x16c5   : > { %4853 = vst.msk [vmem:[#allocation3] sm:$0xf] %vm11337_vm14, %v4846_v8  ;;  %v4848_v25 = vpop.permute.xlu1 %4847 }
0x16c6   : > { %v4849_v6 = vsel %vm11338_vm13, %v4846_v8, %v4848_v25  ;;  %4855 = vst.msk [vmem:[#allocation3 + $0x10] sm:$0xf] %vm11339_vm7, %v4848_v25  ;;  %vm11341_vm7 = vcmask 1039360  }
0x16c7   : > { %4854 = vst [vmem:[#allocation3 + $0x8] sm:$0xf] %v4849_v6  ;;  %vm11342_vm13 = vmmov %vm11341_vm7 }
0x16cc   : > { %v4875_v48 = vld [vmem:[#allocation3] sm:$0xf] }
0x16cd   : > { %v4856_v4 = vld [vmem:[#allocation3] sm:$0xf]  ;;  %4881 = vrot.lane.b32.xlu0 %v4875_v48, %s7718_s7  ;;  %v4877_v42 = vld [vmem:[#allocation3 + $0x10] sm:$0xf] }
0x16ce   : > { %v4871_v15 = vsel %vm4869_vm2, %v4856_v4, 0.0  ;;  %v4857_v19 = vld [vmem:[#allocation3 + $0x8] sm:$0xf]  ;;  %4885 = vrot.lane.b32.xlu1 %v4877_v42, %s7718_s7  ;;  %v4895_v32 = vld [vmem:[#allocation3 + $0x10] sm:$0xf] }
0x16cf   : > { %4873 = vst [vmem:[#allocation2 + $0x10] sm:$0xf] %v4871_v15  ;;  %v4872_v26 = vsel %vm4870_vm9, %v4857_v19, 0.0  ;;  %v4876_v34 = vld [vmem:[#allocation3 + $0x8] sm:$0xf]  ;;  %v10357_v15 = vld [vmem:[%s10959_s1 + $0x48] sm:$0xff] }
0x16d0   : > { %4874 = vst [vmem:[#allocation2 + $0x18] sm:$0xf] %v4872_v26  ;;  %v4894_v33 = vld [vmem:[#allocation3 + $0x8] sm:$0xf]  ;;  %v4893_v3 = vld [vmem:[#allocation3] sm:$0xf]  ;;  %v5158_v42 = vcombine.high %v10357_v15, %v10357_v15 }
0x16d1   : > { %4883 = vrot.lane.b32.xlu0 %v4876_v34, %s7718_s7  ;;  %v4926_v38 = vld [vmem:[#allocation3] sm:$0xf]  ;;  %v4928_v2 = vld [vmem:[#allocation3 + $0x10] sm:$0xf]  ;;  %v4927_v40 = vld [vmem:[#allocation3 + $0x8] sm:$0xf] }
0x16d2   : > { %4914 = vrot.lane.b32.xlu1 %v4894_v33, %s7720_s8  ;;  %v4959_v61 = vld [vmem:[#allocation3] sm:$0xf]  ;;  %v4961_v14 = vld [vmem:[#allocation3 + $0x10] sm:$0xf]  ;;  %v4978_v0 = vld [vmem:[#allocation3 + $0x8] sm:$0xf] }
0x16d3   : > { %v4977_v24 = vld [vmem:[#allocation3] sm:$0xf]  ;;  %v4979_v52 = vld [vmem:[#allocation3 + $0x10] sm:$0xf]  ;;  %v5011_v22 = vld [vmem:[#allocation3 + $0x8] sm:$0xf] }
0x16d4   : > { %v5010_v23 = vld [vmem:[#allocation3] sm:$0xf]  ;;  %v5045_v25 = vld [vmem:[#allocation3 + $0x10] sm:$0xf]  ;;  %v5044_v6 = vld [vmem:[#allocation3 + $0x8] sm:$0xf] }
0x16d5   : > { %4916 = vrot.lane.b32.xlu0 %v4895_v32, %s7720_s8  ;;  %v5043_v8 = vld [vmem:[#allocation3] sm:$0xf]  ;;  %v5062_v39 = vld [vmem:[#allocation3 + $0x8] sm:$0xf]  ;;  %v5063_v63 = vld [vmem:[#allocation3 + $0x10] sm:$0xf] }
0x16d6   : > { %4912 = vrot.lane.b32.xlu1 %v4893_v3, %s7720_s8  ;;  %v5100_v30 = vld [vmem:[#allocation2 + $0x10] sm:$0xff]  ;;  %v6648_v4 = vld [vmem:[%s10960_s2 + $0x24] sm:$0xf]  ;;  %v6644_v19 = vld [vmem:[%s10963_s5 + $0x1] ss:$2 sm:$0x3] }
0x16d7   : > { %v5101_v50 = vld [vmem:[#allocation2 + $0x18] sm:$0xff]  ;;  %v7675_v20 = vpack.c.bf16 %v5100_v30, %v9969_v27  ;;  %v5061_v48 = vld [vmem:[#allocation3] sm:$0xf]  ;;  %v4929_v32 = vld [vmem:[%s10963_s5] ss:$2 sm:$0x3] }
0x16d8   : > { %v7672_v16 = vpack.c.bf16 %v5101_v50, %v9955_v18  ;;  %v7251_v18 = vpack.c.bf16 %v10041_v28, %v10331_v44  ;;  %v4960_v27 = vld [vmem:[#allocation3 + $0x8] sm:$0xf]  ;;  %v5012_v28 = vld [vmem:[#allocation3 + $0x10] sm:$0xf]  ;;  %vm4930_vm5 = vcmp.gt.f32.partialorder %v4929_v32, 0.5  ;;  %vm11343_vm9 = vcmask 1031168  }
0x16d9   : > { %4945 = vrot.lane.b32.xlu0 %v4926_v38, %s7721_s9  ;;  %v5013_v32 = vld [vmem:[%s10963_s5] ss:$2 sm:$0x3] }
0x16da   : > { %4949 = vrot.lane.b32.xlu1 %v4928_v2, %s7721_s9  ;;  %7673 = vmatprep.subr.msk.bf16.mxu1 %vm9962_vm4, %v7672_v16  ;;  %vm11340_vm4 = vcmask 719872  }
0x16db   : > { %7676 = vmatpush1.bf16.msk.msra.mxu1 %vm9976_vm10, %v7675_v20  ;;  %6649 = vmatprep.mubr.msk.f32.mxu1 %vm11340_vm4, %v5158_v42  ;;  %vm4897_vm10 = vcmp.gt.f32.partialorder %v6644_v19, 0.5  ;;  %v4931_v20 = vsel %vm4930_vm5, 1, %v7716_v1  ;;  %vm11344_vm4 = vmmov %vm11343_vm9  ;;  %vm11345_vm5 = vcmask 916480  }
0x16dc   : > { %7250 = vmatprep.subr.bf16.mxu1 %v7249_v5  ;;  %v4898_v34 = vsel %vm4897_vm10, 1, %v7716_v1 }
0x16dd   : > { %4947 = vrot.lane.b32.xlu0 %v4927_v40, %s7721_s9  ;;  %v4906_v3 = vrot.slane %v4898_v34, %v7839_v7  ;;  %v4902_v50 = vrot.slane %v4898_v34, %v7842_v9 }
0x16de   : > { %4965 = vrot.lane.b32.xlu1 %v4959_v61, %s7722_s10 }
0x16df   : > { %7252 = vmatpush1.bf16.msra.mxu1 %v7251_v18  ;;  %vm4908_vm14 = vcmp.eq.s32.totalorder %v4906_v3, 1  ;;  %vm4907_vm2 = vcmp.eq.s32.totalorder %v4902_v50, 1 }
0x16e1   : > { %4969 = vrot.lane.b32.xlu0 %v4961_v14, %s7722_s10 }
0x16e2   : > { %4967 = vrot.lane.b32.xlu1 %v4960_v27, %s7722_s10 }
0x16e5   : > { %4996 = vrot.lane.b32.xlu0 %v4977_v24, %s7723_s11  ;;  %v4935_v24 = vrot.slane %v4931_v20, %v7842_v9 }
0x16e6   : > { %5000 = vrot.lane.b32.xlu1 %v4979_v52, %s7723_s11  ;;  %v4939_v52 = vrot.slane %v4931_v20, %v7839_v7 }
0x16e7   : > { %vm4940_vm10 = vcmp.eq.s32.totalorder %v4935_v24, 1  ;;  %v7687_v24 = vpack.c.bf16 %v10106_v43, %v10408_v59 }
0x16e9   : > { %4998 = vrot.lane.b32.xlu0 %v4978_v0, %s7723_s11 }
0x16ea   : > { %5031 = vrot.lane.b32.xlu1 %v5011_v22, %s7724_s12  ;;  %v10378_v22 = vld [vmem:[#allocation2 + $0x58] sm:$0xff] }
0x16ed   : > { %5033 = vrot.lane.b32.xlu0 %v5012_v28, %s7724_s12  ;;  %v10380_v28 = vld [vmem:[#allocation2 + $0x50] sm:$0xff] }
0x16ee   : > { %5029 = vrot.lane.b32.xlu1 %v5010_v23, %s7724_s12 }
0x16f1   : > { %5049 = vrot.lane.b32.xlu0 %v5043_v8, %s7725_s13 }
0x16f2   : > { %5053 = vrot.lane.b32.xlu1 %v5045_v25, %s7725_s13 }
0x16f5   : > { %5051 = vrot.lane.b32.xlu0 %v5044_v6, %s7725_s13  ;;  %v6645_v6 = vld [vmem:[%s10963_s5 + $0x1] ss:$2 sm:$0x3] }
0x16f6   : > { %5082 = vrot.lane.b32.xlu1 %v5062_v39, %s7726_s14 }
0x16f9   : > { %5084 = vrot.lane.b32.xlu0 %v5063_v63, %s7726_s14 }
0x16fa   : > { %5080 = vrot.lane.b32.xlu1 %v5061_v48, %s7726_s14 }
0x16fd   : > { %5154 = vperm.xlu0 %7472, %v6648_v4  }
0x173f   : > { %v4882_v26 = vpop.permute.xlu0 %4881 }
0x1740   : > { %v4886_v33 = vpop.permute.xlu1 %4885 }
0x1743   : > { %v4884_v30 = vpop.permute.xlu0 %4883 }
0x1744   : > { %v4887_v38 = vsel %vm11341_vm7, %v4882_v26, %v4884_v30  ;;  %v4888_v2 = vsel %vm11342_vm13, %v4884_v30, %v4886_v33  ;;  %v4915_v16 = vpop.permute.xlu1 %4914  ;;  %vm4941_vm7 = vcmp.eq.s32.totalorder %v4939_v52, 1  ;;  %vm4981_vm13 = vcmp.gt.f32.partialorder %v6645_v6, 0.5 }
0x1745   : > { %4891 = vst [vmem:[#allocation2 + $0x40] sm:$0xf] %v4887_v38  ;;  %4892 = vst [vmem:[#allocation2 + $0x48] sm:$0xf] %v4888_v2  ;;  %v4982_v30 = vsel %vm4981_vm13, 1, %v7716_v1  ;;  %v10393_v38 = vld [vmem:[#allocation2 + $0x88] sm:$0xff] }
0x1746   : > { %vm11355_vm13 = vcmask 785408  }
0x1747   : > { %v4917_v5 = vpop.permute.xlu0 %4916 }
0x1748   : > { %v4919_v40 = vsel %vm11343_vm9, %v4915_v16, %v4917_v5  ;;  %v4913_v61 = vpop.permute.xlu1 %4912  ;;  %vm11347_vm9 = vcmask 908288  }
0x1749   : > { %v4923_v18 = vsel %vm4908_vm14, %v4919_v40, 0.0  ;;  %v4918_v14 = vsel %vm11344_vm4, %v4913_v61, %v4915_v16  ;;  %vm11346_vm14 = vmmov %vm11345_vm5  ;;  %v4986_v61 = vrot.slane %v4982_v30, %v7842_v9 }
0x174a   : > { %4925 = vst [vmem:[#allocation2 + $0x78] sm:$0xf] %v4923_v18  ;;  %v4922_v27 = vsel %vm4907_vm2, %v4918_v14, 0.0  ;;  %vm5014_vm2 = vcmp.gt.f32.partialorder %v5013_v32, 0.5  ;;  %vm11348_vm4 = vmmov %vm11347_vm9  ;;  %v4990_v18 = vrot.slane %v4982_v30, %v7839_v7  ;;  %v10443_v30 = vld [vmem:[#allocation2 + $0xe8] sm:$0xff] }
0x174b   : > { %4924 = vst [vmem:[#allocation2 + $0x70] sm:$0xf] %v4922_v27  ;;  %v4946_v0 = vpop.permute.xlu0 %4945 }
0x174c   : > { %v4950_v23 = vpop.permute.xlu1 %4949  ;;  %v5107_v8 = vld [vmem:[#allocation2 + $0x48] sm:$0xff]  ;;  %v5106_v25 = vld [vmem:[#allocation2 + $0x40] sm:$0xff] }
0x174d   : > { %v7253_v39 = vpack.c.bf16 %v10378_v22, %v5107_v8  ;;  %v7255_v63 = vpack.c.bf16 %v10380_v28, %v5106_v25 }
0x174f   : > { %v4948_v48 = vpop.permute.xlu0 %4947  ;;  %7254 = vmatprep.subr.bf16.mxu1 %v7253_v39 }
0x1750   : > { %v4951_v4 = vsel %vm11345_vm5, %v4946_v0, %v4948_v48  ;;  %v4952_v42 = vsel %vm11346_vm14, %v4948_v48, %v4950_v23  ;;  %v4966_v19 = vpop.permute.xlu1 %4965  ;;  %7256 = vmatpush1.bf16.msra.mxu1 %v7255_v63  ;;  %v10422_v0 = vld [vmem:[#allocation2 + $0xb0] sm:$0xff]  ;;  %vm11356_vm14 = vmmov %vm11355_vm13 }
0x1751   : > { %v4955_v26 = vsel %vm4940_vm10, %v4951_v4, 0.0  ;;  %v4956_v34 = vsel %vm4941_vm7, %v4952_v42, 0.0  ;;  %v5113_v33 = vld [vmem:[#allocation2 + $0x78] sm:$0xff]  ;;  %v6646_v4 = vld [vmem:[%s10963_s5 + $0x1] ss:$2 sm:$0x3] }
0x1752   : > { %4957 = vst [vmem:[#allocation2 + $0xa0] sm:$0xf] %v4955_v26  ;;  %4958 = vst [vmem:[#allocation2 + $0xa8] sm:$0xf] %v4956_v34  ;;  %v5112_v3 = vld [vmem:[#allocation2 + $0x70] sm:$0xff]  ;;  %v7678_v16 = vpack.c.bf16 %v5113_v33, %v10066_v53  ;;  %v7684_v53 = vpack.c.bf16 %v10085_v45, %v10393_v38  ;;  %vm5065_vm5 = vcmp.gt.f32.partialorder %v6646_v4, 0.5 }
0x1753   : > { %v4970_v50 = vpop.permute.xlu0 %4969  ;;  %v7681_v40 = vpack.c.bf16 %v5112_v3, %v10063_v12  ;;  %v5015_v12 = vsel %vm5014_vm2, 1, %v7716_v1 }
0x1754   : > { %v4968_v2 = vpop.permute.xlu1 %4967  ;;  %7679 = vmatprep.subr.msk.bf16.mxu1 %vm10090_vm3, %v7678_v16  ;;  %vm10418_vm3 = vcmp.eq.s32.totalorder %v4986_v61, 1  ;;  %v5023_v43 = vrot.slane %v5015_v12, %v7839_v7  ;;  %v5019_v6 = vrot.slane %v5015_v12, %v7842_v9  ;;  %v5066_v61 = vsel %vm5065_vm5, 1, %v7716_v1 }
0x1755   : > { %v4971_v5 = vsel %vm11347_vm9, %v4966_v19, %v4968_v2  ;;  %v4972_v20 = vsel %vm11348_vm4, %v4968_v2, %v4970_v50  ;;  %7682 = vmatpush1.bf16.msk.msra.mxu1 %vm10112_vm1, %v7681_v40  ;;  %vm10424_vm1 = vcmp.eq.s32.totalorder %v4990_v18, 1  ;;  %v10454_v18 = vld [vmem:[#allocation2 + $0x118] sm:$0xff]  ;;  %v5074_v45 = vrot.slane %v5066_v61, %v7839_v7 }
0x1756   : > { %4975 = vst [vmem:[#allocation2 + $0xd0] sm:$0xf] %v4971_v5  ;;  %4976 = vst [vmem:[#allocation2 + $0xd8] sm:$0xf] %v4972_v20  ;;  %7685 = vmatprep.subr.msk.bf16.mxu1 %vm10126_vm0, %v7684_v53  ;;  %vm11353_vm0 = vcmask 900096   ;;  %vm5025_vm10 = vcmp.eq.s32.totalorder %v5023_v43, 1 }
0x1757   : > { %v4997_v14 = vpop.permute.xlu0 %4996  ;;  %vm5024_vm7 = vcmp.eq.s32.totalorder %v5019_v6, 1  ;;  %vm11359_vm4 = vcmask 769024  }
0x1758   : > { %v5001_v27 = vpop.permute.xlu1 %5000 }
0x1759   : > { %7688 = vmatpush1.bf16.msk.msra.mxu1 %vm10141_vm12, %v7687_v24  ;;  %v5119_v51 = vld [vmem:[#allocation2 + $0xa8] sm:$0xff]  ;;  %v5118_v52 = vld [vmem:[#allocation2 + $0xa0] sm:$0xff]  ;;  %vm11354_vm12 = vmmov %vm11353_vm0 }
0x175a   : > { %v7265_v8 = vpack.c.bf16 %v10412_v10, %v5119_v51  ;;  %v7267_v25 = vpack.c.bf16 %v10422_v0, %v5118_v52  ;;  %v5070_v52 = vrot.slane %v5066_v61, %v7842_v9 }
0x175b   : > { %v4999_v29 = vpop.permute.xlu0 %4998 }
0x175c   : > { %v5002_v39 = vsel %vm11353_vm0, %v4997_v14, %v4999_v29  ;;  %v5003_v63 = vsel %vm11354_vm12, %v4999_v29, %v5001_v27  ;;  %v5032_v48 = vpop.permute.xlu1 %5031  ;;  %7266 = vmatprep.subr.bf16.mxu1 %v7265_v8  ;;  %v10460_v27 = vld [vmem:[#allocation2 + $0x110] sm:$0xff]  ;;  %vm5075_vm9 = vcmp.eq.s32.totalorder %v5070_v52, 1  ;;  %v10468_v29 = vld [vmem:[#allocation2 + $0x148] sm:$0xff] }
0x175d   : > { %v5006_v42 = vsel %vm10418_vm3, %v5002_v39, 0.0  ;;  %v5007_v19 = vsel %vm10424_vm1, %v5003_v63, 0.0  ;;  %7268 = vmatpush1.bf16.msra.mxu1 %v7267_v25  ;;  %v5125_v26 = vld [vmem:[#allocation2 + $0xd8] sm:$0xff]  ;;  %v5124_v34 = vld [vmem:[#allocation2 + $0xd0] sm:$0xff]  ;;  %vm11360_vm3 = vmmov %vm11359_vm4 }
0x175e   : > { %5008 = vst [vmem:[#allocation2 + $0x100] sm:$0xf] %v5006_v42  ;;  %5009 = vst [vmem:[#allocation2 + $0x108] sm:$0xf] %v5007_v19  ;;  %v7269_v33 = vpack.c.bf16 %v5125_v26, %v10153_v57  ;;  %v7271_v32 = vpack.c.bf16 %v5124_v34, %v10150_v13  ;;  %v7690_v57 = vpack.c.bf16 %v10168_v46, %v10443_v30  ;;  %v10451_v13 = vld [vmem:[#allocation2 + $0xe0] sm:$0xff] }
0x175f   : > { %v5034_v3 = vpop.permute.xlu0 %5033  ;;  %v7693_v14 = vpack.c.bf16 %v10182_v17, %v10451_v13  ;;  %v10480_v34 = vld [vmem:[#allocation2 + $0x140] sm:$0xff] }
0x1760   : > { %v5036_v50 = vsel %vm11355_vm13, %v5032_v48, %v5034_v3  ;;  %v5030_v2 = vpop.permute.xlu1 %5029  ;;  %7270 = vmatprep.subr.bf16.mxu1 %v7269_v33  ;;  %v10484_v33 = vld [vmem:[#allocation2 + $0x178] sm:$0xff]  ;;  %vm11365_vm13 = vcmask 134144  }
0x1761   : > { %v5040_v16 = vsel %vm5025_vm10, %v5036_v50, 0.0  ;;  %v5035_v5 = vsel %vm11356_vm14, %v5030_v2, %v5032_v48  ;;  %7272 = vmatpush1.bf16.msra.mxu1 %v7271_v32  ;;  %v7285_v48 = vpack.c.bf16 %v10236_v37, %v10468_v29  ;;  %vm11363_vm10 = vcmask 1043592  }
0x1762   : > { %5042 = vst [vmem:[#allocation2 + $0x138] sm:$0xf] %v5040_v16  ;;  %v5039_v20 = vsel %vm5024_vm7, %v5035_v5, 0.0  ;;  %7691 = vmatprep.subr.msk.bf16.mxu1 %vm10190_vm11, %v7690_v57  ;;  %vm11357_vm11 = vcmask 777216   ;;  %v10496_v16 = vld [vmem:[#allocation2 + $0x1a8] sm:$0xff]  ;;  %v10499_v5 = vld [vmem:[#allocation2 + $0x1a0] sm:$0xff] }
0x1763   : > { %5041 = vst [vmem:[#allocation2 + $0x130] sm:$0xf] %v5039_v20  ;;  %v5050_v40 = vpop.permute.xlu0 %5049  ;;  %vm11358_vm2 = vmmov %vm11357_vm11  ;;  %vm11364_vm7 = vcmask 138240  }
0x1764   : > { %v5054_v53 = vpop.permute.xlu1 %5053 }
0x1765   : > { %7694 = vmatpush1.bf16.msk.msra.mxu1 %vm10215_vm6, %v7693_v14  ;;  %v5131_v12 = vld [vmem:[#allocation2 + $0x108] sm:$0xff]  ;;  %v5130_v46 = vld [vmem:[#allocation2 + $0x100] sm:$0xff]  ;;  %vm5076_vm6 = vcmp.eq.s32.totalorder %v5074_v45, 1 }
0x1766   : > { %v7277_v55 = vpack.c.bf16 %v10454_v18, %v5131_v12  ;;  %v7279_v24 = vpack.c.bf16 %v10460_v27, %v5130_v46  ;;  %v5253_v14 = vld [vmem:[%s10963_s5] ss:$2 sm:$0x3] }
0x1767   : > { %v5052_v51 = vpop.permute.xlu0 %5051  ;;  %vm5254_vm12 = vcmp.gt.f32.partialorder %v5253_v14, 0.5 }
0x1768   : > { %v5055_v23 = vsel %vm11357_vm11, %v5050_v40, %v5052_v51  ;;  %v5056_v17 = vsel %vm11358_vm2, %v5052_v51, %v5054_v53  ;;  %v5083_v8 = vpop.permute.xlu1 %5082  ;;  %7278 = vmatprep.subr.bf16.mxu1 %v7277_v55  ;;  %vm11366_vm11 = vcmask 719872  }
0x1769   : > { %5059 = vst [vmem:[#allocation2 + $0x160] sm:$0xf] %v5055_v23  ;;  %5060 = vst [vmem:[#allocation2 + $0x168] sm:$0xf] %v5056_v17  ;;  %7280 = vmatpush1.bf16.msra.mxu1 %v7279_v24  ;;  %v5137_v31 = vld [vmem:[#allocation2 + $0x138] sm:$0xff] }
0x176a   : > { %v5136_v25 = vld [vmem:[#allocation2 + $0x130] sm:$0xff]  ;;  %v7696_v63 = vpack.c.bf16 %v5137_v31, %v10210_v36  ;;  %v7287_v36 = vpack.c.bf16 %v10255_v35, %v10480_v34 }
0x176b   : > { %v5085_v43 = vpop.permute.xlu0 %5084  ;;  %v7699_v19 = vpack.c.bf16 %v5136_v25, %v10227_v21  ;;  %v10487_v21 = vld [vmem:[#allocation2 + $0x170] sm:$0xff] }
0x176c   : > { %v5087_v6 = vsel %vm11359_vm4, %v5083_v8, %v5085_v43  ;;  %v5081_v39 = vpop.permute.xlu1 %5080  ;;  %7697 = vmatprep.subr.msk.bf16.mxu1 %vm10241_vm8, %v7696_v63  ;;  %vm11361_vm8 = vnez %v11334_v56 }
0x176d   : > { %v5091_v4 = vsel %vm5076_vm6, %v5087_v6, 0.0  ;;  %v5086_v42 = vsel %vm11360_vm3, %v5081_v39, %v5083_v8  ;;  %7700 = vmatpush1.bf16.msk.msra.mxu1 %vm10260_vm15, %v7699_v19  ;;  %vm11362_vm15 = vnez %v11336_v47 }
0x176e   : > { %5093 = vst [vmem:[#allocation2 + $0x198] sm:$0xf] %v5091_v4  ;;  %v5090_v26 = vsel %vm5075_vm9, %v5086_v42, 0.0  ;;  %7286 = vmatprep.subr.bf16.mxu1 %v7285_v48  ;;  %vm11367_vm9 = vcmask 1039360  }
0x176f   : > { %5092 = vst [vmem:[#allocation2 + $0x190] sm:$0xf] %v5090_v26  ;;  %v5539_v26 = vld [vmem:[#allocation2 + $0x8] sm:$0xff]  ;;  %vm11368_vm4 = vmmov %vm11367_vm9 }
0x1770   : > { %v5143_v60 = vld [vmem:[#allocation2 + $0x168] sm:$0xff]  ;;  %v5142_v37 = vld [vmem:[#allocation2 + $0x160] sm:$0xff] }
0x1771   : > { %7288 = vmatpush1.bf16.msra.mxu1 %v7287_v36  ;;  %v7289_v32 = vpack.c.bf16 %v10484_v33, %v5143_v60  ;;  %v7291_v49 = vpack.c.bf16 %v10487_v21, %v5142_v37  ;;  %v10520_v37 = vld [vmem:[#allocation2 + $0x38] sm:$0xff] }
0x1773   : > { %7290 = vmatprep.subr.bf16.mxu1 %v7289_v32 }
0x1775   : > { %7292 = vmatpush1.bf16.msra.mxu1 %v7291_v49  ;;  %v5149_v3 = vld [vmem:[#allocation2 + $0x198] sm:$0xff] }
0x1776   : > { %v5148_v50 = vld [vmem:[#allocation2 + $0x190] sm:$0xff]  ;;  %v7702_v2 = vpack.c.bf16 %v5149_v3, %v10272_v54 }
0x1777   : > { %v7705_v35 = vpack.c.bf16 %v5148_v50, %v10276_v41 }
0x1778   : > { %7703 = vmatprep.subr.msk.bf16.mxu1 %vm11361_vm8, %v7702_v2  ;;  %v5538_v2 = vld [vmem:[#allocation2] sm:$0xff] }
0x1779   : > { %7706 = vmatpush1.bf16.msk.msra.mxu1 %vm11362_vm15, %v7705_v35  ;;  %vm11369_vm15 = vcmask 1031168  }
0x177a   : > { %5213 = vmatprep.subr.mxu1 %v10496_v16 }
0x177c   : > { %v5155_v20 = vpop.permute.xlu0 %5154 }
0x177d   : > { %5214 = vmatpush1.msra.mxu1 %v10499_v5 }
0x177e   : > { %5226 = vmatmul.mubr.f32.vlgmr.msra.gmra.mrb[10].mxu1 %v10357_v15  ;;  %v5255_v15 = vsel %vm5254_vm12, 1, %v7716_v1  ;;  %vm11371_vm12 = vcmask 916480  }
0x177f   : > { %v5259_v24 = vrot.slane %v5255_v15, %v7842_v9  ;;  %v5263_v45 = vrot.slane %v5255_v15, %v7839_v7 }
0x1781   : > { %vm5264_vm5 = vcmp.eq.s32.totalorder %v5259_v24, 1  ;;  %vm5265_vm14 = vcmp.eq.s32.totalorder %v5263_v45, 1 }
0x1851   : > { %v5227_v54 = vpop.f32.mrb[10].mxu1 }
0x1852   : > { %v5228_v57 = vadd.f32 %v5227_v54, %v5155_v20  ;;  %v5229_v56 = vpop.f32.mrb[11].mxu1 }
0x1853   : > { %v5230_v40 = vadd.f32 %v5229_v56, %v5155_v20  ;;  %v7301_v20 = vpack.c.bf16 %v10520_v37, %v10320_v58 }
0x1854   : > { %vm5232_vm1 = vcmp.ge.f32.partialorder %v5228_v57, 0.0  ;;  %v5234_v41 = vmul.f32 0.2, %v5228_v57 }
0x1855   : > { %vm5233_vm0 = vcmp.ge.f32.partialorder %v5230_v40, 0.0  ;;  %v5235_v47 = vmul.f32 0.2, %v5230_v40 }
0x1856   : > { %v5236_v61 = vsel %vm5232_vm1, %v5228_v57, %v5234_v41  ;;  %v10532_v57 = vld [vmem:[#allocation2 + $0x30] sm:$0xff]  ;;  %vm11370_vm1 = vmmov %vm11369_vm15 }
0x1857   : > { %5240 = vrot.lane.b32.xlu1 %v5236_v61, %s7717_s28  ;;  %v5237_v53 = vsel %vm5233_vm0, %v5230_v40, %v5235_v47  ;;  %v7303_v47 = vpack.c.bf16 %v10532_v57, %v10331_v44 }
0x1858   : > { %5242 = vrot.lane.b32.xlu0 %v5237_v53, %s7717_s28 }
0x18c9   : > { %v5241_v12 = vpop.permute.xlu1 %5240 }
0x18ca   : > { %5248 = vst.msk [vmem:[#allocation3] sm:$0xf] %vm11363_vm10, %v5241_v12  ;;  %v5243_v46 = vpop.permute.xlu0 %5242 }
0x18cb   : > { %v5244_v55 = vsel %vm11364_vm7, %v5241_v12, %v5243_v46  ;;  %5250 = vst.msk [vmem:[#allocation3 + $0x10] sm:$0xf] %vm11365_vm13, %v5243_v46  ;;  %vm11372_vm13 = vmmov %vm11371_vm12 }
0x18cc   : > { %5249 = vst [vmem:[#allocation3 + $0x8] sm:$0xf] %v5244_v55 }
0x18d1   : > { %v5276_v51 = vld [vmem:[#allocation3] sm:$0xf] }
0x18d2   : > { %v5251_v52 = vld [vmem:[#allocation3] sm:$0xf]  ;;  %v5282_v23 = vrot.slane %v5276_v51, 4  ;;  %v5278_v17 = vld [vmem:[#allocation3 + $0x10] sm:$0xf] }
0x18d3   : > { %v5266_v8 = vsel %vm5264_vm5, %v5251_v52, 0.0  ;;  %v5252_v31 = vld [vmem:[#allocation3 + $0x8] sm:$0xf]  ;;  %v5284_v63 = vrot.slane %v5278_v17, 4  ;;  %v5297_v42 = vld [vmem:[#allocation3] sm:$0xf] }
0x18d4   : > { %v5298_v25 = vld [vmem:[#allocation3 + $0x8] sm:$0xf]  ;;  %v5270_v43 = vrot.slane %v5266_v8, 4  ;;  %5285 = vrot.lane.b32.xlu1 %v5282_v23, %s7718_s7  ;;  %v5267_v39 = vsel %vm5265_vm14, %v5252_v31, 0.0  ;;  %v5299_v19 = vld [vmem:[#allocation3 + $0x10] sm:$0xf] }
0x18d5   : > { %5318 = vrot.lane.b32.xlu0 %v5298_v25, %s7720_s8  ;;  %v5277_v6 = vld [vmem:[#allocation3 + $0x8] sm:$0xf]  ;;  %v5271_v4 = vrot.slane %v5267_v39, 4  ;;  %v5338_v36 = vld [vmem:[#allocation3 + $0x10] sm:$0xf]  ;;  %vm11373_vm5 = vcmask 908288  }
0x18d6   : > { %5274 = vst [vmem:[#allocation2 + $0x10] sm:$0xf0] %v5270_v43  ;;  %v5283_v48 = vrot.slane %v5277_v6, 4  ;;  %v5337_v32 = vld [vmem:[#allocation3 + $0x8] sm:$0xf]  ;;  %v10560_v43 = vld [vmem:[%s10959_s1 + $0x50] sm:$0xff] }
0x18d7   : > { %5275 = vst [vmem:[#allocation2 + $0x18] sm:$0xf0] %v5271_v4  ;;  %v5375_v3 = vld [vmem:[#allocation3] sm:$0xf]  ;;  %v5376_v56 = vld [vmem:[#allocation3 + $0x8] sm:$0xf]  ;;  %v5598_v6 = vcombine.high %v10560_v43, %v10560_v43 }
0x18d8   : > { %5287 = vrot.lane.b32.xlu1 %v5283_v48, %s7718_s7  ;;  %v5381_v54 = vrot.slane %v5375_v3, 4  ;;  %v5336_v40 = vld [vmem:[#allocation3] sm:$0xf]  ;;  %v5377_v41 = vld [vmem:[#allocation3 + $0x10] sm:$0xf]  ;;  %v5382_v61 = vrot.slane %v5376_v56, 4 }
0x18d9   : > { %5289 = vrot.lane.b32.xlu0 %v5284_v63, %s7718_s7  ;;  %v5383_v58 = vrot.slane %v5377_v41, 4  ;;  %v5398_v53 = vld [vmem:[#allocation3 + $0x10] sm:$0xf]  ;;  %v5397_v14 = vld [vmem:[#allocation3 + $0x8] sm:$0xf]  ;;  %6655 = vmatprep.mubr.msk.f32.mxu0 %vm11366_vm11, %v5598_v6  ;;  %v5551_v6 = vld [vmem:[#allocation2 + $0x68] sm:$0xff] }
0x18da   : > { %v5436_v15 = vld [vmem:[#allocation3 + $0x8] sm:$0xf]  ;;  %v5396_v12 = vld [vmem:[#allocation3] sm:$0xf]  ;;  %v5476_v46 = vld [vmem:[#allocation3 + $0x10] sm:$0xf] }
0x18db   : > { %v5435_v44 = vld [vmem:[#allocation3] sm:$0xf]  ;;  %v5437_v55 = vld [vmem:[#allocation3 + $0x10] sm:$0xf]  ;;  %v5482_v45 = vrot.slane %v5476_v46, 4  ;;  %vm11374_vm11 = vmmov %vm11373_vm5 }
0x18dc   : > { %5320 = vrot.lane.b32.xlu1 %v5299_v19, %s7720_s8  ;;  %v5474_v24 = vld [vmem:[#allocation3] sm:$0xf]  ;;  %v5475_v52 = vld [vmem:[#allocation3 + $0x8] sm:$0xf]  ;;  %v5497_v31 = vld [vmem:[#allocation3 + $0x10] sm:$0xf] }
0x18dd   : > { %5316 = vrot.lane.b32.xlu0 %v5297_v42, %s7720_s8  ;;  %v5540_v60 = vld [vmem:[#allocation2 + $0x10] sm:$0xff]  ;;  %v5480_v51 = vrot.slane %v5474_v24, 4  ;;  %v5496_v23 = vld [vmem:[#allocation3 + $0x8] sm:$0xf]  ;;  %v5481_v17 = vrot.slane %v5475_v52, 4 }
0x18de   : > { %v5541_v49 = vld [vmem:[#allocation2 + $0x18] sm:$0xff]  ;;  %v10526_v35 = vpack.c.bf16 %v5540_v60, %v5538_v2  ;;  %v5495_v8 = vld [vmem:[#allocation3] sm:$0xf]  ;;  %v6654_v25 = vld [vmem:[%s10960_s2 + $0x28] sm:$0xf] }
0x18df   : > { %v10524_v50 = vpack.c.bf16 %v5541_v49, %v5539_v26  ;;  %v6650_v39 = vld [vmem:[%s10963_s5 + $0x1] ss:$2 sm:$0x3]  ;;  %v5339_v63 = vld [vmem:[%s10963_s5] ss:$2 sm:$0x3] }
0x18e0   : > { %5357 = vrot.lane.b32.xlu1 %v5337_v32, %s7721_s9  ;;  %vm5301_vm2 = vcmp.gt.f32.partialorder %v6650_v39, 0.5  ;;  %vm5340_vm6 = vcmp.gt.f32.partialorder %v5339_v63, 0.5  ;;  %v5550_v39 = vld [vmem:[#allocation2 + $0x60] sm:$0xff] }
0x18e1   : > { %5359 = vrot.lane.b32.xlu0 %v5338_v36, %s7721_s9  ;;  %7298 = vmatprep.subr.bf16.mxu0 %v10524_v50  ;;  %v5302_v42 = vsel %vm5301_vm2, 1, %v7716_v1  ;;  %v5341_v32 = vsel %vm5340_vm6, 1, %v7716_v1  ;;  %vm11375_vm6 = vcmask 900096  }
0x18e2   : > { %7350 = vmatprep.subr.bf16.mxu1 %v10524_v50  ;;  %7300 = vmatpush1.bf16.msra.mxu0 %v10526_v35  ;;  %v5306_v19 = vrot.slane %v5302_v42, %v7842_v9  ;;  %v5310_v26 = vrot.slane %v5302_v42, %v7839_v7  ;;  %v5349_v2 = vrot.slane %v5341_v32, %v7839_v7 }
0x18e3   : > { %7352 = vmatpush1.bf16.msra.mxu1 %v10526_v35  ;;  %7302 = vmatprep.subr.bf16.mxu0 %v7301_v20 }
0x18e4   : > { %5355 = vrot.lane.b32.xlu1 %v5336_v40, %s7721_s9  ;;  %vm5311_vm3 = vcmp.eq.s32.totalorder %v5306_v19, 1  ;;  %vm5312_vm8 = vcmp.eq.s32.totalorder %v5310_v26, 1  ;;  %vm5351_vm0 = vcmp.eq.s32.totalorder %v5349_v2, 1  ;;  %v10599_v19 = vld [vmem:[#allocation2 + $0x98] sm:$0xff]  ;;  %v10610_v2 = vld [vmem:[#allocation2 + $0x90] sm:$0xff] }
0x18e5   : > { %5384 = vrot.lane.b32.xlu0 %v5381_v54, %s7722_s10 }
0x18e6   : > { %7304 = vmatpush1.bf16.msra.mxu0 %v7303_v47 }
0x18e8   : > { %5388 = vrot.lane.b32.xlu1 %v5383_v58, %s7722_s10 }
0x18e9   : > { %5386 = vrot.lane.b32.xlu0 %v5382_v61, %s7722_s10 }
0x18ec   : > { %5417 = vrot.lane.b32.xlu1 %v5397_v14, %s7723_s11 }
0x18ed   : > { %5419 = vrot.lane.b32.xlu0 %v5398_v53, %s7723_s11  ;;  %v6651_v53 = vld [vmem:[%s10963_s5 + $0x1] ss:$2 sm:$0x3] }
0x18ee   : > { %vm5400_vm10 = vcmp.gt.f32.partialorder %v6651_v53, 0.5 }
0x18f0   : > { %5415 = vrot.lane.b32.xlu1 %v5396_v12, %s7723_s11  ;;  %v5345_v12 = vrot.slane %v5341_v32, %v7842_v9 }
0x18f1   : > { %5456 = vrot.lane.b32.xlu0 %v5436_v15, %s7724_s12 }
0x18f2   : > { %vm5350_vm7 = vcmp.eq.s32.totalorder %v5345_v12, 1 }
0x18f4   : > { %5458 = vrot.lane.b32.xlu1 %v5437_v55, %s7724_s12 }
0x18f5   : > { %5454 = vrot.lane.b32.xlu0 %v5435_v44, %s7724_s12 }
0x18f8   : > { %5483 = vrot.lane.b32.xlu1 %v5480_v51, %s7725_s13 }
0x18f9   : > { %5487 = vrot.lane.b32.xlu0 %v5482_v45, %s7725_s13 }
0x18fc   : > { %5485 = vrot.lane.b32.xlu1 %v5481_v17, %s7725_s13 }
0x18fd   : > { %5516 = vrot.lane.b32.xlu0 %v5496_v23, %s7726_s14 }
0x1900   : > { %5518 = vrot.lane.b32.xlu1 %v5497_v31, %s7726_s14 }
0x1901   : > { %5514 = vrot.lane.b32.xlu0 %v5495_v8, %s7726_s14  ;;  %v5401_v8 = vsel %vm5400_vm10, 1, %v7716_v1 }
0x1904   : > { %5594 = vperm.xlu1 %7473, %v6654_v25   ;;  %v5438_v25 = vld [vmem:[%s10963_s5] ss:$2 sm:$0x3] }
0x1905   : > { %vm5439_vm14 = vcmp.gt.f32.partialorder %v5438_v25, 0.5 }
0x1946   : > { %v5286_v48 = vpop.permute.xlu1 %5285 }
0x1947   : > { %v5319_v4 = vpop.permute.xlu0 %5318 }
0x194a   : > { %v5288_v60 = vpop.permute.xlu1 %5287 }
0x194b   : > { %v5290_v36 = vpop.permute.xlu0 %5289  ;;  %v5291_v49 = vsel %vm11367_vm9, %v5286_v48, %v5288_v60 }
0x194c   : > { %v5292_v3 = vsel %vm11368_vm4, %v5288_v60, %v5290_v36  ;;  %5295 = vst [vmem:[#allocation2 + $0x40] sm:$0xf0] %v5291_v49  ;;  %vm11378_vm4 = vmmov %vm11375_vm6 }
0x194d   : > { %5296 = vst [vmem:[#allocation2 + $0x48] sm:$0xf0] %v5292_v3  ;;  %v7313_v3 = vpack.c.bf16 %v10599_v19, %v10393_v38 }
0x194e   : > { %v5321_v54 = vpop.permute.xlu1 %5320 }
0x194f   : > { %v5317_v20 = vpop.permute.xlu0 %5316  ;;  %v5323_v40 = vsel %vm11370_vm1, %v5319_v4, %v5321_v54  ;;  %v5405_v54 = vrot.slane %v5401_v8, %v7842_v9 }
0x1950   : > { %v5322_v56 = vsel %vm11369_vm15, %v5317_v20, %v5319_v4  ;;  %v5327_v47 = vsel %vm5312_vm8, %v5323_v40, 0.0  ;;  %v5409_v4 = vrot.slane %v5401_v8, %v7839_v7  ;;  %v5440_v40 = vsel %vm5439_vm14, 1, %v7716_v1 }
0x1951   : > { %v5326_v41 = vsel %vm5311_vm3, %v5322_v56, 0.0  ;;  %v5331_v58 = vrot.slane %v5327_v47, 4  ;;  %v5444_v53 = vrot.slane %v5440_v40, %v7842_v9  ;;  %vm10623_vm9 = vcmp.eq.s32.totalorder %v5405_v54, 1 }
0x1952   : > { %v5330_v61 = vrot.slane %v5326_v41, 4  ;;  %v5358_v15 = vpop.permute.xlu1 %5357  ;;  %vm5411_vm2 = vcmp.eq.s32.totalorder %v5409_v4, 1  ;;  %vm11383_vm15 = vcmask 785408  }
0x1953   : > { %v5360_v14 = vpop.permute.xlu0 %5359  ;;  %5335 = vst [vmem:[#allocation2 + $0x78] sm:$0xf0] %v5331_v58  ;;  %v10587_v55 = vld [vmem:[#allocation2 + $0x40] sm:$0xff]  ;;  %vm10638_vm3 = vcmp.eq.s32.totalorder %v5444_v53, 1 }
0x1954   : > { %5334 = vst [vmem:[#allocation2 + $0x70] sm:$0xf0] %v5330_v61  ;;  %v5362_v44 = vsel %vm11371_vm12, %v5358_v15, %v5360_v14  ;;  %v10585_v46 = vld [vmem:[#allocation2 + $0x48] sm:$0xff]  ;;  %v7307_v51 = vpack.c.bf16 %v10380_v28, %v10587_v55  ;;  %v7315_v61 = vpack.c.bf16 %v10610_v2, %v10408_v59  ;;  %vm11385_vm12 = vcmask 777216  }
0x1955   : > { %v5366_v24 = vsel %vm5351_vm0, %v5362_v44, 0.0  ;;  %v7305_v45 = vpack.c.bf16 %v10378_v22, %v10585_v46  ;;  %v5448_v44 = vrot.slane %v5440_v40, %v7839_v7  ;;  %vm11384_vm0 = vmmov %vm11383_vm15 }
0x1956   : > { %v5370_v52 = vrot.slane %v5366_v24, 4  ;;  %v5356_v17 = vpop.permute.xlu1 %5355  ;;  %vm11386_vm10 = vmmov %vm11385_vm12 }
0x1957   : > { %v5385_v23 = vpop.permute.xlu0 %5384  ;;  %7306 = vmatprep.subr.bf16.mxu0 %v7305_v45  ;;  %v5361_v31 = vsel %vm11372_vm13, %v5356_v17, %v5358_v15  ;;  %vm10644_vm8 = vcmp.eq.s32.totalorder %v5448_v44, 1 }
0x1958   : > { %5374 = vst [vmem:[#allocation2 + $0xa8] sm:$0xf0] %v5370_v52  ;;  %7308 = vmatpush1.bf16.msra.mxu0 %v7307_v51  ;;  %v5365_v22 = vsel %vm5350_vm7, %v5361_v31, 0.0  ;;  %v5563_v51 = vld [vmem:[#allocation2 + $0xc8] sm:$0xff] }
0x1959   : > { %v5369_v28 = vrot.slane %v5365_v22, 4 }
0x195a   : > { %v5553_v48 = vld [vmem:[#allocation2 + $0x78] sm:$0xff]  ;;  %v5389_v36 = vpop.permute.xlu1 %5388 }
0x195b   : > { %v5387_v63 = vpop.permute.xlu0 %5386  ;;  %v5552_v42 = vld [vmem:[#allocation2 + $0x70] sm:$0xff]  ;;  %v10602_v60 = vpack.c.bf16 %v5553_v48, %v5551_v6  ;;  %5373 = vst [vmem:[#allocation2 + $0xa0] sm:$0xf0] %v5369_v28  ;;  %v5562_v48 = vld [vmem:[#allocation2 + $0xc0] sm:$0xff] }
0x195c   : > { %v5390_v26 = vsel %vm11373_vm5, %v5385_v23, %v5387_v63  ;;  %v10604_v32 = vpack.c.bf16 %v5552_v42, %v5550_v39  ;;  %v5391_v49 = vsel %vm11374_vm11, %v5387_v63, %v5389_v36  ;;  %v6652_v23 = vld [vmem:[%s10963_s5 + $0x1] ss:$2 sm:$0x3]  ;;  %v10648_v39 = vld [vmem:[#allocation2 + $0xf8] sm:$0xff]  ;;  %vm11387_vm5 = vcmask 769024  }
0x195d   : > { %5394 = vst [vmem:[#allocation2 + $0xd0] sm:$0xf0] %v5390_v26  ;;  %5395 = vst [vmem:[#allocation2 + $0xd8] sm:$0xf0] %v5391_v49  ;;  %7310 = vmatprep.subr.bf16.mxu0 %v10602_v60  ;;  %vm5499_vm1 = vcmp.gt.f32.partialorder %v6652_v23, 0.5  ;;  %v5575_v23 = vld [vmem:[#allocation2 + $0x128] sm:$0xff] }
0x195e   : > { %7312 = vmatpush1.bf16.msra.mxu0 %v10604_v32  ;;  %v5418_v41 = vpop.permute.xlu1 %5417  ;;  %vm11388_vm14 = vmmov %vm11387_vm5 }
0x195f   : > { %v5420_v20 = vpop.permute.xlu0 %5419  ;;  %v10614_v56 = vld [vmem:[#allocation2 + $0xa8] sm:$0xff]  ;;  %7314 = vmatprep.subr.bf16.mxu0 %v7313_v3  ;;  %v7325_v3 = vpack.c.bf16 %v10648_v39, %v10443_v30 }
0x1960   : > { %v5422_v47 = vsel %vm11375_vm6, %v5418_v41, %v5420_v20  ;;  %v7317_v58 = vpack.c.bf16 %v10412_v10, %v10614_v56  ;;  %v10661_v20 = vld [vmem:[#allocation2 + $0xf0] sm:$0xff] }
0x1961   : > { %v5426_v38 = vsel %vm5411_vm2, %v5422_v47, 0.0 }
0x1962   : > { %v5430_v14 = vrot.slane %v5426_v38, 4  ;;  %7316 = vmatpush1.bf16.msra.mxu0 %v7315_v61  ;;  %v5416_v24 = vpop.permute.xlu1 %5415  ;;  %v10628_v45 = vld [vmem:[#allocation2 + $0xa0] sm:$0xff]  ;;  %v7327_v38 = vpack.c.bf16 %v10661_v20, %v10451_v13 }
0x1963   : > { %v5457_v15 = vpop.permute.xlu0 %5456  ;;  %7318 = vmatprep.subr.bf16.mxu0 %v7317_v58  ;;  %v5421_v59 = vsel %vm11378_vm4, %v5416_v24, %v5418_v41  ;;  %v7319_v10 = vpack.c.bf16 %v10422_v0, %v10628_v45  ;;  %v5500_v41 = vsel %vm5499_vm1, 1, %v7716_v1  ;;  %vm11390_vm4 = vcmask 138240  }
0x1964   : > { %5434 = vst [vmem:[#allocation2 + $0x108] sm:$0xf0] %v5430_v14  ;;  %v5565_v52 = vld [vmem:[#allocation2 + $0xd8] sm:$0xff]  ;;  %v5425_v17 = vsel %vm10623_vm9, %v5421_v59, 0.0  ;;  %v5564_v25 = vld [vmem:[#allocation2 + $0xd0] sm:$0xff]  ;;  %v5504_v58 = vrot.slane %v5500_v41, %v7842_v9  ;;  %v5508_v14 = vrot.slane %v5500_v41, %v7839_v7  ;;  %v5574_v59 = vld [vmem:[#allocation2 + $0x120] sm:$0xff] }
0x1965   : > { %v10642_v31 = vpack.c.bf16 %v5565_v52, %v5563_v51  ;;  %v5429_v22 = vrot.slane %v5425_v17, 4  ;;  %v10655_v26 = vpack.c.bf16 %v5564_v25, %v5562_v48  ;;  %v10682_v25 = vld [vmem:[#allocation2 + $0x158] sm:$0xff]  ;;  %v5587_v41 = vld [vmem:[#allocation2 + $0x188] sm:$0xff]  ;;  %vm11389_vm9 = vcmask 1043592  }
0x1966   : > { %7320 = vmatpush1.bf16.msra.mxu0 %v7319_v10  ;;  %v5459_v63 = vpop.permute.xlu1 %5458  ;;  %vm5509_vm7 = vcmp.eq.s32.totalorder %v5504_v58, 1  ;;  %vm5510_vm13 = vcmp.eq.s32.totalorder %v5508_v14, 1  ;;  %v7337_v48 = vpack.c.bf16 %v10682_v25, %v10468_v29  ;;  %vm11392_vm1 = vcmask 719872  }
0x1967   : > { %v5455_v6 = vpop.permute.xlu0 %5454  ;;  %7322 = vmatprep.subr.bf16.mxu0 %v10642_v31  ;;  %5433 = vst [vmem:[#allocation2 + $0x100] sm:$0xf0] %v5429_v22  ;;  %v5461_v42 = vsel %vm11384_vm0, %v5457_v15, %v5459_v63 }
0x1968   : > { %v5460_v28 = vsel %vm11383_vm15, %v5455_v6, %v5457_v15  ;;  %v5465_v49 = vsel %vm10644_vm8, %v5461_v42, 0.0 }
0x1969   : > { %v5464_v4 = vsel %vm10638_vm3, %v5460_v28, 0.0  ;;  %v5469_v54 = vrot.slane %v5465_v49, 4  ;;  %vm11391_vm3 = vcmask 134144  }
0x196a   : > { %v5468_v36 = vrot.slane %v5464_v4, 4  ;;  %7324 = vmatpush1.bf16.msra.mxu0 %v10655_v26  ;;  %v5484_v47 = vpop.permute.xlu1 %5483  ;;  %v10690_v4 = vld [vmem:[#allocation2 + $0x150] sm:$0xff] }
0x196b   : > { %v5488_v40 = vpop.permute.xlu0 %5487  ;;  %7326 = vmatprep.subr.bf16.mxu0 %v7325_v3  ;;  %v10665_v61 = vld [vmem:[#allocation2 + $0x108] sm:$0xff]  ;;  %5473 = vst [vmem:[#allocation2 + $0x138] sm:$0xf0] %v5469_v54  ;;  %v5586_v54 = vld [vmem:[#allocation2 + $0x180] sm:$0xff] }
0x196c   : > { %5472 = vst [vmem:[#allocation2 + $0x130] sm:$0xf0] %v5468_v36  ;;  %v7329_v30 = vpack.c.bf16 %v10454_v18, %v10665_v61  ;;  %v7339_v36 = vpack.c.bf16 %v10690_v4, %v10480_v34 }
0x196e   : > { %7328 = vmatpush1.bf16.msra.mxu0 %v7327_v38  ;;  %v5486_v15 = vpop.permute.xlu1 %5485  ;;  %v10673_v12 = vld [vmem:[#allocation2 + $0x100] sm:$0xff] }
0x196f   : > { %v5517_v53 = vpop.permute.xlu0 %5516  ;;  %7330 = vmatprep.subr.bf16.mxu0 %v7329_v30  ;;  %v5489_v44 = vsel %vm11385_vm12, %v5484_v47, %v5486_v15  ;;  %v5490_v24 = vsel %vm11386_vm10, %v5486_v15, %v5488_v40  ;;  %v7331_v13 = vpack.c.bf16 %v10460_v27, %v10673_v12  ;;  %vm11393_vm10 = vcmask 1039360  }
0x1970   : > { %5493 = vst [vmem:[#allocation2 + $0x160] sm:$0xf0] %v5489_v44  ;;  %5494 = vst [vmem:[#allocation2 + $0x168] sm:$0xf0] %v5490_v24 }
0x1972   : > { %7332 = vmatpush1.bf16.msra.mxu0 %v7331_v13  ;;  %v5519_v52 = vpop.permute.xlu1 %5518  ;;  %v5577_v17 = vld [vmem:[#allocation2 + $0x138] sm:$0xff] }
0x1973   : > { %v5515_v18 = vpop.permute.xlu0 %5514  ;;  %v5576_v10 = vld [vmem:[#allocation2 + $0x130] sm:$0xff]  ;;  %v5521_v27 = vsel %vm11388_vm14, %v5517_v53, %v5519_v52  ;;  %v10685_v6 = vpack.c.bf16 %v5577_v17, %v5575_v23  ;;  %vm11395_vm14 = vcmask 1031168  }
0x1974   : > { %v5520_v51 = vsel %vm11387_vm5, %v5515_v18, %v5517_v53  ;;  %v10680_v8 = vpack.c.bf16 %v5576_v10, %v5574_v59  ;;  %v5525_v28 = vsel %vm5510_vm13, %v5521_v27, 0.0 }
0x1975   : > { %v5524_v22 = vsel %vm5509_vm7, %v5520_v51, 0.0  ;;  %v5529_v63 = vrot.slane %v5525_v28, 4  ;;  %7334 = vmatprep.subr.bf16.mxu0 %v10685_v6  ;;  %vm11394_vm7 = vmmov %vm11393_vm10 }
0x1976   : > { %v5528_v0 = vrot.slane %v5524_v22, 4  ;;  %7336 = vmatpush1.bf16.msra.mxu0 %v10680_v8 }
0x1977   : > { %5533 = vst [vmem:[#allocation2 + $0x198] sm:$0xf0] %v5529_v63  ;;  %7338 = vmatprep.subr.bf16.mxu0 %v7337_v48  ;;  %v10693_v42 = vld [vmem:[#allocation2 + $0x168] sm:$0xff]  ;;  %v10699_v3 = vld [vmem:[#allocation2 + $0x160] sm:$0xff] }
0x1978   : > { %5532 = vst [vmem:[#allocation2 + $0x190] sm:$0xf0] %v5528_v0  ;;  %v7341_v49 = vpack.c.bf16 %v10484_v33, %v10693_v42  ;;  %v7343_v29 = vpack.c.bf16 %v10487_v21, %v10699_v3 }
0x197a   : > { %7340 = vmatpush1.bf16.msra.mxu0 %v7339_v36 }
0x197b   : > { %7342 = vmatprep.subr.bf16.mxu0 %v7341_v49 }
0x197e   : > { %7344 = vmatpush1.bf16.msra.mxu0 %v7343_v29  ;;  %v5589_v47 = vld [vmem:[#allocation2 + $0x198] sm:$0xff] }
0x197f   : > { %v5588_v40 = vld [vmem:[#allocation2 + $0x190] sm:$0xff]  ;;  %v10705_v30 = vpack.c.bf16 %v5589_v47, %v5587_v41 }
0x1980   : > { %v10703_v38 = vpack.c.bf16 %v5588_v40, %v5586_v54 }
0x1981   : > { %7346 = vmatprep.subr.bf16.mxu0 %v10705_v30 }
0x1982   : > { %7348 = vmatpush1.bf16.msra.mxu0 %v10703_v38 }
0x1983   : > { %5653 = vmatprep.subr.mxu0 %v10496_v16  ;;  %v5595_v34 = vpop.permute.xlu1 %5594 }
0x1986   : > { %5654 = vmatpush1.msra.mxu0 %v10499_v5  ;;  %v5693_v5 = vld [vmem:[%s10963_s5] ss:$2 sm:$0x3] }
0x1987   : > { %5666 = vmatmul.mubr.f32.vlgmr.msra.gmra.mrb[12].mxu0 %v10560_v43  ;;  %7402 = vmatprep.subr.bf16.mxu0 %v10524_v50  ;;  %vm5694_vm6 = vcmp.gt.f32.partialorder %v5693_v5, 0.5 }
0x1988   : > { %7404 = vmatpush1.bf16.msra.mxu0 %v10526_v35  ;;  %v5695_v43 = vsel %vm5694_vm6, 1, %v7716_v1  ;;  %vm11397_vm6 = vcmask 916480  }
0x1989   : > { %v5699_v13 = vrot.slane %v5695_v43, %v7842_v9  ;;  %v5703_v18 = vrot.slane %v5695_v43, %v7839_v7  ;;  %v6660_v43 = vld [vmem:[%s10960_s2 + $0x2c] sm:$0xf] }
0x198b   : > { %vm5704_vm8 = vcmp.eq.s32.totalorder %v5699_v13, 1  ;;  %vm5705_vm15 = vcmp.eq.s32.totalorder %v5703_v18, 1  ;;  %v6656_v13 = vld [vmem:[%s10963_s5 + $0x1] ss:$2 sm:$0x3] }
0x198c   : > { %vm5732_vm0 = vcmp.gt.f32.partialorder %v6656_v13, 0.5  ;;  %v5764_v18 = vld [vmem:[%s10963_s5] ss:$2 sm:$0x3] }
0x198d   : > { %vm5765_vm12 = vcmp.gt.f32.partialorder %v5764_v18, 0.5 }
0x1a5a   : > { %v5667_v33 = vpop.f32.mrb[12].mxu0 }
0x1a5b   : > { %v5668_v21 = vadd.f32 %v5667_v33, %v5595_v34  ;;  %v5669_v58 = vpop.f32.mrb[13].mxu0 }
0x1a5c   : > { %v5670_v53 = vadd.f32 %v5669_v58, %v5595_v34 }
0x1a5d   : > { %vm5672_vm11 = vcmp.ge.f32.partialorder %v5668_v21, 0.0  ;;  %v5674_v14 = vmul.f32 0.2, %v5668_v21 }
0x1a5e   : > { %vm5673_vm2 = vcmp.ge.f32.partialorder %v5670_v53, 0.0  ;;  %v5675_v15 = vmul.f32 0.2, %v5670_v53 }
0x1a5f   : > { %v5676_v44 = vsel %vm5672_vm11, %v5668_v21, %v5674_v14  ;;  %vm11396_vm11 = vmmov %vm11395_vm14 }
0x1a60   : > { %5680 = vrot.lane.b32.xlu0 %v5676_v44, %s7717_s28  ;;  %v5677_v16 = vsel %vm5673_vm2, %v5670_v53, %v5675_v15 }
0x1a61   : > { %5682 = vrot.lane.b32.xlu1 %v5677_v16, %s7717_s28 }
0x1ad2   : > { %v5681_v50 = vpop.permute.xlu0 %5680 }
0x1ad3   : > { %5688 = vst.msk [vmem:[#allocation3] sm:$0xf] %vm11389_vm9, %v5681_v50  ;;  %v5683_v35 = vpop.permute.xlu1 %5682 }
0x1ad4   : > { %v5684_v24 = vsel %vm11390_vm4, %v5681_v50, %v5683_v35  ;;  %5690 = vst.msk [vmem:[#allocation3 + $0x10] sm:$0xf] %vm11391_vm3, %v5683_v35  ;;  %v10753_v35 = vld [vmem:[%s10959_s1 + $0x58] sm:$0xff]  ;;  %vm11398_vm3 = vmmov %vm11397_vm6 }
0x1ad5   : > { %5689 = vst [vmem:[#allocation3 + $0x8] sm:$0xf] %v5684_v24  ;;  %v5993_v24 = vcombine.high %v10753_v35, %v10753_v35 }
0x1ad7   : > { %6661 = vmatprep.mubr.msk.f32.mxu1 %vm11392_vm1, %v5993_v24 }
0x1ada   : > { %v5710_v59 = vld [vmem:[#allocation3] sm:$0xf] }
0x1adb   : > { %v5691_v10 = vld [vmem:[#allocation3] sm:$0xf]  ;;  %5716 = vrot.lane.b32.xlu0 %v5710_v59, %s7718_s7  ;;  %v5712_v51 = vld [vmem:[#allocation3 + $0x10] sm:$0xf] }
0x1adc   : > { %5720 = vrot.lane.b32.xlu1 %v5712_v51, %s7718_s7  ;;  %v5692_v52 = vld [vmem:[#allocation3 + $0x8] sm:$0xf]  ;;  %v5706_v23 = vsel %vm5704_vm8, %v5691_v10, 0.0  ;;  %v5728_v27 = vld [vmem:[#allocation3] sm:$0xf]  ;;  %v5733_v51 = vsel %vm5732_vm0, 1, %v7716_v1 }
0x1add   : > { %v5711_v17 = vld [vmem:[#allocation3 + $0x8] sm:$0xf]  ;;  %v5707_v22 = vsel %vm5705_vm15, %v5692_v52, 0.0  ;;  %5708 = vst [vmem:[#allocation2 + $0x20] sm:$0xf] %v5706_v23  ;;  %v5737_v23 = vrot.slane %v5733_v51, %v7842_v9  ;;  %vm11399_vm15 = vcmask 908288  }
0x1ade   : > { %5709 = vst [vmem:[#allocation2 + $0x28] sm:$0xf] %v5707_v22  ;;  %v5730_v0 = vld [vmem:[#allocation3 + $0x10] sm:$0xf]  ;;  %v5729_v28 = vld [vmem:[#allocation3 + $0x8] sm:$0xf]  ;;  %vm11400_vm1 = vmmov %vm11399_vm15 }
0x1adf   : > { %5718 = vrot.lane.b32.xlu0 %v5711_v17, %s7718_s7  ;;  %v5762_v48 = vld [vmem:[#allocation3 + $0x8] sm:$0xf]  ;;  %v5763_v49 = vld [vmem:[#allocation3 + $0x10] sm:$0xf]  ;;  %v5761_v40 = vld [vmem:[#allocation3] sm:$0xf]  ;;  %v5741_v17 = vrot.slane %v5733_v51, %v7839_v7 }
0x1ae0   : > { %5747 = vrot.lane.b32.xlu1 %v5728_v27, %s7720_s8  ;;  %v5794_v41 = vld [vmem:[#allocation3] sm:$0xf]  ;;  %v5796_v47 = vld [vmem:[#allocation3 + $0x10] sm:$0xf]  ;;  %v5795_v34 = vld [vmem:[#allocation3 + $0x8] sm:$0xf] }
0x1ae1   : > { %v5813_v33 = vld [vmem:[#allocation3 + $0x8] sm:$0xf]  ;;  %v5847_v58 = vld [vmem:[#allocation3 + $0x10] sm:$0xf]  ;;  %v5845_v53 = vld [vmem:[#allocation3] sm:$0xf] }
0x1ae2   : > { %v5846_v21 = vld [vmem:[#allocation3 + $0x8] sm:$0xf]  ;;  %v5880_v15 = vld [vmem:[#allocation3 + $0x10] sm:$0xf]  ;;  %v5878_v44 = vld [vmem:[#allocation3] sm:$0xf] }
0x1ae3   : > { %5751 = vrot.lane.b32.xlu0 %v5730_v0, %s7720_s8  ;;  %v5879_v14 = vld [vmem:[#allocation3 + $0x8] sm:$0xf]  ;;  %v5898_v5 = vld [vmem:[#allocation3 + $0x10] sm:$0xf]  ;;  %v5896_v50 = vld [vmem:[#allocation3] sm:$0xf] }
0x1ae4   : > { %5749 = vrot.lane.b32.xlu1 %v5729_v28, %s7720_s8  ;;  %v5937_v63 = vld [vmem:[#allocation2 + $0x20] sm:$0xff]  ;;  %v5897_v16 = vld [vmem:[#allocation3 + $0x8] sm:$0xf]  ;;  %v5766_v28 = vsel %vm5765_vm12, 1, %v7716_v1  ;;  %vm5742_vm13 = vcmp.eq.s32.totalorder %v5737_v23, 1  ;;  %vm5743_vm5 = vcmp.eq.s32.totalorder %v5741_v17, 1 }
0x1ae5   : > { %v5938_v36 = vld [vmem:[#allocation2 + $0x28] sm:$0xff]  ;;  %v7355_v54 = vpack.c.bf16 %v10532_v57, %v5937_v63  ;;  %v5812_v57 = vld [vmem:[#allocation3] sm:$0xf]  ;;  %vm11401_vm12 = vcmask 900096  }
0x1ae6   : > { %v7353_v29 = vpack.c.bf16 %v10520_v37, %v5938_v36  ;;  %v5814_v37 = vld [vmem:[#allocation3 + $0x10] sm:$0xf] }
0x1ae7   : > { %5782 = vrot.lane.b32.xlu0 %v5762_v48, %s7721_s9  ;;  %v5774_v48 = vrot.slane %v5766_v28, %v7839_v7 }
0x1ae8   : > { %5784 = vrot.lane.b32.xlu1 %v5763_v49, %s7721_s9  ;;  %7354 = vmatprep.subr.bf16.mxu1 %v7353_v29 }
0x1ae9   : > { %7356 = vmatpush1.bf16.msra.mxu1 %v7355_v54  ;;  %vm5776_vm2 = vcmp.eq.s32.totalorder %v5774_v48, 1 }
0x1aeb   : > { %5780 = vrot.lane.b32.xlu0 %v5761_v40, %s7721_s9 }
0x1aec   : > { %5800 = vrot.lane.b32.xlu1 %v5794_v41, %s7722_s10  ;;  %v5770_v41 = vrot.slane %v5766_v28, %v7842_v9 }
0x1aee   : > { %vm5775_vm4 = vcmp.eq.s32.totalorder %v5770_v41, 1 }
0x1aef   : > { %5804 = vrot.lane.b32.xlu0 %v5796_v47, %s7722_s10  ;;  %v6657_v47 = vld [vmem:[%s10963_s5 + $0x1] ss:$2 sm:$0x3] }
0x1af0   : > { %5802 = vrot.lane.b32.xlu1 %v5795_v34, %s7722_s10  ;;  %vm5816_vm9 = vcmp.gt.f32.partialorder %v6657_v47, 0.5 }
0x1af3   : > { %5833 = vrot.lane.b32.xlu0 %v5813_v33, %s7723_s11 }
0x1af4   : > { %5835 = vrot.lane.b32.xlu1 %v5814_v37, %s7723_s11 }
0x1af7   : > { %5831 = vrot.lane.b32.xlu0 %v5812_v57, %s7723_s11 }
0x1af8   : > { %5866 = vrot.lane.b32.xlu1 %v5846_v21, %s7724_s12 }
0x1afb   : > { %5868 = vrot.lane.b32.xlu0 %v5847_v58, %s7724_s12 }
0x1afc   : > { %5864 = vrot.lane.b32.xlu1 %v5845_v53, %s7724_s12 }
0x1aff   : > { %5886 = vrot.lane.b32.xlu0 %v5879_v14, %s7725_s13 }
0x1b00   : > { %5888 = vrot.lane.b32.xlu1 %v5880_v15, %s7725_s13 }
0x1b03   : > { %5884 = vrot.lane.b32.xlu0 %v5878_v44, %s7725_s13 }
0x1b04   : > { %5917 = vrot.lane.b32.xlu1 %v5897_v16, %s7726_s14 }
0x1b07   : > { %5919 = vrot.lane.b32.xlu0 %v5898_v5, %s7726_s14  ;;  %v5817_v5 = vsel %vm5816_vm9, 1, %v7716_v1 }
0x1b08   : > { %5915 = vrot.lane.b32.xlu1 %v5896_v50, %s7726_s14  ;;  %v5825_v13 = vrot.slane %v5817_v5, %v7839_v7  ;;  %v5821_v23 = vrot.slane %v5817_v5, %v7842_v9 }
0x1b0a   : > { %vm5827_vm0 = vcmp.eq.s32.totalorder %v5825_v13, 1 }
0x1b0b   : > { %5989 = vperm.xlu0 %7472, %v6660_v43  }
0x1b4d   : > { %v5717_v59 = vpop.permute.xlu0 %5716 }
0x1b4e   : > { %v5721_v10 = vpop.permute.xlu1 %5720 }
0x1b51   : > { %v5719_v52 = vpop.permute.xlu0 %5718 }
0x1b52   : > { %v5722_v22 = vsel %vm11393_vm10, %v5717_v59, %v5719_v52  ;;  %v5723_v27 = vsel %vm11394_vm7, %v5719_v52, %v5721_v10  ;;  %v5748_v0 = vpop.permute.xlu1 %5747  ;;  %vm5826_vm10 = vcmp.eq.s32.totalorder %v5821_v23, 1  ;;  %vm11402_vm7 = vmmov %vm11401_vm12 }
0x1b53   : > { %5726 = vst [vmem:[#allocation2 + $0x50] sm:$0xf] %v5722_v22  ;;  %5727 = vst [vmem:[#allocation2 + $0x58] sm:$0xf] %v5723_v27 }
0x1b55   : > { %v5752_v63 = vpop.permute.xlu0 %5751 }
0x1b56   : > { %v5750_v36 = vpop.permute.xlu1 %5749 }
0x1b57   : > { %v5753_v49 = vsel %vm11395_vm14, %v5748_v0, %v5750_v36  ;;  %v5754_v29 = vsel %vm11396_vm11, %v5750_v36, %v5752_v63  ;;  %vm11403_vm14 = vcmask 785408  }
0x1b58   : > { %v5757_v54 = vsel %vm5742_vm13, %v5753_v49, 0.0  ;;  %v5758_v40 = vsel %vm5743_vm5, %v5754_v29, 0.0 }
0x1b59   : > { %5759 = vst [vmem:[#allocation2 + $0x80] sm:$0xf] %v5757_v54  ;;  %5760 = vst [vmem:[#allocation2 + $0x88] sm:$0xf] %v5758_v40  ;;  %v5783_v34 = vpop.permute.xlu0 %5782 }
0x1b5a   : > { %v5785_v33 = vpop.permute.xlu1 %5784  ;;  %v5944_v37 = vld [vmem:[#allocation2 + $0x58] sm:$0xff]  ;;  %v5943_v57 = vld [vmem:[#allocation2 + $0x50] sm:$0xff]  ;;  %v6658_v40 = vld [vmem:[%s10963_s5 + $0x1] ss:$2 sm:$0x3] }
0x1b5b   : > { %v5787_v21 = vsel %vm11397_vm6, %v5783_v34, %v5785_v33  ;;  %v7357_v58 = vpack.c.bf16 %v5944_v37, %v10585_v46  ;;  %v7359_v53 = vpack.c.bf16 %v5943_v57, %v10587_v55  ;;  %v5848_v46 = vld [vmem:[%s10963_s5] ss:$2 sm:$0x3]  ;;  %vm5900_vm11 = vcmp.gt.f32.partialorder %v6658_v40, 0.5 }
0x1b5c   : > { %v5791_v14 = vsel %vm5776_vm2, %v5787_v21, 0.0  ;;  %vm5849_vm8 = vcmp.gt.f32.partialorder %v5848_v46, 0.5  ;;  %vm11404_vm2 = vmmov %vm11403_vm14  ;;  %vm11405_vm6 = vcmask 777216  }
0x1b5d   : > { %5793 = vst [vmem:[#allocation2 + $0xb8] sm:$0xf] %v5791_v14  ;;  %v5781_v15 = vpop.permute.xlu0 %5780  ;;  %7358 = vmatprep.subr.bf16.mxu1 %v7357_v58  ;;  %v5850_v22 = vsel %vm5849_vm8, 1, %v7716_v1  ;;  %v5901_v14 = vsel %vm5900_vm11, 1, %v7716_v1  ;;  %vm11406_vm9 = vmmov %vm11405_vm6  ;;  %vm11407_vm8 = vcmask 769024   ;;  %vm11412_vm11 = vcmask 719872  }
0x1b5e   : > { %v5786_v44 = vsel %vm11398_vm3, %v5781_v15, %v5783_v34  ;;  %v5801_v16 = vpop.permute.xlu1 %5800  ;;  %7360 = vmatpush1.bf16.msra.mxu1 %v7359_v53  ;;  %v5854_v36 = vrot.slane %v5850_v22, %v7842_v9  ;;  %v5909_v5 = vrot.slane %v5901_v14, %v7839_v7 }
0x1b5f   : > { %v5790_v50 = vsel %vm5775_vm4, %v5786_v44, 0.0  ;;  %7362 = vmatprep.subr.bf16.mxu1 %v10602_v60 }
0x1b60   : > { %5792 = vst [vmem:[#allocation2 + $0xb0] sm:$0xf] %v5790_v50  ;;  %v5950_v55 = vld [vmem:[#allocation2 + $0x88] sm:$0xff]  ;;  %v5949_v18 = vld [vmem:[#allocation2 + $0x80] sm:$0xff]  ;;  %vm5859_vm5 = vcmp.eq.s32.totalorder %v5854_v36, 1  ;;  %vm5911_vm4 = vcmp.eq.s32.totalorder %v5909_v5, 1 }
0x1b61   : > { %v5805_v43 = vpop.permute.xlu0 %5804  ;;  %v7365_v24 = vpack.c.bf16 %v10599_v19, %v5950_v55  ;;  %v7367_v51 = vpack.c.bf16 %v10610_v2, %v5949_v18  ;;  %v5858_v2 = vrot.slane %v5850_v22, %v7839_v7  ;;  %v6380_v5 = vld [vmem:[#allocation2 + $0x30] sm:$0xff] }
0x1b62   : > { %v5803_v59 = vpop.permute.xlu1 %5802  ;;  %7364 = vmatpush1.bf16.msra.mxu1 %v10604_v32 }
0x1b63   : > { %v5806_v10 = vsel %vm11399_vm15, %v5801_v16, %v5803_v59  ;;  %v5807_v60 = vsel %vm11400_vm1, %v5803_v59, %v5805_v43  ;;  %7366 = vmatprep.subr.bf16.mxu1 %v7365_v24  ;;  %vm5860_vm13 = vcmp.eq.s32.totalorder %v5858_v2, 1  ;;  %vm11408_vm15 = vmmov %vm11407_vm8 }
0x1b64   : > { %5810 = vst [vmem:[#allocation2 + $0xe0] sm:$0xf] %v5806_v10  ;;  %5811 = vst [vmem:[#allocation2 + $0xe8] sm:$0xf] %v5807_v60  ;;  %v5956_v52 = vld [vmem:[#allocation2 + $0xb8] sm:$0xff] }
0x1b65   : > { %v5834_v19 = vpop.permute.xlu0 %5833  ;;  %v7369_v17 = vpack.c.bf16 %v5956_v52, %v10614_v56 }
0x1b66   : > { %v5836_v32 = vpop.permute.xlu1 %5835  ;;  %7368 = vmatpush1.bf16.msra.mxu1 %v7367_v51 }
0x1b67   : > { %v5838_v27 = vsel %vm11401_vm12, %v5834_v19, %v5836_v32  ;;  %7370 = vmatprep.subr.bf16.mxu1 %v7369_v17  ;;  %v5955_v0 = vld [vmem:[#allocation2 + $0xb0] sm:$0xff] }
0x1b68   : > { %v5842_v28 = vsel %vm5827_vm0, %v5838_v27, 0.0  ;;  %v7371_v63 = vpack.c.bf16 %v5955_v0, %v10628_v45 }
0x1b69   : > { %5844 = vst [vmem:[#allocation2 + $0x118] sm:$0xf] %v5842_v28  ;;  %v5832_v48 = vpop.permute.xlu0 %5831 }
0x1b6a   : > { %v5837_v56 = vsel %vm11402_vm7, %v5832_v48, %v5834_v19  ;;  %v5867_v49 = vpop.permute.xlu1 %5866  ;;  %7372 = vmatpush1.bf16.msra.mxu1 %v7371_v63  ;;  %vm11410_vm7 = vcmask 138240  }
0x1b6b   : > { %v5841_v29 = vsel %vm5826_vm10, %v5837_v56, 0.0  ;;  %7374 = vmatprep.subr.bf16.mxu1 %v10642_v31  ;;  %v5962_v54 = vld [vmem:[#allocation2 + $0xe8] sm:$0xff]  ;;  %v5961_v47 = vld [vmem:[#allocation2 + $0xe0] sm:$0xff]  ;;  %vm11409_vm10 = vcmask 1043592  }
0x1b6c   : > { %5843 = vst [vmem:[#allocation2 + $0x110] sm:$0xf] %v5841_v29  ;;  %v7377_v45 = vpack.c.bf16 %v10648_v39, %v5962_v54  ;;  %v7379_v21 = vpack.c.bf16 %v10661_v20, %v5961_v47  ;;  %v5905_v20 = vrot.slane %v5901_v14, %v7842_v9 }
0x1b6d   : > { %v5869_v41 = vpop.permute.xlu0 %5868 }
0x1b6e   : > { %v5871_v34 = vsel %vm11403_vm14, %v5867_v49, %v5869_v41  ;;  %v5865_v33 = vpop.permute.xlu1 %5864  ;;  %7376 = vmatpush1.bf16.msra.mxu1 %v10655_v26  ;;  %vm5910_vm3 = vcmp.eq.s32.totalorder %v5905_v20, 1 }
0x1b6f   : > { %v5875_v37 = vsel %vm5860_vm13, %v5871_v34, 0.0  ;;  %v5870_v31 = vsel %vm11404_vm2, %v5865_v33, %v5867_v49  ;;  %7378 = vmatprep.subr.bf16.mxu1 %v7377_v45  ;;  %vm11411_vm13 = vcmask 134144  }
0x1b70   : > { %5877 = vst [vmem:[#allocation2 + $0x148] sm:$0xf] %v5875_v37  ;;  %v5874_v57 = vsel %vm5859_vm5, %v5870_v31, 0.0  ;;  %v5968_v58 = vld [vmem:[#allocation2 + $0x118] sm:$0xff] }
0x1b71   : > { %5876 = vst [vmem:[#allocation2 + $0x140] sm:$0xf] %v5874_v57  ;;  %v5887_v39 = vpop.permute.xlu0 %5886  ;;  %v7381_v53 = vpack.c.bf16 %v5968_v58, %v10665_v61 }
0x1b72   : > { %v5889_v15 = vpop.permute.xlu1 %5888  ;;  %7380 = vmatpush1.bf16.msra.mxu1 %v7379_v21 }
0x1b73   : > { %v5891_v26 = vsel %vm11405_vm6, %v5887_v39, %v5889_v15  ;;  %7382 = vmatprep.subr.bf16.mxu1 %v7381_v53  ;;  %v5967_v44 = vld [vmem:[#allocation2 + $0x110] sm:$0xff]  ;;  %v6381_v53 = vld [vmem:[#allocation2 + $0x38] sm:$0xff] }
0x1b74   : > { %5895 = vst [vmem:[#allocation2 + $0x178] sm:$0xf] %v5891_v26  ;;  %v7383_v16 = vpack.c.bf16 %v5967_v44, %v10673_v12 }
0x1b75   : > { %v5885_v50 = vpop.permute.xlu0 %5884 }
0x1b76   : > { %v5890_v46 = vsel %vm11406_vm9, %v5885_v50, %v5887_v39  ;;  %v5918_v55 = vpop.permute.xlu1 %5917  ;;  %7384 = vmatpush1.bf16.msra.mxu1 %v7383_v16  ;;  %vm11413_vm9 = vcmask 1039360  }
0x1b77   : > { %5894 = vst [vmem:[#allocation2 + $0x170] sm:$0xf] %v5890_v46  ;;  %7386 = vmatprep.subr.bf16.mxu1 %v10685_v6  ;;  %v5974_v61 = vld [vmem:[#allocation2 + $0x148] sm:$0xff] }
0x1b78   : > { %v7389_v43 = vpack.c.bf16 %v10682_v25, %v5974_v61  ;;  %v5973_v13 = vld [vmem:[#allocation2 + $0x140] sm:$0xff] }
0x1b79   : > { %v5920_v24 = vpop.permute.xlu0 %5919  ;;  %v7391_v6 = vpack.c.bf16 %v10690_v4, %v5973_v13 }
0x1b7a   : > { %v5922_v12 = vsel %vm11407_vm8, %v5918_v55, %v5920_v24  ;;  %v5916_v18 = vpop.permute.xlu1 %5915  ;;  %7388 = vmatpush1.bf16.msra.mxu1 %v10680_v8 }
0x1b7b   : > { %v5926_v59 = vsel %vm5911_vm4, %v5922_v12, 0.0  ;;  %v5921_v10 = vsel %vm11408_vm15, %v5916_v18, %v5918_v55  ;;  %7390 = vmatprep.subr.bf16.mxu1 %v7389_v43  ;;  %v5980_v60 = vld [vmem:[#allocation2 + $0x178] sm:$0xff]  ;;  %vm11414_vm4 = vmmov %vm11413_vm9  ;;  %vm11415_vm15 = vcmask 1031168  }
0x1b7c   : > { %5928 = vst [vmem:[#allocation2 + $0x1a8] sm:$0xf] %v5926_v59  ;;  %v5925_v51 = vsel %vm5910_vm3, %v5921_v10, 0.0  ;;  %v7393_v52 = vpack.c.bf16 %v5980_v60, %v10693_v42 }
0x1b7d   : > { %5927 = vst [vmem:[#allocation2 + $0x1a0] sm:$0xf] %v5925_v51 }
0x1b7e   : > { %7392 = vmatpush1.bf16.msra.mxu1 %v7391_v6  ;;  %v5979_v25 = vld [vmem:[#allocation2 + $0x170] sm:$0xff] }
0x1b7f   : > { %7394 = vmatprep.subr.bf16.mxu1 %v7393_v52  ;;  %v7395_v23 = vpack.c.bf16 %v5979_v25, %v10699_v3 }
0x1b82   : > { %7396 = vmatpush1.bf16.msra.mxu1 %v7395_v23 }
0x1b83   : > { %7398 = vmatprep.subr.bf16.mxu1 %v10705_v30  ;;  %v5986_v8 = vld [vmem:[#allocation2 + $0x1a8] sm:$0xff] }
0x1b84   : > { %v5985_v19 = vld [vmem:[#allocation2 + $0x1a0] sm:$0xff] }
0x1b86   : > { %7400 = vmatpush1.bf16.msra.mxu1 %v10703_v38  ;;  %v6088_v38 = vld [vmem:[%s10963_s5] ss:$2 sm:$0x3] }
0x1b87   : > { %6048 = vmatprep.subr.mxu1 %v5986_v8  ;;  %vm6089_vm12 = vcmp.gt.f32.partialorder %v6088_v38, 0.5 }
0x1b8a   : > { %6049 = vmatpush1.msra.mxu1 %v5985_v19  ;;  %v5990_v4 = vpop.permute.xlu0 %5989 }
0x1b8b   : > { %6061 = vmatmul.mubr.f32.vlgmr.msra.gmra.mrb[12].mxu1 %v10753_v35  ;;  %v6090_v35 = vsel %vm6089_vm12, 1, %v7716_v1  ;;  %vm11419_vm12 = vcmask 916480  }
0x1b8c   : > { %v6094_v48 = vrot.slane %v6090_v35, %v7842_v9  ;;  %v6098_v36 = vrot.slane %v6090_v35, %v7839_v7 }
0x1b8e   : > { %vm6099_vm5 = vcmp.eq.s32.totalorder %v6094_v48, 1  ;;  %vm6100_vm14 = vcmp.eq.s32.totalorder %v6098_v36, 1 }
0x1c5e   : > { %v6062_v17 = vpop.f32.mrb[12].mxu1 }
0x1c5f   : > { %v6063_v42 = vadd.f32 %v6062_v17, %v5990_v4  ;;  %v6064_v22 = vpop.f32.mrb[13].mxu1 }
0x1c60   : > { %v6065_v32 = vadd.f32 %v6064_v22, %v5990_v4  ;;  %v6666_v22 = vld [vmem:[%s10961_s3 + $0x28] sm:$0xff] }
0x1c61   : > { %vm6067_vm1 = vcmp.ge.f32.partialorder %v6063_v42, 0.0  ;;  %v6069_v27 = vmul.f32 0.2, %v6063_v42  ;;  %6668 = vmatprep.mubr.msk.f32.mxu0 %vm11412_vm11, %v6666_v22 }
0x1c62   : > { %vm6068_vm0 = vcmp.ge.f32.partialorder %v6065_v32, 0.0  ;;  %v6070_v3 = vmul.f32 0.2, %v6065_v32 }
0x1c63   : > { %v6071_v0 = vsel %vm6067_vm1, %v6063_v42, %v6069_v27  ;;  %v6667_v42 = vld [vmem:[%s10962_s4 + $0x10] sm:$0xff]  ;;  %v6174_v27 = vld [vmem:[%s10963_s5] ss:$2 sm:$0x3]  ;;  %vm11416_vm1 = vmmov %vm11415_vm15 }
0x1c64   : > { %6075 = vrot.lane.b32.xlu1 %v6071_v0, %s7717_s28  ;;  %v6072_v30 = vsel %vm6068_vm0, %v6065_v32, %v6070_v3  ;;  %v6662_v32 = vld [vmem:[%s10963_s5 + $0x1] ss:$2 sm:$0x3]  ;;  %vm6175_vm6 = vcmp.gt.f32.partialorder %v6174_v27, 0.5 }
0x1c65   : > { %6077 = vrot.lane.b32.xlu0 %v6072_v30, %s7717_s28  ;;  %vm6136_vm2 = vcmp.gt.f32.partialorder %v6662_v32, 0.5  ;;  %v6176_v36 = vsel %vm6175_vm6, 1, %v7716_v1  ;;  %vm11425_vm6 = vcmask 900096  }
0x1c66   : > { %v6137_v0 = vsel %vm6136_vm2, 1, %v7716_v1 }
0x1c67   : > { %v6145_v38 = vrot.slane %v6137_v0, %v7839_v7 }
0x1c69   : > { %vm6147_vm3 = vcmp.eq.s32.totalorder %v6145_v38, 1  ;;  %v6395_v38 = vld [vmem:[#allocation2 + $0xa8] sm:$0xff] }
0x1cd6   : > { %v6076_v28 = vpop.permute.xlu1 %6075 }
0x1cd7   : > { %6083 = vst.msk [vmem:[#allocation3] sm:$0xf] %vm11409_vm10, %v6076_v28  ;;  %v6078_v63 = vpop.permute.xlu0 %6077 }
0x1cd8   : > { %v6079_v2 = vsel %vm11410_vm7, %v6076_v28, %v6078_v63  ;;  %6085 = vst.msk [vmem:[#allocation3 + $0x10] sm:$0xf] %vm11411_vm13, %v6078_v63  ;;  %v6141_v28 = vrot.slane %v6137_v0, %v7842_v9  ;;  %vm11422_vm13 = vmmov %vm11419_vm12 }
0x1cd9   : > { %6084 = vst [vmem:[#allocation3 + $0x8] sm:$0xf] %v6079_v2 }
0x1cda   : > { %vm6146_vm8 = vcmp.eq.s32.totalorder %v6141_v28, 1 }
0x1cde   : > { %v6111_v56 = vld [vmem:[#allocation3] sm:$0xf] }
0x1cdf   : > { %v6086_v49 = vld [vmem:[#allocation3] sm:$0xf]  ;;  %v6117_v29 = vrot.slane %v6111_v56, 4  ;;  %v6113_v54 = vld [vmem:[#allocation3 + $0x10] sm:$0xf] }
0x1ce0   : > { %v6101_v40 = vsel %vm6099_vm5, %v6086_v49, 0.0  ;;  %v6119_v45 = vrot.slane %v6113_v54, 4  ;;  %v6112_v41 = vld [vmem:[#allocation3 + $0x8] sm:$0xf]  ;;  %v6134_v21 = vld [vmem:[#allocation3 + $0x10] sm:$0xf]  ;;  %v6184_v49 = vrot.slane %v6176_v36, %v7839_v7 }
0x1ce1   : > { %v6105_v47 = vrot.slane %v6101_v40, 4  ;;  %6120 = vrot.lane.b32.xlu1 %v6117_v29, %s7718_s7  ;;  %v6087_v34 = vld [vmem:[#allocation3 + $0x8] sm:$0xf]  ;;  %v6118_v33 = vrot.slane %v6112_v41, 4  ;;  %v6132_v58 = vld [vmem:[#allocation3] sm:$0xf] }
0x1ce2   : > { %6124 = vrot.lane.b32.xlu0 %v6119_v45, %s7718_s7  ;;  %v6102_v37 = vsel %vm6100_vm14, %v6087_v34, 0.0  ;;  %v6133_v57 = vld [vmem:[#allocation3 + $0x8] sm:$0xf]  ;;  %v6173_v15 = vld [vmem:[#allocation3 + $0x10] sm:$0xf]  ;;  %v6180_v34 = vrot.slane %v6176_v36, %v7842_v9  ;;  %vm10892_vm0 = vcmp.eq.s32.totalorder %v6184_v49, 1 }
0x1ce3   : > { %6109 = vst [vmem:[#allocation2 + $0x20] sm:$0xf0] %v6105_v47  ;;  %v6106_v31 = vrot.slane %v6102_v37, 4  ;;  %v6172_v39 = vld [vmem:[#allocation3 + $0x8] sm:$0xf]  ;;  %vm11423_vm14 = vcmask 908288  }
0x1ce4   : > { %v6210_v44 = vld [vmem:[#allocation3] sm:$0xf]  ;;  %v6212_v55 = vld [vmem:[#allocation3 + $0x10] sm:$0xf]  ;;  %v6211_v61 = vld [vmem:[#allocation3 + $0x8] sm:$0xf] }
0x1ce5   : > { %6122 = vrot.lane.b32.xlu1 %v6118_v33, %s7718_s7  ;;  %6110 = vst [vmem:[#allocation2 + $0x28] sm:$0xf0] %v6106_v31  ;;  %v6171_v20 = vld [vmem:[#allocation3] sm:$0xf]  ;;  %v6216_v46 = vrot.slane %v6210_v44, 4  ;;  %v6218_v43 = vrot.slane %v6212_v55, 4  ;;  %vm11424_vm11 = vmmov %vm11423_vm14 }
0x1ce6   : > { %6153 = vrot.lane.b32.xlu0 %v6133_v57, %s7720_s8  ;;  %v6217_v24 = vrot.slane %v6211_v61, 4  ;;  %v6232_v13 = vld [vmem:[#allocation3 + $0x8] sm:$0xf]  ;;  %v6233_v12 = vld [vmem:[#allocation3 + $0x10] sm:$0xf]  ;;  %vm10899_vm7 = vcmp.eq.s32.totalorder %v6180_v34, 1 }
0x1ce7   : > { %v6231_v18 = vld [vmem:[#allocation3] sm:$0xf]  ;;  %v6271_v59 = vld [vmem:[#allocation3 + $0x8] sm:$0xf]  ;;  %v6272_v10 = vld [vmem:[#allocation3 + $0x10] sm:$0xf] }
0x1ce8   : > { %v6310_v60 = vld [vmem:[#allocation3 + $0x8] sm:$0xf]  ;;  %v6270_v51 = vld [vmem:[#allocation3] sm:$0xf]  ;;  %v6311_v6 = vld [vmem:[#allocation3 + $0x10] sm:$0xf] }
0x1ce9   : > { %6155 = vrot.lane.b32.xlu1 %v6134_v21, %s7720_s8  ;;  %v6316_v52 = vrot.slane %v6310_v60, 4  ;;  %v6317_v25 = vrot.slane %v6311_v6, 4  ;;  %v6309_v23 = vld [vmem:[#allocation3] sm:$0xf]  ;;  %v6331_v19 = vld [vmem:[#allocation3 + $0x8] sm:$0xf] }
0x1cea   : > { %6151 = vrot.lane.b32.xlu0 %v6132_v58, %s7720_s8  ;;  %v6378_v14 = vld [vmem:[#allocation2 + $0x20] sm:$0xff]  ;;  %v6315_v8 = vrot.slane %v6309_v23, 4  ;;  %v6330_v17 = vld [vmem:[#allocation3] sm:$0xf]  ;;  %v6383_v21 = vld [vmem:[#allocation2 + $0x48] sm:$0xff] }
0x1ceb   : > { %v7407_v50 = vpack.c.bf16 %v6380_v5, %v6378_v14  ;;  %v6332_v4 = vld [vmem:[#allocation3 + $0x10] sm:$0xf]  ;;  %v6400_v57 = vld [vmem:[#allocation2 + $0xd0] sm:$0xff] }
0x1cec   : > { %v6379_v26 = vld [vmem:[#allocation2 + $0x28] sm:$0xff]  ;;  %v6663_v33 = vld [vmem:[%s10963_s5 + $0x1] ss:$2 sm:$0x3] }
0x1ced   : > { %6192 = vrot.lane.b32.xlu1 %v6172_v39, %s7721_s9  ;;  %v7405_v16 = vpack.c.bf16 %v6381_v53, %v6379_v26  ;;  %v6382_v58 = vld [vmem:[#allocation2 + $0x40] sm:$0xff]  ;;  %vm6235_vm10 = vcmp.gt.f32.partialorder %v6663_v33, 0.5  ;;  %v6399_v33 = vld [vmem:[#allocation2 + $0xc8] sm:$0xff] }
0x1cee   : > { %6194 = vrot.lane.b32.xlu0 %v6173_v15, %s7721_s9  ;;  %v6389_v15 = vld [vmem:[#allocation2 + $0x78] sm:$0xff] }
0x1cef   : > { %7406 = vmatprep.subr.bf16.mxu0 %v7405_v16 }
0x1cf0   : > { %7408 = vmatpush1.bf16.msra.mxu0 %v7407_v50 }
0x1cf1   : > { %6190 = vrot.lane.b32.xlu1 %v6171_v20, %s7721_s9  ;;  %v6387_v20 = vld [vmem:[#allocation2 + $0x68] sm:$0xff] }
0x1cf2   : > { %6219 = vrot.lane.b32.xlu0 %v6216_v46, %s7722_s10  ;;  %v7413_v61 = vpack.c.bf16 %v6389_v15, %v6387_v20  ;;  %v6398_v15 = vld [vmem:[#allocation2 + $0xc0] sm:$0xff] }
0x1cf5   : > { %6223 = vrot.lane.b32.xlu1 %v6218_v43, %s7722_s10  ;;  %v6388_v43 = vld [vmem:[#allocation2 + $0x70] sm:$0xff] }
0x1cf6   : > { %6221 = vrot.lane.b32.xlu0 %v6217_v24, %s7722_s10 }
0x1cf9   : > { %6252 = vrot.lane.b32.xlu1 %v6232_v13, %s7723_s11 }
0x1cfa   : > { %6254 = vrot.lane.b32.xlu0 %v6233_v12, %s7723_s11  ;;  %v6236_v12 = vsel %vm6235_vm10, 1, %v7716_v1 }
0x1cfb   : > { %v6244_v23 = vrot.slane %v6236_v12, %v7839_v7  ;;  %v6240_v27 = vrot.slane %v6236_v12, %v7842_v9  ;;  %v6404_v12 = vld [vmem:[#allocation2 + $0xf0] sm:$0xff] }
0x1cfd   : > { %6250 = vrot.lane.b32.xlu1 %v6231_v18, %s7723_s11  ;;  %vm6246_vm2 = vcmp.eq.s32.totalorder %v6244_v23, 1  ;;  %v6413_v23 = vld [vmem:[#allocation2 + $0x138] sm:$0xff] }
0x1cfe   : > { %6291 = vrot.lane.b32.xlu0 %v6271_v59, %s7724_s12  ;;  %v6386_v59 = vld [vmem:[#allocation2 + $0x60] sm:$0xff] }
0x1d01   : > { %6293 = vrot.lane.b32.xlu1 %v6272_v10, %s7724_s12  ;;  %v6273_v10 = vld [vmem:[%s10963_s5] ss:$2 sm:$0x3] }
0x1d02   : > { %6289 = vrot.lane.b32.xlu0 %v6270_v51, %s7724_s12  ;;  %v7415_v51 = vpack.c.bf16 %v6388_v43, %v6386_v59  ;;  %vm6274_vm5 = vcmp.gt.f32.partialorder %v6273_v10, 0.5 }
0x1d03   : > { %v6275_v0 = vsel %vm6274_vm5, 1, %v7716_v1  ;;  %vm11435_vm5 = vcmask 769024  }
0x1d04   : > { %v6283_v36 = vrot.slane %v6275_v0, %v7839_v7 }
0x1d05   : > { %6320 = vrot.lane.b32.xlu1 %v6316_v52, %s7725_s13 }
0x1d06   : > { %6322 = vrot.lane.b32.xlu0 %v6317_v25, %s7725_s13  ;;  %v6393_v25 = vld [vmem:[#allocation2 + $0x98] sm:$0xff] }
0x1d09   : > { %6318 = vrot.lane.b32.xlu1 %v6315_v8, %s7725_s13 }
0x1d0a   : > { %6351 = vrot.lane.b32.xlu0 %v6331_v19, %s7726_s14 }
0x1d0d   : > { %6353 = vrot.lane.b32.xlu1 %v6332_v4, %s7726_s14 }
0x1d0e   : > { %6349 = vrot.lane.b32.xlu0 %v6330_v17, %s7726_s14  ;;  %v6392_v17 = vld [vmem:[#allocation2 + $0x90] sm:$0xff] }
0x1d11   : > { %6430 = vperm.xlu1 %7473, %v6667_v42  }
0x1d53   : > { %v6121_v3 = vpop.permute.xlu1 %6120 }
0x1d54   : > { %v6125_v30 = vpop.permute.xlu0 %6124 }
0x1d57   : > { %v6123_v35 = vpop.permute.xlu1 %6122 }
0x1d58   : > { %v6126_v63 = vsel %vm11413_vm9, %v6121_v3, %v6123_v35  ;;  %v6127_v2 = vsel %vm11414_vm4, %v6123_v35, %v6125_v30  ;;  %v6154_v48 = vpop.permute.xlu0 %6153  ;;  %vm10916_vm9 = vcmp.eq.s32.totalorder %v6240_v27, 1  ;;  %vm11428_vm4 = vmmov %vm11425_vm6 }
0x1d59   : > { %6130 = vst [vmem:[#allocation2 + $0x50] sm:$0xf0] %v6126_v63  ;;  %6131 = vst [vmem:[#allocation2 + $0x58] sm:$0xf0] %v6127_v2 }
0x1d5b   : > { %v6156_v56 = vpop.permute.xlu1 %6155 }
0x1d5c   : > { %v6158_v29 = vsel %vm11415_vm15, %v6154_v48, %v6156_v56  ;;  %v6152_v54 = vpop.permute.xlu0 %6151  ;;  %v6401_v56 = vld [vmem:[#allocation2 + $0xd8] sm:$0xff]  ;;  %vm11431_vm15 = vcmask 785408  }
0x1d5d   : > { %v6162_v40 = vsel %vm6147_vm3, %v6158_v29, 0.0  ;;  %v6157_v45 = vsel %vm11416_vm1, %v6152_v54, %v6154_v48  ;;  %v6394_v54 = vld [vmem:[#allocation2 + $0xa0] sm:$0xff]  ;;  %vm10928_vm3 = vcmp.eq.s32.totalorder %v6283_v36, 1 }
0x1d5e   : > { %v6166_v41 = vrot.slane %v6162_v40, 4  ;;  %v6161_v47 = vsel %vm6146_vm8, %v6157_v45, 0.0  ;;  %v6279_v45 = vrot.slane %v6275_v0, %v7842_v9 }
0x1d5f   : > { %v6165_v37 = vrot.slane %v6161_v47, 4  ;;  %v6193_v31 = vpop.permute.xlu1 %6192 }
0x1d60   : > { %6170 = vst [vmem:[#allocation2 + $0x88] sm:$0xf0] %v6166_v41  ;;  %v6195_v39 = vpop.permute.xlu0 %6194  ;;  %v6385_v53 = vld [vmem:[#allocation2 + $0x58] sm:$0xff]  ;;  %v6384_v14 = vld [vmem:[#allocation2 + $0x50] sm:$0xff]  ;;  %vm6284_vm8 = vcmp.eq.s32.totalorder %v6279_v45, 1 }
0x1d61   : > { %6169 = vst [vmem:[#allocation2 + $0x80] sm:$0xf0] %v6165_v37  ;;  %v6197_v26 = vsel %vm11419_vm12, %v6193_v31, %v6195_v39  ;;  %v7409_v44 = vpack.c.bf16 %v6385_v53, %v6383_v21  ;;  %v7411_v16 = vpack.c.bf16 %v6384_v14, %v6382_v58  ;;  %v6664_v21 = vld [vmem:[%s10963_s5 + $0x1] ss:$2 sm:$0x3]  ;;  %vm11433_vm12 = vcmask 777216  }
0x1d62   : > { %v6201_v5 = vsel %vm10892_vm0, %v6197_v26, 0.0  ;;  %vm6334_vm1 = vcmp.gt.f32.partialorder %v6664_v21, 0.5  ;;  %vm11432_vm0 = vmmov %vm11431_vm15  ;;  %v6422_v39 = vld [vmem:[#allocation2 + $0x180] sm:$0xff] }
0x1d63   : > { %v6205_v46 = vrot.slane %v6201_v5, 4  ;;  %v6191_v55 = vpop.permute.xlu1 %6190  ;;  %7410 = vmatprep.subr.bf16.mxu0 %v7409_v44  ;;  %v6405_v5 = vld [vmem:[#allocation2 + $0xf8] sm:$0xff]  ;;  %vm11434_vm10 = vmmov %vm11433_vm12 }
0x1d64   : > { %v6196_v24 = vsel %vm11422_vm13, %v6191_v55, %v6193_v31  ;;  %v6220_v13 = vpop.permute.xlu0 %6219  ;;  %7412 = vmatpush1.bf16.msra.mxu0 %v7411_v16  ;;  %v7425_v31 = vpack.c.bf16 %v6401_v56, %v6399_v33  ;;  %v7427_v16 = vpack.c.bf16 %v6400_v57, %v6398_v15  ;;  %v6425_v33 = vld [vmem:[#allocation2 + $0x198] sm:$0xff]  ;;  %v6423_v57 = vld [vmem:[#allocation2 + $0x188] sm:$0xff]  ;;  %v6665_v15 = vld [vmem:[%s10961_s3 + $0x20] sm:$0xff] }
0x1d65   : > { %6209 = vst [vmem:[#allocation2 + $0xb8] sm:$0xf0] %v6205_v46  ;;  %v6200_v18 = vsel %vm10899_vm7, %v6196_v24, 0.0  ;;  %7414 = vmatprep.subr.bf16.mxu0 %v7413_v61  ;;  %v7449_v21 = vpack.c.bf16 %v6425_v33, %v6423_v57 }
0x1d66   : > { %v6204_v60 = vrot.slane %v6200_v18, 4  ;;  %v6335_v18 = vsel %vm6334_vm1, 1, %v7716_v1 }
0x1d67   : > { %v6224_v6 = vpop.permute.xlu1 %6223  ;;  %v6391_v52 = vld [vmem:[#allocation2 + $0x88] sm:$0xff]  ;;  %v6339_v1 = vrot.slane %v6335_v18, %v7842_v9 }
0x1d68   : > { %6208 = vst [vmem:[#allocation2 + $0xb0] sm:$0xf0] %v6204_v60  ;;  %v6222_v8 = vpop.permute.xlu0 %6221  ;;  %7416 = vmatpush1.bf16.msra.mxu0 %v7415_v51  ;;  %v7417_v19 = vpack.c.bf16 %v6393_v25, %v6391_v52  ;;  %v6390_v4 = vld [vmem:[#allocation2 + $0x80] sm:$0xff]  ;;  %v6407_v60 = vld [vmem:[#allocation2 + $0x108] sm:$0xff]  ;;  %v6343_v25 = vrot.slane %v6335_v18, %v7839_v7 }
0x1d69   : > { %v6225_v42 = vsel %vm11423_vm14, %v6220_v13, %v6222_v8  ;;  %v6226_v22 = vsel %vm11424_vm11, %v6222_v8, %v6224_v6  ;;  %v7419_v32 = vpack.c.bf16 %v6392_v17, %v6390_v4  ;;  %vm6344_vm13 = vcmp.eq.s32.totalorder %v6339_v1, 1  ;;  %v6410_v7 = vld [vmem:[#allocation2 + $0x120] sm:$0xff]  ;;  %vm11436_vm14 = vmmov %vm11435_vm5 }
0x1d6a   : > { %6229 = vst [vmem:[#allocation2 + $0xe0] sm:$0xf0] %v6225_v42  ;;  %6230 = vst [vmem:[#allocation2 + $0xe8] sm:$0xf0] %v6226_v22  ;;  %7418 = vmatprep.subr.bf16.mxu0 %v7417_v19  ;;  %v6406_v19 = vld [vmem:[#allocation2 + $0x100] sm:$0xff]  ;;  %vm6345_vm7 = vcmp.eq.s32.totalorder %v6343_v25, 1 }
0x1d6b   : > { %v6253_v3 = vpop.permute.xlu1 %6252 }
0x1d6c   : > { %v6255_v30 = vpop.permute.xlu0 %6254  ;;  %7420 = vmatpush1.bf16.msra.mxu0 %v7419_v32  ;;  %v6397_v35 = vld [vmem:[#allocation2 + $0xb8] sm:$0xff]  ;;  %v6411_v32 = vld [vmem:[#allocation2 + $0x128] sm:$0xff] }
0x1d6d   : > { %v6257_v28 = vsel %vm11425_vm6, %v6253_v3, %v6255_v30  ;;  %v7421_v63 = vpack.c.bf16 %v6397_v35, %v6395_v38  ;;  %v7437_v27 = vpack.c.bf16 %v6413_v23, %v6411_v32  ;;  %v6417_v38 = vld [vmem:[#allocation2 + $0x158] sm:$0xff] }
0x1d6e   : > { %v6261_v2 = vsel %vm6246_vm2, %v6257_v28, 0.0 }
0x1d6f   : > { %v6265_v49 = vrot.slane %v6261_v2, 4  ;;  %v6251_v29 = vpop.permute.xlu1 %6250  ;;  %7422 = vmatprep.subr.bf16.mxu0 %v7421_v63  ;;  %v6396_v40 = vld [vmem:[#allocation2 + $0xb0] sm:$0xff] }
0x1d70   : > { %v6256_v41 = vsel %vm11428_vm4, %v6251_v29, %v6253_v3  ;;  %v6292_v47 = vpop.permute.xlu0 %6291  ;;  %v7423_v34 = vpack.c.bf16 %v6396_v40, %v6394_v54  ;;  %v6412_v3 = vld [vmem:[#allocation2 + $0x130] sm:$0xff] }
0x1d71   : > { %6269 = vst [vmem:[#allocation2 + $0x118] sm:$0xf0] %v6265_v49  ;;  %v6260_v37 = vsel %vm10916_vm9, %v6256_v41, 0.0  ;;  %v6403_v53 = vld [vmem:[#allocation2 + $0xe8] sm:$0xff]  ;;  %v6402_v55 = vld [vmem:[#allocation2 + $0xe0] sm:$0xff]  ;;  %v7439_v9 = vpack.c.bf16 %v6412_v3, %v6410_v7  ;;  %v6416_v40 = vld [vmem:[#allocation2 + $0x150] sm:$0xff] }
0x1d72   : > { %v6264_v58 = vrot.slane %v6260_v37, 4  ;;  %7424 = vmatpush1.bf16.msra.mxu0 %v7423_v34  ;;  %v7429_v46 = vpack.c.bf16 %v6405_v5, %v6403_v53  ;;  %v7431_v10 = vpack.c.bf16 %v6404_v12, %v6402_v55  ;;  %v6419_v41 = vld [vmem:[#allocation2 + $0x168] sm:$0xff]  ;;  %v6418_v37 = vld [vmem:[#allocation2 + $0x160] sm:$0xff] }
0x1d73   : > { %v6294_v14 = vpop.permute.xlu1 %6293  ;;  %7426 = vmatprep.subr.bf16.mxu0 %v7425_v31  ;;  %v7489_v12 = vld [vmem:[%s7830_s27] sm:$0xff] }
0x1d74   : > { %6268 = vst [vmem:[#allocation2 + $0x110] sm:$0xf0] %v6264_v58  ;;  %v6296_v26 = vsel %vm11431_vm15, %v6292_v47, %v6294_v14  ;;  %v6290_v44 = vpop.permute.xlu0 %6289  ;;  %v6424_v58 = vld [vmem:[#allocation2 + $0x190] sm:$0xff] }
0x1d75   : > { %v6300_v50 = vsel %vm10928_vm3, %v6296_v26, 0.0  ;;  %v6295_v20 = vsel %vm11432_vm0, %v6290_v44, %v6292_v47  ;;  %v7451_v53 = vpack.c.bf16 %v6424_v58, %v6422_v39 }
0x1d76   : > { %v6304_v61 = vrot.slane %v6300_v50, 4  ;;  %v6299_v43 = vsel %vm6284_vm8, %v6295_v20, 0.0  ;;  %7428 = vmatpush1.bf16.msra.mxu0 %v7427_v16 }
0x1d77   : > { %v6303_v24 = vrot.slane %v6299_v43, 4  ;;  %v6321_v13 = vpop.permute.xlu1 %6320  ;;  %7430 = vmatprep.subr.bf16.mxu0 %v7429_v46 }
0x1d78   : > { %6308 = vst [vmem:[#allocation2 + $0x148] sm:$0xf0] %v6304_v61  ;;  %v6323_v59 = vpop.permute.xlu0 %6322  ;;  %v6409_v51 = vld [vmem:[#allocation2 + $0x118] sm:$0xff] }
0x1d79   : > { %6307 = vst [vmem:[#allocation2 + $0x140] sm:$0xf0] %v6303_v24  ;;  %v6325_v6 = vsel %vm11433_vm12, %v6321_v13, %v6323_v59  ;;  %v7433_v52 = vpack.c.bf16 %v6409_v51, %v6407_v60  ;;  %v7490_v59 = vld [vmem:[%s7830_s27 + $0x8] sm:$0xff] }
0x1d7a   : > { %6329 = vst [vmem:[#allocation2 + $0x178] sm:$0xf0] %v6325_v6  ;;  %7432 = vmatpush1.bf16.msra.mxu0 %v7431_v10 }
0x1d7b   : > { %v6319_v8 = vpop.permute.xlu1 %6318  ;;  %7434 = vmatprep.subr.bf16.mxu0 %v7433_v52  ;;  %v6408_v4 = vld [vmem:[#allocation2 + $0x110] sm:$0xff] }
0x1d7c   : > { %v6324_v17 = vsel %vm11434_vm10, %v6319_v8, %v6321_v13  ;;  %v6352_v42 = vpop.permute.xlu0 %6351  ;;  %v7435_v22 = vpack.c.bf16 %v6408_v4, %v6406_v19 }
0x1d7d   : > { %6328 = vst [vmem:[#allocation2 + $0x170] sm:$0xf0] %v6324_v17 }
0x1d7e   : > { %7436 = vmatpush1.bf16.msra.mxu0 %v7435_v22 }
0x1d7f   : > { %v6354_v0 = vpop.permute.xlu1 %6353  ;;  %7438 = vmatprep.subr.bf16.mxu0 %v7437_v27  ;;  %v6415_v30 = vld [vmem:[#allocation2 + $0x148] sm:$0xff] }
0x1d80   : > { %v6356_v35 = vsel %vm11435_vm5, %v6352_v42, %v6354_v0  ;;  %v6350_v28 = vpop.permute.xlu0 %6349  ;;  %v7441_v63 = vpack.c.bf16 %v6417_v38, %v6415_v30  ;;  %v6414_v36 = vld [vmem:[#allocation2 + $0x140] sm:$0xff] }
0x1d81   : > { %v6360_v2 = vsel %vm6345_vm7, %v6356_v35, 0.0  ;;  %v6355_v48 = vsel %vm11436_vm14, %v6350_v28, %v6352_v42  ;;  %v6421_v29 = vld [vmem:[#allocation2 + $0x178] sm:$0xff]  ;;  %v7443_v45 = vpack.c.bf16 %v6416_v40, %v6414_v36 }
0x1d82   : > { %v6364_v56 = vrot.slane %v6360_v2, 4  ;;  %v6359_v49 = vsel %vm6344_vm13, %v6355_v48, 0.0  ;;  %7440 = vmatpush1.bf16.msra.mxu0 %v7439_v9  ;;  %v7445_v47 = vpack.c.bf16 %v6421_v29, %v6419_v41 }
0x1d83   : > { %v6363_v54 = vrot.slane %v6359_v49, 4  ;;  %7442 = vmatprep.subr.bf16.mxu0 %v7441_v63 }
0x1d84   : > { %6368 = vst [vmem:[#allocation2 + $0x1a8] sm:$0xf0] %v6364_v56  ;;  %v6420_v34 = vld [vmem:[#allocation2 + $0x170] sm:$0xff] }
0x1d85   : > { %6367 = vst [vmem:[#allocation2 + $0x1a0] sm:$0xf0] %v6363_v54  ;;  %v7447_v31 = vpack.c.bf16 %v6420_v34, %v6418_v37 }
0x1d86   : > { %7444 = vmatpush1.bf16.msra.mxu0 %v7443_v45 }
0x1d87   : > { %7446 = vmatprep.subr.bf16.mxu0 %v7445_v47 }
0x1d8a   : > { %7448 = vmatpush1.bf16.msra.mxu0 %v7447_v31 }
0x1d8b   : > { %7450 = vmatprep.subr.bf16.mxu0 %v7449_v21  ;;  %v6427_v14 = vld [vmem:[#allocation2 + $0x1a8] sm:$0xff] }
0x1d8c   : > { %v6426_v26 = vld [vmem:[#allocation2 + $0x1a0] sm:$0xff] }
0x1d8e   : > { %7452 = vmatpush1.bf16.msra.mxu0 %v7451_v53 }
0x1d8f   : > { %6488 = vmatprep.subr.mxu0 %v6427_v14 }
0x1d90   : > { %v6431_v44 = vpop.permute.xlu1 %6430 }
0x1d92   : > { %6489 = vmatpush1.msra.mxu0 %v6426_v26 }
0x1d93   : > { %6501 = vmatmul.mubr.f32.vlgmr.msra.gmra.mrb[14].mxu0 %v6665_v15 }
0x1e66   : > { %v6502_v16 = vpop.f32.mrb[14].mxu0 }
0x1e67   : > { %v6503_v5 = vadd.f32 %v6502_v16, %v6431_v44  ;;  %v6504_v50 = vpop.f32.mrb[15].mxu0 }
0x1e68   : > { %v6505_v20 = vadd.f32 %v6504_v50, %v6431_v44 }
0x1e69   : > { %v6507_v46 = vmul.f32 0.2, %v6503_v5 }
0x1e6a   : > { %v6508_v55 = vmul.f32 0.2, %v6505_v20 }
0x1e6b   : > { %v6509_v61 = vadd.f32 %v6507_v46, %v9939_v11 }
0x1e6c   : > { %v6510_v43 = vadd.f32 %v6508_v55, %v9942_v62 }
0x1e6d   : > { %v6511_v24 = vmul.f32 0.2, %v6509_v61 }
0x1e6e   : > { %v6512_v13 = vmul.f32 0.2, %v6510_v43 }
0x1e6f   : > { %v6513_v18 = vadd.f32 %v7489_v12, %v6511_v24 }
0x1e70   : > { %v6514_v10 = vadd.f32 %v7490_v59, %v6512_v13 }
0x1e71   : > { %6515 = vst [vmem:[%s251_s23] sm:$0xff] %v6513_v18 }
0x1e72   : > { %6516 = vst [vmem:[%s251_s23 + $0x8] sm:$0xff] %v6514_v10 }
0x1e73 PF: > { %s16_s21 = sadd.s32 1, %s7713_s21  }
0x1e74   : > { %p13_p4 = scmp.ge.s32.totalorder %s16_s21, 4  }
0x1e76   :  { %15 = sbr.rel (!%p13_p4) target bundleno = 1 (0x1), region = 101 }

</bundles_post_ra>
